<compile_context>
chip_gen: v6e
topology: v6e:2x2x1
jax: 0.10.0
libtpu: 0.0.40
codegen_flags: <defaults>
</compile_context>

<pallas_src>
from functools import partial

import jax
import jax.numpy as jnp
from jax import lax
from jax.experimental import pallas as pl
from jax.experimental.pallas import tpu as pltpu


def _heads_per_block(num_heads, head_dim, sublane_tile=16):
    """Largest head group whose row count is a multiple of the bf16 sublane
    tile, so stores into the bf16 attn scratch are unmasked full tiles."""
    for hpb in range(1, num_heads + 1):
        if num_heads % hpb == 0 and (hpb * head_dim) % sublane_tile == 0:
            return hpb
    return num_heads


def cross_attention_kernel(x_ref, wqkv_ref, bqkv_ref, wo_ref, bo_ref,
                           gamma_ref, beta_ref, gavg_ref, o_ref,
                           qkv_ref, attn_ref,
                           *, num_heads, eps, heads_per_block):
    x = x_ref[...]                                   # (C, S) f32
    C, S = x.shape
    d = C // num_heads
    R = heads_per_block * d                          # rows per attn-scratch store
    n_blocks = num_heads // heads_per_block

    xb = x.astype(jnp.bfloat16)

    # Fused Q/K/V projection: one (3C, C) @ (C, S) MXU matmul (single weight
    # push, lane-dense N = S).  wq/bq rows already carry the 1/sqrt(d) scale.
    qkv = jnp.dot(wqkv_ref[...], xb,
                  preferred_element_type=jnp.float32) + bqkv_ref[...]
    qkv_ref[...] = qkv.astype(jnp.bfloat16)          # (3C, S) bf16 scratch

    def head_block(g, carry):
        r0 = pl.multiple_of(g * R, R)
        q_g = qkv_ref[pl.ds(r0, R), :]                                  # (R, S) bf16
        k_g = qkv_ref[pl.ds(pl.multiple_of(C + g * R, R), R), :]        # (R, S) bf16
        v_g = qkv_ref[pl.ds(pl.multiple_of(2 * C + g * R, R), R), :]    # (R, S) bf16

        outs = []
        for j in range(heads_per_block):
            lo = j * d
            qh = q_g[lo:lo + d, :]                   # (d, S) bf16
            kh = k_g[lo:lo + d, :]
            vh = v_g[lo:lo + d, :]
            # s[i, j] = sum_c q[c, i] * k[c, j]  (scale already folded in).
            s = lax.dot_general(qh, kh, (((0,), (0,)), ((), ())),
                                preferred_element_type=jnp.float32)     # (S, S)
            m = jnp.max(s, axis=-1, keepdims=True)
            e = jnp.exp(s - m)
            denom = jnp.sum(e, axis=-1, keepdims=True)
            p = (e * pl.reciprocal(denom, approx=True)).astype(jnp.bfloat16)
            # o[c, i] = sum_k v[c, k] * p[i, k]  -> (d, S); no transposes.
            outs.append(lax.dot_general(vh, p, (((1,), (1,)), ((), ())),
                                        preferred_element_type=jnp.float32))
        blk = outs[0] if len(outs) == 1 else jnp.concatenate(outs, axis=0)
        # Aligned (R, S) store (R is a multiple of the bf16 sublane tile).
        attn_ref[pl.ds(r0, R), :] = blk.astype(jnp.bfloat16)
        return carry

    lax.fori_loop(0, n_blocks, head_block, 0)

    # Output projection: single K = C matmul, lane-dense (C, S) output; the
    # bf16 attn scratch feeds the MXU directly (no astype pass).
    y = jnp.dot(wo_ref[...], attn_ref[...],
                preferred_element_type=jnp.float32) + bo_ref[...]

    # Fused GroupNorm + affine + residual (biased variance, as torch GroupNorm).
    # Per-channel lane reductions, tiny group-averaging matvec -> per-channel
    # group mean / E[x^2], then ONE vectorized lane-dense (C, S) store.
    sum_c = jnp.sum(y, axis=1, keepdims=True)            # (C, 1)
    sumsq_c = jnp.sum(y * y, axis=1, keepdims=True)      # (C, 1)
    mu = jnp.dot(gavg_ref[...], sum_c, preferred_element_type=jnp.float32)
    ex2 = jnp.dot(gavg_ref[...], sumsq_c, preferred_element_type=jnp.float32)
    inv = lax.rsqrt(ex2 - mu * mu + eps)                 # (C, 1)
    o_ref[...] = (y - mu) * inv * gamma_ref[...] + beta_ref[...] + x


def cross_attention(x_nchw, params, *, num_heads=8, num_groups=8, eps=1e-5):
    B, C, H, W = x_nchw.shape
    assert C % num_heads == 0 and C % num_groups == 0
    S = H * W
    d = C // num_heads
    scale = float(d) ** -0.5
    hpb = _heads_per_block(num_heads, d)

    # NCHW -> (B, C, S): pure reshape (channels-on-sublanes, spatial-on-lanes).
    x_seq = x_nchw.reshape(B, C, S)

    bf = jnp.bfloat16
    f32 = jnp.float32
    # Stacked QKV weight/bias; fold the softmax scale into the Q rows
    # (constant-folds under jit).  Weights bf16 (MXU), biases/affine f32.
    w_qkv = jnp.concatenate(
        [params["wq"] * scale, params["wk"], params["wv"]], axis=0).astype(bf)
    b_qkv = jnp.concatenate(
        [params["bq"] * scale, params["bk"], params["bv"]], axis=0
    ).reshape(3 * C, 1).astype(f32)
    wo = params["wo"].astype(bf)
    bo = params["bo"].reshape(C, 1).astype(f32)
    gamma = params["gamma"].reshape(C, 1).astype(f32)
    beta = params["beta"].reshape(C, 1).astype(f32)

    # Group-averaging matrix: gavg[i, j] = 1/(cs*S) if channels i and j share a
    # GroupNorm group, else 0.  Vectorizes the per-group mean / E[x^2].
    cs = C // num_groups
    gidx = jnp.arange(C) // cs
    gavg = (gidx[:, None] == gidx[None, :]).astype(f32) / float(cs * S)

    kern = partial(cross_attention_kernel, num_heads=num_heads, eps=eps,
                   heads_per_block=hpb)

    def rep(shape):
        return pl.BlockSpec(shape, lambda b: (0, 0))

    in_specs = [
        pl.BlockSpec((None, C, S), lambda b: (b, 0, 0)),   # x -> kernel sees (C, S)
        rep((3 * C, C)), rep((3 * C, 1)),                  # w_qkv, b_qkv
        rep((C, C)), rep((C, 1)),                          # wo, bo
        rep((C, 1)), rep((C, 1)),                          # gamma, beta
        rep((C, C)),                                       # gavg
    ]

    out_seq = pl.pallas_call(
        kern,
        out_shape=jax.ShapeDtypeStruct((B, C, S), jnp.float32),
        grid=(B,),
        in_specs=in_specs,
        out_specs=pl.BlockSpec((None, C, S), lambda b: (b, 0, 0)),
        scratch_shapes=[pltpu.VMEM((3 * C, S), jnp.bfloat16),   # fused QKV
                        pltpu.VMEM((C, S), jnp.bfloat16)],      # attention out
        compiler_params=pltpu.CompilerParams(
            dimension_semantics=("parallel",)),
    )(x_seq, w_qkv, b_qkv, wo, bo, gamma, beta, gavg)

    return out_seq.reshape(B, C, H, W)


def reference(x, params, *, num_heads=8, num_groups=8, eps=1e-5):
    """Pure-JAX f32 re-implementation of the PyTorch forward.

    Weight layout matches torch.nn.Linear: W is (out, in), y = x @ W.T + b.
    """
    B, C, H, W = x.shape
    S = H * W
    d = C // num_heads
    xs = jnp.transpose(x.reshape(B, C, S), (0, 2, 1))            # (B, S, C)
    q = xs @ params["wq"].T + params["bq"]
    k = xs @ params["wk"].T + params["bk"]
    v = xs @ params["wv"].T + params["bv"]
    q, k, v = [t.reshape(B, S, num_heads, d).transpose(0, 2, 1, 3)
               for t in (q, k, v)]
    attn = jnp.einsum("bhqd,bhkd->bhqk", q, k) * (d ** -0.5)
    attn = jax.nn.softmax(attn, axis=-1)
    out = jnp.einsum("bhqk,bhkd->bhqd", attn, v)
    out = out.transpose(0, 2, 1, 3).reshape(B, S, C)
    out = out @ params["wo"].T + params["bo"]
    out = jnp.transpose(out, (0, 2, 1)).reshape(B, C, H, W)
    og = out.reshape(B, num_groups, C // num_groups, H, W)
    mu = og.mean(axis=(2, 3, 4), keepdims=True)
    var = ((og - mu) ** 2).mean(axis=(2, 3, 4), keepdims=True)
    on = ((og - mu) / jnp.sqrt(var + eps)).reshape(B, C, H, W)
    gamma = params["gamma"][None, :, None, None]
    beta = params["beta"][None, :, None, None]
    return on * gamma + beta + x


def make_params(key, channels):
    """Deterministic params in PyTorch nn.Linear / GroupNorm layout."""
    ks = jax.random.split(key, 10)
    ws, bs = 0.2, 0.2
    C = channels
    return {
        "wq": ws * jax.random.normal(ks[0], (C, C), jnp.float32),
        "bq": bs * jax.random.normal(ks[1], (C,), jnp.float32),
        "wk": ws * jax.random.normal(ks[2], (C, C), jnp.float32),
        "bk": bs * jax.random.normal(ks[3], (C,), jnp.float32),
        "wv": ws * jax.random.normal(ks[4], (C, C), jnp.float32),
        "bv": bs * jax.random.normal(ks[5], (C,), jnp.float32),
        "wo": ws * jax.random.normal(ks[6], (C, C), jnp.float32),
        "bo": bs * jax.random.normal(ks[7], (C,), jnp.float32),
        "gamma": 1.0 + 0.1 * jax.random.normal(ks[8], (C,), jnp.float32),
        "beta": 0.1 * jax.random.normal(ks[9], (C,), jnp.float32),
    }


if __name__ == "__main__":
    key = jax.random.PRNGKey(0)
    kx, kp = jax.random.split(key)

    # channels must be divisible by the module's 8 heads and 8 GroupNorm groups.
    B, C, H, W = 2, 32, 16, 16
    x = jax.random.normal(kx, (B, C, H, W), jnp.float32)
    params = make_params(kp, C)

    fn = jax.jit(cross_attention)
    out = jax.block_until_ready(fn(x, params))

    ref = reference(x, params)
    assert out.shape == (B, C, H, W)

    # bf16 MXU operands + approximate (EUP) softmax reciprocal + GroupNorm's
    # 1/std amplification -> looser element-wise tolerance, tight global error.
    diff = out - ref
    rel_fro = jnp.sqrt(jnp.sum(diff * diff) / jnp.sum(ref * ref))
    max_abs = jnp.max(jnp.abs(diff))
    assert rel_fro < 2.5e-2, f"relative Frobenius error {rel_fro}"
    assert jnp.allclose(out, ref, atol=1e-1, rtol=1e-1), \
        f"max abs err {max_abs}, rel err {rel_fro}"

    print("KERNEL_OK")
</pallas_src>

<mosaic_0001>
module attributes {stable_mosaic.version = 11 : i64} {
  func.func @cross_attention_kernel(%arg0: i32, %arg1: memref<1x32x256xf32, #tpu.memory_space<vmem>>, %arg2: memref<96x32xbf16, #tpu.memory_space<vmem>>, %arg3: memref<96x1xf32, #tpu.memory_space<vmem>>, %arg4: memref<32x32xbf16, #tpu.memory_space<vmem>>, %arg5: memref<32x1xf32, #tpu.memory_space<vmem>>, %arg6: memref<32x1xf32, #tpu.memory_space<vmem>>, %arg7: memref<32x1xf32, #tpu.memory_space<vmem>>, %arg8: memref<32x32xf32, #tpu.memory_space<vmem>>, %arg9: memref<1x32x256xf32, #tpu.memory_space<vmem>>, %arg10: memref<96x256xbf16, #tpu.memory_space<vmem>>, %arg11: memref<32x256xbf16, #tpu.memory_space<vmem>>) attributes {dimension_semantics = [#tpu.dimension_semantics<parallel>], iteration_bounds = array<i64: 2>, scalar_prefetch = 0 : i64, scratch_operands = 2 : i64, tpu.core_type = #tpu.core_type<tc>, window_params = [{transform_indices = @transform_0, window_bounds = array<i64: 1, 32, 256>}, {pipeline_mode = #tpu.pipeline_mode<synchronous>, transform_indices = @transform_1, window_bounds = array<i64: 96, 32>}, {pipeline_mode = #tpu.pipeline_mode<synchronous>, transform_indices = @transform_2, window_bounds = array<i64: 96, 1>}, {pipeline_mode = #tpu.pipeline_mode<synchronous>, transform_indices = @transform_3, window_bounds = array<i64: 32, 32>}, {pipeline_mode = #tpu.pipeline_mode<synchronous>, transform_indices = @transform_4, window_bounds = array<i64: 32, 1>}, {pipeline_mode = #tpu.pipeline_mode<synchronous>, transform_indices = @transform_5, window_bounds = array<i64: 32, 1>}, {pipeline_mode = #tpu.pipeline_mode<synchronous>, transform_indices = @transform_6, window_bounds = array<i64: 32, 1>}, {pipeline_mode = #tpu.pipeline_mode<synchronous>, transform_indices = @transform_7, window_bounds = array<i64: 32, 32>}, {transform_indices = @transform_8, window_bounds = array<i64: 1, 32, 256>}]} {
    %c0 = arith.constant 0 : index
    %c0_0 = arith.constant 0 : index
    %c0_1 = arith.constant 0 : index
    %0 = vector.load %arg1[%c0, %c0_0, %c0_1] : memref<1x32x256xf32, #tpu.memory_space<vmem>>, vector<1x32x256xf32>
    %1 = vector.shape_cast %0 : vector<1x32x256xf32> to vector<32x256xf32>
    %2 = arith.truncf %1 : vector<32x256xf32> to vector<32x256xbf16>
    %c0_2 = arith.constant 0 : index
    %c0_3 = arith.constant 0 : index
    %3 = vector.load %arg2[%c0_2, %c0_3] : memref<96x32xbf16, #tpu.memory_space<vmem>>, vector<96x32xbf16>
    %cst = arith.constant dense<0.000000e+00> : vector<96x256xf32>
    %4 = tpu.matmul %3, %2, %cst {dimension_numbers = #tpu.dot_dimension_numbers<[1], [0], [0], [1], [0, 0, 1, 1], [], []>} : vector<96x32xbf16>, vector<32x256xbf16>, vector<96x256xf32> -> vector<96x256xf32>
    %c0_4 = arith.constant 0 : index
    %c0_5 = arith.constant 0 : index
    %5 = vector.load %arg3[%c0_4, %c0_5] : memref<96x1xf32, #tpu.memory_space<vmem>>, vector<96x1xf32>
    %6 = vector.broadcast %5 : vector<96x1xf32> to vector<96x256xf32>
    %7 = arith.addf %4, %6 : vector<96x256xf32>
    %8 = arith.truncf %7 : vector<96x256xf32> to vector<96x256xbf16>
    %c0_6 = arith.constant 0 : index
    %c0_7 = arith.constant 0 : index
    %9 = vector.load %arg10[%c0_6, %c0_7] : memref<96x256xbf16, #tpu.memory_space<vmem>>, vector<96x256xbf16>
    tpu.vector_store %arg10[%c0_6, %c0_7], %8 {strides = array<i32>} : memref<96x256xbf16, #tpu.memory_space<vmem>>, vector<96x256xbf16>,
    %c0_i32 = arith.constant 0 : i32
    %c2_i32 = arith.constant 2 : i32
    %10 = arith.addi %c0_i32, %c2_i32 : i32
    %c1_i32 = arith.constant 1 : i32
    scf.for %arg12 = %c0_i32 to %10 step %c1_i32  : i32 {
      %c16_i32 = arith.constant 16 : i32
      %45 = arith.muli %arg12, %c16_i32 : i32
      %46 = tpu.assume_multiple %45, 16 : i32
      %47 = arith.index_cast %46 : i32 to index
      %c0_32 = arith.constant 0 : index
      %48 = vector.load %arg10[%47, %c0_32] : memref<96x256xbf16, #tpu.memory_space<vmem>>, vector<16x256xbf16>
      %c16_i32_33 = arith.constant 16 : i32
      %49 = arith.muli %arg12, %c16_i32_33 : i32
      %c32_i32 = arith.constant 32 : i32
      %50 = arith.addi %c32_i32, %49 : i32
      %51 = tpu.assume_multiple %50, 16 : i32
      %52 = arith.index_cast %51 : i32 to index
      %c0_34 = arith.constant 0 : index
      %53 = vector.load %arg10[%52, %c0_34] : memref<96x256xbf16, #tpu.memory_space<vmem>>, vector<16x256xbf16>
      %c16_i32_35 = arith.constant 16 : i32
      %54 = arith.muli %arg12, %c16_i32_35 : i32
      %c64_i32 = arith.constant 64 : i32
      %55 = arith.addi %c64_i32, %54 : i32
      %56 = tpu.assume_multiple %55, 16 : i32
      %57 = arith.index_cast %56 : i32 to index
      %c0_36 = arith.constant 0 : index
      %58 = vector.load %arg10[%57, %c0_36] : memref<96x256xbf16, #tpu.memory_space<vmem>>, vector<16x256xbf16>
      %59 = vector.extract_strided_slice %48 {offsets = [0, 0], sizes = [4, 256], strides = [1, 1]} : vector<16x256xbf16> to vector<4x256xbf16>
      %60 = vector.extract_strided_slice %53 {offsets = [0, 0], sizes = [4, 256], strides = [1, 1]} : vector<16x256xbf16> to vector<4x256xbf16>
      %61 = vector.extract_strided_slice %58 {offsets = [0, 0], sizes = [4, 256], strides = [1, 1]} : vector<16x256xbf16> to vector<4x256xbf16>
      %cst_37 = arith.constant dense<0.000000e+00> : vector<256x256xf32>
      %62 = tpu.matmul %59, %60, %cst_37 {dimension_numbers = #tpu.dot_dimension_numbers<[0], [0], [1], [1], [0, 1, 1, 1], [], []>} : vector<4x256xbf16>, vector<4x256xbf16>, vector<256x256xf32> -> vector<256x256xf32>
      %cst_38 = arith.constant dense<0xFF800000> : vector<256xf32>
      %63 = vector.multi_reduction <maximumf>, %62, %cst_38 [1] : vector<256x256xf32> to vector<256xf32>
      %64 = vector.shape_cast %63 : vector<256xf32> to vector<256x1xf32>
      %65 = vector.broadcast %64 : vector<256x1xf32> to vector<256x256xf32>
      %66 = arith.subf %62, %65 : vector<256x256xf32>
      %67 = math.exp %66 : vector<256x256xf32>
      %cst_39 = arith.constant dense<0.000000e+00> : vector<256xf32>
      %68 = vector.multi_reduction <add>, %67, %cst_39 [1] : vector<256x256xf32> to vector<256xf32>
      %69 = vector.shape_cast %68 : vector<256xf32> to vector<256x1xf32>
      %70 = tpu.reciprocal %69 {approx = true} : vector<256x1xf32> -> vector<256x1xf32>
      %71 = vector.broadcast %70 : vector<256x1xf32> to vector<256x256xf32>
      %72 = arith.mulf %67, %71 : vector<256x256xf32>
      %73 = arith.truncf %72 : vector<256x256xf32> to vector<256x256xbf16>
      %cst_40 = arith.constant dense<0.000000e+00> : vector<4x256xf32>
      %74 = tpu.matmul %61, %73, %cst_40 {dimension_numbers = #tpu.dot_dimension_numbers<[1], [1], [0], [0], [0, 0, 1, 0], [], []>} : vector<4x256xbf16>, vector<256x256xbf16>, vector<4x256xf32> -> vector<4x256xf32>
      %75 = vector.extract_strided_slice %48 {offsets = [4, 0], sizes = [4, 256], strides = [1, 1]} : vector<16x256xbf16> to vector<4x256xbf16>
      %76 = vector.extract_strided_slice %53 {offsets = [4, 0], sizes = [4, 256], strides = [1, 1]} : vector<16x256xbf16> to vector<4x256xbf16>
      %77 = vector.extract_strided_slice %58 {offsets = [4, 0], sizes = [4, 256], strides = [1, 1]} : vector<16x256xbf16> to vector<4x256xbf16>
      %cst_41 = arith.constant dense<0.000000e+00> : vector<256x256xf32>
      %78 = tpu.matmul %75, %76, %cst_41 {dimension_numbers = #tpu.dot_dimension_numbers<[0], [0], [1], [1], [0, 1, 1, 1], [], []>} : vector<4x256xbf16>, vector<4x256xbf16>, vector<256x256xf32> -> vector<256x256xf32>
      %cst_42 = arith.constant dense<0xFF800000> : vector<256xf32>
      %79 = vector.multi_reduction <maximumf>, %78, %cst_42 [1] : vector<256x256xf32> to vector<256xf32>
      %80 = vector.shape_cast %79 : vector<256xf32> to vector<256x1xf32>
      %81 = vector.broadcast %80 : vector<256x1xf32> to vector<256x256xf32>
      %82 = arith.subf %78, %81 : vector<256x256xf32>
      %83 = math.exp %82 : vector<256x256xf32>
      %cst_43 = arith.constant dense<0.000000e+00> : vector<256xf32>
      %84 = vector.multi_reduction <add>, %83, %cst_43 [1] : vector<256x256xf32> to vector<256xf32>
      %85 = vector.shape_cast %84 : vector<256xf32> to vector<256x1xf32>
      %86 = tpu.reciprocal %85 {approx = true} : vector<256x1xf32> -> vector<256x1xf32>
      %87 = vector.broadcast %86 : vector<256x1xf32> to vector<256x256xf32>
      %88 = arith.mulf %83, %87 : vector<256x256xf32>
      %89 = arith.truncf %88 : vector<256x256xf32> to vector<256x256xbf16>
      %cst_44 = arith.constant dense<0.000000e+00> : vector<4x256xf32>
      %90 = tpu.matmul %77, %89, %cst_44 {dimension_numbers = #tpu.dot_dimension_numbers<[1], [1], [0], [0], [0, 0, 1, 0], [], []>} : vector<4x256xbf16>, vector<256x256xbf16>, vector<4x256xf32> -> vector<4x256xf32>
      %91 = vector.extract_strided_slice %48 {offsets = [8, 0], sizes = [4, 256], strides = [1, 1]} : vector<16x256xbf16> to vector<4x256xbf16>
      %92 = vector.extract_strided_slice %53 {offsets = [8, 0], sizes = [4, 256], strides = [1, 1]} : vector<16x256xbf16> to vector<4x256xbf16>
      %93 = vector.extract_strided_slice %58 {offsets = [8, 0], sizes = [4, 256], strides = [1, 1]} : vector<16x256xbf16> to vector<4x256xbf16>
      %cst_45 = arith.constant dense<0.000000e+00> : vector<256x256xf32>
      %94 = tpu.matmul %91, %92, %cst_45 {dimension_numbers = #tpu.dot_dimension_numbers<[0], [0], [1], [1], [0, 1, 1, 1], [], []>} : vector<4x256xbf16>, vector<4x256xbf16>, vector<256x256xf32> -> vector<256x256xf32>
      %cst_46 = arith.constant dense<0xFF800000> : vector<256xf32>
      %95 = vector.multi_reduction <maximumf>, %94, %cst_46 [1] : vector<256x256xf32> to vector<256xf32>
      %96 = vector.shape_cast %95 : vector<256xf32> to vector<256x1xf32>
      %97 = vector.broadcast %96 : vector<256x1xf32> to vector<256x256xf32>
      %98 = arith.subf %94, %97 : vector<256x256xf32>
      %99 = math.exp %98 : vector<256x256xf32>
      %cst_47 = arith.constant dense<0.000000e+00> : vector<256xf32>
      %100 = vector.multi_reduction <add>, %99, %cst_47 [1] : vector<256x256xf32> to vector<256xf32>
      %101 = vector.shape_cast %100 : vector<256xf32> to vector<256x1xf32>
      %102 = tpu.reciprocal %101 {approx = true} : vector<256x1xf32> -> vector<256x1xf32>
      %103 = vector.broadcast %102 : vector<256x1xf32> to vector<256x256xf32>
      %104 = arith.mulf %99, %103 : vector<256x256xf32>
      %105 = arith.truncf %104 : vector<256x256xf32> to vector<256x256xbf16>
      %cst_48 = arith.constant dense<0.000000e+00> : vector<4x256xf32>
      %106 = tpu.matmul %93, %105, %cst_48 {dimension_numbers = #tpu.dot_dimension_numbers<[1], [1], [0], [0], [0, 0, 1, 0], [], []>} : vector<4x256xbf16>, vector<256x256xbf16>, vector<4x256xf32> -> vector<4x256xf32>
      %107 = vector.extract_strided_slice %48 {offsets = [12, 0], sizes = [4, 256], strides = [1, 1]} : vector<16x256xbf16> to vector<4x256xbf16>
      %108 = vector.extract_strided_slice %53 {offsets = [12, 0], sizes = [4, 256], strides = [1, 1]} : vector<16x256xbf16> to vector<4x256xbf16>
      %109 = vector.extract_strided_slice %58 {offsets = [12, 0], sizes = [4, 256], strides = [1, 1]} : vector<16x256xbf16> to vector<4x256xbf16>
      %cst_49 = arith.constant dense<0.000000e+00> : vector<256x256xf32>
      %110 = tpu.matmul %107, %108, %cst_49 {dimension_numbers = #tpu.dot_dimension_numbers<[0], [0], [1], [1], [0, 1, 1, 1], [], []>} : vector<4x256xbf16>, vector<4x256xbf16>, vector<256x256xf32> -> vector<256x256xf32>
      %cst_50 = arith.constant dense<0xFF800000> : vector<256xf32>
      %111 = vector.multi_reduction <maximumf>, %110, %cst_50 [1] : vector<256x256xf32> to vector<256xf32>
      %112 = vector.shape_cast %111 : vector<256xf32> to vector<256x1xf32>
      %113 = vector.broadcast %112 : vector<256x1xf32> to vector<256x256xf32>
      %114 = arith.subf %110, %113 : vector<256x256xf32>
      %115 = math.exp %114 : vector<256x256xf32>
      %cst_51 = arith.constant dense<0.000000e+00> : vector<256xf32>
      %116 = vector.multi_reduction <add>, %115, %cst_51 [1] : vector<256x256xf32> to vector<256xf32>
      %117 = vector.shape_cast %116 : vector<256xf32> to vector<256x1xf32>
      %118 = tpu.reciprocal %117 {approx = true} : vector<256x1xf32> -> vector<256x1xf32>
      %119 = vector.broadcast %118 : vector<256x1xf32> to vector<256x256xf32>
      %120 = arith.mulf %115, %119 : vector<256x256xf32>
      %121 = arith.truncf %120 : vector<256x256xf32> to vector<256x256xbf16>
      %cst_52 = arith.constant dense<0.000000e+00> : vector<4x256xf32>
      %122 = tpu.matmul %109, %121, %cst_52 {dimension_numbers = #tpu.dot_dimension_numbers<[1], [1], [0], [0], [0, 0, 1, 0], [], []>} : vector<4x256xbf16>, vector<256x256xbf16>, vector<4x256xf32> -> vector<4x256xf32>
      %123 = tpu.concatenate %74, %90, %106, %122 in 0 : vector<4x256xf32>, vector<4x256xf32>, vector<4x256xf32>, vector<4x256xf32> -> vector<16x256xf32>
      %124 = arith.truncf %123 : vector<16x256xf32> to vector<16x256xbf16>
      %125 = arith.index_cast %46 : i32 to index
      %c0_53 = arith.constant 0 : index
      %126 = vector.load %arg11[%125, %c0_53] : memref<32x256xbf16, #tpu.memory_space<vmem>>, vector<16x256xbf16>
      tpu.vector_store %arg11[%125, %c0_53], %124 {strides = array<i32>} : memref<32x256xbf16, #tpu.memory_space<vmem>>, vector<16x256xbf16>,
    }
    %c2_i32_8 = arith.constant 2 : i32
    %c0_9 = arith.constant 0 : index
    %c0_10 = arith.constant 0 : index
    %11 = vector.load %arg4[%c0_9, %c0_10] : memref<32x32xbf16, #tpu.memory_space<vmem>>, vector<32x32xbf16>
    %c0_11 = arith.constant 0 : index
    %c0_12 = arith.constant 0 : index
    %12 = vector.load %arg11[%c0_11, %c0_12] : memref<32x256xbf16, #tpu.memory_space<vmem>>, vector<32x256xbf16>
    %cst_13 = arith.constant dense<0.000000e+00> : vector<32x256xf32>
    %13 = tpu.matmul %11, %12, %cst_13 {dimension_numbers = #tpu.dot_dimension_numbers<[1], [0], [0], [1], [0, 0, 1, 1], [], []>} : vector<32x32xbf16>, vector<32x256xbf16>, vector<32x256xf32> -> vector<32x256xf32>
    %c0_14 = arith.constant 0 : index
    %c0_15 = arith.constant 0 : index
    %14 = vector.load %arg5[%c0_14, %c0_15] : memref<32x1xf32, #tpu.memory_space<vmem>>, vector<32x1xf32>
    %15 = vector.broadcast %14 : vector<32x1xf32> to vector<32x256xf32>
    %16 = arith.addf %13, %15 : vector<32x256xf32>
    %cst_16 = arith.constant dense<0.000000e+00> : vector<32xf32>
    %17 = vector.multi_reduction <add>, %16, %cst_16 [1] : vector<32x256xf32> to vector<32xf32>
    %18 = vector.shape_cast %17 : vector<32xf32> to vector<32x1xf32>
    %19 = arith.mulf %16, %16 : vector<32x256xf32>
    %cst_17 = arith.constant dense<0.000000e+00> : vector<32xf32>
    %20 = vector.multi_reduction <add>, %19, %cst_17 [1] : vector<32x256xf32> to vector<32xf32>
    %21 = vector.shape_cast %20 : vector<32xf32> to vector<32x1xf32>
    %c0_18 = arith.constant 0 : index
    %c0_19 = arith.constant 0 : index
    %22 = vector.load %arg8[%c0_18, %c0_19] : memref<32x32xf32, #tpu.memory_space<vmem>>, vector<32x32xf32>
    %cst_20 = arith.constant dense<0.000000e+00> : vector<32x1xf32>
    %23 = tpu.matmul %22, %18, %cst_20 {dimension_numbers = #tpu.dot_dimension_numbers<[1], [0], [0], [1], [0, 0, 1, 1], [], []>} : vector<32x32xf32>, vector<32x1xf32>, vector<32x1xf32> -> vector<32x1xf32>
    %c0_21 = arith.constant 0 : index
    %c0_22 = arith.constant 0 : index
    %24 = vector.load %arg8[%c0_21, %c0_22] : memref<32x32xf32, #tpu.memory_space<vmem>>, vector<32x32xf32>
    %cst_23 = arith.constant dense<0.000000e+00> : vector<32x1xf32>
    %25 = tpu.matmul %24, %21, %cst_23 {dimension_numbers = #tpu.dot_dimension_numbers<[1], [0], [0], [1], [0, 0, 1, 1], [], []>} : vector<32x32xf32>, vector<32x1xf32>, vector<32x1xf32> -> vector<32x1xf32>
    %26 = arith.mulf %23, %23 : vector<32x1xf32>
    %27 = arith.subf %25, %26 : vector<32x1xf32>
    %cst_24 = arith.constant 9.99999974E-6 : f32
    %28 = vector.broadcast %cst_24 : f32 to vector<32x1xf32>
    %29 = arith.addf %27, %28 : vector<32x1xf32>
    %30 = math.rsqrt %29 : vector<32x1xf32>
    %31 = vector.broadcast %23 : vector<32x1xf32> to vector<32x256xf32>
    %32 = arith.subf %16, %31 : vector<32x256xf32>
    %33 = vector.broadcast %30 : vector<32x1xf32> to vector<32x256xf32>
    %34 = arith.mulf %32, %33 : vector<32x256xf32>
    %c0_25 = arith.constant 0 : index
    %c0_26 = arith.constant 0 : index
    %35 = vector.load %arg6[%c0_25, %c0_26] : memref<32x1xf32, #tpu.memory_space<vmem>>, vector<32x1xf32>
    %36 = vector.broadcast %35 : vector<32x1xf32> to vector<32x256xf32>
    %37 = arith.mulf %34, %36 : vector<32x256xf32>
    %c0_27 = arith.constant 0 : index
    %c0_28 = arith.constant 0 : index
    %38 = vector.load %arg7[%c0_27, %c0_28] : memref<32x1xf32, #tpu.memory_space<vmem>>, vector<32x1xf32>
    %39 = vector.broadcast %38 : vector<32x1xf32> to vector<32x256xf32>
    %40 = arith.addf %37, %39 : vector<32x256xf32>
    %41 = arith.addf %40, %1 : vector<32x256xf32>
    %c0_29 = arith.constant 0 : index
    %c0_30 = arith.constant 0 : index
    %c0_31 = arith.constant 0 : index
    %42 = vector.load %arg9[%c0_29, %c0_30, %c0_31] : memref<1x32x256xf32, #tpu.memory_space<vmem>>, vector<1x32x256xf32>
    %43 = vector.shape_cast %42 : vector<1x32x256xf32> to vector<32x256xf32>
    %44 = vector.shape_cast %41 : vector<32x256xf32> to vector<1x32x256xf32>
    tpu.vector_store %arg9[%c0_29, %c0_30, %c0_31], %44 {strides = array<i32>} : memref<1x32x256xf32, #tpu.memory_space<vmem>>, vector<1x32x256xf32>,
    return
  }
  func.func @transform_0(%arg0: i32) -> (i32, i32, i32) {
    %c0_i32 = arith.constant 0 : i32
    %c0_i32_0 = arith.constant 0 : i32
    %c0_i32_1 = arith.constant 0 : i32
    return %arg0, %c0_i32, %c0_i32_0 : i32, i32, i32
  }
  func.func @transform_1(%arg0: i32) -> (i32, i32) {
    %c0_i32 = arith.constant 0 : i32
    %c0_i32_0 = arith.constant 0 : i32
    %c0_i32_1 = arith.constant 0 : i32
    return %c0_i32, %c0_i32_0 : i32, i32
  }
  func.func @transform_2(%arg0: i32) -> (i32, i32) {
    %c0_i32 = arith.constant 0 : i32
    %c0_i32_0 = arith.constant 0 : i32
    %c0_i32_1 = arith.constant 0 : i32
    return %c0_i32, %c0_i32_0 : i32, i32
  }
  func.func @transform_3(%arg0: i32) -> (i32, i32) {
    %c0_i32 = arith.constant 0 : i32
    %c0_i32_0 = arith.constant 0 : i32
    %c0_i32_1 = arith.constant 0 : i32
    return %c0_i32, %c0_i32_0 : i32, i32
  }
  func.func @transform_4(%arg0: i32) -> (i32, i32) {
    %c0_i32 = arith.constant 0 : i32
    %c0_i32_0 = arith.constant 0 : i32
    %c0_i32_1 = arith.constant 0 : i32
    return %c0_i32, %c0_i32_0 : i32, i32
  }
  func.func @transform_5(%arg0: i32) -> (i32, i32) {
    %c0_i32 = arith.constant 0 : i32
    %c0_i32_0 = arith.constant 0 : i32
    %c0_i32_1 = arith.constant 0 : i32
    return %c0_i32, %c0_i32_0 : i32, i32
  }
  func.func @transform_6(%arg0: i32) -> (i32, i32) {
    %c0_i32 = arith.constant 0 : i32
    %c0_i32_0 = arith.constant 0 : i32
    %c0_i32_1 = arith.constant 0 : i32
    return %c0_i32, %c0_i32_0 : i32, i32
  }
  func.func @transform_7(%arg0: i32) -> (i32, i32) {
    %c0_i32 = arith.constant 0 : i32
    %c0_i32_0 = arith.constant 0 : i32
    %c0_i32_1 = arith.constant 0 : i32
    return %c0_i32, %c0_i32_0 : i32, i32
  }
  func.func @transform_8(%arg0: i32) -> (i32, i32, i32) {
    %c0_i32 = arith.constant 0 : i32
    %c0_i32_0 = arith.constant 0 : i32
    %c0_i32_1 = arith.constant 0 : i32
    return %arg0, %c0_i32, %c0_i32_0 : i32, i32, i32
  }
}

</mosaic_0001>

<bundles_post_ra>
// kernel: cross_attention.1
= control target key start
LH: loop header
LB: loop body
LE: loop exit
PB: predicated region body
PF: predicated region fallthrough
CT: control target
= control target key end

     0   :  { %s5735_s27 = smov 0   ;;  %s8407_s0 = inlined_call_operand.vmem [shape: f32[2,32,256], index: 0, kind: input, shape index: {}]   ;;  %s8408_s1 = inlined_call_operand.vmem [shape: bf16[96,32], index: 1, kind: input, shape index: {}]   ;;  %s8409_s2 = inlined_call_operand.vmem [shape: f32[96,1], index: 2, kind: input, shape index: {}]   ;;  %s8410_s3 = inlined_call_operand.vmem [shape: bf16[32,32], index: 3, kind: input, shape index: {}]   ;;  %s8411_s4 = inlined_call_operand.vmem [shape: f32[32,1], index: 4, kind: input, shape index: {}]   ;;  %s8412_s5 = inlined_call_operand.vmem [shape: f32[32,1], index: 5, kind: input, shape index: {}]   ;;  %s8413_s6 = inlined_call_operand.vmem [shape: f32[32,1], index: 6, kind: input, shape index: {}]   ;;  %s8414_s7 = inlined_call_operand.vmem [shape: f32[32,32], index: 7, kind: input, shape index: {}]   ;;  %s8415_s8 = inlined_call_operand.vmem [shape: f32[2,32,256], index: 8, kind: output, shape index: {}]  }
   0x1 LB: > { %s4639_s28 = sadd.s32 4294967295, %s5682_s27   ;;  %p4643_p0 = scmp.ge.s32.totalorder %s5682_s27, 1  ;;  %s5682_s27 = sphi %s5735_s27, %s18_s27  }
   0x2   : > { %p262_p1 = scmp.lt.s32.totalorder %s5682_s27, 3 }
   0x4   : > { %p263_p2 = pnand %p4643_p0, %p262_p1 }
   0x6   : > { %266 = sbr.rel (%p263_p2) target bundleno = 2707 (0xa93), region = 52 }
   0xb   : > { %p296_p3 = scmp.lt.s32.totalorder %s4639_s28, 1  ;;  %v8416_v0 = vmov 0   ;;  %v333_v12 = vld [vmem:[%s8409_s2 + $0x10] sm:$0xff]  ;;  %v331_v13 = vld [vmem:[%s8409_s2] sm:$0xff]  ;;  %v4869_v16 = vld [vmem:[%s8408_s1 + $0x18] sm:$0xff]   ;;  %vm433_vm0 = vcmask 261120  }
   0xc   : > { %484 = vmatprep.mubr.bf16.mxu0 %v8416_v0  ;;  %514 = vmatprep.mubr.bf16.mxu1 %v8416_v0  ;;  %v4868_v15 = vld [vmem:[%s8408_s1] sm:$0xff]   ;;  %v334_v17 = vld [vmem:[%s8409_s2 + $0x18] sm:$0xff]  ;;  %v332_v18 = vld [vmem:[%s8409_s2 + $0x8] sm:$0xff]  ;;  %s5847_s9 = smov 0  }
   0xd   : > { %s9559_s28 = smov (!%p296_p3, %s4639_s28), 1  ;;  %4867 = vset.pattern.permute.xlu1 %v8416_v0  ;;  %4866 = vset.pattern.permute.xlu0 %v8416_v0  ;;  %v336_v19 = vld [vmem:[%s8409_s2 + $0x28] sm:$0xff]  ;;  %v335_v20 = vld [vmem:[%s8409_s2 + $0x20] sm:$0xff]  ;;  %v338_v23 = vld [vmem:[%s8409_s2 + $0x38] sm:$0xff] }
   0xe   : > { %s4780_s29 = sshll.u32 %s9559_s28, 6  ;;  %355 = vperm.xlu1 %4867, %v333_v12   ;;  %345 = vperm.xlu0 %4866, %v331_v13   ;;  %v4870_v21 = vld [vmem:[%s8408_s1 + $0x8] sm:$0xff]   ;;  %v4871_v22 = vld [vmem:[%s8408_s1 + $0x20] sm:$0xff]   ;;  %v337_v24 = vld [vmem:[%s8409_s2 + $0x30] sm:$0xff] }
   0xf   : > { %s300_s10 = scalar_lea.vmem %s8407_s0, %s4780_s29  ;;  %s5753_s13 = scalar_lea.vmem %s8415_s8, %s4780_s29  ;;  %v340_v25 = vld [vmem:[%s8409_s2 + $0x48] sm:$0xff]  ;;  %v339_v26 = vld [vmem:[%s8409_s2 + $0x40] sm:$0xff]  ;;  %v4872_v27 = vld [vmem:[%s8408_s1 + $0x10] sm:$0xff]  }
  0x10   : > { %v5755_v1 = vld [vmem:[%s300_s10 + $0x28] sm:$0xff]  ;;  %v5757_v2 = vld [vmem:[%s300_s10 + $0x38] sm:$0xff]  ;;  %v5759_v3 = vld [vmem:[%s300_s10 + $0x20] sm:$0xff] }
  0x11   : > { %8778 = vst [vmem:[#allocation4_spill] sm:$0xff] %v5755_v1  ;;  %8779 = vst [vmem:[#allocation5_spill] sm:$0xff] %v5757_v2  ;;  %v318_v4 = vpack.c.bf16 %v5757_v2, %v5755_v1  ;;  %v5763_v5 = vld [vmem:[%s300_s10 + $0x30] sm:$0xff]  ;;  %v5765_v6 = vld [vmem:[%s300_s10 + $0x8] sm:$0xff] }
  0x12   : > { %8780 = vst [vmem:[#allocation6_spill] sm:$0xff] %v5759_v3  ;;  %8781 = vst [vmem:[#allocation7_spill] sm:$0xff] %v5763_v5  ;;  %v5767_v7 = vld [vmem:[%s300_s10 + $0x18] sm:$0xff]  ;;  %v317_v8 = vpack.c.bf16 %v5763_v5, %v5759_v3  ;;  %v5773_v10 = vld [vmem:[%s300_s10] sm:$0xff]  ;;  %360 = vperm.xlu1 %4867, %v334_v17   ;;  %350 = vperm.xlu0 %4866, %v332_v18  }
  0x13   : > { %8782 = vst [vmem:[#allocation8_spill] sm:$0xff] %v5765_v6  ;;  %8783 = vst [vmem:[#allocation9_spill] sm:$0xff] %v5767_v7  ;;  %v316_v9 = vpack.c.bf16 %v5767_v7, %v5765_v6  ;;  %v5775_v11 = vld [vmem:[%s300_s10 + $0x10] sm:$0xff]  ;;  %464 = vmatprep.subr.bf16.mxu0 %v318_v4  ;;  %4844 = vmatprep.subr.bf16.mxu1 %v318_v4  ;;  %v4873_v28 = vld [vmem:[%s8408_s1 + $0x28] sm:$0xff]  }
  0x14   : > { %8784 = vst [vmem:[#allocation10_spill] sm:$0xff] %v5773_v10  ;;  %8785 = vst [vmem:[#allocation11_spill] sm:$0xff] %v5775_v11  ;;  %465 = vmatpush1.bf16.msra.mxu0 %v317_v8  ;;  %4846 = vmatpush1.bf16.msra.mxu1 %v317_v8  ;;  %v315_v14 = vpack.c.bf16 %v5775_v11, %v5773_v10  ;;  %v342_v29 = vld [vmem:[%s8409_s2 + $0x58] sm:$0xff]  ;;  %v341_v30 = vld [vmem:[%s8409_s2 + $0x50] sm:$0xff] }
  0x15   : > { %466 = vmatprep.subr.bf16.mxu0 %v316_v9  ;;  %4845 = vmatprep.subr.bf16.mxu1 %v316_v9 }
  0x16   : > { %370 = vperm.xlu1 %4867, %v336_v19   ;;  %365 = vperm.xlu0 %4866, %v335_v20  }
  0x18   : > { %467 = vmatpush1.bf16.msra.mxu0 %v315_v14  ;;  %4847 = vmatpush1.bf16.msra.mxu1 %v315_v14 }
  0x1a   : > { %380 = vperm.xlu1 %4867, %v338_v23   ;;  %375 = vperm.xlu0 %4866, %v337_v24  }
  0x1b   : > { %4654 = vmatmul.mubr.msk.bf16.vlgmr.msra.gmra.mxu0 %vm433_vm0, %v4868_v15  ;;  %4657 = vmatmul.mubr.msk.bf16.vlgmr.msra.gmra.mxu1 %vm433_vm0, %v4869_v16 }
  0x1c   : > { %494 = vmatprep.mubr.bf16.mxu0 %v8416_v0  ;;  %524 = vmatprep.mubr.bf16.mxu1 %v8416_v0 }
  0x1e   : > { %390 = vperm.xlu1 %4867, %v340_v25   ;;  %385 = vperm.xlu0 %4866, %v339_v26  }
  0x22   : > { %400 = vperm.xlu1 %4867, %v342_v29   ;;  %395 = vperm.xlu0 %4866, %v341_v30  }
  0x23   : > { %4655 = vmatmul.mubr.msk.bf16.gmra.mxu0 %vm433_vm0, %v4870_v21  ;;  %4658 = vmatmul.mubr.msk.bf16.gmra.mxu1 %vm433_vm0, %v4871_v22 }
  0x24   : > { %504 = vmatprep.mubr.bf16.mxu0 %v8416_v0  ;;  %534 = vmatprep.mubr.bf16.mxu1 %v8416_v0 }
  0x2b   : > { %4656 = vmatmul.mubr.msk.bf16.gmra.mxu0 %vm433_vm0, %v4872_v27  ;;  %4659 = vmatmul.mubr.msk.bf16.gmra.mxu1 %vm433_vm0, %v4873_v28 }
  0x89   : > { %v346_v31 = vpop.permute.xlu0 %345  ;;  %v356_v32 = vpop.permute.xlu1 %355 }
  0x8d   : > { %v351_v33 = vpop.permute.xlu0 %350  ;;  %v361_v34 = vpop.permute.xlu1 %360 }
  0x91   : > { %v366_v35 = vpop.permute.xlu0 %365  ;;  %v5843_v36 = vpop.permute.xlu1 %370 }
  0x95   : > { %v376_v39 = vpop.permute.xlu0 %375  ;;  %v381_v48 = vpop.permute.xlu1 %380 }
  0x99   : > { %v386_v59 = vpop.permute.xlu0 %385  ;;  %v391_v15 = vpop.permute.xlu1 %390 }
  0x9d   : > { %v396_v26 = vpop.permute.xlu0 %395 }
  0xdb   : > { %v486_v37 = vpop.f32.mrf.mxu0  ;;  %v516_v38 = vpop.f32.mrf.mxu1 }
  0xdc   : > { %v487_v42 = vadd.f32 %v486_v37, %v346_v31  ;;  %v517_v43 = vadd.f32 %v516_v38, %v376_v39 }
  0xdd   : > { %v488_v40 = vpop.f32.mrf.mxu0  ;;  %v518_v41 = vpop.f32.mrf.mxu1 }
  0xde   : > { %v489_v44 = vadd.f32 %v488_v40, %v346_v31  ;;  %v519_v45 = vadd.f32 %v518_v41, %v376_v39  ;;  %v401_v40 = vpop.permute.xlu1 %400 }
  0xdf   : > { %v490_v46 = vpop.f32.mrf.mxu0  ;;  %v520_v47 = vpop.f32.mrf.mxu1 }
  0xe0   : > { %v4782_v49 = vpack.c.bf16 %v489_v44, %v487_v42  ;;  %v4788_v50 = vpack.c.bf16 %v519_v45, %v517_v43  ;;  %v491_v53 = vadd.f32 %v490_v46, %v351_v33  ;;  %v521_v54 = vadd.f32 %v520_v47, %v381_v48 }
  0xe1   : > { %v492_v51 = vpop.f32.mrf.mxu0  ;;  %v522_v52 = vpop.f32.mrf.mxu1 }
  0xe2   : > { %617 = vst [vmem:[#allocation2] sm:$0xff] %v4782_v49  ;;  %623 = vst [vmem:[#allocation2 + $0x30] sm:$0xff] %v4788_v50  ;;  %v493_v55 = vadd.f32 %v492_v51, %v351_v33  ;;  %v523_v56 = vadd.f32 %v522_v52, %v381_v48 }
  0xe3   : > { %v496_v57 = vpop.f32.mrf.mxu0  ;;  %v526_v58 = vpop.f32.mrf.mxu1 }
  0xe4   : > { %v4783_v60 = vpack.c.bf16 %v493_v55, %v491_v53  ;;  %v4789_v61 = vpack.c.bf16 %v523_v56, %v521_v54  ;;  %v497_v4 = vadd.f32 %v496_v57, %v356_v32  ;;  %v527_v8 = vadd.f32 %v526_v58, %v386_v59 }
  0xe5   : > { %v498_v62 = vpop.f32.mrf.mxu0  ;;  %v528_v63 = vpop.f32.mrf.mxu1 }
  0xe6   : > { %618 = vst [vmem:[#allocation2 + $0x8] sm:$0xff] %v4783_v60  ;;  %624 = vst [vmem:[#allocation2 + $0x38] sm:$0xff] %v4789_v61  ;;  %v499_v9 = vadd.f32 %v498_v62, %v356_v32  ;;  %v529_v12 = vadd.f32 %v528_v63, %v386_v59 }
  0xe7   : > { %v500_v13 = vpop.f32.mrf.mxu0  ;;  %v530_v14 = vpop.f32.mrf.mxu1 }
  0xe8   : > { %v4784_v16 = vpack.c.bf16 %v499_v9, %v497_v4  ;;  %v4790_v17 = vpack.c.bf16 %v529_v12, %v527_v8  ;;  %v501_v20 = vadd.f32 %v500_v13, %v361_v34  ;;  %v531_v21 = vadd.f32 %v530_v14, %v391_v15 }
  0xe9   : > { %v502_v18 = vpop.f32.mrf.mxu0  ;;  %v532_v19 = vpop.f32.mrf.mxu1 }
  0xea   : > { %619 = vst [vmem:[#allocation2 + $0x10] sm:$0xff] %v4784_v16  ;;  %625 = vst [vmem:[#allocation2 + $0x40] sm:$0xff] %v4790_v17  ;;  %v503_v22 = vadd.f32 %v502_v18, %v361_v34  ;;  %v533_v23 = vadd.f32 %v532_v19, %v391_v15 }
  0xeb   : > { %v506_v24 = vpop.f32.mrf.mxu0  ;;  %v536_v25 = vpop.f32.mrf.mxu1 }
  0xec   : > { %v4785_v27 = vpack.c.bf16 %v503_v22, %v501_v20  ;;  %v4791_v28 = vpack.c.bf16 %v533_v23, %v531_v21  ;;  %v507_v31 = vadd.f32 %v506_v24, %v366_v35  ;;  %v537_v32 = vadd.f32 %v536_v25, %v396_v26 }
  0xed   : > { %v508_v29 = vpop.f32.mrf.mxu0  ;;  %v538_v30 = vpop.f32.mrf.mxu1 }
  0xee   : > { %620 = vst [vmem:[#allocation2 + $0x18] sm:$0xff] %v4785_v27  ;;  %626 = vst [vmem:[#allocation2 + $0x48] sm:$0xff] %v4791_v28  ;;  %v509_v33 = vadd.f32 %v508_v29, %v366_v35  ;;  %v539_v37 = vadd.f32 %v538_v30, %v396_v26 }
  0xef   : > { %v510_v38 = vpop.f32.mrf.mxu0  ;;  %v540_v39 = vpop.f32.mrf.mxu1 }
  0xf0   : > { %v4786_v41 = vpack.c.bf16 %v509_v33, %v507_v31  ;;  %v4792_v42 = vpack.c.bf16 %v539_v37, %v537_v32  ;;  %v511_v44 = vadd.f32 %v510_v38, %v5843_v36  ;;  %v541_v45 = vadd.f32 %v540_v39, %v401_v40 }
  0xf1   : > { %v512_v34 = vpop.f32.mrf.mxu0  ;;  %v542_v43 = vpop.f32.mrf.mxu1 }
  0xf2   : > { %621 = vst [vmem:[#allocation2 + $0x20] sm:$0xff] %v4786_v41  ;;  %627 = vst [vmem:[#allocation2 + $0x50] sm:$0xff] %v4792_v42  ;;  %v513_v46 = vadd.f32 %v512_v34, %v5843_v36  ;;  %v543_v47 = vadd.f32 %v542_v43, %v401_v40 }
  0xf4   : > { %v4787_v48 = vpack.c.bf16 %v513_v46, %v511_v44  ;;  %v4793_v49 = vpack.c.bf16 %v543_v47, %v541_v45 }
  0xf6   : > { %622 = vst [vmem:[#allocation2 + $0x28] sm:$0xff] %v4787_v48  ;;  %628 = vst [vmem:[#allocation2 + $0x58] sm:$0xff] %v4793_v49 }
  0xf7 LB: >> { %v8418_v35 = vmov 0   ;;  %s5854_s10 = sshll.u32 %s5686_s9, 4  ;;  %vm752_vm1 = vcmask 1041408   ;;  %vm703_vm2 = vcmask 31744   ;;  %vm4059_vm3 = vcmask 1043456   ;;  %s634_s9 = sadd.s32 1, %s5686_s9   ;;  %s5686_s9 = sphi %s5847_s9, %s634_s9  }
  0xf8   : >> { %791 = vmatprep.mubr.bf16.mxu0 %v8418_v35  ;;  %s643_s11 = sadd.s32 32, %s5854_s10  ;;  %s640_s12 = scalar_lea.vmem [#allocation2], %s5854_s10 }
  0xf9   : >> { %s644_s14 = sshra.s32 %s643_s11, 3  ;;  %s651_s17 = sadd.s32 64, %s5854_s10 }
  0xfa   : >> { %s4795_s15 = sshll.u32 %s644_s14, 3  ;;  %s652_s18 = sshra.s32 %s651_s17, 3 }
  0xfb   : >> { %s648_s16 = scalar_lea.vmem [#allocation2], %s4795_s15  ;;  %s4796_s19 = sshll.u32 %s652_s18, 3 }
  0xfc   : >> { %s6939_s20 = scalar_lea.vmem [#allocation2], %s4796_s19  ;;  %s4077_s21 = scalar_lea.vmem [#allocation3], %s5854_s10 }
  0xfd   : >> { %v641_v36 = vld [vmem:[%s640_s12] sm:$0xff]  ;;  %v650_v60 = vld [vmem:[%s648_s16 + $0x8] sm:$0xff]  ;;  %p631_p4 = scmp.ge.s32.totalorder %s634_s9, 2  }
  0xfe   : >> { %v4679_v50 = vcombine.low %v641_v36, %v641_v36  ;;  %v649_v51 = vld [vmem:[%s648_s16] sm:$0xff]  ;;  %v4680_v57 = vcombine.high %v641_v36, %v641_v36  ;;  %v5863_v61 = vcombine.high %v650_v60, %v650_v60  ;;  %v642_v9 = vld [vmem:[%s640_s12 + $0x8] sm:$0xff]  ;;  %v5905_v28 = vcombine.low %v650_v60, %v650_v60 }
  0xff   : >> { %v4682_v53 = vcombine.high %v649_v51, %v649_v51  ;;  %v4681_v54 = vcombine.low %v649_v51, %v649_v51  ;;  %v4719_v12 = vcombine.low %v642_v9, %v642_v9  ;;  %v5888_v20 = vcombine.high %v642_v9, %v642_v9 }
 0x100   : >> { %666 = vxpose.xlu0.c.b16.start.end [1/1] (short) %v4679_v50, 128  ;;  %v1512_v52 = vrot.slane %v4679_v50, 2  ;;  %v1513_v58 = vrot.slane %v4680_v57, 2  ;;  %v2447_v30 = vsel %vm752_vm1, %v5905_v28, 0 }
 0x101   : >> { %4683 = vmatprep.subr.msk.bf16.mxu0 %vm752_vm1, %v4682_v53  ;;  %v1549_v55 = vrot.slane %v4682_v53, 2  ;;  %v754_v56 = vsel %vm752_vm1, %v4681_v54, 0  ;;  %v1548_v59 = vrot.slane %v4681_v54, 2  ;;  %v3205_v17 = vrot.slane %v4719_v12, 2  ;;  %8786 = vst [vmem:[#allocation12_spill] sm:$0xff] %v5888_v20 }
 0x102   : >> { %1516 = vxpose.xlu1.c.b16.start.end [1/1] (short) %v1512_v52, 128  ;;  %774 = vmatpush1.bf16.msra.mxu0 %v754_v56 }
 0x103   : >> { %4702 = vmatprep.subr.msk.bf16.mxu0 %vm752_vm1, %v1549_v55  ;;  %v1599_v62 = vsel %vm752_vm1, %v1548_v59, 0 }
 0x11d   : >> { %682 = vxpose.xlu0.c.b16.start.end [1/1] (short) %v4680_v57, 128 }
 0x11f   : >> { %1532 = vxpose.xlu1.c.b16.start.end [1/1] (short) %v1513_v58, 128 }
 0x13a   : >> { %2361 = vxpose.xlu0.c.b16.start.end [1/1] (short) %v4719_v12, 128 }
 0x13c   : >> { %2377 = vxpose.xlu1.c.b16.start.end [1/1] (short) %v5888_v20, 128 }
 0x157   : >> { %3209 = vxpose.xlu0.c.b16.start.end [1/1] (short) %v3205_v17, 128 }
 0x162   : >> { %v674_v63 = vpop.trf.xlu0 }
 0x163   : >> { %4684 = vmatmul.mubr.msk.bf16.vlgmr.msra.gmra.mxu0 %vm703_vm2, %v674_v63 }
 0x164   : >> { %801 = vmatprep.mubr.bf16.mxu0 %v8418_v35  ;;  %1619 = vmatpush1.bf16.msra.mxu0 %v1599_v62  ;;  %v1524_v29 = vpop.trf.xlu1 }
 0x165   : >> { %4723 = vmatprep.subr.msk.bf16.mxu0 %vm752_vm1, %v5863_v61 }
 0x166   : >> { %v675_v4 = vpop.trf.xlu0 }
 0x168   : >> { %v1525_v31 = vpop.trf.xlu1 }
 0x16a   : >> { %v676_v8 = vpop.trf.xlu0 }
 0x16b   : >> { %4685 = vmatmul.mubr.msk.bf16.gmra.mxu0 %vm703_vm2, %v675_v4 }
 0x16c   : >> { %811 = vmatprep.mubr.bf16.mxu0 %v8418_v35  ;;  %v1526_v32 = vpop.trf.xlu1 }
 0x16e   : >> { %v677_v13 = vpop.trf.xlu0 }
 0x170   : >> { %v1527_v33 = vpop.trf.xlu1 }
 0x172   : >> { %v678_v14 = vpop.trf.xlu0 }
 0x173   : >> { %4686 = vmatmul.mubr.msk.bf16.gmra.mxu0 %vm703_vm2, %v676_v8 }
 0x174   : >> { %821 = vmatprep.mubr.bf16.mxu0 %v8418_v35  ;;  %v1528_v37 = vpop.trf.xlu1 }
 0x176   : >> { %v679_v15 = vpop.trf.xlu0 }
 0x178   : >> { %v1529_v38 = vpop.trf.xlu1 }
 0x17a   : >> { %v680_v16 = vpop.trf.xlu0 }
 0x17b   : >> { %4687 = vmatmul.mubr.msk.bf16.gmra.mxu0 %vm703_vm2, %v677_v13 }
 0x17c   : >> { %831 = vmatprep.mubr.bf16.mxu0 %v8418_v35  ;;  %v1530_v39 = vpop.trf.xlu1 }
 0x17e   : >> { %v681_v18 = vpop.trf.xlu0 }
 0x180   : >> { %v1531_v40 = vpop.trf.xlu1 }
 0x182   : >> { %v690_v19 = vpop.trf.xlu0 }
 0x183   : >> { %4688 = vmatmul.mubr.msk.bf16.gmra.mxu0 %vm703_vm2, %v678_v14 }
 0x184   : >> { %841 = vmatprep.mubr.bf16.mxu0 %v8418_v35  ;;  %v1540_v41 = vpop.trf.xlu1 }
 0x186   : >> { %v691_v21 = vpop.trf.xlu0 }
 0x188   : >> { %v1541_v44 = vpop.trf.xlu1 }
 0x18a   : >> { %v692_v22 = vpop.trf.xlu0 }
 0x18b   : >> { %4689 = vmatmul.mubr.msk.bf16.gmra.mxu0 %vm703_vm2, %v679_v15 }
 0x18c   : >> { %851 = vmatprep.mubr.bf16.mxu0 %v8418_v35  ;;  %v1542_v49 = vpop.trf.xlu1 }
 0x18e   : >> { %v693_v23 = vpop.trf.xlu0 }
 0x190   : >> { %v1543_v53 = vpop.trf.xlu1 }
 0x192   : >> { %v694_v24 = vpop.trf.xlu0 }
 0x193   : >> { %4690 = vmatmul.mubr.msk.bf16.gmra.mxu0 %vm703_vm2, %v680_v16 }
 0x194   : >> { %861 = vmatprep.mubr.bf16.mxu0 %v8418_v35  ;;  %v1544_v59 = vpop.trf.xlu1 }
 0x196   : >> { %v695_v25 = vpop.trf.xlu0 }
 0x198   : >> { %v1545_v8 = vpop.trf.xlu1 }
 0x19a   : >> { %v696_v26 = vpop.trf.xlu0 }
 0x19b   : >> { %4691 = vmatmul.mubr.msk.bf16.gmra.mxu0 %vm703_vm2, %v681_v18 }
 0x19c   : >> { %871 = vmatprep.mubr.bf16.mxu0 %v8418_v35  ;;  %v1546_v16 = vpop.trf.xlu1 }
 0x19e   : >> { %v697_v27 = vpop.trf.xlu0 }
 0x1a3   : >> { %4692 = vmatmul.mubr.msk.bf16.gmra.mxu0 %vm703_vm2, %v690_v19 }
 0x1a4   : >> { %881 = vmatprep.mubr.bf16.mxu0 %v8418_v35 }
 0x1ab   : >> { %4693 = vmatmul.mubr.msk.bf16.gmra.mxu0 %vm703_vm2, %v691_v21 }
 0x1ac   : >> { %891 = vmatprep.mubr.bf16.mxu0 %v8418_v35 }
 0x1b3   : >> { %4694 = vmatmul.mubr.msk.bf16.gmra.mxu0 %vm703_vm2, %v692_v22 }
 0x1b4   : >> { %901 = vmatprep.mubr.bf16.mxu0 %v8418_v35 }
 0x1bb   : >> { %4695 = vmatmul.mubr.msk.bf16.gmra.mxu0 %vm703_vm2, %v693_v23  ;;  %v1547_v23 = vpop.trf.xlu1 }
 0x1bc   : >> { %911 = vmatprep.mubr.bf16.mxu0 %v8418_v35 }
 0x1c3   : >> { %4696 = vmatmul.mubr.msk.bf16.gmra.mxu0 %vm703_vm2, %v694_v24 }
 0x1c4   : >> { %921 = vmatprep.mubr.bf16.mxu0 %v8418_v35 }
 0x1cb   : >> { %4697 = vmatmul.mubr.msk.bf16.gmra.mxu0 %vm703_vm2, %v695_v25 }
 0x1cc   : >> { %931 = vmatprep.mubr.bf16.mxu0 %v8418_v35 }
 0x1d3   : >> { %4698 = vmatmul.mubr.msk.bf16.gmra.mxu0 %vm703_vm2, %v696_v26 }
 0x1d4   : >> { %941 = vmatprep.mubr.bf16.mxu0 %v8418_v35 }
 0x1db   : >> { %4699 = vmatmul.mubr.msk.bf16.gmra.mxu0 %vm703_vm2, %v697_v27 }
 0x1dc   : >> { %1636 = vmatprep.mubr.bf16.mxu0 %v8418_v35 }
 0x1e3   : >> { %4703 = vmatmul.mubr.msk.bf16.vlgmr.msra.gmra.mxu0 %vm703_vm2, %v1524_v29 }
 0x1e4   : >> { %1646 = vmatprep.mubr.bf16.mxu0 %v8418_v35  ;;  %2467 = vmatpush1.bf16.msra.mxu0 %v2447_v30  ;;  %v3242_v30 = vrot.slane %v5863_v61, 2 }
 0x1e6   : >> { %4742 = vmatprep.subr.msk.bf16.mxu0 %vm752_vm1, %v3242_v30 }
 0x1eb   : >> { %4704 = vmatmul.mubr.msk.bf16.gmra.mxu0 %vm703_vm2, %v1525_v31  ;;  %v3241_v31 = vrot.slane %v5905_v28, 2 }
 0x1ec   : >> { %1656 = vmatprep.mubr.bf16.mxu0 %v8418_v35 }
 0x1f3   : >> { %4705 = vmatmul.mubr.msk.bf16.gmra.mxu0 %vm703_vm2, %v1526_v32 }
 0x1f4   : >> { %1666 = vmatprep.mubr.bf16.mxu0 %v8418_v35 }
 0x1fb   : >> { %4706 = vmatmul.mubr.msk.bf16.gmra.mxu0 %vm703_vm2, %v1527_v33  ;;  %v2369_v33 = vpop.trf.xlu0 }
 0x1fc   : >> { %1676 = vmatprep.mubr.bf16.mxu0 %v8418_v35 }
 0x203   : >> { %4707 = vmatmul.mubr.msk.bf16.gmra.mxu0 %vm703_vm2, %v1528_v37 }
 0x204   : >> { %1686 = vmatprep.mubr.bf16.mxu0 %v8418_v35 }
 0x20b   : >> { %4708 = vmatmul.mubr.msk.bf16.gmra.mxu0 %vm703_vm2, %v1529_v38 }
 0x20c   : >> { %1696 = vmatprep.mubr.bf16.mxu0 %v8418_v35 }
 0x213   : >> { %4709 = vmatmul.mubr.msk.bf16.gmra.mxu0 %vm703_vm2, %v1530_v39 }
 0x214   : >> { %1706 = vmatprep.mubr.bf16.mxu0 %v8418_v35 }
 0x21b   : >> { %4710 = vmatmul.mubr.msk.bf16.gmra.mxu0 %vm703_vm2, %v1531_v40  ;;  %v3292_v40 = vsel %vm752_vm1, %v3241_v31, 0 }
 0x21c   : >> { %1716 = vmatprep.mubr.bf16.mxu0 %v8418_v35 }
 0x223   : >> { %v5925_v42 = vpop.f32.mrf.mxu0  ;;  %4711 = vmatmul.mubr.msk.bf16.gmra.mxu0 %vm703_vm2, %v1540_v41 }
 0x224   : >> { %1726 = vmatprep.mubr.bf16.mxu0 %v8418_v35 }
 0x225   : >> { %v5929_v34 = vpop.f32.mrf.mxu0 }
 0x227   : >> { %v5931_v43 = vpop.f32.mrf.mxu0 }
 0x228   : >> { %8787 = vst [vmem:[#allocation13_spill] sm:$0xff] %v5931_v43 }
 0x229   : >> { %v5933_v45 = vpop.f32.mrf.mxu0 }
 0x22a   : >> { %8788 = vst [vmem:[#allocation14_spill] sm:$0xff] %v5933_v45 }
 0x22b   : >> { %v5935_v46 = vpop.f32.mrf.mxu0  ;;  %4712 = vmatmul.mubr.msk.bf16.gmra.mxu0 %vm703_vm2, %v1541_v44 }
 0x22c   : >> { %1736 = vmatprep.mubr.bf16.mxu0 %v8418_v35 }
 0x22d   : >> { %v5939_v47 = vpop.f32.mrf.mxu0 }
 0x22f   : >> { %v5941_v48 = vpop.f32.mrf.mxu0 }
 0x231   : >> { %v5943_v36 = vpop.f32.mrf.mxu0 }
 0x233   : >> { %v5945_v50 = vpop.f32.mrf.mxu0  ;;  %4713 = vmatmul.mubr.msk.bf16.gmra.mxu0 %vm703_vm2, %v1542_v49 }
 0x234   : >> { %1746 = vmatprep.mubr.bf16.mxu0 %v8418_v35 }
 0x235   : >> { %v5949_v51 = vpop.f32.mrf.mxu0 }
 0x237   : >> { %v5951_v52 = vpop.f32.mrf.mxu0 }
 0x239   : >> { %v5953_v54 = vpop.f32.mrf.mxu0 }
 0x23b   : >> { %v5955_v55 = vpop.f32.mrf.mxu0  ;;  %4714 = vmatmul.mubr.msk.bf16.gmra.mxu0 %vm703_vm2, %v1543_v53  ;;  %v2370_v53 = vpop.trf.xlu0 }
 0x23c   : >> { %1756 = vmatprep.mubr.bf16.mxu0 %v8418_v35 }
 0x23d   : >> { %v5959_v56 = vpop.f32.mrf.mxu0 }
 0x23e   : >> { %v970_v57 = vmax.f32 %v5955_v55, %v5959_v56 }
 0x23f   : >> { %v5963_v58 = vpop.f32.mrf.mxu0 }
 0x240   : >> { %971 = vmax.xlane.f32.xlu0 %v970_v57 }
 0x241   : >> { %v5965_v60 = vpop.f32.mrf.mxu0 }
 0x242   : >> { %v973_v28 = vmax.f32 %v5963_v58, %v5965_v60 }
 0x243   : >> { %v5967_v62 = vpop.f32.mrf.mxu0  ;;  %4715 = vmatmul.mubr.msk.bf16.gmra.mxu0 %vm703_vm2, %v1544_v59  ;;  %v964_v59 = vmax.f32 %v5945_v50, %v5949_v51 }
 0x244   : >> { %1766 = vmatprep.mubr.bf16.mxu0 %v8418_v35 }
 0x245   : >> { %v5971_v63 = vpop.f32.mrf.mxu0 }
 0x246   : >> { %v976_v44 = vmax.f32 %v5967_v62, %v5971_v63 }
 0x247   : >> { %v5973_v4 = vpop.f32.mrf.mxu0 }
 0x249   : >> { %v5975_v9 = vpop.f32.mrf.mxu0 }
 0x24b   : >> { %v5977_v12 = vpop.f32.mrf.mxu0  ;;  %4716 = vmatmul.mubr.msk.bf16.gmra.mxu0 %vm703_vm2, %v1545_v8  ;;  %v979_v8 = vmax.f32 %v5973_v4, %v5975_v9 }
 0x24c   : >> { %1776 = vmatprep.mubr.bf16.mxu0 %v8418_v35 }
 0x24d   : >> { %v5981_v13 = vpop.f32.mrf.mxu0 }
 0x24e   : >> { %v982_v14 = vmax.f32 %v5977_v12, %v5981_v13 }
 0x24f   : >> { %v5985_v15 = vpop.f32.mrf.mxu0 }
 0x250   : >> { %983 = vmax.xlane.f32.xlu1 %v982_v14 }
 0x251   : >> { %v5987_v17 = vpop.f32.mrf.mxu0 }
 0x252   : >> { %v985_v39 = vmax.f32 %v5985_v15, %v5987_v17 }
 0x253   : >> { %v5989_v18 = vpop.f32.mrf.mxu0  ;;  %4717 = vmatmul.mubr.msk.bf16.gmra.mxu0 %vm703_vm2, %v1546_v16 }
 0x254   : >> { %1786 = vmatprep.mubr.bf16.mxu0 %v8418_v35 }
 0x255   : >> { %v5993_v19 = vpop.f32.mrf.mxu0 }
 0x256   : >> { %8789 = vst [vmem:[#allocation15_spill] sm:$0xff] %v5993_v19  ;;  %v988_v21 = vmax.f32 %v5989_v18, %v5993_v19 }
 0x257   : >> { %v5997_v22 = vpop.f32.mrf.mxu0 }
 0x258   : >> { %8790 = vst [vmem:[#allocation16_spill] sm:$0xff] %v5997_v22  ;;  %989 = vmax.xlane.f32.xlu1 %v988_v21 }
 0x259   : >> { %v5999_v24 = vpop.f32.mrf.mxu0 }
 0x25a   : >> { %8791 = vst [vmem:[#allocation17_spill] sm:$0xff] %v5999_v24  ;;  %v991_v25 = vmax.f32 %v5997_v22, %v5999_v24 }
 0x25b   : >> { %v6003_v26 = vpop.f32.mrf.mxu0  ;;  %4718 = vmatmul.mubr.msk.bf16.gmra.mxu0 %vm703_vm2, %v1547_v23  ;;  %v967_v23 = vmax.f32 %v5951_v52, %v5953_v54 }
 0x25c   : >> { %992 = vmax.xlane.f32.xlu1 %v991_v25  ;;  %2484 = vmatprep.mubr.bf16.mxu0 %v8418_v35 }
 0x25d   : >> { %v6007_v27 = vpop.f32.mrf.mxu0 }
 0x25e   : >> { %v994_v29 = vmax.f32 %v6003_v26, %v6007_v27 }
 0x25f   : >> { %v6013_v32 = vpop.f32.mrf.mxu0 }
 0x260   : >> { %995 = vmax.xlane.f32.xlu1 %v994_v29  ;;  %v2371_v29 = vpop.trf.xlu0 }
 0x261   : >> { %v6016_v37 = vpop.f32.mrf.mxu0 }
 0x262   : >> { %v997_v38 = vmax.f32 %v6013_v32, %v6016_v37 }
 0x263   : >> { %v6023_v41 = vpop.f32.mrf.mxu0  ;;  %4724 = vmatmul.mubr.msk.bf16.vlgmr.msra.gmra.mxu0 %vm703_vm2, %v2369_v33  ;;  %v958_v33 = vmax.f32 %v5935_v46, %v5939_v47 }
 0x264   : >> { %8792 = vst [vmem:[#allocation18_spill] sm:$0xff] %v6023_v41  ;;  %998 = vmax.xlane.f32.xlu0 %v997_v38  ;;  %986 = vmax.xlane.f32.xlu1 %v985_v39 }
 0x265   : >> { %v6026_v61 = vpop.f32.mrf.mxu0  ;;  %2494 = vmatprep.mubr.bf16.mxu0 %v8418_v35  ;;  %3312 = vmatpush1.bf16.msra.mxu0 %v3292_v40 }
 0x266   : >> { %8793 = vst [vmem:[#allocation19_spill] sm:$0xff] %v6026_v61  ;;  %v1000_v16 = vmax.f32 %v6023_v41, %v6026_v61 }
 0x267   : >> { %v6033_v49 = vpop.f32.mrf.mxu0 }
 0x268   : >> { %8794 = vst [vmem:[#allocation20_spill] sm:$0xff] %v6033_v49  ;;  %974 = vmax.xlane.f32.xlu0 %v973_v28  ;;  %977 = vmax.xlane.f32.xlu1 %v976_v44  ;;  %v961_v28 = vmax.f32 %v5941_v48, %v5943_v36 }
 0x269   : >> { %v6035_v57 = vpop.f32.mrf.mxu0 }
 0x26a   : >> { %8795 = vst [vmem:[#allocation21_spill] sm:$0xff] %v6035_v57  ;;  %v1003_v30 = vmax.f32 %v6033_v49, %v6035_v57 }
 0x26b   : >> { %v6041_v14 = vpop.f32.mrf.mxu0  ;;  %4725 = vmatmul.mubr.msk.bf16.gmra.mxu0 %vm703_vm2, %v2370_v53  ;;  %v2372_v53 = vpop.trf.xlu0 }
 0x26c   : >> { %8796 = vst [vmem:[#allocation22_spill] sm:$0xff] %v6041_v14  ;;  %965 = vmax.xlane.f32.xlu0 %v964_v59  ;;  %980 = vmax.xlane.f32.xlu1 %v979_v8 }
 0x26d   : >> { %v6046_v21 = vpop.f32.mrf.mxu0  ;;  %2504 = vmatprep.mubr.bf16.mxu0 %v8418_v35 }
 0x26e   : >> { %8797 = vst [vmem:[#allocation23_spill] sm:$0xff] %v6046_v21 }
 0x26f   : >> { %v6051_v25 = vpop.f32.mrf.mxu0 }
 0x270   : >> { %8798 = vst [vmem:[#allocation24_spill] sm:$0xff] %v6051_v25  ;;  %968 = vmax.xlane.f32.xlu0 %v967_v23  ;;  %1001 = vmax.xlane.f32.xlu1 %v1000_v16  ;;  %v952_v16 = vmax.f32 %v5925_v42, %v5929_v34 }
 0x271   : >> { %v6055_v31 = vpop.f32.mrf.mxu0 }
 0x272   : >> { %8799 = vst [vmem:[#allocation25_spill] sm:$0xff] %v6055_v31  ;;  %v1009_v39 = vmax.f32 %v6051_v25, %v6055_v31 }
 0x273   : >> { %v6059_v38 = vpop.f32.mrf.mxu0  ;;  %4726 = vmatmul.mubr.msk.bf16.gmra.mxu0 %vm703_vm2, %v2371_v29 }
 0x274   : >> { %8800 = vst [vmem:[#allocation26_spill] sm:$0xff] %v6059_v38  ;;  %959 = vmax.xlane.f32.xlu0 %v958_v33  ;;  %1004 = vmax.xlane.f32.xlu1 %v1003_v30  ;;  %v955_v33 = vmax.f32 %v5931_v43, %v5933_v45 }
 0x275   : >> { %v6064_v40 = vpop.f32.mrf.mxu0  ;;  %2514 = vmatprep.mubr.bf16.mxu0 %v8418_v35 }
 0x276   : >> { %8801 = vst [vmem:[#allocation27_spill] sm:$0xff] %v6064_v40  ;;  %v1012_v59 = vmax.f32 %v6059_v38, %v6064_v40 }
 0x277   : >> { %v6069_v44 = vpop.f32.mrf.mxu0 }
 0x278   : >> { %8802 = vst [vmem:[#allocation28_spill] sm:$0xff] %v6069_v44  ;;  %962 = vmax.xlane.f32.xlu0 %v961_v28  ;;  %1010 = vmax.xlane.f32.xlu1 %v1009_v39  ;;  %v2373_v28 = vpop.trf.xlu0 }
 0x279   : >> { %v6073_v8 = vpop.f32.mrf.mxu0 }
 0x27a   : >> { %8803 = vst [vmem:[#allocation29_spill] sm:$0xff] %v6073_v8  ;;  %v1015_v29 = vmax.f32 %v6069_v44, %v6073_v8 }
 0x27b   : >> { %v6077_v23 = vpop.f32.mrf.mxu0  ;;  %4727 = vmatmul.mubr.msk.bf16.gmra.mxu0 %vm703_vm2, %v2372_v53  ;;  %v1006_v53 = vmax.f32 %v6041_v14, %v6046_v21 }
 0x27c   : >> { %8804 = vst [vmem:[#allocation30_spill] sm:$0xff] %v6077_v23  ;;  %953 = vmax.xlane.f32.xlu0 %v952_v16  ;;  %1013 = vmax.xlane.f32.xlu1 %v1012_v59  ;;  %v2374_v2 = vpop.trf.xlu0 }
 0x27d   : >> { %v6082_v30 = vpop.f32.mrf.mxu0  ;;  %2524 = vmatprep.mubr.bf16.mxu0 %v8418_v35 }
 0x27e   : >> { %8805 = vst [vmem:[#allocation31_spill] sm:$0xff] %v6082_v30  ;;  %v1018_v59 = vmax.f32 %v6077_v23, %v6082_v30 }
 0x27f   : >> { %v6087_v39 = vpop.f32.mrf.mxu0 }
 0x280   : >> { %8806 = vst [vmem:[#allocation32_spill] sm:$0xff] %v6087_v39  ;;  %956 = vmax.xlane.f32.xlu0 %v955_v33  ;;  %1016 = vmax.xlane.f32.xlu1 %v1015_v29  ;;  %v8810_v29 = vmov 0  }
 0x281   : >> { %v6093_v16 = vpop.f32.mrf.mxu0 }
 0x282   : >> { %8807 = vst [vmem:[#allocation33_spill] sm:$0xff] %v6093_v16  ;;  %v1021_v35 = vmax.f32 %v6087_v39, %v6093_v16 }
 0x283   : >> { %v6095_v0 = vpop.f32.mrf.mxu0  ;;  %4728 = vmatmul.mubr.msk.bf16.gmra.mxu0 %vm703_vm2, %v2373_v28 }
 0x284   : >> { %8808 = vst [vmem:[#allocation34_spill] sm:$0xff] %v6095_v0  ;;  %1007 = vmax.xlane.f32.xlu0 %v1006_v53  ;;  %1019 = vmax.xlane.f32.xlu1 %v1018_v59 }
 0x285   : >> { %v6100_v33 = vpop.f32.mrf.mxu0  ;;  %2534 = vmatprep.mubr.bf16.mxu0 %v8810_v29 }
 0x286   : >> { %8809 = vst [vmem:[#allocation35_spill] sm:$0xff] %v6100_v33  ;;  %v1024_v1 = vmax.f32 %v6095_v0, %v6100_v33 }
 0x287   : >> { %v6105_v3 = vpop.f32.mrf.mxu0 }
 0x288   : >> { %8811 = vst [vmem:[#allocation36_spill] sm:$0xff] %v6105_v3  ;;  %1025 = vmax.xlane.f32.xlu0 %v1024_v1  ;;  %1022 = vmax.xlane.f32.xlu1 %v1021_v35  ;;  %v2375_v35 = vpop.trf.xlu0 }
 0x289   : >> { %v6107_v5 = vpop.f32.mrf.mxu0 }
 0x28a   : >> { %8812 = vst [vmem:[#allocation37_spill] sm:$0xff] %v6107_v5  ;;  %v1027_v28 = vmax.f32 %v6105_v3, %v6107_v5 }
 0x28b   : >> { %v6111_v53 = vpop.f32.mrf.mxu0  ;;  %4729 = vmatmul.mubr.msk.bf16.gmra.mxu0 %vm703_vm2, %v2374_v2 }
 0x28c   : >> { %8813 = vst [vmem:[#allocation38_spill] sm:$0xff] %v6111_v53  ;;  %1028 = vmax.xlane.f32.xlu0 %v1027_v28  ;;  %2544 = vmatprep.mubr.bf16.mxu0 %v8810_v29 }
 0x28d   : >> { %v6115_v59 = vpop.f32.mrf.mxu0 }
 0x28e   : >> { %8814 = vst [vmem:[#allocation39_spill] sm:$0xff] %v6115_v59  ;;  %v1030_v6 = vmax.f32 %v6111_v53, %v6115_v59 }
 0x28f   : >> { %v6119_v1 = vpop.f32.mrf.mxu0 }
 0x290   : >> { %8815 = vst [vmem:[#allocation40_spill] sm:$0xff] %v6119_v1  ;;  %1031 = vmax.xlane.f32.xlu0 %v1030_v6  ;;  %v2376_v6 = vpop.trf.xlu0 }
 0x291   : >> { %v6121_v10 = vpop.f32.mrf.mxu0 }
 0x292   : >> { %8816 = vst [vmem:[#allocation41_spill] sm:$0xff] %v6121_v10  ;;  %v1033_v7 = vmax.f32 %v6119_v1, %v6121_v10 }
 0x293   : >> { %v6125_v11 = vpop.f32.mrf.mxu0  ;;  %4730 = vmatmul.mubr.msk.bf16.gmra.mxu0 %vm703_vm2, %v2375_v35 }
 0x294   : >> { %8817 = vst [vmem:[#allocation42_spill] sm:$0xff] %v6125_v11  ;;  %1034 = vmax.xlane.f32.xlu0 %v1033_v7  ;;  %2554 = vmatprep.mubr.bf16.mxu0 %v8810_v29 }
 0x295   : >> { %v6129_v2 = vpop.f32.mrf.mxu0 }
 0x296   : >> { %8818 = vst [vmem:[#allocation43_spill] sm:$0xff] %v6129_v2  ;;  %v1036_v28 = vmax.f32 %v6125_v11, %v6129_v2 }
 0x297   : >> { %v6133_v57 = vpop.f32.mrf.mxu0 }
 0x298   : >> { %8819 = vst [vmem:[#allocation44_spill] sm:$0xff] %v6133_v57  ;;  %1037 = vmax.xlane.f32.xlu0 %v1036_v28  ;;  %v2385_v28 = vpop.trf.xlu1 }
 0x299   : >> { %v6135_v49 = vpop.f32.mrf.mxu0 }
 0x29a   : >> { %8820 = vst [vmem:[#allocation45_spill] sm:$0xff] %v6135_v49  ;;  %v1039_v31 = vmax.f32 %v6133_v57, %v6135_v49 }
 0x29b   : >> { %v6139_v25 = vpop.f32.mrf.mxu0  ;;  %4731 = vmatmul.mubr.msk.bf16.gmra.mxu0 %vm703_vm2, %v2376_v6 }
 0x29c   : >> { %1040 = vmax.xlane.f32.xlu1 %v1039_v31  ;;  %2564 = vmatprep.mubr.bf16.mxu0 %v8810_v29  ;;  %v2386_v61 = vpop.trf.xlu1 }
 0x29d   : >> { %v6143_v7 = vpop.f32.mrf.mxu0 }
 0x29e   : >> { %v1042_v35 = vmax.f32 %v6139_v25, %v6143_v7 }
 0x29f   : >> { %v6147_v8 = vpop.f32.mrf.mxu0 }
 0x2a0   : >> { %8821 = vst [vmem:[#allocation46_spill] sm:$0xff] %v6147_v8  ;;  %1043 = vmax.xlane.f32.xlu0 %v1042_v35 }
 0x2a1   : >> { %v6149_v44 = vpop.f32.mrf.mxu0 }
 0x2a2   : >> { %8822 = vst [vmem:[#allocation47_spill] sm:$0xff] %v6149_v44  ;;  %v1045_v40 = vmax.f32 %v6147_v8, %v6149_v44 }
 0x2a3   : >> { %v6153_v38 = vpop.f32.mrf.mxu0  ;;  %4732 = vmatmul.mubr.msk.bf16.gmra.mxu0 %vm703_vm2, %v2385_v28 }
 0x2a4   : >> { %8823 = vst [vmem:[#allocation48_spill] sm:$0xff] %v6153_v38  ;;  %1046 = vmax.xlane.f32.xlu0 %v1045_v40  ;;  %2574 = vmatprep.mubr.bf16.mxu0 %v8810_v29  ;;  %v2387_v40 = vpop.trf.xlu1 }
 0x2a5   : >> { %v6157_v31 = vpop.f32.mrf.mxu0 }
 0x2a6   : >> { %8824 = vst [vmem:[#allocation49_spill] sm:$0xff] %v6157_v31  ;;  %v3217_v31 = vpop.trf.xlu0 }
 0x2a7   : >> { %v6159_v6 = vpop.f32.mrf.mxu0 }
 0x2a8   : >> { %8825 = vst [vmem:[#allocation50_spill] sm:$0xff] %v6159_v6 }
 0x2a9   : >> { %v6161_v41 = vpop.f32.mrf.mxu0 }
 0x2aa   : >> { %8826 = vst [vmem:[#allocation51_spill] sm:$0xff] %v6161_v41 }
 0x2ab   : >> { %v6163_v35 = vpop.f32.mrf.mxu0  ;;  %4733 = vmatmul.mubr.msk.bf16.gmra.mxu0 %vm703_vm2, %v2386_v61  ;;  %v2388_v61 = vpop.trf.xlu1 }
 0x2ac   : >> { %8827 = vst [vmem:[#allocation52_spill] sm:$0xff] %v6163_v35  ;;  %2584 = vmatprep.mubr.bf16.mxu0 %v8810_v29 }
 0x2ad   : >> { %v6167_v21 = vpop.f32.mrf.mxu0 }
 0x2ae   : >> { %8828 = vst [vmem:[#allocation53_spill] sm:$0xff] %v6167_v21 }
 0x2af   : >> { %v6169_v38 = vpop.f32.mrf.mxu0  ;;  %v2389_v5 = vpop.trf.xlu1 }
 0x2b0   : >> { %8829 = vst [vmem:[#allocation54_spill] sm:$0xff] %v6169_v38 }
 0x2b1   : >> { %v6171_v28 = vpop.f32.mrf.mxu0 }
 0x2b2   : >> { %8830 = vst [vmem:[#allocation55_spill] sm:$0xff] %v6171_v28  ;;  %v3218_v28 = vpop.trf.xlu0 }
 0x2b3   : >> { %v6173_v14 = vpop.f32.mrf.mxu0  ;;  %4734 = vmatmul.mubr.msk.bf16.gmra.mxu0 %vm703_vm2, %v2387_v40  ;;  %v2390_v23 = vpop.trf.xlu1 }
 0x2b4   : >> { %8831 = vst [vmem:[#allocation56_spill] sm:$0xff] %v6173_v14  ;;  %2594 = vmatprep.mubr.bf16.mxu0 %v8810_v29 }
 0x2b5   : >> { %v6177_v6 = vpop.f32.mrf.mxu0 }
 0x2b6   : >> { %8832 = vst [vmem:[#allocation57_spill] sm:$0xff] %v6177_v6  ;;  %v3219_v35 = vpop.trf.xlu0 }
 0x2b7   : >> { %v6179_v41 = vpop.f32.mrf.mxu0  ;;  %v2391_v44 = vpop.trf.xlu1 }
 0x2b8   : >> { %8833 = vst [vmem:[#allocation58_spill] sm:$0xff] %v6179_v41 }
 0x2b9   : >> { %v6181_v16 = vpop.f32.mrf.mxu0 }
 0x2ba   : >> { %8834 = vst [vmem:[#allocation59_spill] sm:$0xff] %v6181_v16  ;;  %v3220_v41 = vpop.trf.xlu0 }
 0x2bb   : >> { %v6183_v39 = vpop.f32.mrf.mxu0  ;;  %4735 = vmatmul.mubr.msk.bf16.gmra.mxu0 %vm703_vm2, %v2388_v61 }
 0x2bc   : >> { %8835 = vst [vmem:[#allocation60_spill] sm:$0xff] %v6183_v39  ;;  %2604 = vmatprep.mubr.bf16.mxu0 %v8810_v29 }
 0x2bd   : >> { %v6187_v38 = vpop.f32.mrf.mxu0 }
 0x2be   : >> { %8836 = vst [vmem:[#allocation61_spill] sm:$0xff] %v6187_v38  ;;  %v6211_v14 = vpop.trf.xlu0 }
 0x2bf   : >> { %v6189_v40 = vpop.f32.mrf.mxu0 }
 0x2c0   : >> { %8837 = vst [vmem:[#allocation62_spill] sm:$0xff] %v6189_v40 }
 0x2c1   : >> { %v6191_v3 = vpop.f32.mrf.mxu0 }
 0x2c2   : >> { %8838 = vst [vmem:[#allocation63_spill] sm:$0xff] %v6191_v3  ;;  %v2392_v3 = vpop.trf.xlu1 }
 0x2c3   : >> { %v6193_v30 = vpop.f32.mrf.mxu0  ;;  %4736 = vmatmul.mubr.msk.bf16.gmra.mxu0 %vm703_vm2, %v2389_v5 }
 0x2c4   : >> { %2614 = vmatprep.mubr.bf16.mxu0 %v8810_v29 }
 0x2c5   : >> { %v6197_v21 = vpop.f32.mrf.mxu0 }
 0x2c7   : >> { %v6199_v61 = vpop.f32.mrf.mxu0 }
 0x2c8   : >> { %8839 = vst [vmem:[#allocation64_spill] sm:$0xff] %v6199_v61 }
 0x2c9   : >> { %v6201_v33 = vpop.f32.mrf.mxu0 }
 0x2ca   : >> { %8840 = vst [vmem:[#allocation65_spill] sm:$0xff] %v6201_v33 }
 0x2cb   : >> { %v6203_v16 = vpop.f32.mrf.mxu0  ;;  %4737 = vmatmul.mubr.msk.bf16.gmra.mxu0 %vm703_vm2, %v2390_v23  ;;  %v6221_v23 = vpop.trf.xlu0 }
 0x2cc   : >> { %2624 = vmatprep.mubr.bf16.mxu0 %v8810_v29 }
 0x2cd   : >> { %v6207_v0 = vpop.f32.mrf.mxu0 }
 0x2cf   : >> { %v6209_v5 = vpop.f32.mrf.mxu0  ;;  %v6231_v59 = vpop.trf.xlu0 }
 0x2d0   : >> { %8841 = vst [vmem:[#allocation66_spill] sm:$0xff] %v6209_v5 }
 0x2d1   : >> { %v6213_v6 = vpop.f32.mrf.mxu0 }
 0x2d2   : >> { %8842 = vst [vmem:[#allocation67_spill] sm:$0xff] %v6213_v6 }
 0x2d3   : >> { %v6215_v8 = vpop.f32.mrf.mxu0  ;;  %4738 = vmatmul.mubr.msk.bf16.gmra.mxu0 %vm703_vm2, %v2391_v44  ;;  %v6239_v53 = vpop.trf.xlu0 }
 0x2d4   : >> { %2634 = vmatprep.mubr.bf16.mxu0 %v8810_v29 }
 0x2d5   : >> { %v6219_v20 = vpop.f32.mrf.mxu0 }
 0x2d7   : >> { %v6223_v10 = vpop.f32.mrf.mxu0  ;;  %v6249_v49 = vpop.xlane.xlu0 %971 }
 0x2d9   : >> { %v6225_v40 = vpop.f32.mrf.mxu0  ;;  %v6275_v11 = vpop.xlane.xlu1 %983 }
 0x2db   : >> { %v6227_v1 = vpop.f32.mrf.mxu0  ;;  %4739 = vmatmul.mubr.msk.bf16.gmra.mxu0 %vm703_vm2, %v2392_v3 }
 0x2dc   : >> { %3329 = vmatprep.mubr.bf16.mxu0 %v8810_v29 }
 0x2dd   : >> { %v6233_v44 = vpop.f32.mrf.mxu0 }
 0x2df   : >> { %v6235_v39 = vpop.f32.mrf.mxu0 }
 0x2e0   : >> { %8843 = vst [vmem:[#allocation68_spill] sm:$0xff] %v6235_v39 }
 0x2e1   : >> { %v6237_v38 = vpop.f32.mrf.mxu0 }
 0x2e2   : >> { %8844 = vst [vmem:[#allocation69_spill] sm:$0xff] %v6237_v38 }
 0x2e3   : >> { %v6241_v61 = vpop.f32.mrf.mxu0  ;;  %4743 = vmatmul.mubr.msk.bf16.vlgmr.msra.gmra.mxu0 %vm703_vm2, %v3217_v31 }
 0x2e4   : >> { %8845 = vst [vmem:[#allocation70_spill] sm:$0xff] %v6241_v61  ;;  %3339 = vmatprep.mubr.bf16.mxu0 %v8810_v29 }
 0x2e5   : >> { %v6245_v33 = vpop.f32.mrf.mxu0 }
 0x2e6   : >> { %8846 = vst [vmem:[#allocation71_spill] sm:$0xff] %v6245_v33 }
 0x2e7   : >> { %v6247_v3 = vpop.f32.mrf.mxu0 }
 0x2e8   : >> { %8847 = vst [vmem:[#allocation72_spill] sm:$0xff] %v6247_v3 }
 0x2e9   : >> { %v6251_v5 = vpop.f32.mrf.mxu0 }
 0x2ea   : >> { %8848 = vst [vmem:[#allocation73_spill] sm:$0xff] %v6251_v5 }
 0x2eb   : >> { %v6253_v6 = vpop.f32.mrf.mxu0  ;;  %4744 = vmatmul.mubr.msk.bf16.gmra.mxu0 %vm703_vm2, %v3218_v28 }
 0x2ec   : >> { %8849 = vst [vmem:[#allocation74_spill] sm:$0xff] %v6253_v6  ;;  %3349 = vmatprep.mubr.bf16.mxu0 %v8810_v29 }
 0x2ed   : >> { %v6257_v57 = vpop.xlane.xlu0 %998  ;;  %v6259_v61 = vpop.f32.mrf.mxu0 }
 0x2ee   : >> { %8850 = vst [vmem:[#allocation75_spill] sm:$0xff] %v6259_v61 }
 0x2ef   : >> { %v6261_v31 = vpop.f32.mrf.mxu0 }
 0x2f0   : >> { %8851 = vst [vmem:[#allocation76_spill] sm:$0xff] %v6261_v31 }
 0x2f1   : >> { %v6263_v2 = vpop.xlane.xlu0 %974  ;;  %v6265_v33 = vpop.f32.mrf.mxu0 }
 0x2f2   : >> { %8852 = vst [vmem:[#allocation77_spill] sm:$0xff] %v6265_v33  ;;  %v6283_v33 = vpop.xlane.xlu1 %989 }
 0x2f3   : >> { %v6267_v3 = vpop.f32.mrf.mxu0  ;;  %4745 = vmatmul.mubr.msk.bf16.gmra.mxu0 %vm703_vm2, %v3219_v35 }
 0x2f4   : >> { %8853 = vst [vmem:[#allocation78_spill] sm:$0xff] %v6267_v3  ;;  %3359 = vmatprep.mubr.bf16.mxu0 %v8810_v29 }
 0x2f5   : >> { %v966_v5 = vpop.xlane.xlu0 %965  ;;  %v6271_v28 = vpop.f32.mrf.mxu0 }
 0x2f6   : >> { %8854 = vst [vmem:[#allocation79_spill] sm:$0xff] %v6271_v28  ;;  %v6296_v19 = vpop.xlane.xlu1 %992 }
 0x2f7   : >> { %v6273_v6 = vpop.f32.mrf.mxu0 }
 0x2f8   : >> { %8855 = vst [vmem:[#allocation80_spill] sm:$0xff] %v6273_v6  ;;  %v1056_v6 = vsub.f32 %v5945_v50, %v966_v5 }
 0x2f9   : >> { %v969_v61 = vpop.xlane.xlu0 %968  ;;  %v6277_v45 = vpop.f32.mrf.mxu0 }
 0x2fa   : >> { %8856 = vst [vmem:[#allocation81_spill] sm:$0xff] %v6277_v45  ;;  %v1057_v45 = vsub.f32 %v5949_v51, %v966_v5  ;;  %v1128_v50 = vmul.f32 1.442695, %v1056_v6 }
 0x2fb   : >> { %v6279_v31 = vpop.f32.mrf.mxu0  ;;  %4746 = vmatmul.mubr.msk.bf16.gmra.mxu0 %vm703_vm2, %v3220_v41  ;;  %v1058_v41 = vsub.f32 %v5951_v52, %v969_v61 }
 0x2fc   : >> { %8857 = vst [vmem:[#allocation82_spill] sm:$0xff] %v6279_v31  ;;  %3369 = vmatprep.mubr.bf16.mxu0 %v8810_v29  ;;  %v1130_v52 = vmul.f32 1.442695, %v1057_v45  ;;  %v1060_v45 = vsub.f32 %v5955_v55, %v6249_v49 }
 0x2fd   : >> { %v960_v35 = vpop.xlane.xlu0 %959  ;;  %v6287_v43 = vpop.f32.mrf.mxu0 }
 0x2fe   : >> { %v1052_v3 = vsub.f32 %v5935_v46, %v960_v35  ;;  %v1053_v28 = vsub.f32 %v5939_v47, %v960_v35  ;;  %8858 = vst [vmem:[#allocation83_spill] sm:$0xff] %v6287_v43  ;;  %v1059_v47 = vsub.f32 %v5953_v54, %v969_v61  ;;  %v1136_v55 = vmul.f32 1.442695, %v1060_v45 }
 0x2ff   : >> { %v6292_v24 = vpop.f32.mrf.mxu0 }
 0x300   : >> { %v1120_v39 = vmul.f32 1.442695, %v1052_v3  ;;  %v1122_v38 = vmul.f32 1.442695, %v1053_v28  ;;  %8859 = vst [vmem:[#allocation84_spill] sm:$0xff] %v6292_v24 }
 0x301   : >> { %v963_v31 = vpop.xlane.xlu0 %962  ;;  %v1132_v3 = vmul.f32 1.442695, %v1058_v41  ;;  %v1134_v54 = vmul.f32 1.442695, %v1059_v47 }
 0x302   : >> { %4886 = vpow2.f32 %v1120_v39  ;;  %v1054_v22 = vsub.f32 %v5941_v48, %v963_v31  ;;  %v1055_v46 = vsub.f32 %v5943_v36, %v963_v31  ;;  %v6302_v48 = vpop.f32.mrf.mxu0 }
 0x303   : >> { %4888 = vpow2.f32 %v1122_v38  ;;  %4747 = vmatmul.mubr.msk.bf16.gmra.mxu0 %vm703_vm2, %v6211_v14  ;;  %8860 = vst [vmem:[#allocation85_spill] sm:$0xff] %v6302_v48  ;;  %v996_v14 = vpop.xlane.xlu1 %995 }
 0x304   : >> { %v1124_v51 = vmul.f32 1.442695, %v1054_v22  ;;  %v1126_v5 = vmul.f32 1.442695, %v1055_v46  ;;  %3379 = vmatprep.mubr.bf16.mxu0 %v8810_v29  ;;  %v6310_v61 = vpop.f32.mrf.mxu0  ;;  %v1077_v28 = vsub.f32 %v6007_v27, %v996_v14  ;;  %v1079_v27 = vsub.f32 %v6016_v37, %v6257_v57 }
 0x305   : >> { %v954_v39 = vpop.xlane.xlu0 %953  ;;  %8861 = vst [vmem:[#allocation86_spill] sm:$0xff] %v6310_v61  ;;  %v1827_v37 = vmax.f32 %v6203_v16, %v6207_v0 }
 0x306   : >> { %4890 = vpow2.f32 %v1124_v51  ;;  %v1048_v36 = vsub.f32 %v5925_v42, %v954_v39  ;;  %v1049_v31 = vsub.f32 %v5929_v34, %v954_v39  ;;  %v1061_v42 = vsub.f32 %v5959_v56, %v6249_v49  ;;  %v6321_v41 = vpop.f32.mrf.mxu0 }
 0x307   : >> { %4892 = vpow2.f32 %v1126_v5  ;;  %v1076_v34 = vsub.f32 %v6003_v26, %v996_v14  ;;  %8862 = vst [vmem:[#allocation87_spill] sm:$0xff] %v6321_v41  ;;  %v6325_v49 = vpop.xlane.xlu1 %986  ;;  %v1078_v26 = vsub.f32 %v6013_v32, %v6257_v57 }
 0x308   : >> { %4894 = vpow2.f32 %v1128_v50  ;;  %v1112_v38 = vmul.f32 1.442695, %v1048_v36  ;;  %v1114_v22 = vmul.f32 1.442695, %v1049_v31  ;;  %v1138_v56 = vmul.f32 1.442695, %v1061_v42 }
 0x309   : >> { %4896 = vpow2.f32 %v1130_v52  ;;  %v6306_v6 = vpop.xlane.xlu0 %956  ;;  %v1170_v50 = vmul.f32 1.442695, %v1077_v28  ;;  %v6337_v52 = vpop.f32.mrf.mxu0  ;;  %v1172_v57 = vmul.f32 1.442695, %v1078_v26  ;;  %v1174_v31 = vmul.f32 1.442695, %v1079_v27 }
 0x30a   : >> { %4898 = vpow2.f32 %v1132_v3  ;;  %v1062_v3 = vsub.f32 %v5963_v58, %v6263_v2  ;;  %v1833_v42 = vmax.f32 %v6215_v8, %v6219_v20 }
 0x30b   : >> { %4900 = vpow2.f32 %v1134_v54  ;;  %4748 = vmatmul.mubr.msk.bf16.gmra.mxu0 %vm703_vm2, %v6221_v23  ;;  %v1168_v23 = vmul.f32 1.442695, %v1076_v34  ;;  %v1063_v54 = vsub.f32 %v5965_v60, %v6263_v2  ;;  %v6360_v45 = vpop.f32.mrf.mxu0 }
 0x30c   : >> { %4902 = vpow2.f32 %v1112_v38  ;;  %3389 = vmatprep.mubr.bf16.mxu0 %v8810_v29  ;;  %v1140_v60 = vmul.f32 1.442695, %v1062_v3 }
 0x30d   : >> { %4904 = vpow2.f32 %v1114_v22  ;;  %v6319_v35 = vpop.xlane.xlu0 %1007  ;;  %v1142_v28 = vmul.f32 1.442695, %v1063_v54  ;;  %v6376_v26 = vpop.f32.mrf.mxu0 }
 0x30e   : >> { %4906 = vpow2.f32 %v1136_v55  ;;  %8873 = vst [vmem:[#allocation98_spill] sm:$0xff] %v6376_v26 }
 0x30f   : >> { %v6323_v46 = vpop.eup %4886  ;;  %4908 = vpow2.f32 %v1138_v56  ;;  %v6387_v3 = vpop.f32.mrf.mxu0 }
 0x310   : >> { %8863 = vst [vmem:[#allocation88_spill] sm:$0xff] %v6323_v46  ;;  %v6327_v47 = vpop.eup %4888  ;;  %4910 = vpow2.f32 %v1168_v23  ;;  %8874 = vst [vmem:[#allocation99_spill] sm:$0xff] %v6387_v3 }
 0x311   : >> { %8864 = vst [vmem:[#allocation89_spill] sm:$0xff] %v6327_v47  ;;  %v6333_v51 = vpop.xlane.xlu0 %1025  ;;  %v1246_v5 = vadd.f32 %v6327_v47, %v6323_v46  ;;  %4912 = vpow2.f32 %v1170_v50  ;;  %v8880_v47 = vld [vmem:[#allocation15_spill] sm:$0xff] }
 0x312   : >> { %4914 = vpow2.f32 %v1172_v57 }
 0x313   : >> { %v6339_v39 = vpop.eup %4890  ;;  %1247 = vadd.xlane.f32.xlu0 %v1246_v5  ;;  %4749 = vmatmul.mubr.msk.bf16.gmra.mxu0 %vm703_vm2, %v6231_v59  ;;  %v978_v59 = vpop.xlane.xlu1 %977  ;;  %4916 = vpow2.f32 %v1174_v31 }
 0x314   : >> { %8865 = vst [vmem:[#allocation90_spill] sm:$0xff] %v6339_v39  ;;  %v6343_v32 = vpop.eup %4892  ;;  %3399 = vmatprep.mubr.bf16.mxu0 %v8810_v29  ;;  %4918 = vpow2.f32 %v1140_v60  ;;  %v1064_v27 = vsub.f32 %v5967_v62, %v978_v59  ;;  %v1065_v5 = vsub.f32 %v5971_v63, %v978_v59 }
 0x315   : >> { %8866 = vst [vmem:[#allocation91_spill] sm:$0xff] %v6343_v32  ;;  %v6350_v36 = vpop.eup %4894  ;;  %v6354_v38 = vpop.xlane.xlu0 %1028  ;;  %v1249_v14 = vadd.f32 %v6343_v32, %v6339_v39  ;;  %4920 = vpow2.f32 %v1142_v28  ;;  %v1839_v39 = vmax.f32 %v6227_v1, %v6233_v44 }
 0x316   : >> { %8867 = vst [vmem:[#allocation92_spill] sm:$0xff] %v6350_v36  ;;  %v6358_v22 = vpop.eup %4896 }
 0x317   : >> { %8868 = vst [vmem:[#allocation93_spill] sm:$0xff] %v6358_v22  ;;  %v6362_v58 = vpop.eup %4898  ;;  %1250 = vadd.xlane.f32.xlu1 %v1249_v14  ;;  %1828 = vmax.xlane.f32.xlu0 %v1827_v37  ;;  %v1252_v56 = vadd.f32 %v6358_v22, %v6350_v36  ;;  %v981_v50 = vpop.xlane.xlu1 %980  ;;  %v1821_v14 = vmax.f32 %v6193_v30, %v6197_v21 }
 0x318   : >> { %8869 = vst [vmem:[#allocation94_spill] sm:$0xff] %v6362_v58  ;;  %v6366_v34 = vpop.eup %4900  ;;  %v1066_v63 = vsub.f32 %v5973_v4, %v981_v50  ;;  %v1067_v60 = vsub.f32 %v5975_v9, %v981_v50  ;;  %v1068_v4 = vsub.f32 %v5977_v12, %v6275_v11  ;;  %v1073_v36 = vsub.f32 %v8880_v47, %v6283_v33 }
 0x319   : >> { %8870 = vst [vmem:[#allocation95_spill] sm:$0xff] %v6366_v34  ;;  %v6368_v2 = vpop.eup %4902  ;;  %v6370_v55 = vpop.xlane.xlu0 %1031  ;;  %v1255_v37 = vadd.f32 %v6366_v34, %v6362_v58 }
 0x31a   : >> { %8871 = vst [vmem:[#allocation96_spill] sm:$0xff] %v6368_v2  ;;  %v6374_v23 = vpop.eup %4904  ;;  %v1150_v50 = vmul.f32 1.442695, %v1067_v60 }
 0x31b   : >> { %8872 = vst [vmem:[#allocation97_spill] sm:$0xff] %v6374_v23  ;;  %1253 = vadd.xlane.f32.xlu1 %v1252_v56  ;;  %1834 = vmax.xlane.f32.xlu0 %v1833_v42  ;;  %v1240_v57 = vadd.f32 %v6374_v23, %v6368_v2  ;;  %v6389_v31 = vpop.eup %4906  ;;  %v1146_v42 = vmul.f32 1.442695, %v1065_v5  ;;  %v6401_v28 = vpop.xlane.xlu1 %1001  ;;  %v1836_v56 = vmax.f32 %v6223_v10, %v6225_v40  ;;  %v1148_v5 = vmul.f32 1.442695, %v1066_v63 }
 0x31c   : >> { %4750 = vmatmul.mubr.msk.bf16.gmra.mxu0 %vm703_vm2, %v6239_v53  ;;  %8875 = vst [vmem:[#allocation100_spill] sm:$0xff] %v6389_v31  ;;  %v6393_v62 = vpop.eup %4908  ;;  %v1144_v53 = vmul.f32 1.442695, %v1064_v27  ;;  %v1069_v27 = vsub.f32 %v5981_v13, %v6275_v11 }
 0x31d   : >> { %3409 = vmatprep.mubr.bf16.mxu0 %v8810_v29  ;;  %v6391_v54 = vpop.xlane.xlu0 %1034  ;;  %8876 = vst [vmem:[#allocation101_spill] sm:$0xff] %v6393_v62  ;;  %v6396_v59 = vpop.eup %4910  ;;  %v1258_v23 = vadd.f32 %v6393_v62, %v6389_v31 }
 0x31e   : >> { %4922 = vpow2.f32 %v1144_v53  ;;  %v1154_v13 = vmul.f32 1.442695, %v1069_v27  ;;  %v1070_v53 = vsub.f32 %v5985_v15, %v6325_v49 }
 0x31f   : >> { %1256 = vadd.xlane.f32.xlu1 %v1255_v37  ;;  %1241 = vadd.xlane.f32.xlu0 %v1240_v57  ;;  %v6405_v37 = vpop.eup %4912  ;;  %v6407_v57 = vpop.f32.mrf.mxu0  ;;  %4924 = vpow2.f32 %v1146_v42  ;;  %v1071_v42 = vsub.f32 %v5987_v17, %v6325_v49  ;;  %v1072_v17 = vsub.f32 %v5989_v18, %v6283_v33  ;;  %v8882_v18 = vld [vmem:[#allocation16_spill] sm:$0xff]  ;;  %v8884_v33 = vld [vmem:[#allocation17_spill] sm:$0xff] }
 0x320   : >> { %v6413_v9 = vpop.eup %4914  ;;  %v1282_v46 = vadd.f32 %v6405_v37, %v6396_v59  ;;  %v6425_v11 = vpop.xlane.xlu1 %1004  ;;  %4926 = vpow2.f32 %v1148_v5  ;;  %v1156_v49 = vmul.f32 1.442695, %v1070_v53  ;;  %v1162_v53 = vmul.f32 1.442695, %v1073_v36 }
 0x321   : >> { %v6415_v2 = vpop.xlane.xlu0 %1037  ;;  %v6421_v12 = vpop.eup %4916  ;;  %4928 = vpow2.f32 %v1150_v50  ;;  %v1158_v32 = vmul.f32 1.442695, %v1071_v42  ;;  %v1075_v47 = vsub.f32 %v8884_v33, %v6296_v19  ;;  %v8885_v42 = vld [vmem:[#allocation69_spill] sm:$0xff] }
 0x322   : >> { %v6429_v63 = vpop.eup %4918 }
 0x323   : >> { %1822 = vmax.xlane.f32.xlu0 %v1821_v14  ;;  %1837 = vmax.xlane.f32.xlu1 %v1836_v56  ;;  %v6423_v14 = vpop.f32.mrf.mxu0  ;;  %v1152_v56 = vmul.f32 1.442695, %v1068_v4  ;;  %8877 = vst [vmem:[#allocation102_spill] sm:$0xff] %v6429_v63  ;;  %v1285_v4 = vadd.f32 %v6421_v12, %v6413_v9  ;;  %v1166_v36 = vmul.f32 1.442695, %v1075_v47 }
 0x324   : >> { %v6447_v58 = vpop.xlane.xlu1 %1010 }
 0x325   : >> { %4930 = vpow2.f32 %v1152_v56  ;;  %v1074_v56 = vsub.f32 %v8882_v18, %v6296_v19  ;;  %v8893_v18 = vld [vmem:[#allocation13_spill] sm:$0xff] }
 0x326   : >> { %4932 = vpow2.f32 %v1154_v13  ;;  %v1050_v33 = vsub.f32 %v8893_v18, %v6306_v6 }
 0x327   : >> { %1259 = vadd.xlane.f32.xlu1 %v1258_v23  ;;  %1283 = vadd.xlane.f32.xlu0 %v1282_v46  ;;  %v6437_v23 = vpop.eup %4920  ;;  %v6439_v46 = vpop.f32.mrf.mxu0 }
 0x328   : >> { %8878 = vst [vmem:[#allocation103_spill] sm:$0xff] %v6437_v23  ;;  %8879 = vst [vmem:[#allocation104_spill] sm:$0xff] %v6439_v46  ;;  %v1116_v31 = vmul.f32 1.442695, %v1050_v33 }
 0x329   : >> { %v1044_v60 = vpop.xlane.xlu0 %1043 }
 0x32a   : >> { %v1108_v15 = vsub.f32 %v6139_v25, %v1044_v60  ;;  %v1109_v27 = vsub.f32 %v6143_v7, %v1044_v60  ;;  %v1261_v25 = vadd.f32 %v6437_v23, %v6429_v63  ;;  %v6451_v7 = vpop.f32.mrf.mxu0  ;;  %v8886_v60 = vld [vmem:[#allocation68_spill] sm:$0xff] }
 0x32b   : >> { %1840 = vmax.xlane.f32.xlu1 %v1839_v39  ;;  %1286 = vadd.xlane.f32.xlu0 %v1285_v4  ;;  %8881 = vst [vmem:[#allocation15_spill] sm:$0xff] %v6451_v7  ;;  %v1160_v39 = vmul.f32 1.442695, %v1072_v17  ;;  %v6455_v13 = vpop.eup %4922  ;;  %v1842_v4 = vmax.f32 %v8886_v60, %v8885_v42  ;;  %v1164_v17 = vmul.f32 1.442695, %v1074_v56 }
 0x32c   : >> { %v1232_v5 = vmul.f32 1.442695, %v1108_v15  ;;  %v1234_v50 = vmul.f32 1.442695, %v1109_v27  ;;  %8883 = vst [vmem:[#allocation16_spill] sm:$0xff] %v6455_v13  ;;  %v6461_v15 = vpop.eup %4924  ;;  %v6463_v27 = vpop.f32.mrf.mxu0 }
 0x32d   : >> { %8887 = vst [vmem:[#allocation17_spill] sm:$0xff] %v6461_v15  ;;  %8888 = vst [vmem:[#allocation69_spill] sm:$0xff] %v6463_v27  ;;  %v1264_v19 = vadd.f32 %v6461_v15, %v6455_v13 }
 0x32e   : >> { %4934 = vpow2.f32 %v1232_v5  ;;  %v6465_v5 = vpop.xlane.xlu1 %1013 }
 0x32f   : >> { %4936 = vpow2.f32 %v1234_v50  ;;  %1262 = vadd.xlane.f32.xlu1 %v1261_v25  ;;  %v6473_v50 = vpop.f32.mrf.mxu0 }
 0x330   : >> { %4938 = vpow2.f32 %v1156_v49  ;;  %v6467_v49 = vpop.eup %4926  ;;  %8891 = vst [vmem:[#allocation106_spill] sm:$0xff] %v6473_v50 }
 0x331   : >> { %4940 = vpow2.f32 %v1158_v32  ;;  %8889 = vst [vmem:[#allocation68_spill] sm:$0xff] %v6467_v49  ;;  %v6471_v32 = vpop.eup %4928  ;;  %v6487_v22 = vpop.f32.mrf.mxu0 }
 0x332   : >> { %4942 = vpow2.f32 %v1160_v39  ;;  %8890 = vst [vmem:[#allocation105_spill] sm:$0xff] %v6471_v32  ;;  %v6475_v25 = vpop.eup %4930  ;;  %v8894_v39 = vld [vmem:[#allocation14_spill] sm:$0xff]  ;;  %v1267_v47 = vadd.f32 %v6471_v32, %v6467_v49  ;;  %v8906_v49 = vld [vmem:[#allocation43_spill] sm:$0xff] }
 0x333   : >> { %1843 = vmax.xlane.f32.xlu1 %v1842_v4  ;;  %4944 = vpow2.f32 %v1162_v53  ;;  %8892 = vst [vmem:[#allocation107_spill] sm:$0xff] %v6475_v25  ;;  %v1051_v56 = vsub.f32 %v8894_v39, %v6306_v6  ;;  %v6481_v53 = vpop.xlane.xlu1 %1016  ;;  %v6485_v4 = vpop.eup %4932  ;;  %v1105_v15 = vsub.f32 %v8906_v49, %v6415_v2 }
 0x334   : >> { %4946 = vpow2.f32 %v1164_v17  ;;  %8895 = vst [vmem:[#allocation13_spill] sm:$0xff] %v6485_v4  ;;  %v1270_v39 = vadd.f32 %v6485_v4, %v6475_v25  ;;  %v6501_v63 = vpop.f32.mrf.mxu0  ;;  %v8908_v4 = vld [vmem:[#allocation44_spill] sm:$0xff] }
 0x335   : >> { %4948 = vpow2.f32 %v1166_v36  ;;  %v1118_v36 = vmul.f32 1.442695, %v1051_v56  ;;  %v1226_v48 = vmul.f32 1.442695, %v1105_v15  ;;  %v8917_v15 = vld [vmem:[#allocation64_spill] sm:$0xff] }
 0x336   : >> { %4950 = vpow2.f32 %v1116_v31 }
 0x337   : >> { %1265 = vadd.xlane.f32.xlu1 %v1264_v19  ;;  %v6503_v62 = vpop.xlane.xlu1 %1019  ;;  %4952 = vpow2.f32 %v1118_v36  ;;  %v8905_v36 = vld [vmem:[#allocation42_spill] sm:$0xff] }
 0x338   : >> { %v1104_v23 = vsub.f32 %v8905_v36, %v6415_v2  ;;  %v8912_v36 = vld [vmem:[#allocation45_spill] sm:$0xff] }
 0x33b   : >> { %v6489_v19 = vpop.eup %4934  ;;  %1268 = vadd.xlane.f32.xlu1 %v1267_v47  ;;  %v6515_v13 = vpop.xlane.xlu1 %1022 }
 0x33c   : >> { %8896 = vst [vmem:[#allocation14_spill] sm:$0xff] %v6489_v19  ;;  %v6491_v17 = vpop.eup %4936 }
 0x33d   : >> { %8897 = vst [vmem:[#allocation108_spill] sm:$0xff] %v6491_v17  ;;  %v6493_v18 = vpop.eup %4938  ;;  %v1330_v6 = vadd.f32 %v6491_v17, %v6489_v19  ;;  %v6511_v19 = vpop.f32.mrf.mxu0 }
 0x33e   : >> { %8898 = vst [vmem:[#allocation109_spill] sm:$0xff] %v6493_v18  ;;  %v6499_v34 = vpop.eup %4940 }
 0x33f   : >> { %8899 = vst [vmem:[#allocation110_spill] sm:$0xff] %v6499_v34  ;;  %1331 = vadd.xlane.f32.xlu0 %v1330_v6  ;;  %1271 = vadd.xlane.f32.xlu1 %v1270_v39  ;;  %v6505_v47 = vpop.eup %4942  ;;  %v1273_v33 = vadd.f32 %v6499_v34, %v6493_v18  ;;  %v6521_v31 = vpop.f32.mrf.mxu0  ;;  %v1224_v18 = vmul.f32 1.442695, %v1104_v23  ;;  %v8910_v34 = vld [vmem:[#allocation67_spill] sm:$0xff] }
 0x340   : >> { %8900 = vst [vmem:[#allocation111_spill] sm:$0xff] %v6505_v47  ;;  %v6509_v56 = vpop.eup %4944  ;;  %8904 = vst [vmem:[#allocation115_spill] sm:$0xff] %v6521_v31  ;;  %v1041_v25 = vpop.xlane.xlu1 %1040 }
 0x341   : >> { %8901 = vst [vmem:[#allocation112_spill] sm:$0xff] %v6509_v56  ;;  %v6513_v17 = vpop.eup %4946  ;;  %v1276_v6 = vadd.f32 %v6509_v56, %v6505_v47  ;;  %v6529_v32 = vpop.f32.mrf.mxu0  ;;  %v1106_v47 = vsub.f32 %v8908_v4, %v1041_v25  ;;  %v1107_v29 = vsub.f32 %v8912_v36, %v1041_v25  ;;  %4954 = vpow2.f32 %v1224_v18  ;;  %v8922_v36 = vld [vmem:[#allocation39_spill] sm:$0xff] }
 0x342   : >> { %8902 = vst [vmem:[#allocation113_spill] sm:$0xff] %v6513_v17  ;;  %v6519_v39 = vpop.eup %4948  ;;  %8907 = vst [vmem:[#allocation42_spill] sm:$0xff] %v6529_v32  ;;  %4956 = vpow2.f32 %v1226_v48  ;;  %v8916_v32 = vld [vmem:[#allocation65_spill] sm:$0xff]  ;;  %v8921_v48 = vld [vmem:[#allocation60_spill] sm:$0xff] }
 0x343   : >> { %1274 = vadd.xlane.f32.xlu1 %v1273_v33  ;;  %8903 = vst [vmem:[#allocation114_spill] sm:$0xff] %v6519_v39  ;;  %v1279_v33 = vadd.f32 %v6519_v39, %v6513_v17  ;;  %v6532_v56 = vpop.eup %4950  ;;  %v6539_v2 = vpop.f32.mrf.mxu0  ;;  %v1228_v49 = vmul.f32 1.442695, %v1106_v47  ;;  %v1824_v17 = vmax.f32 %v8917_v15, %v8916_v32  ;;  %v8920_v47 = vld [vmem:[#allocation61_spill] sm:$0xff] }
 0x344   : >> { %8909 = vst [vmem:[#allocation43_spill] sm:$0xff] %v6532_v56  ;;  %v6537_v43 = vpop.eup %4952  ;;  %8914 = vst [vmem:[#allocation67_spill] sm:$0xff] %v6539_v2  ;;  %v1101_v2 = vsub.f32 %v8922_v36, %v6370_v55 }
 0x345   : >> { %8913 = vst [vmem:[#allocation44_spill] sm:$0xff] %v6537_v43  ;;  %v1243_v23 = vadd.f32 %v6537_v43, %v6532_v56  ;;  %v6543_v4 = vpop.f32.mrf.mxu0  ;;  %4958 = vpow2.f32 %v1228_v49 }
 0x346   : >> { %v1218_v39 = vmul.f32 1.442695, %v1101_v2 }
 0x347   : >> { %1277 = vadd.xlane.f32.xlu1 %v1276_v6  ;;  %v8911_v6 = vld [vmem:[#allocation66_spill] sm:$0xff]  ;;  %v6547_v25 = vpop.f32.mrf.mxu0 }
 0x348   : >> { %v1830_v24 = vmax.f32 %v8911_v6, %v8910_v34  ;;  %8915 = vst [vmem:[#allocation66_spill] sm:$0xff] %v6543_v4  ;;  %8918 = vst [vmem:[#allocation45_spill] sm:$0xff] %v6547_v25  ;;  %v8926_v25 = vld [vmem:[#allocation63_spill] sm:$0xff] }
 0x349   : >> { %v6555_v56 = vpop.f32.mrf.mxu0 }
 0x34a   : >> { %8923 = vst [vmem:[#allocation64_spill] sm:$0xff] %v6555_v56  ;;  %v8937_v56 = vld [vmem:[#allocation57_spill] sm:$0xff] }
 0x34b   : >> { %1280 = vadd.xlane.f32.xlu1 %v1279_v33  ;;  %v1230_v33 = vmul.f32 1.442695, %v1107_v29  ;;  %v1815_v29 = vmax.f32 %v8921_v48, %v8920_v47  ;;  %v6567_v48 = vpop.f32.mrf.mxu0 }
 0x34d   : >> { %4960 = vpow2.f32 %v1230_v33  ;;  %v6575_v2 = vpop.f32.mrf.mxu0 }
 0x34e   : >> { %v6559_v33 = vpop.eup %4954  ;;  %8933 = vst [vmem:[#allocation117_spill] sm:$0xff] %v6575_v2 }
 0x34f   : >> { %1831 = vmax.xlane.f32.xlu1 %v1830_v24  ;;  %v8919_v24 = vld [vmem:[#allocation38_spill] sm:$0xff]  ;;  %v6565_v47 = vpop.eup %4956 }
 0x350   : >> { %v1100_v18 = vsub.f32 %v8919_v24, %v6370_v55  ;;  %8925 = vst [vmem:[#allocation38_spill] sm:$0xff] %v6559_v33  ;;  %v8928_v24 = vld [vmem:[#allocation41_spill] sm:$0xff]  ;;  %8929 = vst [vmem:[#allocation39_spill] sm:$0xff] %v6565_v47  ;;  %v1324_v36 = vadd.f32 %v6565_v47, %v6559_v33  ;;  %v8939_v47 = vld [vmem:[#allocation47_spill] sm:$0xff] }
 0x351   : >> { %v1103_v32 = vsub.f32 %v8928_v24, %v6391_v54 }
 0x352   : >> { %v1216_v49 = vmul.f32 1.442695, %v1100_v18  ;;  %v6569_v18 = vpop.eup %4958 }
 0x353   : >> { %1244 = vadd.xlane.f32.xlu1 %v1243_v23  ;;  %v8924_v23 = vld [vmem:[#allocation40_spill] sm:$0xff]  ;;  %8931 = vst [vmem:[#allocation41_spill] sm:$0xff] %v6569_v18 }
 0x354   : >> { %v1102_v4 = vsub.f32 %v8924_v23, %v6391_v54  ;;  %8930 = vst [vmem:[#allocation40_spill] sm:$0xff] %v6567_v48  ;;  %4962 = vpow2.f32 %v1216_v49  ;;  %v1047_v54 = vpop.xlane.xlu0 %1046  ;;  %v6579_v49 = vpop.f32.mrf.mxu0  ;;  %v8938_v48 = vld [vmem:[#allocation56_spill] sm:$0xff] }
 0x355   : >> { %4964 = vpow2.f32 %v1218_v39  ;;  %8934 = vst [vmem:[#allocation118_spill] sm:$0xff] %v6579_v49  ;;  %v1809_v33 = vmax.f32 %v8938_v48, %v8937_v56  ;;  %v8944_v49 = vld [vmem:[#allocation58_spill] sm:$0xff] }
 0x356   : >> { %v1220_v55 = vmul.f32 1.442695, %v1102_v4  ;;  %v8935_v4 = vld [vmem:[#allocation12_spill] sm:$0xff]  ;;  %v6586_v2 = vpop.f32.mrf.mxu0 }
 0x357   : >> { %1825 = vmax.xlane.f32.xlu1 %v1824_v17  ;;  %v8927_v17 = vld [vmem:[#allocation62_spill] sm:$0xff]  ;;  %v3206_v39 = vrot.slane %v8935_v4, 2  ;;  %8940 = vst [vmem:[#allocation12_spill] sm:$0xff] %v6586_v2 }
 0x358   : >> { %v1818_v43 = vmax.f32 %v8927_v17, %v8926_v25  ;;  %4966 = vpow2.f32 %v1220_v55  ;;  %v1111_v25 = vsub.f32 %v8939_v47, %v1047_v54  ;;  %v8941_v55 = vld [vmem:[#allocation34_spill] sm:$0xff]  ;;  %v6598_v47 = vpop.f32.mrf.mxu0 }
 0x359   : >> { %8947 = vst [vmem:[#allocation47_spill] sm:$0xff] %v6598_v47 }
 0x35a   : >> { %v6573_v23 = vpop.eup %4960  ;;  %v1238_v17 = vmul.f32 1.442695, %v1111_v25  ;;  %v6606_v2 = vpop.f32.mrf.mxu0 }
 0x35b   : >> { %1816 = vmax.xlane.f32.xlu1 %v1815_v29  ;;  %v1222_v29 = vmul.f32 1.442695, %v1103_v32  ;;  %8932 = vst [vmem:[#allocation116_spill] sm:$0xff] %v6573_v23  ;;  %v8936_v32 = vld [vmem:[#allocation46_spill] sm:$0xff]  ;;  %8950 = vst [vmem:[#allocation119_spill] sm:$0xff] %v6606_v2  ;;  %v8956_v2 = vld [vmem:[#allocation36_spill] sm:$0xff] }
 0x35c   : >> { %v1110_v24 = vsub.f32 %v8936_v32, %v1047_v54  ;;  %v8945_v32 = vld [vmem:[#allocation35_spill] sm:$0xff]  ;;  %v6610_v25 = vpop.f32.mrf.mxu0 }
 0x35d   : >> { %4968 = vpow2.f32 %v1222_v29  ;;  %v1096_v29 = vsub.f32 %v8941_v55, %v6333_v51  ;;  %8951 = vst [vmem:[#allocation120_spill] sm:$0xff] %v6610_v25 }
 0x35f   : >> { %1819 = vmax.xlane.f32.xlu1 %v1818_v43  ;;  %v1327_v43 = vadd.f32 %v6573_v23, %v6569_v18  ;;  %v1097_v23 = vsub.f32 %v8945_v32, %v6333_v51  ;;  %v8955_v32 = vld [vmem:[#allocation31_spill] sm:$0xff] }
 0x360   : >> { %v1093_v47 = vsub.f32 %v8955_v32, %v6503_v62 }
 0x361   : >> { %v6590_v18 = vpop.eup %4962 }
 0x362   : >> { %8942 = vst [vmem:[#allocation46_spill] sm:$0xff] %v6590_v18  ;;  %v6596_v56 = vpop.eup %4964 }
 0x363   : >> { %1325 = vadd.xlane.f32.xlu1 %v1324_v36  ;;  %v1236_v36 = vmul.f32 1.442695, %v1110_v24  ;;  %8946 = vst [vmem:[#allocation56_spill] sm:$0xff] %v6596_v56  ;;  %v1210_v24 = vmul.f32 1.442695, %v1097_v23 }
 0x365   : >> { %4970 = vpow2.f32 %v1236_v36  ;;  %v6600_v54 = vpop.eup %4966  ;;  %v8954_v36 = vld [vmem:[#allocation52_spill] sm:$0xff] }
 0x366   : >> { %8948 = vst [vmem:[#allocation34_spill] sm:$0xff] %v6600_v54  ;;  %4972 = vpow2.f32 %v1238_v17  ;;  %v8953_v17 = vld [vmem:[#allocation53_spill] sm:$0xff] }
 0x367   : >> { %1328 = vadd.xlane.f32.xlu1 %v1327_v43  ;;  %v8943_v43 = vld [vmem:[#allocation59_spill] sm:$0xff] }
 0x368   : >> { %v1812_v4 = vmax.f32 %v8944_v49, %v8943_v43 }
 0x36a   : >> { %v6604_v55 = vpop.eup %4968 }
 0x36b   : >> { %1810 = vmax.xlane.f32.xlu1 %v1809_v33  ;;  %v1208_v33 = vmul.f32 1.442695, %v1096_v29  ;;  %8949 = vst [vmem:[#allocation35_spill] sm:$0xff] %v6604_v55  ;;  %v1321_v51 = vadd.f32 %v6604_v55, %v6600_v54  ;;  %v8952_v29 = vld [vmem:[#allocation30_spill] sm:$0xff] }
 0x36c   : >> { %3225 = vxpose.xlu0.c.b16.start.end [1/1] (short) %v3206_v39, 128  ;;  %v1318_v39 = vadd.f32 %v6596_v56, %v6590_v18  ;;  %v1092_v23 = vsub.f32 %v8952_v29, %v6503_v62  ;;  %v8961_v56 = vld [vmem:[#allocation55_spill] sm:$0xff]  ;;  %v8962_v55 = vld [vmem:[#allocation54_spill] sm:$0xff]  ;;  %v8963_v62 = vld [vmem:[#allocation33_spill] sm:$0xff] }
 0x36d   : >> { %4974 = vpow2.f32 %v1208_v33  ;;  %v6620_v33 = vpop.f32.mrf.mxu0  ;;  %v1095_v32 = vsub.f32 %v8963_v62, %v6515_v13 }
 0x36e   : >> { %4976 = vpow2.f32 %v1210_v24  ;;  %8957 = vst [vmem:[#allocation30_spill] sm:$0xff] %v6620_v33  ;;  %v8958_v24 = vld [vmem:[#allocation37_spill] sm:$0xff]  ;;  %v1200_v25 = vmul.f32 1.442695, %v1092_v23  ;;  %v8964_v33 = vld [vmem:[#allocation22_spill] sm:$0xff]  ;;  %v8966_v23 = vld [vmem:[#allocation23_spill] sm:$0xff] }
 0x36f   : >> { %1813 = vmax.xlane.f32.xlu1 %v1812_v4  ;;  %v1803_v4 = vmax.f32 %v8954_v36, %v8953_v17  ;;  %v1099_v18 = vsub.f32 %v8958_v24, %v6354_v38  ;;  %v1806_v17 = vmax.f32 %v8962_v55, %v8961_v56  ;;  %v1202_v36 = vmul.f32 1.442695, %v1093_v47 }
 0x370   : >> { %v1084_v43 = vsub.f32 %v8964_v33, %v6319_v35  ;;  %v1085_v24 = vsub.f32 %v8966_v23, %v6319_v35  ;;  %4978 = vpow2.f32 %v1200_v25  ;;  %v1206_v47 = vmul.f32 1.442695, %v1095_v32 }
 0x371   : >> { %4980 = vpow2.f32 %v1202_v36  ;;  %v8973_v36 = vld [vmem:[#allocation26_spill] sm:$0xff] }
 0x372   : >> { %v6626_v29 = vpop.eup %4970  ;;  %v1184_v33 = vmul.f32 1.442695, %v1084_v43  ;;  %v1088_v32 = vsub.f32 %v8973_v36, %v6465_v5 }
 0x373   : >> { %1319 = vadd.xlane.f32.xlu1 %v1318_v39  ;;  %v1098_v39 = vsub.f32 %v8956_v2, %v6354_v38  ;;  %8960 = vst [vmem:[#allocation31_spill] sm:$0xff] %v6626_v29  ;;  %v6632_v2 = vpop.eup %4972 }
 0x375   : >> { %v1212_v38 = vmul.f32 1.442695, %v1098_v39 }
 0x377   : >> { %1322 = vadd.xlane.f32.xlu1 %v1321_v51  ;;  %v8959_v51 = vld [vmem:[#allocation32_spill] sm:$0xff]  ;;  %4982 = vpow2.f32 %v1212_v38  ;;  %v8974_v38 = vld [vmem:[#allocation49_spill] sm:$0xff] }
 0x378   : >> { %v1094_v54 = vsub.f32 %v8959_v51, %v6515_v13  ;;  %v1214_v51 = vmul.f32 1.442695, %v1099_v18  ;;  %v1333_v13 = vadd.f32 %v6632_v2, %v6626_v29  ;;  %v8970_v18 = vld [vmem:[#allocation18_spill] sm:$0xff] }
 0x37a   : >> { %v1204_v49 = vmul.f32 1.442695, %v1094_v54  ;;  %v6640_v56 = vpop.eup %4974  ;;  %4984 = vpow2.f32 %v1214_v51  ;;  %v1080_v54 = vsub.f32 %v8970_v18, %v6401_v28  ;;  %v1192_v18 = vmul.f32 1.442695, %v1088_v32 }
 0x37b   : >> { %1804 = vmax.xlane.f32.xlu1 %v1803_v4  ;;  %v6636_v4 = vpop.f32.mrf.mxu0  ;;  %8967 = vst [vmem:[#allocation37_spill] sm:$0xff] %v6640_v56  ;;  %v6644_v62 = vpop.eup %4976 }
 0x37c   : >> { %8965 = vst [vmem:[#allocation36_spill] sm:$0xff] %v6636_v4  ;;  %8968 = vst [vmem:[#allocation32_spill] sm:$0xff] %v6644_v62  ;;  %v1186_v4 = vmul.f32 1.442695, %v1085_v24  ;;  %4986 = vpow2.f32 %v1204_v49  ;;  %v1312_v35 = vadd.f32 %v6644_v62, %v6640_v56  ;;  %v8975_v49 = vld [vmem:[#allocation48_spill] sm:$0xff]  ;;  %v8976_v24 = vld [vmem:[#allocation27_spill] sm:$0xff] }
 0x37d   : >> { %v6646_v39 = vpop.f32.mrf.mxu0  ;;  %4988 = vpow2.f32 %v1206_v47  ;;  %v1797_v23 = vmax.f32 %v8975_v49, %v8974_v38  ;;  %v1089_v51 = vsub.f32 %v8976_v24, %v6465_v5  ;;  %v1176_v47 = vmul.f32 1.442695, %v1080_v54  ;;  %v8982_v56 = vld [vmem:[#allocation29_spill] sm:$0xff] }
 0x37e   : >> { %8969 = vst [vmem:[#allocation54_spill] sm:$0xff] %v6646_v39  ;;  %4990 = vpow2.f32 %v1184_v33  ;;  %v8978_v39 = vld [vmem:[#allocation28_spill] sm:$0xff]  ;;  %v1091_v62 = vsub.f32 %v8982_v56, %v6481_v53 }
 0x37f   : >> { %1807 = vmax.xlane.f32.xlu1 %v1806_v17  ;;  %v6652_v25 = vpop.f32.mrf.mxu0  ;;  %v8972_v17 = vld [vmem:[#allocation19_spill] sm:$0xff]  ;;  %4992 = vpow2.f32 %v1186_v4  ;;  %v6666_v4 = vpop.eup %4978 }
 0x380   : >> { %8971 = vst [vmem:[#allocation33_spill] sm:$0xff] %v6652_v25  ;;  %v1081_v43 = vsub.f32 %v8972_v17, %v6401_v28  ;;  %v1090_v28 = vsub.f32 %v8978_v39, %v6481_v53  ;;  %8979 = vst [vmem:[#allocation23_spill] sm:$0xff] %v6666_v4  ;;  %v8981_v17 = vld [vmem:[#allocation50_spill] sm:$0xff]  ;;  %v1194_v25 = vmul.f32 1.442695, %v1089_v51  ;;  %v6672_v29 = vpop.eup %4980  ;;  %4994 = vpow2.f32 %v1176_v47 }
 0x381   : >> { %8983 = vst [vmem:[#allocation18_spill] sm:$0xff] %v6672_v29  ;;  %v1306_v53 = vadd.f32 %v6672_v29, %v6666_v4 }
 0x382   : >> { %v1178_v33 = vmul.f32 1.442695, %v1081_v43  ;;  %v1196_v39 = vmul.f32 1.442695, %v1090_v28  ;;  %v8993_v28 = vld [vmem:[#allocation24_spill] sm:$0xff] }
 0x383   : >> { %1334 = vadd.xlane.f32.xlu1 %v1333_v13  ;;  %v6662_v13 = vpop.f32.mrf.mxu0 }
 0x384   : >> { %8977 = vst [vmem:[#allocation22_spill] sm:$0xff] %v6662_v13  ;;  %v6676_v54 = vpop.eup %4982  ;;  %4996 = vpow2.f32 %v1178_v33 }
 0x385   : >> { %v6674_v5 = vpop.f32.mrf.mxu0  ;;  %8985 = vst [vmem:[#allocation26_spill] sm:$0xff] %v6676_v54  ;;  %4998 = vpow2.f32 %v1192_v18 }
 0x386   : >> { %8984 = vst [vmem:[#allocation19_spill] sm:$0xff] %v6674_v5  ;;  %5000 = vpow2.f32 %v1194_v25 }
 0x387   : >> { %1313 = vadd.xlane.f32.xlu1 %v1312_v35  ;;  %v8980_v35 = vld [vmem:[#allocation51_spill] sm:$0xff]  ;;  %v6678_v43 = vpop.eup %4984  ;;  %v6686_v24 = vpop.f32.mrf.mxu0  ;;  %5002 = vpow2.f32 %v1196_v39  ;;  %v1887_v39 = vmax.f32 %v6487_v22, %v6501_v63 }
 0x388   : >> { %v1800_v36 = vmax.f32 %v8981_v17, %v8980_v35  ;;  %8986 = vst [vmem:[#allocation49_spill] sm:$0xff] %v6678_v43  ;;  %8989 = vst [vmem:[#allocation28_spill] sm:$0xff] %v6686_v24  ;;  %v1315_v47 = vadd.f32 %v6678_v43, %v6676_v54 }
 0x389   : >> { %v6680_v32 = vpop.eup %4986  ;;  %v6696_v25 = vpop.f32.mrf.mxu0 }
 0x38a   : >> { %8987 = vst [vmem:[#allocation48_spill] sm:$0xff] %v6680_v32  ;;  %v6684_v56 = vpop.eup %4988  ;;  %8992 = vst [vmem:[#allocation29_spill] sm:$0xff] %v6696_v25 }
 0x38b   : >> { %1798 = vmax.xlane.f32.xlu1 %v1797_v23  ;;  %v1198_v23 = vmul.f32 1.442695, %v1091_v62  ;;  %8988 = vst [vmem:[#allocation27_spill] sm:$0xff] %v6684_v56  ;;  %v6688_v51 = vpop.eup %4990  ;;  %v1309_v62 = vadd.f32 %v6684_v56, %v6680_v32 }
 0x38c   : >> { %8990 = vst [vmem:[#allocation51_spill] sm:$0xff] %v6688_v51  ;;  %v6692_v33 = vpop.eup %4992 }
 0x38d   : >> { %8991 = vst [vmem:[#allocation50_spill] sm:$0xff] %v6692_v33  ;;  %5004 = vpow2.f32 %v1198_v23  ;;  %v1294_v18 = vadd.f32 %v6692_v33, %v6688_v51  ;;  %v6706_v23 = vpop.f32.mrf.mxu0 }
 0x38e   : >> { %8995 = vst [vmem:[#allocation24_spill] sm:$0xff] %v6706_v23 }
 0x38f   : >> { %1801 = vmax.xlane.f32.xlu1 %v1800_v36  ;;  %v1086_v36 = vsub.f32 %v8993_v28, %v6447_v58  ;;  %v6722_v29 = vpop.f32.mrf.mxu0 }
 0x390   : >> { %9000 = vst [vmem:[#allocation124_spill] sm:$0xff] %v6722_v29 }
 0x391   : >> { %v1188_v51 = vmul.f32 1.442695, %v1086_v36 }
 0x393   : >> { %1307 = vadd.xlane.f32.xlu1 %v1306_v53  ;;  %v8994_v53 = vld [vmem:[#allocation25_spill] sm:$0xff]  ;;  %5006 = vpow2.f32 %v1188_v51 }
 0x394   : >> { %v1087_v4 = vsub.f32 %v8994_v53, %v6447_v58  ;;  %v1890_v53 = vmax.f32 %v6511_v19, %v6521_v31 }
 0x395   : >> { %1316 = vadd.xlane.f32.xlu0 %v1315_v47  ;;  %v6708_v47 = vpop.eup %4994 }
 0x396   : >> { %8996 = vst [vmem:[#allocation25_spill] sm:$0xff] %v6708_v47  ;;  %v6712_v32 = vpop.eup %4996  ;;  %v1190_v58 = vmul.f32 1.442695, %v1087_v4 }
 0x397   : >> { %1310 = vadd.xlane.f32.xlu1 %v1309_v62  ;;  %v1875_v62 = vmax.f32 %v6376_v26, %v6387_v3  ;;  %8997 = vst [vmem:[#allocation121_spill] sm:$0xff] %v6712_v32  ;;  %v6716_v28 = vpop.eup %4998  ;;  %v9001_v3 = vld [vmem:[#allocation20_spill] sm:$0xff] }
 0x398   : >> { %8998 = vst [vmem:[#allocation122_spill] sm:$0xff] %v6716_v28  ;;  %v1082_v36 = vsub.f32 %v9001_v3, %v6425_v11  ;;  %5008 = vpow2.f32 %v1190_v58  ;;  %v1869_v3 = vmax.f32 %v6310_v61, %v6321_v41 }
 0x399   : >> { %1295 = vadd.xlane.f32.xlu0 %v1294_v18  ;;  %v6720_v18 = vpop.eup %5000 }
 0x39a   : >> { %8999 = vst [vmem:[#allocation123_spill] sm:$0xff] %v6720_v18  ;;  %v6732_v4 = vpop.eup %5002  ;;  %v1180_v51 = vmul.f32 1.442695, %v1082_v36  ;;  %v1881_v36 = vmax.f32 %v6439_v46, %v6451_v7 }
 0x39b   : >> { %1888 = vmax.xlane.f32.xlu1 %v1887_v39  ;;  %v1288_v39 = vadd.f32 %v6712_v32, %v6708_v47  ;;  %9002 = vst [vmem:[#allocation20_spill] sm:$0xff] %v6732_v4  ;;  %v6738_v24 = vpop.eup %5004  ;;  %v6740_v47 = vpop.f32.mrf.mxu0 }
 0x39c   : >> { %v6714_v33 = vpop.xlane.xlu0 %1247  ;;  %9005 = vst [vmem:[#allocation125_spill] sm:$0xff] %v6740_v47  ;;  %5010 = vpow2.f32 %v1180_v51 }
 0x39d   : >> { %1876 = vmax.xlane.f32.xlu0 %v1875_v62  ;;  %v9003_v62 = vld [vmem:[#allocation21_spill] sm:$0xff]  ;;  %v6748_v58 = vpop.f32.mrf.mxu0 }
 0x39e   : >> { %v1083_v26 = vsub.f32 %v9003_v62, %v6425_v11  ;;  %9004 = vst [vmem:[#allocation21_spill] sm:$0xff] %v6738_v24  ;;  %v1303_v11 = vadd.f32 %v6738_v24, %v6732_v4  ;;  %9006 = vst [vmem:[#allocation126_spill] sm:$0xff] %v6748_v58 }
 0x39f   : >> { %1891 = vmax.xlane.f32.xlu1 %v1890_v53  ;;  %v1300_v53 = vadd.f32 %v6720_v18, %v6716_v28 }
 0x3a0   : >> { %v6728_v56 = vpop.xlane.xlu0 %1828  ;;  %v6730_v54 = vpop.xlane.xlu1 %1250  ;;  %v1182_v43 = vmul.f32 1.442695, %v1083_v26 }
 0x3a1   : >> { %1289 = vadd.xlane.f32.xlu0 %v1288_v39  ;;  %v6760_v28 = vpop.eup %5006 }
 0x3a2   : >> { %5012 = vpow2.f32 %v1182_v43  ;;  %9007 = vst [vmem:[#allocation127_spill] sm:$0xff] %v6760_v28 }
 0x3a3   : >> { %1301 = vadd.xlane.f32.xlu1 %v1300_v53  ;;  %v6756_v53 = vpop.f32.mrf.mxu0 }
 0x3a4   : >> { %v1835_v32 = vpop.xlane.xlu0 %1834  ;;  %v6744_v25 = vpop.xlane.xlu1 %1253 }
 0x3a5   : >> { %1870 = vmax.xlane.f32.xlu0 %v1869_v3  ;;  %v6764_v51 = vpop.eup %5008  ;;  %v6766_v4 = vpop.f32.mrf.mxu0  ;;  %v1918_v5 = vsub.f32 %v6219_v20, %v1835_v32 }
 0x3a6   : >> { %9008 = vst [vmem:[#allocation128_spill] sm:$0xff] %v6764_v51  ;;  %v1297_v24 = vadd.f32 %v6764_v51, %v6760_v28  ;;  %v1917_v28 = vsub.f32 %v6215_v8, %v1835_v32  ;;  %v1913_v8 = vsub.f32 %v6203_v16, %v6728_v56 }
 0x3a7   : >> { %1304 = vadd.xlane.f32.xlu1 %v1303_v11  ;;  %v1884_v11 = vmax.f32 %v6463_v27, %v6473_v50  ;;  %v1878_v50 = vmax.f32 %v6407_v57, %v6423_v14 }
 0x3a8   : >> { %v6750_v39 = vpop.xlane.xlu0 %1241  ;;  %v6752_v62 = vpop.xlane.xlu1 %1256  ;;  %v1997_v16 = vmul.f32 1.442695, %v1913_v8 }
 0x3a9   : >> { %v6774_v7 = vpop.eup %5010 }
 0x3aa   : >> { %9010 = vst [vmem:[#allocation130_spill] sm:$0xff] %v6774_v7 }
 0x3ab   : >> { %1882 = vmax.xlane.f32.xlu1 %v1881_v36  ;;  %v6772_v36 = vpop.f32.mrf.mxu0 }
 0x3ac   : >> { %v6758_v26 = vpop.xlane.xlu0 %1822  ;;  %v1838_v3 = vpop.xlane.xlu1 %1837  ;;  %9009 = vst [vmem:[#allocation129_spill] sm:$0xff] %v6772_v36 }
 0x3ad   : >> { %v6782_v13 = vpop.f32.mrf.mxu0 }
 0x3ae   : >> { %9011 = vst [vmem:[#allocation131_spill] sm:$0xff] %v6782_v13 }
 0x3af   : >> { %1885 = vmax.xlane.f32.xlu1 %v1884_v11  ;;  %v6780_v46 = vpop.eup %5012 }
 0x3b0   : >> { %v1284_v43 = vpop.xlane.xlu0 %1283  ;;  %v6768_v41 = vpop.xlane.xlu1 %1259 }
 0x3b1   : >> { %5014 = vrcp.f32 %v1284_v43  ;;  %v6790_v43 = vpop.f32.mrf.mxu0 }
 0x3b3   : >> { %1298 = vadd.xlane.f32.xlu1 %v1297_v24 }
 0x3b4   : >> { %v1287_v18 = vpop.xlane.xlu0 %1286  ;;  %v1841_v61 = vpop.xlane.xlu1 %1840 }
 0x3b5   : >> { %v1921_v27 = vsub.f32 %v6227_v1, %v1841_v61  ;;  %v1922_v11 = vsub.f32 %v6233_v44, %v1841_v61  ;;  %5016 = vrcp.f32 %v1287_v18  ;;  %v1291_v1 = vadd.f32 %v6780_v46, %v6774_v7  ;;  %v6798_v18 = vpop.f32.mrf.mxu0 }
 0x3b6   : >> { %v2005_v44 = vmul.f32 1.442695, %v1917_v28  ;;  %v2007_v61 = vmul.f32 1.442695, %v1918_v5  ;;  %v1919_v28 = vsub.f32 %v6223_v10, %v1838_v3  ;;  %v1920_v5 = vsub.f32 %v6225_v40, %v1838_v3 }
 0x3b7   : >> { %v2013_v24 = vmul.f32 1.442695, %v1921_v27  ;;  %v2015_v51 = vmul.f32 1.442695, %v1922_v11  ;;  %1879 = vmax.xlane.f32.xlu1 %v1878_v50  ;;  %v1872_v50 = vmax.f32 %v6337_v52, %v6360_v45  ;;  %v1914_v11 = vsub.f32 %v6207_v0, %v6728_v56 }
 0x3b8   : >> { %v6786_v31 = vpop.xlane.xlu1 %1262  ;;  %v2009_v7 = vmul.f32 1.442695, %v1919_v28  ;;  %v2011_v56 = vmul.f32 1.442695, %v1920_v5 }
 0x3b9   : >> { %5018 = vpow2.f32 %v2013_v24 }
 0x3ba   : >> { %5020 = vpow2.f32 %v2015_v51 }
 0x3bb   : >> { %1292 = vadd.xlane.f32.xlu1 %v1291_v1  ;;  %5022 = vpow2.f32 %v2005_v44 }
 0x3bc   : >> { %v1844_v27 = vpop.xlane.xlu1 %1843  ;;  %5024 = vpow2.f32 %v2007_v61 }
 0x3bd   : >> { %v1923_v20 = vsub.f32 %v8886_v60, %v1844_v27  ;;  %v1924_v32 = vsub.f32 %v8885_v42, %v1844_v27  ;;  %v6806_v42 = vpop.f32.mrf.mxu0  ;;  %v1999_v27 = vmul.f32 1.442695, %v1914_v11 }
 0x3be   : >> { %v5015_v60 = vpop.eup %5014 }
 0x3bf   : >> { %v2017_v51 = vmul.f32 1.442695, %v1923_v20  ;;  %v2019_v24 = vmul.f32 1.442695, %v1924_v32  ;;  %1873 = vmax.xlane.f32.xlu1 %v1872_v50  ;;  %v1397_v44 = vmul.f32 %v5015_v60, %v6405_v37  ;;  %v1396_v40 = vmul.f32 %v5015_v60, %v6396_v59  ;;  %v6816_v50 = vpop.f32.mrf.mxu0 }
 0x3c0   : >> { %v6804_v1 = vpop.xlane.xlu1 %1265  ;;  %v1909_v32 = vsub.f32 %v6193_v30, %v6758_v26  ;;  %v1910_v37 = vsub.f32 %v6197_v21, %v6758_v26 }
 0x3c1   : >> { %5026 = vpow2.f32 %v2017_v51 }
 0x3c2   : >> { %5028 = vpow2.f32 %v2019_v24  ;;  %v5017_v0 = vpop.eup %5016  ;;  %v1989_v24 = vmul.f32 1.442695, %v1909_v32  ;;  %v1991_v60 = vmul.f32 1.442695, %v1910_v37  ;;  %v9022_v32 = vmov 0  }
 0x3c3   : >> { %5030 = vpow2.f32 %v1997_v16  ;;  %v1399_v8 = vmul.f32 %v5017_v0, %v6421_v12  ;;  %v1398_v3 = vmul.f32 %v5017_v0, %v6413_v9  ;;  %v6826_v12 = vpop.f32.mrf.mxu0  ;;  %v9017_v16 = vld [vmem:[#allocation82_spill] sm:$0xff] }
 0x3c4   : >> { %v6808_v10 = vpop.xlane.xlu1 %1268  ;;  %5032 = vpow2.f32 %v1999_v27  ;;  %9014 = vst [vmem:[#allocation134_spill] sm:$0xff] %v6826_v12  ;;  %v9030_v12 = vld [vmem:[#allocation84_spill] sm:$0xff] }
 0x3c5   : >> { %5034 = vpow2.f32 %v2009_v7  ;;  %v1447_v11 = vpack.c.bf16 %v1399_v8, %v1397_v44  ;;  %v1446_v28 = vpack.c.bf16 %v1398_v3, %v1396_v40  ;;  %v9016_v7 = vld [vmem:[#allocation83_spill] sm:$0xff]  ;;  %v6838_v0 = vpop.f32.mrf.mxu0 }
 0x3c6   : >> { %v6814_v61 = vpop.eup %5018  ;;  %5036 = vpow2.f32 %v2011_v56  ;;  %v1863_v5 = vmax.f32 %v9017_v16, %v9016_v7  ;;  %9020 = vst [vmem:[#allocation136_spill] sm:$0xff] %v6838_v0 }
 0x3c7   : >> { %9012 = vst [vmem:[#allocation132_spill] sm:$0xff] %v6814_v61  ;;  %v6818_v20 = vpop.eup %5020  ;;  %1471 = vmatprep.subr.bf16.mxu1 %v1447_v11  ;;  %5038 = vpow2.f32 %v1989_v24  ;;  %v9027_v24 = vld [vmem:[#allocation79_spill] sm:$0xff] }
 0x3c8   : >> { %9013 = vst [vmem:[#allocation133_spill] sm:$0xff] %v6818_v20  ;;  %v1272_v59 = vpop.xlane.xlu1 %1271  ;;  %v2127_v9 = vadd.f32 %v6818_v20, %v6814_v61  ;;  %1472 = vmatpush1.bf16.xpose.msra.mxu1 %v1446_v28  ;;  %v6828_v51 = vpop.xlane.xlu0 %1331  ;;  %5040 = vpow2.f32 %v1991_v60 }
 0x3c9   : >> { %v6830_v30 = vpop.eup %5022  ;;  %v6850_v28 = vpop.f32.mrf.mxu0 }
 0x3ca   : >> { %2128 = vadd.xlane.f32.xlu0 %v2127_v9  ;;  %9015 = vst [vmem:[#allocation135_spill] sm:$0xff] %v6830_v30  ;;  %v6834_v26 = vpop.eup %5024  ;;  %9024 = vst [vmem:[#allocation139_spill] sm:$0xff] %v6850_v28 }
 0x3cb   : >> { %9018 = vst [vmem:[#allocation83_spill] sm:$0xff] %v6834_v26  ;;  %v2121_v40 = vadd.f32 %v6834_v26, %v6830_v30 }
 0x3cc   : >> { %v1275_v21 = vpop.xlane.xlu1 %1274 }
 0x3cd   : >> { %5042 = vrcp.f32 %v1275_v21  ;;  %v6862_v21 = vpop.f32.mrf.mxu0 }
 0x3ce   : >> { %v6836_v27 = vpop.eup %5026  ;;  %1864 = vmax.xlane.f32.xlu0 %v1863_v5  ;;  %v3233_v56 = vpop.trf.xlu0  ;;  %v9028_v5 = vld [vmem:[#allocation78_spill] sm:$0xff]  ;;  %9032 = vst [vmem:[#allocation143_spill] sm:$0xff] %v6862_v21  ;;  %v9035_v21 = vld [vmem:[#allocation75_spill] sm:$0xff] }
 0x3cf   : >> { %9019 = vst [vmem:[#allocation82_spill] sm:$0xff] %v6836_v27  ;;  %v6840_v44 = vpop.eup %5028  ;;  %4751 = vmatmul.mubr.msk.bf16.gmra.mxu0 %vm703_vm2, %v3233_v56  ;;  %v1857_v60 = vmax.f32 %v9028_v5, %v9027_v24  ;;  %v9029_v56 = vld [vmem:[#allocation85_spill] sm:$0xff] }
 0x3d0   : >> { %9021 = vst [vmem:[#allocation137_spill] sm:$0xff] %v6840_v44  ;;  %v1278_v8 = vpop.xlane.xlu1 %1277  ;;  %v2130_v3 = vadd.f32 %v6840_v44, %v6836_v27  ;;  %3419 = vmatprep.mubr.bf16.mxu0 %v9022_v32  ;;  %v6848_v11 = vpop.eup %5030  ;;  %v1866_v0 = vmax.f32 %v9030_v12, %v9029_v56  ;;  %v9041_v44 = vld [vmem:[#allocation65_spill] sm:$0xff] }
 0x3d1   : >> { %9023 = vst [vmem:[#allocation138_spill] sm:$0xff] %v6848_v11  ;;  %v6852_v37 = vpop.eup %5032  ;;  %5044 = vrcp.f32 %v1278_v8  ;;  %v9049_v12 = vld [vmem:[#allocation113_spill] sm:$0xff] }
 0x3d2   : >> { %2122 = vadd.xlane.f32.xlu0 %v2121_v40  ;;  %2131 = vadd.xlane.f32.xlu1 %v2130_v3  ;;  %9025 = vst [vmem:[#allocation140_spill] sm:$0xff] %v6852_v37  ;;  %v6854_v9 = vpop.eup %5034  ;;  %5046 = vrcp.f32 %v1272_v59  ;;  %v3234_v26 = vpop.trf.xlu0  ;;  %v2115_v40 = vadd.f32 %v6852_v37, %v6848_v11  ;;  %v9036_v11 = vld [vmem:[#allocation74_spill] sm:$0xff]  ;;  %v9052_v24 = vld [vmem:[#allocation61_spill] sm:$0xff] }
 0x3d3   : >> { %9026 = vst [vmem:[#allocation141_spill] sm:$0xff] %v6854_v9  ;;  %v6860_v27 = vpop.eup %5036  ;;  %v1851_v37 = vmax.f32 %v9036_v11, %v9035_v21  ;;  %v9047_v11 = vld [vmem:[#allocation114_spill] sm:$0xff] }
 0x3d4   : >> { %v1281_v30 = vpop.xlane.xlu1 %1280  ;;  %9031 = vst [vmem:[#allocation142_spill] sm:$0xff] %v6860_v27  ;;  %v2124_v3 = vadd.f32 %v6860_v27, %v6854_v9  ;;  %v9037_v9 = vld [vmem:[#allocation81_spill] sm:$0xff]  ;;  %v9038_v27 = vld [vmem:[#allocation80_spill] sm:$0xff] }
 0x3d5   : >> { %5048 = vrcp.f32 %v1281_v30  ;;  %v6872_v30 = vpop.f32.mrf.mxu0  ;;  %v1860_v61 = vmax.f32 %v9038_v27, %v9037_v9 }
 0x3d6   : >> { %1858 = vmax.xlane.f32.xlu0 %v1857_v60  ;;  %1867 = vmax.xlane.f32.xlu1 %v1866_v0  ;;  %9033 = vst [vmem:[#allocation144_spill] sm:$0xff] %v6872_v30  ;;  %5050 = vrcp.f32 %v6808_v10  ;;  %v6875_v60 = vpop.eup %5038 }
 0x3d7   : >> { %4752 = vmatmul.mubr.msk.bf16.gmra.mxu0 %vm703_vm2, %v3234_v26  ;;  %9034 = vst [vmem:[#allocation145_spill] sm:$0xff] %v6875_v60  ;;  %5052 = vrcp.f32 %v6804_v1 }
 0x3d8   : >> { %v1832_v8 = vpop.xlane.xlu1 %1831  ;;  %3429 = vmatprep.mubr.bf16.mxu0 %v9022_v32 }
 0x3d9   : >> { %v1915_v59 = vsub.f32 %v8911_v6, %v1832_v8  ;;  %v1916_v28 = vsub.f32 %v8910_v34, %v1832_v8  ;;  %v3235_v34 = vpop.trf.xlu0  ;;  %v6884_v8 = vpop.eup %5040 }
 0x3da   : >> { %2116 = vadd.xlane.f32.xlu0 %v2115_v40  ;;  %2125 = vadd.xlane.f32.xlu1 %v2124_v3  ;;  %9039 = vst [vmem:[#allocation146_spill] sm:$0xff] %v6884_v8  ;;  %v6886_v40 = vpop.f32.mrf.mxu0  ;;  %v5043_v10 = vpop.eup %5042 }
 0x3db   : >> { %v2001_v26 = vmul.f32 1.442695, %v1915_v59  ;;  %v2003_v0 = vmul.f32 1.442695, %v1916_v28  ;;  %9040 = vst [vmem:[#allocation147_spill] sm:$0xff] %v6886_v40  ;;  %v2109_v59 = vadd.f32 %v6884_v8, %v6875_v60  ;;  %v9042_v40 = vld [vmem:[#allocation71_spill] sm:$0xff] }
 0x3dc   : >> { %v6882_v6 = vpop.xlane.xlu1 %1244  ;;  %v9046_v8 = vld [vmem:[#allocation112_spill] sm:$0xff] }
 0x3dd   : >> { %5054 = vpow2.f32 %v2001_v26 }
 0x3de   : >> { %5056 = vpow2.f32 %v2003_v0  ;;  %1852 = vmax.xlane.f32.xlu0 %v1851_v37  ;;  %1861 = vmax.xlane.f32.xlu1 %v1860_v61  ;;  %v5045_v28 = vpop.eup %5044  ;;  %v9043_v0 = vld [vmem:[#allocation70_spill] sm:$0xff]  ;;  %v6896_v61 = vpop.f32.mrf.mxu0 }
 0x3df   : >> { %4753 = vmatmul.mubr.msk.bf16.gmra.mxu0 %vm703_vm2, %v3235_v34  ;;  %v5047_v1 = vpop.eup %5046  ;;  %v1845_v37 = vmax.f32 %v9043_v0, %v9042_v40  ;;  %9044 = vst [vmem:[#allocation65_spill] sm:$0xff] %v6896_v61  ;;  %5058 = vrcp.f32 %v6786_v31  ;;  %v9045_v34 = vld [vmem:[#allocation110_spill] sm:$0xff]  ;;  %v1393_v21 = vmul.f32 %v5045_v28, %v9046_v8  ;;  %v9050_v0 = vld [vmem:[#allocation13_spill] sm:$0xff]  ;;  %v9051_v31 = vld [vmem:[#allocation60_spill] sm:$0xff]  ;;  %v3236_v8 = vpop.trf.xlu0 }
 0x3e0   : >> { %v1826_v3 = vpop.xlane.xlu1 %1825  ;;  %3439 = vmatprep.mubr.bf16.mxu0 %v9022_v32  ;;  %v1391_v9 = vmul.f32 %v5043_v10, %v9045_v34  ;;  %5060 = vrcp.f32 %v6768_v41  ;;  %v1389_v61 = vmul.f32 %v5047_v1, %v9050_v0 }
 0x3e1   : >> { %v1911_v30 = vsub.f32 %v8917_v15, %v1826_v3  ;;  %v1912_v26 = vsub.f32 %v9041_v44, %v1826_v3  ;;  %v9048_v44 = vld [vmem:[#allocation111_spill] sm:$0xff] }
 0x3e2   : >> { %v5049_v20 = vpop.eup %5048  ;;  %2110 = vadd.xlane.f32.xlu0 %v2109_v59  ;;  %v1392_v3 = vmul.f32 %v5045_v28, %v9048_v44  ;;  %v1443_v28 = vpack.c.bf16 %v1391_v9, %v1389_v61  ;;  %v9057_v9 = vld [vmem:[#allocation109_spill] sm:$0xff] }
 0x3e3   : >> { %v1993_v27 = vmul.f32 1.442695, %v1911_v30  ;;  %v1995_v60 = vmul.f32 1.442695, %v1912_v26  ;;  %v1395_v56 = vmul.f32 %v5049_v20, %v9047_v11  ;;  %v1394_v40 = vmul.f32 %v5049_v20, %v9049_v12  ;;  %v6908_v26 = vpop.f32.mrf.mxu0  ;;  %v5051_v20 = vpop.eup %5050 }
 0x3e4   : >> { %v1817_v15 = vpop.xlane.xlu1 %1816  ;;  %9053 = vst [vmem:[#allocation110_spill] sm:$0xff] %v6908_v26 }
 0x3e5   : >> { %5062 = vpow2.f32 %v1993_v27  ;;  %v1905_v59 = vsub.f32 %v9051_v31, %v1817_v15  ;;  %v1906_v34 = vsub.f32 %v9052_v24, %v1817_v15  ;;  %v1445_v30 = vpack.c.bf16 %v1395_v56, %v1393_v21  ;;  %v5053_v27 = vpop.eup %5052  ;;  %v9054_v24 = vld [vmem:[#allocation62_spill] sm:$0xff]  ;;  %v9055_v21 = vld [vmem:[#allocation63_spill] sm:$0xff]  ;;  %v6916_v0 = vpop.f32.mrf.mxu0 }
 0x3e6   : >> { %5064 = vpow2.f32 %v1995_v60  ;;  %1846 = vmax.xlane.f32.xlu0 %v1845_v37  ;;  %v1444_v11 = vpack.c.bf16 %v1394_v40, %v1392_v3  ;;  %9056 = vst [vmem:[#allocation112_spill] sm:$0xff] %v6916_v0  ;;  %v1390_v37 = vmul.f32 %v5043_v10, %v9057_v9  ;;  %v9058_v3 = vld [vmem:[#allocation105_spill] sm:$0xff] }
 0x3e7   : >> { %v1981_v41 = vmul.f32 1.442695, %v1905_v59  ;;  %v1983_v5 = vmul.f32 1.442695, %v1906_v34  ;;  %1473 = vmatprep.subr.bf16.mxu1 %v1445_v30  ;;  %4754 = vmatmul.mubr.msk.bf16.gmra.mxu0 %vm703_vm2, %v3236_v8  ;;  %v1387_v31 = vmul.f32 %v5051_v20, %v9058_v3  ;;  %v9059_v30 = vld [vmem:[#allocation107_spill] sm:$0xff]  ;;  %v6931_v8 = vpop.f32.mrf.mxu0 }
 0x3e8   : >> { %1474 = vmatpush1.bf16.xpose.msra.mxu1 %v1444_v11  ;;  %v1820_v12 = vpop.xlane.xlu1 %1819  ;;  %3449 = vmatprep.mubr.bf16.mxu0 %v9022_v32  ;;  %v1388_v11 = vmul.f32 %v5047_v1, %v9059_v30  ;;  %9061 = vst [vmem:[#allocation114_spill] sm:$0xff] %v6931_v8 }
 0x3e9   : >> { %5066 = vpow2.f32 %v1981_v41  ;;  %v1907_v56 = vsub.f32 %v9054_v24, %v1820_v12  ;;  %v1908_v60 = vsub.f32 %v9055_v21, %v1820_v12  ;;  %1475 = vmatprep.subr.bf16.mxu1 %v1443_v28  ;;  %v3237_v41 = vpop.trf.xlu0  ;;  %v9062_v12 = vld [vmem:[#allocation77_spill] sm:$0xff]  ;;  %v9063_v24 = vld [vmem:[#allocation76_spill] sm:$0xff] }
 0x3ea   : >> { %v6914_v40 = vpop.eup %5054  ;;  %5068 = vpow2.f32 %v1983_v5  ;;  %v9060_v5 = vld [vmem:[#allocation17_spill] sm:$0xff]  ;;  %v6942_v21 = vld [vmem:[%s6939_s20] sm:$0xff] }
 0x3eb   : >> { %v6919_v61 = vpop.eup %5056  ;;  %5070 = vrcp.f32 %v6752_v62  ;;  %v1985_v15 = vmul.f32 1.442695, %v1907_v56  ;;  %v1987_v44 = vmul.f32 1.442695, %v1908_v60  ;;  %v1385_v10 = vmul.f32 %v5053_v27, %v9060_v5 }
 0x3ec   : >> { %5072 = vrcp.f32 %v6744_v25  ;;  %v6924_v59 = vpop.xlane.xlu1 %1325  ;;  %v2118_v34 = vadd.f32 %v6919_v61, %v6914_v40  ;;  %v1442_v62 = vpack.c.bf16 %v1390_v37, %v1388_v11  ;;  %v5059_v25 = vpop.eup %5058  ;;  %v1854_v56 = vmax.f32 %v9063_v24, %v9062_v12 }
 0x3ed   : >> { %5074 = vpow2.f32 %v1985_v15  ;;  %v1441_v28 = vpack.c.bf16 %v1387_v31, %v1385_v10  ;;  %v5061_v60 = vpop.eup %5060  ;;  %v6946_v9 = vcombine.high %v6942_v21, %v6942_v21  ;;  %v6950_v15 = vpop.f32.mrf.mxu0  ;;  %v9068_v10 = vld [vmem:[#allocation16_spill] sm:$0xff] }
 0x3ee   : >> { %5076 = vpow2.f32 %v1987_v44  ;;  %2119 = vadd.xlane.f32.xlu1 %v2118_v34  ;;  %9065 = vst [vmem:[#allocation113_spill] sm:$0xff] %v6950_v15  ;;  %v9066_v44 = vld [vmem:[#allocation68_spill] sm:$0xff]  ;;  %v9067_v34 = vld [vmem:[#allocation103_spill] sm:$0xff]  ;;  %v3238_v15 = vpop.trf.xlu0 }
 0x3ef   : >> { %4755 = vmatmul.mubr.msk.bf16.gmra.mxu0 %vm703_vm2, %v3237_v41  ;;  %v1386_v3 = vmul.f32 %v5051_v20, %v9066_v44  ;;  %5078 = vrcp.f32 %v6730_v54  ;;  %v1383_v30 = vmul.f32 %v5059_v25, %v9067_v34  ;;  %1503 = vmatprep.mubr.bf16.mxu1 %v6946_v9  ;;  %v6967_v54 = vpop.f32.mrf.mxu0 }
 0x3f0   : >> { %1476 = vmatpush1.bf16.xpose.msra.mxu1 %v1442_v62  ;;  %v6936_v1 = vpop.xlane.xlu1 %1328  ;;  %3459 = vmatprep.mubr.bf16.mxu0 %v9022_v32  ;;  %v1384_v62 = vmul.f32 %v5053_v27, %v9068_v10  ;;  %5080 = vrcp.f32 %v6714_v33  ;;  %9072 = vst [vmem:[#allocation60_spill] sm:$0xff] %v6967_v54  ;;  %v9075_v10 = vld [vmem:[#allocation72_spill] sm:$0xff] }
 0x3f1   : >> { %1477 = vmatprep.subr.bf16.mxu1 %v1441_v28  ;;  %v9069_v28 = vld [vmem:[#allocation57_spill] sm:$0xff] }
 0x3f2   : >> { %v6948_v37 = vpop.eup %5062  ;;  %1855 = vmax.xlane.f32.xlu1 %v1854_v56  ;;  %v9070_v56 = vld [vmem:[#allocation101_spill] sm:$0xff]  ;;  %v1440_v34 = vpack.c.bf16 %v1386_v3, %v1384_v62 }
 0x3f3   : >> { %9064 = vst [vmem:[#allocation111_spill] sm:$0xff] %v6948_v37  ;;  %v6953_v31 = vpop.eup %5064  ;;  %v1381_v44 = vmul.f32 %v5061_v60, %v9070_v56 }
 0x3f4   : >> { %v1811_v11 = vpop.xlane.xlu1 %1810  ;;  %v2112_v5 = vadd.f32 %v6953_v31, %v6948_v37 }
 0x3f5   : >> { %v1901_v41 = vsub.f32 %v8938_v48, %v1811_v11  ;;  %v1902_v20 = vsub.f32 %v9069_v28, %v1811_v11  ;;  %v1439_v27 = vpack.c.bf16 %v1383_v30, %v1381_v44  ;;  %v9074_v48 = vld [vmem:[#allocation73_spill] sm:$0xff]  ;;  %v9080_v44 = vld [vmem:[#allocation102_spill] sm:$0xff] }
 0x3f6   : >> { %v6965_v26 = vpop.eup %5066  ;;  %2113 = vadd.xlane.f32.xlu1 %v2112_v5  ;;  %v1848_v11 = vmax.f32 %v9075_v10, %v9074_v48  ;;  %v9076_v5 = vld [vmem:[#allocation58_spill] sm:$0xff] }
 0x3f7   : >> { %9071 = vst [vmem:[#allocation13_spill] sm:$0xff] %v6965_v26  ;;  %v6969_v0 = vpop.eup %5068  ;;  %v1973_v8 = vmul.f32 1.442695, %v1901_v41  ;;  %v1975_v37 = vmul.f32 1.442695, %v1902_v20  ;;  %4756 = vmatmul.mubr.msk.bf16.gmra.mxu0 %vm703_vm2, %v3238_v15  ;;  %v9077_v41 = vld [vmem:[#allocation59_spill] sm:$0xff]  ;;  %v6981_v15 = vpop.f32.mrf.mxu0 }
 0x3f8   : >> { %9073 = vst [vmem:[#allocation61_spill] sm:$0xff] %v6969_v0  ;;  %v5071_v33 = vpop.eup %5070  ;;  %1478 = vmatpush1.bf16.xpose.msra.mxu1 %v1440_v34  ;;  %v1814_v28 = vpop.xlane.xlu1 %1813  ;;  %v2103_v56 = vadd.f32 %v6969_v0, %v6965_v26  ;;  %3469 = vmatprep.mubr.bf16.mxu0 %v9022_v32  ;;  %9079 = vst [vmem:[#allocation63_spill] sm:$0xff] %v6981_v15  ;;  %v1382_v34 = vmul.f32 %v5059_v25, %v9080_v44  ;;  %v9082_v0 = vld [vmem:[#allocation95_spill] sm:$0xff] }
 0x3f9   : >> { %v5073_v3 = vpop.eup %5072  ;;  %5082 = vpow2.f32 %v1973_v8  ;;  %v1903_v62 = vsub.f32 %v9076_v5, %v1814_v28  ;;  %v1904_v20 = vsub.f32 %v9077_v41, %v1814_v28  ;;  %1479 = vmatprep.subr.bf16.mxu1 %v1439_v27  ;;  %v1379_v5 = vmul.f32 %v5071_v33, %v9082_v0 }
 0x3fa   : >> { %v6979_v30 = vpop.eup %5074  ;;  %5084 = vpow2.f32 %v1975_v37  ;;  %1849 = vmax.xlane.f32.xlu1 %v1848_v11  ;;  %2104 = vadd.xlane.f32.xlu0 %v2103_v56  ;;  %v2687_v27 = vmax.f32 %v6790_v43, %v6798_v18  ;;  %v9083_v11 = vld [vmem:[#allocation100_spill] sm:$0xff]  ;;  %v9084_v56 = vld [vmem:[#allocation93_spill] sm:$0xff]  ;;  %v2690_v44 = vmax.f32 %v6806_v42, %v6816_v50 }
 0x3fb   : >> { %9078 = vst [vmem:[#allocation62_spill] sm:$0xff] %v6979_v30  ;;  %v6984_v54 = vpop.eup %5076  ;;  %5086 = vrcp.f32 %v6882_v6  ;;  %v1977_v26 = vmul.f32 1.442695, %v1903_v62  ;;  %v1979_v8 = vmul.f32 1.442695, %v1904_v20  ;;  %v1380_v25 = vmul.f32 %v5061_v60, %v9083_v11  ;;  %v6997_v6 = vpop.f32.mrf.mxu0  ;;  %v9089_v11 = vld [vmem:[#allocation92_spill] sm:$0xff] }
 0x3fc   : >> { %9081 = vst [vmem:[#allocation109_spill] sm:$0xff] %v6984_v54  ;;  %5088 = vrcp.f32 %v6750_v39  ;;  %v6991_v28 = vpop.xlane.xlu1 %1319  ;;  %v2106_v37 = vadd.f32 %v6984_v54, %v6979_v30  ;;  %v1377_v41 = vmul.f32 %v5073_v3, %v9084_v56  ;;  %9085 = vst [vmem:[#allocation105_spill] sm:$0xff] %v6997_v6  ;;  %v3239_v62 = vpop.trf.xlu0  ;;  %v9090_v56 = vld [vmem:[#allocation52_spill] sm:$0xff]  ;;  %v9092_v6 = vld [vmem:[#allocation89_spill] sm:$0xff] }
 0x3fd   : >> { %5090 = vpow2.f32 %v1977_v26  ;;  %v1438_v0 = vpack.c.bf16 %v1382_v34, %v1380_v25  ;;  %v5079_v39 = vpop.eup %5078  ;;  %v7005_v60 = vpop.f32.mrf.mxu0  ;;  %v1376_v25 = vmul.f32 %v5073_v3, %v9089_v11 }
 0x3fe   : >> { %5092 = vpow2.f32 %v1979_v8  ;;  %2688 = vmax.xlane.f32.xlu0 %v2687_v27  ;;  %2107 = vadd.xlane.f32.xlu1 %v2106_v37  ;;  %v1437_v20 = vpack.c.bf16 %v1379_v5, %v1377_v41  ;;  %v5081_v26 = vpop.eup %5080  ;;  %9086 = vst [vmem:[#allocation107_spill] sm:$0xff] %v7005_v60  ;;  %v9087_v8 = vld [vmem:[#allocation94_spill] sm:$0xff]  ;;  %v9088_v27 = vld [vmem:[#allocation91_spill] sm:$0xff] }
 0x3ff   : >> { %4757 = vmatmul.mubr.msk.bf16.gmra.mxu0 %vm703_vm2, %v3239_v62  ;;  %v1378_v34 = vmul.f32 %v5071_v33, %v9087_v8  ;;  %v1375_v5 = vmul.f32 %v5079_v39, %v9088_v27  ;;  %v9091_v62 = vld [vmem:[#allocation53_spill] sm:$0xff]  ;;  %v1373_v30 = vmul.f32 %v5081_v26, %v9092_v6  ;;  %5094 = vrcp.f32 %v6828_v51 }
 0x400   : >> { %1480 = vmatpush1.bf16.xpose.msra.mxu1 %v1438_v0  ;;  %v7002_v15 = vpop.xlane.xlu1 %1322  ;;  %3479 = vmatprep.mubr.bf16.mxu0 %v9022_v32  ;;  %v7015_v32 = vpop.f32.mrf.mxu0 }
 0x401   : >> { %1481 = vmatprep.subr.bf16.mxu1 %v1437_v20  ;;  %9094 = vst [vmem:[#allocation77_spill] sm:$0xff] %v7015_v32  ;;  %v1436_v20 = vpack.c.bf16 %v1378_v34, %v1376_v25  ;;  %v3240_v60 = vpop.trf.xlu0  ;;  %v1435_v27 = vpack.c.bf16 %v1375_v5, %v1373_v30  ;;  %v9096_v25 = vld [vmem:[#allocation55_spill] sm:$0xff] }
 0x402   : >> { %2691 = vmax.xlane.f32.xlu1 %v2690_v44  ;;  %v7027_v30 = vpop.f32.mrf.mxu0 }
 0x404   : >> { %v1805_v37 = vpop.xlane.xlu1 %1804 }
 0x405   : >> { %v1897_v41 = vsub.f32 %v9090_v56, %v1805_v37  ;;  %v1898_v0 = vsub.f32 %v9091_v62, %v1805_v37 }
 0x406   : >> { %v7013_v54 = vpop.eup %5082 }
 0x407   : >> { %9093 = vst [vmem:[#allocation17_spill] sm:$0xff] %v7013_v54  ;;  %v7017_v44 = vpop.eup %5084  ;;  %v1965_v33 = vmul.f32 1.442695, %v1897_v41  ;;  %v1967_v8 = vmul.f32 1.442695, %v1898_v0  ;;  %4758 = vmatmul.mubr.msk.bf16.gmra.mxu0 %vm703_vm2, %v3240_v60  ;;  %v9098_v60 = vld [vmem:[#allocation90_spill] sm:$0xff] }
 0x408   : >> { %9095 = vst [vmem:[#allocation76_spill] sm:$0xff] %v7017_v44  ;;  %v5087_v3 = vpop.eup %5086  ;;  %1482 = vmatpush1.bf16.xpose.msra.mxu1 %v1436_v20  ;;  %v1808_v37 = vpop.xlane.xlu1 %1807  ;;  %v2097_v6 = vadd.f32 %v7017_v44, %v7013_v54  ;;  %v1374_v51 = vmul.f32 %v5079_v39, %v9098_v60  ;;  %v9100_v20 = vld [vmem:[#allocation44_spill] sm:$0xff]  ;;  %v9102_v39 = vld [vmem:[#allocation97_spill] sm:$0xff] }
 0x409   : >> { %v5089_v11 = vpop.eup %5088  ;;  %5096 = vpow2.f32 %v1965_v33  ;;  %v1899_v34 = vsub.f32 %v8962_v55, %v1808_v37  ;;  %v1900_v56 = vsub.f32 %v9096_v25, %v1808_v37  ;;  %1483 = vmatprep.subr.bf16.mxu1 %v1435_v27  ;;  %v1371_v33 = vmul.f32 %v5087_v3, %v9100_v20  ;;  %v9101_v37 = vld [vmem:[#allocation88_spill] sm:$0xff]  ;;  %v7041_v60 = vpop.f32.mrf.mxu0 }
 0x40a   : >> { %v7025_v41 = vpop.eup %5090  ;;  %5098 = vpow2.f32 %v1967_v8  ;;  %2098 = vadd.xlane.f32.xlu0 %v2097_v6  ;;  %v2681_v55 = vmax.f32 %v6756_v53, %v6766_v4  ;;  %v1372_v6 = vmul.f32 %v5081_v26, %v9101_v37  ;;  %v1369_v25 = vmul.f32 %v5089_v11, %v9102_v39  ;;  %v9104_v26 = vld [vmem:[#allocation43_spill] sm:$0xff]  ;;  %v9105_v39 = vld [vmem:[#allocation96_spill] sm:$0xff] }
 0x40b   : >> { %9097 = vst [vmem:[#allocation68_spill] sm:$0xff] %v7025_v41  ;;  %v7030_v5 = vpop.eup %5092  ;;  %5100 = vrcp.f32 %v6924_v59  ;;  %v1969_v62 = vmul.f32 1.442695, %v1899_v34  ;;  %v1971_v0 = vmul.f32 1.442695, %v1900_v56  ;;  %v7045_v20 = vpop.f32.mrf.mxu0  ;;  %v1368_v54 = vmul.f32 %v5089_v11, %v9105_v39 }
 0x40c   : >> { %9099 = vst [vmem:[#allocation103_spill] sm:$0xff] %v7030_v5  ;;  %5102 = vrcp.f32 %v6936_v1  ;;  %v1335_v27 = vpop.xlane.xlu1 %1334  ;;  %v2100_v8 = vadd.f32 %v7030_v5, %v7025_v41  ;;  %v1434_v59 = vpack.c.bf16 %v1374_v51, %v1372_v6  ;;  %v1433_v34 = vpack.c.bf16 %v1371_v33, %v1369_v25  ;;  %9103 = vst [vmem:[#allocation16_spill] sm:$0xff] %v7045_v20  ;;  %v9144_v5 = vld [vmem:[#allocation18_spill] sm:$0xff] }
 0x40d   : >> { %5104 = vpow2.f32 %v1969_v62  ;;  %v2684_v1 = vmax.f32 %v6772_v36, %v6782_v13  ;;  %v1370_v62 = vmul.f32 %v5087_v3, %v9104_v26  ;;  %v2675_v26 = vmax.f32 %v6706_v23, %v6722_v29  ;;  %v9146_v13 = vld [vmem:[#allocation106_spill] sm:$0xff] }
 0x40e   : >> { %5106 = vpow2.f32 %v1971_v0  ;;  %2682 = vmax.xlane.f32.xlu0 %v2681_v55  ;;  %2101 = vadd.xlane.f32.xlu1 %v2100_v8  ;;  %v5095_v0 = vpop.eup %5094 }
 0x40f   : >> { %5108 = vrcp.f32 %v1335_v27  ;;  %v7054_v27 = vpop.f32.mrf.mxu0  ;;  %v1432_v8 = vpack.c.bf16 %v1370_v62, %v1368_v54 }
 0x410   : >> { %1484 = vmatpush1.bf16.xpose.msra.mxu1 %v1434_v59  ;;  %v1314_v56 = vpop.xlane.xlu1 %1313  ;;  %5110 = vrcp.f32 %v7002_v15  ;;  %9107 = vst [vmem:[#allocation101_spill] sm:$0xff] %v7054_v27 }
 0x411   : >> { %1485 = vmatprep.subr.bf16.mxu1 %v1433_v34  ;;  %5112 = vrcp.f32 %v6991_v28  ;;  %v7065_v54 = vpop.f32.mrf.mxu0 }
 0x412   : >> { %2685 = vmax.xlane.f32.xlu1 %v2684_v1 }
 0x413   : >> { %v7078_v29 = vpop.f32.mrf.mxu0 }
 0x414   : >> { %v1799_v37 = vpop.xlane.xlu1 %1798 }
 0x415   : >> { %v1893_v51 = vsub.f32 %v8975_v49, %v1799_v37  ;;  %v1894_v33 = vsub.f32 %v8974_v38, %v1799_v37 }
 0x416   : >> { %v7052_v55 = vpop.eup %5096 }
 0x417   : >> { %9106 = vst [vmem:[#allocation57_spill] sm:$0xff] %v7052_v55  ;;  %v7056_v6 = vpop.eup %5098  ;;  %v1957_v3 = vmul.f32 1.442695, %v1893_v51  ;;  %v1959_v25 = vmul.f32 1.442695, %v1894_v33 }
 0x418   : >> { %9108 = vst [vmem:[#allocation73_spill] sm:$0xff] %v7056_v6  ;;  %v5101_v59 = vpop.eup %5100  ;;  %1486 = vmatpush1.bf16.xpose.msra.mxu1 %v1432_v8  ;;  %v1802_v11 = vpop.xlane.xlu1 %1801  ;;  %v2091_v15 = vadd.f32 %v7056_v6, %v7052_v55  ;;  %v9112_v8 = vld [vmem:[#allocation14_spill] sm:$0xff]  ;;  %v9114_v55 = vld [vmem:[#allocation116_spill] sm:$0xff] }
 0x419   : >> { %v5103_v49 = vpop.eup %5102  ;;  %5114 = vpow2.f32 %v1957_v3  ;;  %v1895_v38 = vsub.f32 %v8981_v17, %v1802_v11  ;;  %v1896_v34 = vsub.f32 %v8980_v35, %v1802_v11  ;;  %v9111_v35 = vld [vmem:[#allocation108_spill] sm:$0xff]  ;;  %v1428_v3 = vmul.f32 %v5095_v0, %v9112_v8  ;;  %v9113_v11 = vld [vmem:[#allocation31_spill] sm:$0xff] }
 0x41a   : >> { %v7063_v1 = vpop.eup %5104  ;;  %5116 = vpow2.f32 %v1959_v25  ;;  %2092 = vadd.xlane.f32.xlu0 %v2091_v15  ;;  %v1429_v33 = vmul.f32 %v5095_v0, %v9111_v35  ;;  %v1427_v6 = vmul.f32 %v5103_v49, %v9114_v55  ;;  %v2678_v0 = vmax.f32 %v6740_v47, %v6748_v58  ;;  %v7083_v35 = vpop.f32.mrf.mxu0  ;;  %v9118_v8 = vld [vmem:[#allocation35_spill] sm:$0xff] }
 0x41b   : >> { %9109 = vst [vmem:[#allocation72_spill] sm:$0xff] %v7063_v1  ;;  %v7067_v28 = vpop.eup %5106  ;;  %v1961_v62 = vmul.f32 1.442695, %v1895_v38  ;;  %v1963_v37 = vmul.f32 1.442695, %v1896_v34  ;;  %5118 = vrcp.f32 %v1314_v56  ;;  %9116 = vst [vmem:[#allocation59_spill] sm:$0xff] %v7083_v35 }
 0x41c   : >> { %9110 = vst [vmem:[#allocation58_spill] sm:$0xff] %v7067_v28  ;;  %v5109_v39 = vpop.eup %5108  ;;  %v1308_v51 = vpop.xlane.xlu1 %1307  ;;  %v2094_v17 = vadd.f32 %v7067_v28, %v7063_v1  ;;  %v9115_v1 = vld [vmem:[#allocation39_spill] sm:$0xff] }
 0x41d   : >> { %5120 = vpow2.f32 %v1961_v62  ;;  %v1431_v25 = vmul.f32 %v5109_v39, %v6632_v2  ;;  %v1430_v15 = vmul.f32 %v5109_v39, %v9113_v11  ;;  %v1425_v28 = vmul.f32 %v5101_v59, %v9115_v1  ;;  %v5111_v39 = vpop.eup %5110 }
 0x41e   : >> { %5122 = vpow2.f32 %v1963_v37  ;;  %2676 = vmax.xlane.f32.xlu0 %v2675_v26  ;;  %2095 = vadd.xlane.f32.xlu1 %v2094_v17  ;;  %v1317_v56 = vpop.xlane.xlu0 %1316  ;;  %v5113_v55 = vpop.eup %5112  ;;  %v9117_v37 = vld [vmem:[#allocation41_spill] sm:$0xff] }
 0x41f   : >> { %v1463_v38 = vpack.c.bf16 %v1431_v25, %v1429_v33  ;;  %v1462_v34 = vpack.c.bf16 %v1430_v15, %v1428_v3  ;;  %5124 = vrcp.f32 %v1317_v56  ;;  %v1461_v2 = vpack.c.bf16 %v1427_v6, %v1425_v28  ;;  %v7091_v6 = vpop.f32.mrf.mxu0  ;;  %v9121_v28 = vld [vmem:[#allocation38_spill] sm:$0xff] }
 0x420   : >> { %v1311_v62 = vpop.xlane.xlu1 %1310  ;;  %v1426_v17 = vmul.f32 %v5103_v49, %v9117_v37  ;;  %v1423_v3 = vmul.f32 %v5111_v39, %v9118_v8  ;;  %9120 = vst [vmem:[#allocation95_spill] sm:$0xff] %v7091_v6  ;;  %v1424_v11 = vmul.f32 %v5101_v59, %v9121_v28  ;;  %v9127_v28 = vld [vmem:[#allocation19_spill] sm:$0xff] }
 0x421   : >> { %1487 = vmatprep.subr.bf16.mxu1 %v1463_v38  ;;  %5126 = vrcp.f32 %v1311_v62  ;;  %v7104_v8 = vpop.f32.mrf.mxu0 }
 0x422   : >> { %1488 = vmatpush2.bf16.xpose.msra.mxu1 %v1462_v34  ;;  %2679 = vmax.xlane.f32.xlu1 %v2678_v0  ;;  %5128 = vrcp.f32 %v1308_v51  ;;  %v7096_v56 = vpop.xlane.xlu0 %1295  ;;  %v9123_v34 = vld [vmem:[#allocation56_spill] sm:$0xff]  ;;  %v9125_v51 = vld [vmem:[#allocation115_spill] sm:$0xff] }
 0x423   : >> { %1489 = vmatprep.subr.bf16.mxu1 %v1461_v2  ;;  %v1421_v0 = vmul.f32 %v5113_v55, %v9123_v34 }
 0x424   : >> { %v1889_v26 = vpop.xlane.xlu1 %1888 }
 0x425   : >> { %v1953_v1 = vsub.f32 %v6487_v22, %v1889_v26  ;;  %v1954_v33 = vsub.f32 %v6501_v63, %v1889_v26  ;;  %v1460_v22 = vpack.c.bf16 %v1426_v17, %v1424_v11  ;;  %v1459_v37 = vpack.c.bf16 %v1423_v3, %v1421_v0  ;;  %v9128_v11 = vld [vmem:[#allocation22_spill] sm:$0xff] }
 0x426   : >> { %v7089_v25 = vpop.eup %5114  ;;  %v2669_v34 = vmax.f32 %v9128_v11, %v9127_v28  ;;  %v9129_v3 = vld [vmem:[#allocation34_spill] sm:$0xff]  ;;  %v9133_v28 = vld [vmem:[#allocation29_spill] sm:$0xff]  ;;  %v9134_v11 = vld [vmem:[#allocation28_spill] sm:$0xff] }
 0x427   : >> { %9119 = vst [vmem:[#allocation102_spill] sm:$0xff] %v7089_v25  ;;  %v7094_v15 = vpop.eup %5116  ;;  %v2077_v38 = vmul.f32 1.442695, %v1953_v1  ;;  %v2079_v49 = vmul.f32 1.442695, %v1954_v33  ;;  %v1422_v0 = vmul.f32 %v5111_v39, %v9129_v3  ;;  %v2672_v58 = vmax.f32 %v9134_v11, %v9133_v28  ;;  %v9137_v28 = vld [vmem:[#allocation104_spill] sm:$0xff] }
 0x428   : >> { %9122 = vst [vmem:[#allocation100_spill] sm:$0xff] %v7094_v15  ;;  %v1892_v62 = vpop.xlane.xlu1 %1891  ;;  %v2085_v63 = vadd.f32 %v7094_v15, %v7089_v25  ;;  %v5119_v2 = vpop.eup %5118 }
 0x429   : >> { %5130 = vpow2.f32 %v2077_v38  ;;  %v1955_v26 = vsub.f32 %v6511_v19, %v1892_v62  ;;  %v1956_v1 = vsub.f32 %v9125_v51, %v1892_v62  ;;  %v9130_v62 = vld [vmem:[#allocation46_spill] sm:$0xff]  ;;  %v9132_v51 = vld [vmem:[#allocation49_spill] sm:$0xff] }
 0x42a   : >> { %v7102_v59 = vpop.eup %5120  ;;  %5132 = vpow2.f32 %v2079_v49  ;;  %1490 = vmatpush2.bf16.xpose.msra.mxu1 %v1460_v22  ;;  %2086 = vadd.xlane.f32.xlu0 %v2085_v63  ;;  %v1877_v49 = vpop.xlane.xlu0 %1876  ;;  %v1420_v63 = vmul.f32 %v5113_v55, %v9130_v62 }
 0x42b   : >> { %9124 = vst [vmem:[#allocation93_spill] sm:$0xff] %v7102_v59  ;;  %v7107_v33 = vpop.eup %5122  ;;  %v2081_v17 = vmul.f32 1.442695, %v1955_v26  ;;  %1491 = vmatprep.subr.bf16.mxu1 %v1459_v37  ;;  %v2083_v38 = vmul.f32 1.442695, %v1956_v1  ;;  %v7114_v22 = vpop.f32.mrf.mxu0  ;;  %v9131_v26 = vld [vmem:[#allocation32_spill] sm:$0xff] }
 0x42c   : >> { %9126 = vst [vmem:[#allocation94_spill] sm:$0xff] %v7107_v33  ;;  %v1302_v25 = vpop.xlane.xlu1 %1301  ;;  %v2088_v19 = vadd.f32 %v7107_v33, %v7102_v59  ;;  %v5125_v15 = vpop.eup %5124  ;;  %v1417_v37 = vmul.f32 %v5119_v2, %v9131_v26  ;;  %v1458_v59 = vpack.c.bf16 %v1422_v0, %v1420_v63  ;;  %v9136_v26 = vld [vmem:[#allocation26_spill] sm:$0xff]  ;;  %v9138_v0 = vld [vmem:[#allocation15_spill] sm:$0xff] }
 0x42d   : >> { %5134 = vpow2.f32 %v2081_v17  ;;  %v1419_v1 = vmul.f32 %v5125_v15, %v9132_v51  ;;  %v7121_v33 = vpop.f32.mrf.mxu0  ;;  %v1418_v51 = vmul.f32 %v5125_v15, %v9136_v26 }
 0x42e   : >> { %5136 = vpow2.f32 %v2083_v38  ;;  %2670 = vmax.xlane.f32.xlu0 %v2669_v34  ;;  %2089 = vadd.xlane.f32.xlu1 %v2088_v19  ;;  %v5127_v17 = vpop.eup %5126  ;;  %v7123_v34 = vpop.xlane.xlu0 %1289  ;;  %v9135_v38 = vld [vmem:[#allocation98_spill] sm:$0xff] }
 0x42f   : >> { %5138 = vrcp.f32 %v1302_v25  ;;  %v1457_v3 = vpack.c.bf16 %v1419_v1, %v1417_v37  ;;  %v5129_v55 = vpop.eup %5128  ;;  %v1945_v19 = vsub.f32 %v9135_v38, %v1877_v49  ;;  %v9139_v37 = vld [vmem:[#allocation27_spill] sm:$0xff]  ;;  %v7132_v11 = vpop.f32.mrf.mxu0 }
 0x430   : >> { %v1305_v39 = vpop.xlane.xlu1 %1304  ;;  %v1415_v1 = vmul.f32 %v5127_v17, %v9139_v37  ;;  %v1413_v15 = vmul.f32 %v5129_v55, %v9144_v5  ;;  %v9145_v37 = vld [vmem:[#allocation69_spill] sm:$0xff] }
 0x431   : >> { %5140 = vrcp.f32 %v1305_v39  ;;  %v2061_v26 = vmul.f32 1.442695, %v1945_v19 }
 0x432   : >> { %1492 = vmatpush2.bf16.xpose.msra.mxu1 %v1458_v59  ;;  %2673 = vmax.xlane.f32.xlu1 %v2672_v58  ;;  %v9141_v58 = vld [vmem:[#allocation37_spill] sm:$0xff] }
 0x433   : >> { %1493 = vmatprep.subr.bf16.mxu1 %v1457_v3  ;;  %v1416_v59 = vmul.f32 %v5119_v2, %v9141_v58  ;;  %v9143_v3 = vld [vmem:[#allocation99_spill] sm:$0xff]  ;;  %v1455_v58 = vpack.c.bf16 %v1415_v1, %v1413_v15  ;;  %v9152_v15 = vld [vmem:[#allocation48_spill] sm:$0xff] }
 0x434   : >> { %v1883_v62 = vpop.xlane.xlu1 %1882  ;;  %v1946_v23 = vsub.f32 %v9143_v3, %v1877_v49  ;;  %v9148_v49 = vld [vmem:[#allocation36_spill] sm:$0xff]  ;;  %v7147_v3 = vpop.f32.mrf.mxu0 }
 0x435   : >> { %v1949_v25 = vsub.f32 %v9137_v28, %v1883_v62  ;;  %v1950_v63 = vsub.f32 %v9138_v0, %v1883_v62  ;;  %v1456_v28 = vpack.c.bf16 %v1418_v51, %v1416_v59  ;;  %v1871_v0 = vpop.xlane.xlu0 %1870 }
 0x436   : >> { %v7130_v39 = vpop.eup %5130  ;;  %v2063_v19 = vmul.f32 1.442695, %v1946_v23  ;;  %v9153_v23 = vld [vmem:[#allocation23_spill] sm:$0xff] }
 0x437   : >> { %9140 = vst [vmem:[#allocation91_spill] sm:$0xff] %v7130_v39  ;;  %v7135_v47 = vpop.eup %5132  ;;  %v2069_v38 = vmul.f32 1.442695, %v1949_v25  ;;  %v2071_v41 = vmul.f32 1.442695, %v1950_v63  ;;  %v9149_v25 = vld [vmem:[#allocation30_spill] sm:$0xff] }
 0x438   : >> { %9142 = vst [vmem:[#allocation92_spill] sm:$0xff] %v7135_v47  ;;  %v1886_v44 = vpop.xlane.xlu1 %1885  ;;  %v2175_v62 = vadd.f32 %v7135_v47, %v7130_v39  ;;  %v2663_v63 = vmax.f32 %v9149_v25, %v9148_v49  ;;  %v9157_v39 = vld [vmem:[#allocation21_spill] sm:$0xff] }
 0x439   : >> { %5142 = vpow2.f32 %v2069_v38  ;;  %v1951_v32 = vsub.f32 %v9145_v37, %v1886_v44  ;;  %v1952_v2 = vsub.f32 %v9146_v13, %v1886_v44  ;;  %v9151_v13 = vld [vmem:[#allocation86_spill] sm:$0xff]  ;;  %v1414_v37 = vmul.f32 %v5127_v17, %v9152_v15  ;;  %v9158_v17 = vld [vmem:[#allocation87_spill] sm:$0xff] }
 0x43a   : >> { %v7143_v36 = vpop.eup %5134  ;;  %5144 = vpow2.f32 %v2071_v41  ;;  %1494 = vmatpush2.bf16.xpose.msra.mxu1 %v1456_v28  ;;  %2176 = vadd.xlane.f32.xlu0 %v2175_v62  ;;  %v1941_v44 = vsub.f32 %v9151_v13, %v1871_v0  ;;  %v7156_v62 = vpop.f32.mrf.mxu0  ;;  %v1942_v15 = vsub.f32 %v9158_v17, %v1871_v0 }
 0x43b   : >> { %9147 = vst [vmem:[#allocation52_spill] sm:$0xff] %v7143_v36  ;;  %v7149_v5 = vpop.eup %5136  ;;  %5146 = vrcp.f32 %v7096_v56  ;;  %v2073_v51 = vmul.f32 1.442695, %v1951_v32  ;;  %v2075_v59 = vmul.f32 1.442695, %v1952_v2  ;;  %1495 = vmatprep.subr.bf16.mxu1 %v1455_v58  ;;  %v1412_v32 = vmul.f32 %v5129_v55, %v9153_v23  ;;  %v9154_v56 = vld [vmem:[#allocation33_spill] sm:$0xff] }
 0x43c   : >> { %9150 = vst [vmem:[#allocation53_spill] sm:$0xff] %v7149_v5  ;;  %5148 = vpow2.f32 %v2061_v26  ;;  %v1299_v1 = vpop.xlane.xlu1 %1298  ;;  %v2178_v38 = vadd.f32 %v7149_v5, %v7143_v36  ;;  %v5139_v41 = vpop.eup %5138  ;;  %v9155_v26 = vld [vmem:[#allocation54_spill] sm:$0xff]  ;;  %v9156_v58 = vld [vmem:[#allocation123_spill] sm:$0xff] }
 0x43d   : >> { %5150 = vpow2.f32 %v2073_v51  ;;  %v2666_v2 = vmax.f32 %v9155_v26, %v9154_v56  ;;  %v1409_v13 = vmul.f32 %v5139_v41, %v9156_v58  ;;  %v2053_v51 = vmul.f32 1.442695, %v1941_v44  ;;  %v7166_v55 = vpop.f32.mrf.mxu0 }
 0x43e   : >> { %v5141_v28 = vpop.eup %5140  ;;  %5152 = vpow2.f32 %v2075_v59  ;;  %2664 = vmax.xlane.f32.xlu0 %v2663_v63  ;;  %2179 = vadd.xlane.f32.xlu1 %v2178_v38  ;;  %v1454_v5 = vpack.c.bf16 %v1414_v37, %v1412_v32 }
 0x43f   : >> { %5154 = vrcp.f32 %v1299_v1  ;;  %v1411_v36 = vmul.f32 %v5141_v28, %v9157_v39  ;;  %v2055_v39 = vmul.f32 1.442695, %v1942_v15 }
 0x440   : >> { %5156 = vpow2.f32 %v2063_v19  ;;  %v1880_v47 = vpop.xlane.xlu1 %1879  ;;  %v9159_v19 = vld [vmem:[#allocation20_spill] sm:$0xff] }
 0x441   : >> { %v1947_v59 = vsub.f32 %v6407_v57, %v1880_v47  ;;  %v1948_v63 = vsub.f32 %v6423_v14, %v1880_v47  ;;  %v1453_v38 = vpack.c.bf16 %v1411_v36, %v1409_v13  ;;  %5158 = vrcp.f32 %v7123_v34  ;;  %v7172_v57 = vpop.f32.mrf.mxu0  ;;  %v9161_v14 = vld [vmem:[#allocation122_spill] sm:$0xff] }
 0x442   : >> { %1496 = vmatpush2.bf16.xpose.msra.mxu1 %v1454_v5  ;;  %2667 = vmax.xlane.f32.xlu1 %v2666_v2  ;;  %5160 = vpow2.f32 %v2053_v51  ;;  %v1410_v44 = vmul.f32 %v5141_v28, %v9159_v19  ;;  %v1408_v47 = vmul.f32 %v5139_v41, %v9161_v14  ;;  %v9171_v19 = vld [vmem:[#allocation128_spill] sm:$0xff]  ;;  %v9172_v14 = vld [vmem:[#allocation51_spill] sm:$0xff] }
 0x443   : >> { %v2065_v1 = vmul.f32 1.442695, %v1947_v59  ;;  %v2067_v23 = vmul.f32 1.442695, %v1948_v63  ;;  %1497 = vmatprep.subr.bf16.mxu1 %v1453_v38  ;;  %v7185_v15 = vpop.f32.mrf.mxu0  ;;  %v9167_v38 = vld [vmem:[#allocation47_spill] sm:$0xff] }
 0x444   : >> { %v1293_v0 = vpop.xlane.xlu1 %1292  ;;  %v1452_v5 = vpack.c.bf16 %v1410_v44, %v1408_v47  ;;  %9165 = vst [vmem:[#allocation88_spill] sm:$0xff] %v7185_v15 }
 0x445   : >> { %5162 = vpow2.f32 %v2065_v1  ;;  %v9168_v1 = vld [vmem:[#allocation12_spill] sm:$0xff] }
 0x446   : >> { %v7170_v37 = vpop.eup %5142  ;;  %5164 = vpow2.f32 %v2067_v23  ;;  %v2657_v23 = vmax.f32 %v9168_v1, %v9167_v38 }
 0x447   : >> { %9160 = vst [vmem:[#allocation89_spill] sm:$0xff] %v7170_v37  ;;  %v7175_v36 = vpop.eup %5144  ;;  %5166 = vrcp.f32 %v1293_v0 }
 0x448   : >> { %9162 = vst [vmem:[#allocation55_spill] sm:$0xff] %v7175_v36  ;;  %v5147_v34 = vpop.eup %5146  ;;  %5168 = vpow2.f32 %v2055_v39  ;;  %v1874_v32 = vpop.xlane.xlu1 %1873  ;;  %v2169_v2 = vadd.f32 %v7175_v36, %v7170_v37  ;;  %v9177_v37 = vld [vmem:[#allocation119_spill] sm:$0xff] }
 0x449   : >> { %v7179_v58 = vpop.eup %5148  ;;  %v1943_v28 = vsub.f32 %v6337_v52, %v1874_v32  ;;  %v1944_v13 = vsub.f32 %v6360_v45, %v1874_v32  ;;  %v9169_v52 = vld [vmem:[#allocation50_spill] sm:$0xff]  ;;  %v1404_v47 = vmul.f32 %v5147_v34, %v9172_v14 }
 0x44a   : >> { %9163 = vst [vmem:[#allocation90_spill] sm:$0xff] %v7179_v58  ;;  %v7183_v17 = vpop.eup %5150  ;;  %1498 = vmatpush2.bf16.xpose.msra.mxu1 %v1452_v5  ;;  %2170 = vadd.xlane.f32.xlu0 %v2169_v2  ;;  %v1405_v0 = vmul.f32 %v5147_v34, %v9169_v52  ;;  %v9173_v5 = vld [vmem:[#allocation127_spill] sm:$0xff]  ;;  %v7199_v2 = vpop.f32.mrf.mxu0 }
 0x44b   : >> { %9164 = vst [vmem:[#allocation44_spill] sm:$0xff] %v7183_v17  ;;  %v7187_v41 = vpop.eup %5152  ;;  %v2057_v51 = vmul.f32 1.442695, %v1943_v28  ;;  %v2059_v59 = vmul.f32 1.442695, %v1944_v13  ;;  %9174 = vst [vmem:[#allocation96_spill] sm:$0xff] %v7199_v2 }
 0x44c   : >> { %9166 = vst [vmem:[#allocation97_spill] sm:$0xff] %v7187_v41  ;;  %v5155_v63 = vpop.eup %5154  ;;  %v2172_v39 = vadd.f32 %v7187_v41, %v7183_v17 }
 0x44d   : >> { %v7194_v45 = vpop.eup %5156  ;;  %5170 = vpow2.f32 %v2057_v51  ;;  %v1407_v44 = vmul.f32 %v5155_v63, %v9171_v19  ;;  %v1406_v32 = vmul.f32 %v5155_v63, %v9173_v5  ;;  %v9176_v51 = vld [vmem:[#allocation120_spill] sm:$0xff]  ;;  %v7209_v63 = vpop.f32.mrf.mxu0 }
 0x44e   : >> { %9170 = vst [vmem:[#allocation43_spill] sm:$0xff] %v7194_v45  ;;  %5172 = vpow2.f32 %v2059_v59  ;;  %2658 = vmax.xlane.f32.xlu0 %v2657_v23  ;;  %2173 = vadd.xlane.f32.xlu1 %v2172_v39  ;;  %v5159_v15 = vpop.eup %5158  ;;  %v2163_v52 = vadd.f32 %v7194_v45, %v7179_v58  ;;  %v2660_v19 = vmax.f32 %v9177_v37, %v9176_v51  ;;  %9179 = vst [vmem:[#allocation31_spill] sm:$0xff] %v7209_v63  ;;  %v9185_v63 = vld [vmem:[#allocation25_spill] sm:$0xff] }
 0x44f   : >> { %v1451_v28 = vpack.c.bf16 %v1407_v44, %v1405_v0  ;;  %v1450_v13 = vpack.c.bf16 %v1406_v32, %v1404_v47  ;;  %v7203_v17 = vpop.eup %5160  ;;  %v9181_v0 = vld [vmem:[#allocation40_spill] sm:$0xff]  ;;  %v9184_v32 = vld [vmem:[#allocation121_spill] sm:$0xff]  ;;  %v7223_v45 = vpop.f32.mrf.mxu0 }
 0x450   : >> { %9175 = vst [vmem:[#allocation108_spill] sm:$0xff] %v7203_v17  ;;  %v9182_v44 = vld [vmem:[#allocation64_spill] sm:$0xff]  ;;  %9187 = vst [vmem:[#allocation41_spill] sm:$0xff] %v7223_v45 }
 0x451   : >> { %1499 = vmatprep.subr.bf16.mxu1 %v1451_v28  ;;  %v2651_v14 = vmax.f32 %v9182_v44, %v9181_v0  ;;  %v1401_v28 = vmul.f32 %v5159_v15, %v9184_v32 }
 0x452   : >> { %v7207_v34 = vpop.eup %5162  ;;  %1500 = vmatpush2.bf16.xpose.msra.mxu1 %v1450_v13  ;;  %2164 = vadd.xlane.f32.xlu0 %v2163_v52  ;;  %v1400_v13 = vmul.f32 %v5159_v15, %v9185_v63  ;;  %v9186_v52 = vld [vmem:[#allocation130_spill] sm:$0xff]  ;;  %v7233_v63 = vpop.f32.mrf.mxu0 }
 0x453   : >> { %9178 = vst [vmem:[#allocation14_spill] sm:$0xff] %v7207_v34  ;;  %v7211_v59 = vpop.eup %5164  ;;  %2661 = vmax.xlane.f32.xlu1 %v2660_v19  ;;  %v2129_v23 = vpop.xlane.xlu0 %2128  ;;  %9191 = vst [vmem:[#allocation38_spill] sm:$0xff] %v7233_v63 }
 0x454   : >> { %9180 = vst [vmem:[#allocation116_spill] sm:$0xff] %v7211_v59  ;;  %v5167_v39 = vpop.eup %5166  ;;  %v2166_v47 = vadd.f32 %v7211_v59, %v7207_v34  ;;  %v9188_v59 = vld [vmem:[#allocation118_spill] sm:$0xff]  ;;  %5174 = vrcp.f32 %v2129_v23 }
 0x455   : >> { %v7217_v5 = vpop.eup %5168  ;;  %v1403_v2 = vmul.f32 %v5167_v39, %v6780_v46  ;;  %v1402_v58 = vmul.f32 %v5167_v39, %v9186_v52  ;;  %v9189_v46 = vld [vmem:[#allocation117_spill] sm:$0xff] }
 0x456   : >> { %9183 = vst [vmem:[#allocation39_spill] sm:$0xff] %v7217_v5  ;;  %2652 = vmax.xlane.f32.xlu0 %v2651_v14  ;;  %v2157_v32 = vadd.f32 %v7217_v5, %v7203_v17  ;;  %v2654_v44 = vmax.f32 %v9189_v46, %v9188_v59 }
 0x457   : >> { %2167 = vadd.xlane.f32.xlu1 %v2166_v47  ;;  %v1865_v19 = vpop.xlane.xlu0 %1864  ;;  %v1449_v41 = vpack.c.bf16 %v1403_v2, %v1401_v28  ;;  %v1448_v36 = vpack.c.bf16 %v1402_v58, %v1400_v13  ;;  %v9193_v2 = vld [vmem:[#allocation67_spill] sm:$0xff]  ;;  %v9194_v47 = vld [vmem:[#allocation42_spill] sm:$0xff] }
 0x458   : >> { %v1937_v0 = vsub.f32 %v9017_v16, %v1865_v19  ;;  %v1938_v34 = vsub.f32 %v9016_v7, %v1865_v19  ;;  %v2645_v28 = vmax.f32 %v9194_v47, %v9193_v2  ;;  %v9197_v13 = vld [vmem:[#allocation78_spill] sm:$0xff]  ;;  %v9198_v19 = vld [vmem:[#allocation79_spill] sm:$0xff] }
 0x459   : >> { %1501 = vmatprep.subr.bf16.mxu1 %v1449_v41 }
 0x45a   : >> { %v7231_v15 = vpop.eup %5170  ;;  %v2045_v39 = vmul.f32 1.442695, %v1937_v0  ;;  %v2047_v14 = vmul.f32 1.442695, %v1938_v34  ;;  %1502 = vmatpush2.bf16.xpose.msra.mxu1 %v1448_v36  ;;  %2158 = vadd.xlane.f32.xlu0 %v2157_v32  ;;  %v7243_v0 = vcombine.low %v6942_v21, %v6942_v21  ;;  %v7245_v36 = vpop.f32.mrf.mxu0  ;;  %v2310_v34 = vrot.slane %v6946_v9, 2  ;;  %v9202_v21 = vld [vmem:[#allocation66_spill] sm:$0xff] }
 0x45b   : >> { %9190 = vst [vmem:[#allocation35_spill] sm:$0xff] %v7231_v15  ;;  %v7235_v58 = vpop.eup %5172  ;;  %2655 = vmax.xlane.f32.xlu1 %v2654_v44  ;;  %v2123_v7 = vpop.xlane.xlu0 %2122  ;;  %9196 = vst [vmem:[#allocation34_spill] sm:$0xff] %v7245_v36 }
 0x45c   : >> { %9192 = vst [vmem:[#allocation56_spill] sm:$0xff] %v7235_v58  ;;  %v2132_v16 = vpop.xlane.xlu1 %2131  ;;  %5176 = vpow2.f32 %v2045_v39  ;;  %v2160_v41 = vadd.f32 %v7235_v58, %v7231_v15  ;;  %9195 = vst [vmem:[#allocation115_spill] sm:$0xff] %v7243_v0  ;;  %v9199_v39 = vld [vmem:[#allocation84_spill] sm:$0xff]  ;;  %v9201_v15 = vld [vmem:[#allocation45_spill] sm:$0xff] }
 0x45d   : >> { %5178 = vpow2.f32 %v2047_v14  ;;  %v9200_v14 = vld [vmem:[#allocation85_spill] sm:$0xff]  ;;  %v2648_v17 = vmax.f32 %v9202_v21, %v9201_v15 }
 0x45e   : >> { %2646 = vmax.xlane.f32.xlu0 %v2645_v28  ;;  %5180 = vrcp.f32 %v2132_v16  ;;  %v7255_v28 = vpop.f32.mrf.mxu0 }
 0x45f   : >> { %2161 = vadd.xlane.f32.xlu1 %v2160_v41  ;;  %v1859_v23 = vpop.xlane.xlu0 %1858  ;;  %9203 = vst [vmem:[#allocation46_spill] sm:$0xff] %v7255_v28  ;;  %5182 = vrcp.f32 %v2123_v7 }
 0x460   : >> { %v1868_v44 = vpop.xlane.xlu1 %1867  ;;  %v1933_v52 = vsub.f32 %v9197_v13, %v1859_v23  ;;  %v1934_v32 = vsub.f32 %v9198_v19, %v1859_v23  ;;  %v7257_v19 = vpop.f32.mrf.mxu0 }
 0x461   : >> { %v1939_v45 = vsub.f32 %v9199_v39, %v1868_v44  ;;  %v1940_v63 = vsub.f32 %v9200_v14, %v1868_v44  ;;  %1504 = vmatmul.mubr.bf16.vlgmr.msra.gmra.mxu1 %v7243_v0  ;;  %9204 = vst [vmem:[#allocation32_spill] sm:$0xff] %v7257_v19  ;;  %v5175_v14 = vpop.eup %5174  ;;  %v9205_v0 = vld [vmem:[#allocation74_spill] sm:$0xff] }
 0x462   : >> { %v2037_v9 = vmul.f32 1.442695, %v1933_v52  ;;  %v2039_v16 = vmul.f32 1.442695, %v1934_v32  ;;  %2345 = vmatprep.mubr.bf16.mxu1 %v2310_v34  ;;  %v9206_v52 = vld [vmem:[#allocation75_spill] sm:$0xff] }
 0x463   : >> { %v2049_v41 = vmul.f32 1.442695, %v1939_v45  ;;  %v2051_v36 = vmul.f32 1.442695, %v1940_v63  ;;  %2649 = vmax.xlane.f32.xlu1 %v2648_v17  ;;  %v2117_v13 = vpop.xlane.xlu0 %2116  ;;  %v9207_v45 = vld [vmem:[#allocation80_spill] sm:$0xff]  ;;  %v9209_v17 = vld [vmem:[#allocation81_spill] sm:$0xff] }
 0x464   : >> { %v2126_v23 = vpop.xlane.xlu1 %2125  ;;  %5184 = vpow2.f32 %v2037_v9 }
 0x465   : >> { %5186 = vpow2.f32 %v2039_v16  ;;  %v7267_v16 = vpop.f32.mrf.mxu0 }
 0x466   : >> { %5188 = vpow2.f32 %v2049_v41  ;;  %9211 = vst [vmem:[#allocation26_spill] sm:$0xff] %v7267_v16  ;;  %v9215_v16 = vld [vmem:[#allocation82_spill] sm:$0xff] }
 0x467   : >> { %5190 = vpow2.f32 %v2051_v36  ;;  %v1853_v44 = vpop.xlane.xlu0 %1852 }
 0x468   : >> { %v1862_v39 = vpop.xlane.xlu1 %1861  ;;  %v1929_v28 = vsub.f32 %v9205_v0, %v1853_v44  ;;  %v1930_v32 = vsub.f32 %v9206_v52, %v1853_v44  ;;  %5192 = vrcp.f32 %v2126_v23  ;;  %v9212_v52 = vld [vmem:[#allocation133_spill] sm:$0xff] }
 0x469   : >> { %v1935_v34 = vsub.f32 %v9207_v45, %v1862_v39  ;;  %v7262_v7 = vpop.eup %5176  ;;  %v1936_v63 = vsub.f32 %v9209_v17, %v1862_v39  ;;  %v2242_v45 = vmul.f32 %v5175_v14, %v9212_v52  ;;  %v9213_v23 = vld [vmem:[#allocation137_spill] sm:$0xff]  ;;  %v9214_v17 = vld [vmem:[#allocation132_spill] sm:$0xff]  ;;  %v9217_v52 = vld [vmem:[#allocation70_spill] sm:$0xff] }
 0x46a   : >> { %9208 = vst [vmem:[#allocation49_spill] sm:$0xff] %v7262_v7  ;;  %v7265_v9 = vpop.eup %5178  ;;  %v2029_v41 = vmul.f32 1.442695, %v1929_v28  ;;  %v2031_v36 = vmul.f32 1.442695, %v1930_v32  ;;  %v2241_v15 = vmul.f32 %v5175_v14, %v9214_v17  ;;  %v7277_v32 = vpop.f32.mrf.mxu0  ;;  %v2729_v17 = vmax.f32 %v7104_v8, %v7114_v22 }
 0x46b   : >> { %9210 = vst [vmem:[#allocation98_spill] sm:$0xff] %v7265_v9  ;;  %v2041_v19 = vmul.f32 1.442695, %v1935_v34  ;;  %v2043_v58 = vmul.f32 1.442695, %v1936_v63  ;;  %v7269_v5 = vpop.xlane.xlu0 %2110  ;;  %v2151_v0 = vadd.f32 %v7265_v9, %v7262_v7  ;;  %v5181_v44 = vpop.eup %5180  ;;  %9216 = vst [vmem:[#allocation104_spill] sm:$0xff] %v7277_v32  ;;  %v2735_v34 = vmax.f32 %v7147_v3, %v7156_v62 }
 0x46c   : >> { %5194 = vpow2.f32 %v2029_v41  ;;  %v2244_v39 = vmul.f32 %v5181_v44, %v9213_v23  ;;  %v2243_v28 = vmul.f32 %v5181_v44, %v9215_v16  ;;  %v5183_v9 = vpop.eup %5182  ;;  %v7287_v16 = vpop.f32.mrf.mxu0 }
 0x46d   : >> { %5196 = vpow2.f32 %v2031_v36  ;;  %2152 = vadd.xlane.f32.xlu0 %v2151_v0  ;;  %v9218_v0 = vld [vmem:[#allocation71_spill] sm:$0xff]  ;;  %9221 = vst [vmem:[#allocation37_spill] sm:$0xff] %v7287_v16 }
 0x46e   : >> { %5198 = vpow2.f32 %v2041_v19  ;;  %v2292_v63 = vpack.c.bf16 %v2244_v39, %v2242_v45  ;;  %v2291_v41 = vpack.c.bf16 %v2243_v28, %v2241_v15  ;;  %v9223_v28 = vld [vmem:[#allocation83_spill] sm:$0xff] }
 0x46f   : >> { %5200 = vpow2.f32 %v2043_v58  ;;  %v1847_v7 = vpop.xlane.xlu0 %1846 }
 0x470   : >> { %v1925_v36 = vsub.f32 %v9217_v52, %v1847_v7  ;;  %v1926_v21 = vsub.f32 %v9218_v0, %v1847_v7  ;;  %2313 = vmatprep.subr.bf16.mxu1 %v2292_v63  ;;  %5202 = vrcp.f32 %v2117_v13  ;;  %v2238_v13 = vmul.f32 %v5183_v9, %v9223_v28 }
 0x471   : >> { %v7283_v23 = vpop.eup %5184  ;;  %2736 = vmax.xlane.f32.xlu0 %v2735_v34  ;;  %2314 = vmatpush1.bf16.xpose.msra.mxu1 %v2291_v41  ;;  %v9224_v34 = vld [vmem:[#allocation142_spill] sm:$0xff]  ;;  %v9225_v41 = vld [vmem:[#allocation135_spill] sm:$0xff] }
 0x472   : >> { %9219 = vst [vmem:[#allocation15_spill] sm:$0xff] %v7283_v23  ;;  %v7285_v14 = vpop.eup %5186  ;;  %v2021_v19 = vmul.f32 1.442695, %v1925_v36  ;;  %v2023_v44 = vmul.f32 1.442695, %v1926_v21  ;;  %v7299_v21 = vpop.f32.mrf.mxu0  ;;  %v2237_v52 = vmul.f32 %v5183_v9, %v9225_v41  ;;  %v9226_v36 = vld [vmem:[#allocation141_spill] sm:$0xff] }
 0x473   : >> { %9220 = vst [vmem:[#allocation27_spill] sm:$0xff] %v7285_v14  ;;  %v7289_v58 = vpop.eup %5188  ;;  %v2145_v15 = vadd.f32 %v7285_v14, %v7283_v23  ;;  %9222 = vst [vmem:[#allocation99_spill] sm:$0xff] %v7299_v21 }
 0x474   : >> { %v7293_v45 = vpop.eup %5190  ;;  %5204 = vpow2.f32 %v2021_v19 }
 0x475   : >> { %5206 = vpow2.f32 %v2023_v44  ;;  %2146 = vadd.xlane.f32.xlu0 %v2145_v15  ;;  %v2154_v7 = vadd.f32 %v7293_v45, %v7289_v58  ;;  %v5193_v39 = vpop.eup %5192  ;;  %v2738_v15 = vmax.f32 %v7166_v55, %v7172_v57 }
 0x476   : >> { %v2240_v63 = vmul.f32 %v5193_v39, %v9224_v34  ;;  %v2239_v0 = vmul.f32 %v5193_v39, %v9226_v36  ;;  %v2723_v36 = vmax.f32 %v7065_v54, %v7078_v29 }
 0x477   : >> { %2155 = vadd.xlane.f32.xlu1 %v2154_v7  ;;  %v2120_v19 = vpop.xlane.xlu1 %2119  ;;  %v7311_v7 = vpop.f32.mrf.mxu0 }
 0x478   : >> { %5208 = vrcp.f32 %v2120_v19  ;;  %v2290_v16 = vpack.c.bf16 %v2240_v63, %v2238_v13  ;;  %v2289_v23 = vpack.c.bf16 %v2239_v0, %v2237_v52  ;;  %9229 = vst [vmem:[#allocation106_spill] sm:$0xff] %v7311_v7 }
 0x479   : >> { %v7305_v44 = vpop.eup %5194  ;;  %2730 = vmax.xlane.f32.xlu0 %v2729_v17  ;;  %v7323_v63 = vpop.f32.mrf.mxu0  ;;  %5210 = vrcp.f32 %v7269_v5 }
 0x47a   : >> { %9227 = vst [vmem:[#allocation18_spill] sm:$0xff] %v7305_v44  ;;  %v7309_v21 = vpop.eup %5196  ;;  %2315 = vmatprep.subr.bf16.mxu1 %v2290_v16  ;;  %9232 = vst [vmem:[#allocation86_spill] sm:$0xff] %v7323_v63 }
 0x47b   : >> { %9228 = vst [vmem:[#allocation69_spill] sm:$0xff] %v7309_v21  ;;  %v7313_v28 = vpop.eup %5198  ;;  %2739 = vmax.xlane.f32.xlu1 %v2738_v15  ;;  %v1856_v9 = vpop.xlane.xlu1 %1855  ;;  %v2139_v39 = vadd.f32 %v7309_v21, %v7305_v44  ;;  %2316 = vmatpush1.bf16.xpose.msra.mxu1 %v2289_v23 }
 0x47c   : >> { %9230 = vst [vmem:[#allocation36_spill] sm:$0xff] %v7313_v28  ;;  %v7317_v34 = vpop.eup %5200  ;;  %v1931_v41 = vsub.f32 %v9063_v24, %v1856_v9  ;;  %v1932_v13 = vsub.f32 %v9062_v12, %v1856_v9  ;;  %v2732_v12 = vmax.f32 %v7121_v33, %v7132_v11  ;;  %v7334_v15 = vpop.f32.mrf.mxu0 }
 0x47d   : >> { %9231 = vst [vmem:[#allocation30_spill] sm:$0xff] %v7317_v34  ;;  %2140 = vadd.xlane.f32.xlu0 %v2139_v39  ;;  %v2148_v17 = vadd.f32 %v7317_v34, %v7313_v28  ;;  %v5203_v23 = vpop.eup %5202  ;;  %9235 = vst [vmem:[#allocation33_spill] sm:$0xff] %v7334_v15  ;;  %v2717_v15 = vmax.f32 %v7027_v30, %v7041_v60 }
 0x47e   : >> { %v2033_v52 = vmul.f32 1.442695, %v1931_v41  ;;  %v2035_v16 = vmul.f32 1.442695, %v1932_v13 }
 0x47f   : >> { %2149 = vadd.xlane.f32.xlu1 %v2148_v17  ;;  %v2114_v0 = vpop.xlane.xlu1 %2113 }
 0x480   : >> { %5212 = vpow2.f32 %v2033_v52  ;;  %v9236_v52 = vld [vmem:[#allocation140_spill] sm:$0xff] }
 0x481   : >> { %v7328_v24 = vpop.eup %5204  ;;  %5214 = vpow2.f32 %v2035_v16  ;;  %2724 = vmax.xlane.f32.xlu0 %v2723_v36  ;;  %v2234_v16 = vmul.f32 %v5203_v23, %v9236_v52  ;;  %v7341_v36 = vpop.f32.mrf.mxu0 }
 0x482   : >> { %9233 = vst [vmem:[#allocation48_spill] sm:$0xff] %v7328_v24  ;;  %v7332_v19 = vpop.eup %5206  ;;  %5216 = vrcp.f32 %v2114_v0  ;;  %9237 = vst [vmem:[#allocation54_spill] sm:$0xff] %v7341_v36 }
 0x483   : >> { %9234 = vst [vmem:[#allocation23_spill] sm:$0xff] %v7332_v19  ;;  %2733 = vmax.xlane.f32.xlu1 %v2732_v12  ;;  %v2105_v9 = vpop.xlane.xlu0 %2104  ;;  %v1850_v39 = vpop.xlane.xlu1 %1849  ;;  %v2133_v5 = vadd.f32 %v7332_v19, %v7328_v24  ;;  %v9238_v19 = vld [vmem:[#allocation138_spill] sm:$0xff] }
 0x484   : >> { %v1927_v41 = vsub.f32 %v9075_v10, %v1850_v39  ;;  %v1928_v13 = vsub.f32 %v9074_v48, %v1850_v39  ;;  %5218 = vrcp.f32 %v2105_v9  ;;  %v2233_v48 = vmul.f32 %v5203_v23, %v9238_v19 }
 0x485   : >> { %v5209_v17 = vpop.eup %5208  ;;  %2134 = vadd.xlane.f32.xlu0 %v2133_v5 }
 0x486   : >> { %v2025_v44 = vmul.f32 1.442695, %v1927_v41  ;;  %v2027_v21 = vmul.f32 1.442695, %v1928_v13  ;;  %v2236_v0 = vmul.f32 %v5209_v17, %v6919_v61  ;;  %v2235_v12 = vmul.f32 %v5209_v17, %v6914_v40  ;;  %v7350_v61 = vpop.f32.mrf.mxu0  ;;  %v5211_v17 = vpop.eup %5210 }
 0x487   : >> { %v2689_v24 = vpop.xlane.xlu0 %2688  ;;  %v2108_v10 = vpop.xlane.xlu1 %2107 }
 0x488   : >> { %5220 = vpow2.f32 %v2025_v44  ;;  %v2769_v39 = vsub.f32 %v6790_v43, %v2689_v24  ;;  %v2770_v5 = vsub.f32 %v6798_v18, %v2689_v24  ;;  %v2288_v52 = vpack.c.bf16 %v2236_v0, %v2234_v16  ;;  %v9242_v0 = vld [vmem:[#allocation146_spill] sm:$0xff] }
 0x489   : >> { %5222 = vpow2.f32 %v2027_v21  ;;  %2718 = vmax.xlane.f32.xlu0 %v2717_v15  ;;  %v2287_v41 = vpack.c.bf16 %v2235_v12, %v2233_v48  ;;  %v7358_v21 = vpop.f32.mrf.mxu0  ;;  %v2230_v12 = vmul.f32 %v5211_v17, %v9242_v0  ;;  %v9244_v48 = vld [vmem:[#allocation111_spill] sm:$0xff] }
 0x48a   : >> { %v2861_v40 = vmul.f32 1.442695, %v2769_v39  ;;  %v2863_v13 = vmul.f32 1.442695, %v2770_v5  ;;  %5224 = vrcp.f32 %v2108_v10  ;;  %2317 = vmatprep.subr.bf16.mxu1 %v2288_v52  ;;  %9241 = vst [vmem:[#allocation87_spill] sm:$0xff] %v7358_v21  ;;  %v9243_v10 = vld [vmem:[#allocation145_spill] sm:$0xff] }
 0x48b   : >> { %2318 = vmatpush1.bf16.xpose.msra.mxu1 %v2287_v41  ;;  %v2692_v9 = vpop.xlane.xlu1 %2691  ;;  %v7366_v5 = vpop.f32.mrf.mxu0 }
 0x48c   : >> { %5226 = vpow2.f32 %v2861_v40  ;;  %v2771_v44 = vsub.f32 %v6806_v42, %v2692_v9  ;;  %v2772_v43 = vsub.f32 %v6816_v50, %v2692_v9  ;;  %v2229_v50 = vmul.f32 %v5211_v17, %v9243_v10  ;;  %9245 = vst [vmem:[#allocation20_spill] sm:$0xff] %v7366_v5  ;;  %v9250_v10 = vld [vmem:[#allocation109_spill] sm:$0xff] }
 0x48d   : >> { %v7354_v23 = vpop.eup %5212  ;;  %5228 = vpow2.f32 %v2863_v13  ;;  %v2726_v40 = vmax.f32 %v7083_v35, %v7091_v6  ;;  %v7374_v17 = vpop.f32.mrf.mxu0  ;;  %v9284_v35 = vld [vmem:[#allocation19_spill] sm:$0xff] }
 0x48e   : >> { %9239 = vst [vmem:[#allocation123_spill] sm:$0xff] %v7354_v23  ;;  %v7356_v18 = vpop.eup %5214  ;;  %v2865_v24 = vmul.f32 1.442695, %v2771_v44  ;;  %v2867_v19 = vmul.f32 1.442695, %v2772_v43  ;;  %9248 = vst [vmem:[#allocation12_spill] sm:$0xff] %v7374_v17 }
 0x48f   : >> { %9240 = vst [vmem:[#allocation21_spill] sm:$0xff] %v7356_v18  ;;  %v5217_v15 = vpop.eup %5216  ;;  %v2142_v16 = vadd.f32 %v7356_v18, %v7354_v23  ;;  %v7388_v23 = vpop.f32.mrf.mxu0 }
 0x490   : >> { %5230 = vpow2.f32 %v2865_v24  ;;  %v2232_v42 = vmul.f32 %v5217_v15, %v6953_v31  ;;  %v2231_v39 = vmul.f32 %v5217_v15, %v9244_v48 }
 0x491   : >> { %5232 = vpow2.f32 %v2867_v19  ;;  %2143 = vadd.xlane.f32.xlu1 %v2142_v16  ;;  %v5219_v9 = vpop.eup %5218  ;;  %v9249_v16 = vld [vmem:[#allocation61_spill] sm:$0xff] }
 0x492   : >> { %v2286_v52 = vpack.c.bf16 %v2232_v42, %v2230_v12  ;;  %v2285_v41 = vpack.c.bf16 %v2231_v39, %v2229_v50  ;;  %v2226_v0 = vmul.f32 %v5219_v9, %v9249_v16  ;;  %v9252_v39 = vld [vmem:[#allocation13_spill] sm:$0xff] }
 0x493   : >> { %v2099_v13 = vpop.xlane.xlu0 %2098 }
 0x494   : >> { %2319 = vmatprep.subr.bf16.mxu1 %v2286_v52  ;;  %5234 = vrcp.f32 %v2099_v13  ;;  %v2225_v52 = vmul.f32 %v5219_v9, %v9252_v39  ;;  %v9255_v9 = vld [vmem:[#allocation129_spill] sm:$0xff] }
 0x495   : >> { %v7370_v44 = vpop.eup %5220  ;;  %2320 = vmatpush1.bf16.xpose.msra.mxu1 %v2285_v41  ;;  %2727 = vmax.xlane.f32.xlu1 %v2726_v40  ;;  %v9253_v41 = vld [vmem:[#allocation62_spill] sm:$0xff]  ;;  %v9259_v39 = vld [vmem:[#allocation105_spill] sm:$0xff] }
 0x496   : >> { %9246 = vst [vmem:[#allocation122_spill] sm:$0xff] %v7370_v44  ;;  %v7372_v31 = vpop.eup %5222 }
 0x497   : >> { %9247 = vst [vmem:[#allocation47_spill] sm:$0xff] %v7372_v31  ;;  %v5225_v43 = vpop.eup %5224  ;;  %v2683_v24 = vpop.xlane.xlu0 %2682  ;;  %v2136_v15 = vadd.f32 %v7372_v31, %v7370_v44 }
 0x498   : >> { %v2102_v19 = vpop.xlane.xlu1 %2101  ;;  %v2765_v12 = vsub.f32 %v6756_v53, %v2683_v24  ;;  %v2766_v42 = vsub.f32 %v6766_v4, %v2683_v24  ;;  %v2228_v50 = vmul.f32 %v5225_v43, %v9250_v10  ;;  %v2227_v40 = vmul.f32 %v5225_v43, %v9253_v41  ;;  %v9256_v43 = vld [vmem:[#allocation131_spill] sm:$0xff] }
 0x499   : >> { %5236 = vrcp.f32 %v2102_v19  ;;  %v7382_v48 = vpop.eup %5226  ;;  %2137 = vadd.xlane.f32.xlu1 %v2136_v15  ;;  %v2720_v24 = vmax.f32 %v7045_v20, %v7054_v27 }
 0x49a   : >> { %9251 = vst [vmem:[#allocation50_spill] sm:$0xff] %v7382_v48  ;;  %v7386_v13 = vpop.eup %5228  ;;  %v2853_v44 = vmul.f32 1.442695, %v2765_v12  ;;  %v2855_v16 = vmul.f32 1.442695, %v2766_v42  ;;  %v2284_v31 = vpack.c.bf16 %v2228_v50, %v2226_v0  ;;  %v2283_v53 = vpack.c.bf16 %v2227_v40, %v2225_v52  ;;  %v7400_v12 = vpop.f32.mrf.mxu0  ;;  %v9260_v52 = vld [vmem:[#allocation63_spill] sm:$0xff] }
 0x49b   : >> { %9254 = vst [vmem:[#allocation128_spill] sm:$0xff] %v7386_v13  ;;  %v2975_v4 = vadd.f32 %v7386_v13, %v7382_v48  ;;  %v9267_v13 = vld [vmem:[#allocation24_spill] sm:$0xff] }
 0x49c   : >> { %v2686_v18 = vpop.xlane.xlu1 %2685  ;;  %5238 = vpow2.f32 %v2853_v44  ;;  %2321 = vmatprep.subr.bf16.mxu1 %v2284_v31  ;;  %v2711_v44 = vmax.f32 %v9260_v52, %v9259_v39  ;;  %v9268_v52 = vld [vmem:[#allocation124_spill] sm:$0xff] }
 0x49d   : >> { %v2767_v19 = vsub.f32 %v9255_v9, %v2686_v18  ;;  %v2768_v15 = vsub.f32 %v9256_v43, %v2686_v18  ;;  %v7396_v10 = vpop.eup %5230  ;;  %5240 = vpow2.f32 %v2855_v16  ;;  %2322 = vmatpush1.bf16.xpose.msra.mxu1 %v2283_v53  ;;  %2976 = vadd.xlane.f32.xlu0 %v2975_v4  ;;  %v7406_v18 = vpop.f32.mrf.mxu0  ;;  %v9261_v16 = vld [vmem:[#allocation77_spill] sm:$0xff]  ;;  %v9262_v53 = vld [vmem:[#allocation107_spill] sm:$0xff] }
 0x49e   : >> { %9257 = vst [vmem:[#allocation51_spill] sm:$0xff] %v7396_v10  ;;  %v7398_v0 = vpop.eup %5232  ;;  %2721 = vmax.xlane.f32.xlu1 %v2720_v24  ;;  %v2714_v4 = vmax.f32 %v9262_v53, %v9261_v16  ;;  %v9263_v24 = vld [vmem:[#allocation76_spill] sm:$0xff] }
 0x49f   : >> { %9258 = vst [vmem:[#allocation127_spill] sm:$0xff] %v7398_v0  ;;  %v2857_v42 = vmul.f32 1.442695, %v2767_v19  ;;  %v2859_v50 = vmul.f32 1.442695, %v2768_v15  ;;  %v2978_v31 = vadd.f32 %v7398_v0, %v7396_v10  ;;  %v7410_v19 = vpop.f32.mrf.mxu0  ;;  %v9264_v15 = vld [vmem:[#allocation103_spill] sm:$0xff] }
 0x4a0   : >> { %v9266_v0 = vld [vmem:[#allocation17_spill] sm:$0xff] }
 0x4a1   : >> { %5242 = vpow2.f32 %v2857_v42  ;;  %2712 = vmax.xlane.f32.xlu0 %v2711_v44  ;;  %v5235_v41 = vpop.eup %5234  ;;  %v9265_v42 = vld [vmem:[#allocation68_spill] sm:$0xff] }
 0x4a2   : >> { %5244 = vpow2.f32 %v2859_v50  ;;  %2979 = vadd.xlane.f32.xlu1 %v2978_v31  ;;  %v2222_v43 = vmul.f32 %v5235_v41, %v9263_v24  ;;  %v2221_v31 = vmul.f32 %v5235_v41, %v9266_v0  ;;  %v7422_v24 = vpop.f32.mrf.mxu0 }
 0x4a3   : >> { %v2093_v40 = vpop.xlane.xlu0 %2092 }
 0x4a4   : >> { %5246 = vrcp.f32 %v2093_v40 }
 0x4a6   : >> { %v5237_v9 = vpop.eup %5236  ;;  %2715 = vmax.xlane.f32.xlu1 %v2714_v4 }
 0x4a7   : >> { %v2224_v10 = vmul.f32 %v5237_v9, %v9264_v15  ;;  %v2223_v50 = vmul.f32 %v5237_v9, %v9265_v42  ;;  %v2677_v44 = vpop.xlane.xlu0 %2676  ;;  %v2096_v48 = vpop.xlane.xlu1 %2095 }
 0x4a8   : >> { %v2761_v39 = vsub.f32 %v9267_v13, %v2677_v44  ;;  %v2762_v27 = vsub.f32 %v9268_v52, %v2677_v44  ;;  %5248 = vrcp.f32 %v2096_v48  ;;  %v9271_v13 = vld [vmem:[#allocation125_spill] sm:$0xff]  ;;  %v9272_v48 = vld [vmem:[#allocation126_spill] sm:$0xff]  ;;  %v7432_v42 = vpop.f32.mrf.mxu0 }
 0x4a9   : >> { %v2282_v16 = vpack.c.bf16 %v2224_v10, %v2222_v43  ;;  %v7418_v53 = vpop.eup %5238  ;;  %v2281_v40 = vpack.c.bf16 %v2223_v50, %v2221_v31  ;;  %v9276_v50 = vld [vmem:[#allocation112_spill] sm:$0xff] }
 0x4aa   : >> { %9269 = vst [vmem:[#allocation120_spill] sm:$0xff] %v7418_v53  ;;  %v7420_v4 = vpop.eup %5240  ;;  %v2845_v15 = vmul.f32 1.442695, %v2761_v39  ;;  %v2847_v20 = vmul.f32 1.442695, %v2762_v27 }
 0x4ab   : >> { %9270 = vst [vmem:[#allocation119_spill] sm:$0xff] %v7420_v4  ;;  %2323 = vmatprep.subr.bf16.mxu1 %v2282_v16  ;;  %v2680_v9 = vpop.xlane.xlu1 %2679  ;;  %v2969_v0 = vadd.f32 %v7420_v4, %v7418_v53  ;;  %v9275_v16 = vld [vmem:[#allocation114_spill] sm:$0xff] }
 0x4ac   : >> { %2324 = vmatpush1.bf16.xpose.msra.mxu1 %v2281_v40  ;;  %5250 = vpow2.f32 %v2845_v15  ;;  %v2763_v52 = vsub.f32 %v9271_v13, %v2680_v9  ;;  %v2764_v10 = vsub.f32 %v9272_v48, %v2680_v9  ;;  %v2705_v44 = vmax.f32 %v9276_v50, %v9275_v16  ;;  %v7438_v40 = vpop.f32.mrf.mxu0  ;;  %v9277_v15 = vld [vmem:[#allocation60_spill] sm:$0xff]  ;;  %v9278_v9 = vld [vmem:[#allocation113_spill] sm:$0xff]  ;;  %v9280_v4 = vld [vmem:[#allocation58_spill] sm:$0xff] }
 0x4ad   : >> { %5252 = vpow2.f32 %v2847_v20  ;;  %2970 = vadd.xlane.f32.xlu0 %v2969_v0  ;;  %v2708_v0 = vmax.f32 %v9278_v9, %v9277_v15  ;;  %v9283_v50 = vld [vmem:[#allocation22_spill] sm:$0xff] }
 0x4ae   : >> { %v7428_v41 = vpop.eup %5242  ;;  %v2849_v27 = vmul.f32 1.442695, %v2763_v52  ;;  %v2851_v39 = vmul.f32 1.442695, %v2764_v10  ;;  %v7442_v52 = vpop.f32.mrf.mxu0  ;;  %v9279_v10 = vld [vmem:[#allocation73_spill] sm:$0xff] }
 0x4af   : >> { %9273 = vst [vmem:[#allocation121_spill] sm:$0xff] %v7428_v41  ;;  %v7430_v43 = vpop.eup %5244 }
 0x4b0   : >> { %9274 = vst [vmem:[#allocation25_spill] sm:$0xff] %v7430_v43  ;;  %v2972_v31 = vadd.f32 %v7430_v43, %v7428_v41  ;;  %5254 = vpow2.f32 %v2849_v27  ;;  %v9281_v27 = vld [vmem:[#allocation72_spill] sm:$0xff]  ;;  %v9282_v43 = vld [vmem:[#allocation57_spill] sm:$0xff] }
 0x4b1   : >> { %5256 = vpow2.f32 %v2851_v39  ;;  %2706 = vmax.xlane.f32.xlu0 %v2705_v44  ;;  %v5247_v20 = vpop.eup %5246 }
 0x4b2   : >> { %2973 = vadd.xlane.f32.xlu1 %v2972_v31  ;;  %v2218_v53 = vmul.f32 %v5247_v20, %v9279_v10  ;;  %v2217_v16 = vmul.f32 %v5247_v20, %v9282_v43  ;;  %v7454_v10 = vpop.f32.mrf.mxu0  ;;  %v9288_v20 = vld [vmem:[#allocation29_spill] sm:$0xff] }
 0x4b3   : >> { %v2087_v13 = vpop.xlane.xlu0 %2086 }
 0x4b4   : >> { %5258 = vrcp.f32 %v2087_v13 }
 0x4b5   : >> { %v5249_v48 = vpop.eup %5248 }
 0x4b6   : >> { %2709 = vmax.xlane.f32.xlu1 %v2708_v0  ;;  %v2220_v41 = vmul.f32 %v5249_v48, %v9280_v4  ;;  %v2219_v39 = vmul.f32 %v5249_v48, %v9281_v27  ;;  %v7464_v27 = vpop.f32.mrf.mxu0 }
 0x4b7   : >> { %v2671_v44 = vpop.xlane.xlu0 %2670  ;;  %v2090_v31 = vpop.xlane.xlu1 %2089 }
 0x4b8   : >> { %v2757_v6 = vsub.f32 %v9283_v50, %v2671_v44  ;;  %v2758_v15 = vsub.f32 %v9284_v35, %v2671_v44  ;;  %5260 = vrcp.f32 %v2090_v31  ;;  %v2280_v9 = vpack.c.bf16 %v2220_v41, %v2218_v53  ;;  %v9287_v50 = vld [vmem:[#allocation28_spill] sm:$0xff]  ;;  %v7470_v31 = vpop.f32.mrf.mxu0 }
 0x4b9   : >> { %v7450_v0 = vpop.eup %5250  ;;  %v2279_v36 = vpack.c.bf16 %v2219_v39, %v2217_v16 }
 0x4ba   : >> { %9285 = vst [vmem:[#allocation130_spill] sm:$0xff] %v7450_v0  ;;  %v7452_v13 = vpop.eup %5252  ;;  %v2837_v4 = vmul.f32 1.442695, %v2757_v6  ;;  %v2839_v28 = vmul.f32 1.442695, %v2758_v15  ;;  %2325 = vmatprep.subr.bf16.mxu1 %v2280_v9  ;;  %v9292_v9 = vld [vmem:[#allocation144_spill] sm:$0xff] }
 0x4bb   : >> { %9286 = vst [vmem:[#allocation118_spill] sm:$0xff] %v7452_v13  ;;  %2326 = vmatpush1.bf16.xpose.msra.mxu1 %v2279_v36  ;;  %v2674_v48 = vpop.xlane.xlu1 %2673  ;;  %v2963_v43 = vadd.f32 %v7452_v13, %v7450_v0  ;;  %v9291_v36 = vld [vmem:[#allocation147_spill] sm:$0xff]  ;;  %v9296_v13 = vld [vmem:[#allocation94_spill] sm:$0xff] }
 0x4bc   : >> { %5262 = vpow2.f32 %v2837_v4  ;;  %v2759_v35 = vsub.f32 %v9287_v50, %v2674_v48  ;;  %v2760_v53 = vsub.f32 %v9288_v20, %v2674_v48  ;;  %v2699_v39 = vmax.f32 %v9292_v9, %v9291_v36  ;;  %v9293_v4 = vld [vmem:[#allocation110_spill] sm:$0xff]  ;;  %v9294_v48 = vld [vmem:[#allocation65_spill] sm:$0xff] }
 0x4bd   : >> { %v7460_v41 = vpop.eup %5254  ;;  %5264 = vpow2.f32 %v2839_v28  ;;  %2964 = vadd.xlane.f32.xlu0 %v2963_v43  ;;  %v2702_v43 = vmax.f32 %v9294_v48, %v9293_v4 }
 0x4be   : >> { %9289 = vst [vmem:[#allocation117_spill] sm:$0xff] %v7460_v41  ;;  %v7462_v16 = vpop.eup %5256  ;;  %v2841_v6 = vmul.f32 1.442695, %v2759_v35  ;;  %v2843_v15 = vmul.f32 1.442695, %v2760_v53  ;;  %v7474_v35 = vpop.f32.mrf.mxu0  ;;  %v9295_v53 = vld [vmem:[#allocation100_spill] sm:$0xff] }
 0x4bf   : >> { %9290 = vst [vmem:[#allocation67_spill] sm:$0xff] %v7462_v16  ;;  %v2966_v44 = vadd.f32 %v7462_v16, %v7460_v41  ;;  %v9298_v16 = vld [vmem:[#allocation102_spill] sm:$0xff] }
 0x4c0   : >> { %5266 = vpow2.f32 %v2841_v6  ;;  %v9297_v6 = vld [vmem:[#allocation93_spill] sm:$0xff]  ;;  %v7480_v9 = vpop.f32.mrf.mxu0 }
 0x4c1   : >> { %5268 = vpow2.f32 %v2843_v15  ;;  %2700 = vmax.xlane.f32.xlu0 %v2699_v39  ;;  %2967 = vadd.xlane.f32.xlu1 %v2966_v44  ;;  %v5259_v28 = vpop.eup %5258  ;;  %9299 = vst [vmem:[#allocation42_spill] sm:$0xff] %v7480_v9 }
 0x4c2   : >> { %v2214_v0 = vmul.f32 %v5259_v28, %v9295_v53  ;;  %v2213_v36 = vmul.f32 %v5259_v28, %v9298_v16  ;;  %v7490_v28 = vpop.f32.mrf.mxu0 }
 0x4c3   : >> { %v2177_v50 = vpop.xlane.xlu0 %2176  ;;  %9302 = vst [vmem:[#allocation84_spill] sm:$0xff] %v7490_v28  ;;  %v9313_v28 = vld [vmem:[#allocation52_spill] sm:$0xff] }
 0x4c4   : >> { %5270 = vrcp.f32 %v2177_v50 }
 0x4c5   : >> { %v5261_v20 = vpop.eup %5260  ;;  %2703 = vmax.xlane.f32.xlu1 %v2702_v43 }
 0x4c6   : >> { %v2216_v41 = vmul.f32 %v5261_v20, %v9296_v13  ;;  %v2215_v15 = vmul.f32 %v5261_v20, %v9297_v6  ;;  %v9306_v6 = vld [vmem:[#allocation134_spill] sm:$0xff] }
 0x4c7   : >> { %v2665_v39 = vpop.xlane.xlu0 %2664  ;;  %v2180_v44 = vpop.xlane.xlu1 %2179 }
 0x4c8   : >> { %v2753_v4 = vsub.f32 %v9149_v25, %v2665_v39  ;;  %v2754_v48 = vsub.f32 %v9148_v49, %v2665_v39  ;;  %5272 = vrcp.f32 %v2180_v44  ;;  %v2278_v43 = vpack.c.bf16 %v2216_v41, %v2214_v0  ;;  %v7502_v44 = vpop.f32.mrf.mxu0 }
 0x4c9   : >> { %v7484_v34 = vpop.eup %5262  ;;  %v2277_v50 = vpack.c.bf16 %v2215_v15, %v2213_v36  ;;  %9307 = vst [vmem:[#allocation75_spill] sm:$0xff] %v7502_v44 }
 0x4ca   : >> { %9300 = vst [vmem:[#allocation78_spill] sm:$0xff] %v7484_v34  ;;  %v7486_v53 = vpop.eup %5264  ;;  %v2829_v13 = vmul.f32 1.442695, %v2753_v4  ;;  %v2831_v14 = vmul.f32 1.442695, %v2754_v48  ;;  %2327 = vmatprep.subr.bf16.mxu1 %v2278_v43  ;;  %v9305_v48 = vld [vmem:[#allocation136_spill] sm:$0xff] }
 0x4cb   : >> { %9301 = vst [vmem:[#allocation79_spill] sm:$0xff] %v7486_v53  ;;  %2328 = vmatpush1.bf16.xpose.msra.mxu1 %v2277_v50  ;;  %v2668_v20 = vpop.xlane.xlu1 %2667  ;;  %v2957_v16 = vadd.f32 %v7486_v53, %v7484_v34  ;;  %v2693_v15 = vmax.f32 %v9306_v6, %v9305_v48 }
 0x4cc   : >> { %5274 = vpow2.f32 %v2829_v13  ;;  %v2755_v49 = vsub.f32 %v9155_v26, %v2668_v20  ;;  %v2756_v25 = vsub.f32 %v9154_v56, %v2668_v20  ;;  %v9308_v26 = vld [vmem:[#allocation143_spill] sm:$0xff]  ;;  %v7506_v13 = vpop.f32.mrf.mxu0 }
 0x4cd   : >> { %v7494_v0 = vpop.eup %5266  ;;  %5276 = vpow2.f32 %v2831_v14  ;;  %2958 = vadd.xlane.f32.xlu0 %v2957_v16  ;;  %v9309_v14 = vld [vmem:[#allocation139_spill] sm:$0xff]  ;;  %9310 = vst [vmem:[#allocation80_spill] sm:$0xff] %v7506_v13  ;;  %v9311_v16 = vld [vmem:[#allocation92_spill] sm:$0xff] }
 0x4ce   : >> { %9303 = vst [vmem:[#allocation85_spill] sm:$0xff] %v7494_v0  ;;  %v7496_v41 = vpop.eup %5268  ;;  %v2833_v36 = vmul.f32 1.442695, %v2755_v49  ;;  %v2835_v4 = vmul.f32 1.442695, %v2756_v25  ;;  %v2696_v43 = vmax.f32 %v9309_v14, %v9308_v26  ;;  %v9312_v25 = vld [vmem:[#allocation53_spill] sm:$0xff]  ;;  %v7512_v34 = vpop.f32.mrf.mxu0 }
 0x4cf   : >> { %9304 = vst [vmem:[#allocation74_spill] sm:$0xff] %v7496_v41  ;;  %v2960_v39 = vadd.f32 %v7496_v41, %v7494_v0  ;;  %9315 = vst [vmem:[#allocation81_spill] sm:$0xff] %v7512_v34 }
 0x4d0   : >> { %5278 = vpow2.f32 %v2833_v36 }
 0x4d1   : >> { %5280 = vpow2.f32 %v2835_v4  ;;  %2694 = vmax.xlane.f32.xlu0 %v2693_v15  ;;  %2961 = vadd.xlane.f32.xlu1 %v2960_v39  ;;  %v5271_v56 = vpop.eup %5270  ;;  %v9314_v15 = vld [vmem:[#allocation91_spill] sm:$0xff] }
 0x4d2   : >> { %v2274_v49 = vmul.f32 %v5271_v56, %v9311_v16  ;;  %v2273_v39 = vmul.f32 %v5271_v56, %v9314_v15 }
 0x4d3   : >> { %v2171_v50 = vpop.xlane.xlu0 %2170 }
 0x4d4   : >> { %5282 = vrcp.f32 %v2171_v50 }
 0x4d5   : >> { %v5273_v20 = vpop.eup %5272  ;;  %2697 = vmax.xlane.f32.xlu1 %v2696_v43 }
 0x4d6   : >> { %v2276_v9 = vmul.f32 %v5273_v20, %v9312_v25  ;;  %v2275_v44 = vmul.f32 %v5273_v20, %v9313_v28  ;;  %v7522_v20 = vpop.f32.mrf.mxu0 }
 0x4d7   : >> { %v2659_v36 = vpop.xlane.xlu0 %2658  ;;  %v2174_v4 = vpop.xlane.xlu1 %2173  ;;  %9316 = vst [vmem:[#allocation133_spill] sm:$0xff] %v7522_v20 }
 0x4d8   : >> { %v2749_v0 = vsub.f32 %v9168_v1, %v2659_v36  ;;  %v2750_v41 = vsub.f32 %v9167_v38, %v2659_v36  ;;  %5284 = vrcp.f32 %v2174_v4  ;;  %v2308_v13 = vpack.c.bf16 %v2276_v9, %v2274_v49  ;;  %v7534_v15 = vpop.f32.mrf.mxu0 }
 0x4d9   : >> { %v7516_v43 = vpop.eup %5274  ;;  %v2307_v50 = vpack.c.bf16 %v2275_v44, %v2273_v39  ;;  %9318 = vst [vmem:[#allocation132_spill] sm:$0xff] %v7534_v15  ;;  %v9325_v15 = vld [vmem:[#allocation44_spill] sm:$0xff] }
 0x4da   : >> { %v7518_v16 = vpop.eup %5276  ;;  %v2821_v25 = vmul.f32 1.442695, %v2749_v0  ;;  %v2823_v53 = vmul.f32 1.442695, %v2750_v41  ;;  %2329 = vmatprep.subr.bf16.mxu1 %v2308_v13  ;;  %v3532_v41 = vmax.f32 %v7454_v10, %v7464_v27  ;;  %v7540_v34 = vpop.f32.mrf.mxu0 }
 0x4db   : >> { %v2165_v28 = vpop.xlane.xlu0 %2164  ;;  %2330 = vmatpush2.bf16.xpose.msra.mxu1 %v2307_v50  ;;  %v2951_v56 = vadd.f32 %v7518_v16, %v7516_v43  ;;  %9321 = vst [vmem:[#allocation82_spill] sm:$0xff] %v7540_v34 }
 0x4dc   : >> { %5286 = vpow2.f32 %v2821_v25  ;;  %v2662_v1 = vpop.xlane.xlu1 %2661 }
 0x4dd   : >> { %v7524_v38 = vpop.eup %5278  ;;  %5288 = vpow2.f32 %v2823_v53  ;;  %v2751_v9 = vsub.f32 %v9177_v37, %v2662_v1  ;;  %v2752_v44 = vsub.f32 %v9176_v51, %v2662_v1  ;;  %2952 = vadd.xlane.f32.xlu0 %v2951_v56  ;;  %v9319_v53 = vld [vmem:[#allocation64_spill] sm:$0xff] }
 0x4de   : >> { %9317 = vst [vmem:[#allocation137_spill] sm:$0xff] %v7524_v38  ;;  %v7528_v0 = vpop.eup %5280  ;;  %5290 = vrcp.f32 %v2165_v28  ;;  %v9320_v37 = vld [vmem:[#allocation40_spill] sm:$0xff] }
 0x4df   : >> { %v2825_v13 = vmul.f32 1.442695, %v2751_v9  ;;  %v2827_v49 = vmul.f32 1.442695, %v2752_v44  ;;  %v2653_v36 = vpop.xlane.xlu0 %2652  ;;  %v2954_v4 = vadd.f32 %v7528_v0, %v7524_v38  ;;  %v3535_v9 = vmax.f32 %v7470_v31, %v7474_v35  ;;  %v7548_v38 = vpop.f32.mrf.mxu0 }
 0x4e0   : >> { %v2745_v39 = vsub.f32 %v9319_v53, %v2653_v36  ;;  %v2746_v50 = vsub.f32 %v9320_v37, %v2653_v36  ;;  %v2168_v51 = vpop.xlane.xlu1 %2167  ;;  %v9324_v37 = vld [vmem:[#allocation89_spill] sm:$0xff]  ;;  %9326 = vst [vmem:[#allocation70_spill] sm:$0xff] %v7548_v38 }
 0x4e1   : >> { %5292 = vpow2.f32 %v2825_v13  ;;  %3533 = vmax.xlane.f32.xlu0 %v3532_v41  ;;  %2955 = vadd.xlane.f32.xlu1 %v2954_v4  ;;  %v5283_v1 = vpop.eup %5282  ;;  %v9322_v13 = vld [vmem:[#allocation55_spill] sm:$0xff]  ;;  %v9323_v4 = vld [vmem:[#allocation97_spill] sm:$0xff] }
 0x4e2   : >> { %5294 = vpow2.f32 %v2827_v49  ;;  %v2813_v25 = vmul.f32 1.442695, %v2745_v39  ;;  %v2815_v56 = vmul.f32 1.442695, %v2746_v50  ;;  %v2270_v49 = vmul.f32 %v5283_v1, %v9322_v13 }
 0x4e3   : >> { %5296 = vrcp.f32 %v2168_v51  ;;  %v2159_v44 = vpop.xlane.xlu0 %2158  ;;  %v2269_v50 = vmul.f32 %v5283_v1, %v9324_v37  ;;  %v3526_v37 = vmax.f32 %v7422_v24, %v7432_v42 }
 0x4e4   : >> { %5298 = vpow2.f32 %v2813_v25  ;;  %v2656_v28 = vpop.xlane.xlu1 %2655 }
 0x4e5   : >> { %v5285_v53 = vpop.eup %5284  ;;  %5300 = vpow2.f32 %v2815_v56  ;;  %v2747_v36 = vsub.f32 %v9189_v46, %v2656_v28  ;;  %v2748_v41 = vsub.f32 %v9188_v59, %v2656_v28  ;;  %3536 = vmax.xlane.f32.xlu1 %v3535_v9 }
 0x4e6   : >> { %v2272_v39 = vmul.f32 %v5285_v53, %v9323_v4  ;;  %v2271_v51 = vmul.f32 %v5285_v53, %v9325_v15  ;;  %5302 = vrcp.f32 %v2159_v44 }
 0x4e7   : >> { %v2817_v20 = vmul.f32 1.442695, %v2747_v36  ;;  %v2819_v34 = vmul.f32 1.442695, %v2748_v41  ;;  %v2647_v25 = vpop.xlane.xlu0 %2646  ;;  %v9329_v36 = vld [vmem:[#allocation66_spill] sm:$0xff] }
 0x4e8   : >> { %v2741_v56 = vsub.f32 %v9194_v47, %v2647_v25  ;;  %v2742_v46 = vsub.f32 %v9193_v2, %v2647_v25  ;;  %v2162_v59 = vpop.xlane.xlu1 %2161  ;;  %v2306_v9 = vpack.c.bf16 %v2272_v39, %v2270_v49  ;;  %v2305_v28 = vpack.c.bf16 %v2271_v51, %v2269_v50  ;;  %v7558_v47 = vpop.f32.mrf.mxu0 }
 0x4e9   : >> { %v7552_v13 = vpop.eup %5286  ;;  %5304 = vpow2.f32 %v2817_v20  ;;  %9328 = vst [vmem:[#allocation83_spill] sm:$0xff] %v7558_v47  ;;  %v9330_v20 = vld [vmem:[#allocation45_spill] sm:$0xff] }
 0x4ea   : >> { %9327 = vst [vmem:[#allocation71_spill] sm:$0xff] %v7552_v13  ;;  %v7554_v4 = vpop.eup %5288  ;;  %5306 = vpow2.f32 %v2819_v34  ;;  %v2805_v15 = vmul.f32 1.442695, %v2741_v56  ;;  %v2807_v1 = vmul.f32 1.442695, %v2742_v46  ;;  %2331 = vmatprep.subr.bf16.mxu1 %v2306_v9  ;;  %v7568_v56 = vpop.f32.mrf.mxu0 }
 0x4eb   : >> { %5308 = vrcp.f32 %v2162_v59  ;;  %2332 = vmatpush2.bf16.xpose.msra.mxu1 %v2305_v28  ;;  %v2945_v44 = vadd.f32 %v7554_v4, %v7552_v13  ;;  %v5291_v53 = vpop.eup %5290  ;;  %9332 = vst [vmem:[#allocation135_spill] sm:$0xff] %v7568_v56  ;;  %v9333_v59 = vld [vmem:[#allocation43_spill] sm:$0xff] }
 0x4ec   : >> { %5310 = vpow2.f32 %v2805_v15  ;;  %v2650_v2 = vpop.xlane.xlu1 %2649  ;;  %v2266_v9 = vmul.f32 %v5291_v53, %v9333_v59  ;;  %v9335_v15 = vld [vmem:[#allocation116_spill] sm:$0xff] }
 0x4ed   : >> { %5312 = vpow2.f32 %v2807_v1  ;;  %v2743_v41 = vsub.f32 %v9329_v36, %v2650_v2  ;;  %v2744_v49 = vsub.f32 %v9330_v20, %v2650_v2  ;;  %2946 = vadd.xlane.f32.xlu0 %v2945_v44  ;;  %v9336_v44 = vld [vmem:[#allocation90_spill] sm:$0xff] }
 0x4ee   : >> { %v7562_v34 = vpop.eup %5292  ;;  %v2265_v2 = vmul.f32 %v5291_v53, %v9336_v44  ;;  %v9337_v36 = vld [vmem:[#allocation14_spill] sm:$0xff] }
 0x4ef   : >> { %9331 = vst [vmem:[#allocation142_spill] sm:$0xff] %v7562_v34  ;;  %v7564_v39 = vpop.eup %5294  ;;  %v2809_v50 = vmul.f32 1.442695, %v2743_v41  ;;  %v2811_v51 = vmul.f32 1.442695, %v2744_v49 }
 0x4f0   : >> { %v5297_v25 = vpop.eup %5296  ;;  %v2948_v46 = vadd.f32 %v7564_v39, %v7562_v34 }
 0x4f1   : >> { %v7573_v28 = vpop.eup %5298  ;;  %5314 = vpow2.f32 %v2809_v50  ;;  %3527 = vmax.xlane.f32.xlu0 %v3526_v37  ;;  %v2268_v1 = vmul.f32 %v5297_v25, %v9335_v15  ;;  %v2267_v20 = vmul.f32 %v5297_v25, %v9337_v36  ;;  %v3529_v50 = vmax.f32 %v7438_v40, %v7442_v52  ;;  %v7584_v37 = vpop.f32.mrf.mxu0  ;;  %v9344_v36 = vld [vmem:[#allocation56_spill] sm:$0xff] }
 0x4f2   : >> { %9334 = vst [vmem:[#allocation141_spill] sm:$0xff] %v7573_v28  ;;  %v7578_v41 = vpop.eup %5300  ;;  %5316 = vpow2.f32 %v2811_v51  ;;  %2949 = vadd.xlane.f32.xlu1 %v2948_v46  ;;  %9339 = vst [vmem:[#allocation138_spill] sm:$0xff] %v7584_v37  ;;  %v3520_v46 = vmax.f32 %v7388_v23, %v7400_v12 }
 0x4f3   : >> { %9338 = vst [vmem:[#allocation140_spill] sm:$0xff] %v7578_v41  ;;  %v2304_v49 = vpack.c.bf16 %v2268_v1, %v2266_v9  ;;  %v2303_v56 = vpack.c.bf16 %v2267_v20, %v2265_v2  ;;  %v2939_v38 = vadd.f32 %v7578_v41, %v7573_v28  ;;  %v5303_v59 = vpop.eup %5302  ;;  %v7592_v15 = vpop.f32.mrf.mxu0  ;;  %v9345_v20 = vld [vmem:[#allocation108_spill] sm:$0xff] }
 0x4f5   : >> { %2333 = vmatprep.subr.bf16.mxu1 %v2304_v49  ;;  %2940 = vadd.xlane.f32.xlu0 %v2939_v38  ;;  %v9343_v38 = vld [vmem:[#allocation39_spill] sm:$0xff]  ;;  %v2261_v49 = vmul.f32 %v5303_v59, %v9345_v20  ;;  %v7606_v13 = vpop.f32.mrf.mxu0 }
 0x4f6   : >> { %v7586_v53 = vpop.eup %5304  ;;  %2334 = vmatpush2.bf16.xpose.msra.mxu1 %v2303_v56  ;;  %3530 = vmax.xlane.f32.xlu1 %v3529_v50  ;;  %v2153_v25 = vpop.xlane.xlu0 %2152  ;;  %v2262_v2 = vmul.f32 %v5303_v59, %v9343_v38  ;;  %v9346_v50 = vld [vmem:[#allocation35_spill] sm:$0xff]  ;;  %v3523_v59 = vmax.f32 %v7406_v18, %v7410_v19 }
 0x4f7   : >> { %9340 = vst [vmem:[#allocation146_spill] sm:$0xff] %v7586_v53  ;;  %v7588_v51 = vpop.eup %5306  ;;  %5318 = vrcp.f32 %v2153_v25 }
 0x4f8   : >> { %9341 = vst [vmem:[#allocation145_spill] sm:$0xff] %v7588_v51  ;;  %v5309_v9 = vpop.eup %5308  ;;  %v2942_v1 = vadd.f32 %v7588_v51, %v7586_v53 }
 0x4f9   : >> { %v7596_v44 = vpop.eup %5310  ;;  %3521 = vmax.xlane.f32.xlu0 %v3520_v46  ;;  %v2264_v56 = vmul.f32 %v5309_v9, %v9344_v36  ;;  %v2263_v37 = vmul.f32 %v5309_v9, %v9346_v50 }
 0x4fa   : >> { %9342 = vst [vmem:[#allocation111_spill] sm:$0xff] %v7596_v44  ;;  %v7602_v28 = vpop.eup %5312  ;;  %2943 = vadd.xlane.f32.xlu1 %v2942_v1  ;;  %v2737_v41 = vpop.xlane.xlu0 %2736 }
 0x4fb   : >> { %9347 = vst [vmem:[#allocation61_spill] sm:$0xff] %v7602_v28  ;;  %v2801_v47 = vsub.f32 %v7147_v3, %v2737_v41  ;;  %v2802_v34 = vsub.f32 %v7156_v62, %v2737_v41  ;;  %v2302_v53 = vpack.c.bf16 %v2264_v56, %v2262_v2  ;;  %v2301_v51 = vpack.c.bf16 %v2263_v37, %v2261_v49  ;;  %v7618_v37 = vpop.f32.mrf.mxu0 }
 0x4fc   : >> { %v2933_v46 = vadd.f32 %v7602_v28, %v7596_v44  ;;  %v3514_v41 = vmax.f32 %v7350_v61, %v7358_v21  ;;  %v9385_v44 = vld [vmem:[#allocation63_spill] sm:$0xff] }
 0x4fd   : >> { %v2925_v38 = vmul.f32 1.442695, %v2801_v47  ;;  %v2927_v9 = vmul.f32 1.442695, %v2802_v34  ;;  %2335 = vmatprep.subr.bf16.mxu1 %v2302_v53  ;;  %v7626_v2 = vpop.f32.mrf.mxu0  ;;  %v9409_v21 = vld [vmem:[#allocation31_spill] sm:$0xff] }
 0x4fe   : >> { %v7612_v36 = vpop.eup %5314  ;;  %2336 = vmatpush2.bf16.xpose.msra.mxu1 %v2301_v51  ;;  %2934 = vadd.xlane.f32.xlu0 %v2933_v46  ;;  %v2147_v3 = vpop.xlane.xlu0 %2146  ;;  %v3517_v51 = vmax.f32 %v7366_v5, %v7374_v17  ;;  %v9408_v5 = vld [vmem:[#allocation41_spill] sm:$0xff] }
 0x4ff   : >> { %9348 = vst [vmem:[#allocation109_spill] sm:$0xff] %v7612_v36  ;;  %v7614_v62 = vpop.eup %5316  ;;  %5320 = vpow2.f32 %v2925_v38  ;;  %3524 = vmax.xlane.f32.xlu1 %v3523_v59 }
 0x500   : >> { %9349 = vst [vmem:[#allocation13_spill] sm:$0xff] %v7614_v62  ;;  %5322 = vpow2.f32 %v2927_v9  ;;  %v2156_v1 = vpop.xlane.xlu1 %2155  ;;  %v2936_v47 = vadd.f32 %v7614_v62, %v7612_v36  ;;  %v9386_v62 = vld [vmem:[#allocation105_spill] sm:$0xff] }
 0x501   : >> { %5324 = vrcp.f32 %v2156_v1 }
 0x502   : >> { %3515 = vmax.xlane.f32.xlu0 %v3514_v41  ;;  %v2731_v34 = vpop.xlane.xlu0 %2730  ;;  %5326 = vrcp.f32 %v2147_v3 }
 0x503   : >> { %2937 = vadd.xlane.f32.xlu1 %v2936_v47  ;;  %v2797_v53 = vsub.f32 %v7104_v8, %v2731_v34  ;;  %v2798_v25 = vsub.f32 %v7114_v22, %v2731_v34  ;;  %v7632_v22 = vpop.f32.mrf.mxu0 }
 0x504   : >> { %v2740_v56 = vpop.xlane.xlu1 %2739  ;;  %v5319_v1 = vpop.eup %5318 }
 0x505   : >> { %v2917_v20 = vmul.f32 1.442695, %v2797_v53  ;;  %v2919_v49 = vmul.f32 1.442695, %v2798_v25  ;;  %v2803_v50 = vsub.f32 %v7166_v55, %v2740_v56  ;;  %v2804_v46 = vsub.f32 %v7172_v57, %v2740_v56  ;;  %v7638_v3 = vpop.f32.mrf.mxu0 }
 0x506   : >> { %v7630_v59 = vpop.xlane.xlu0 %2140 }
 0x507   : >> { %5328 = vpow2.f32 %v2917_v20  ;;  %v2929_v38 = vmul.f32 1.442695, %v2803_v50  ;;  %v2931_v8 = vmul.f32 1.442695, %v2804_v46  ;;  %3518 = vmax.xlane.f32.xlu1 %v3517_v51 }
 0x508   : >> { %5330 = vpow2.f32 %v2919_v49  ;;  %v2150_v9 = vpop.xlane.xlu1 %2149 }
 0x509   : >> { %5332 = vpow2.f32 %v2929_v38  ;;  %v9352_v38 = vld [vmem:[#allocation98_spill] sm:$0xff] }
 0x50a   : >> { %5334 = vpow2.f32 %v2931_v8  ;;  %v2725_v41 = vpop.xlane.xlu0 %2724  ;;  %v2258_v8 = vmul.f32 %v5319_v1, %v9352_v38 }
 0x50b   : >> { %v2793_v47 = vsub.f32 %v7065_v54, %v2725_v41  ;;  %v2794_v55 = vsub.f32 %v7078_v29, %v2725_v41  ;;  %5336 = vrcp.f32 %v2150_v9  ;;  %v7649_v9 = vpop.f32.mrf.mxu0 }
 0x50c   : >> { %v7636_v57 = vpop.eup %5320  ;;  %v2734_v34 = vpop.xlane.xlu1 %2733 }
 0x50d   : >> { %9350 = vst [vmem:[#allocation62_spill] sm:$0xff] %v7636_v57  ;;  %v7640_v53 = vpop.eup %5322  ;;  %v2909_v25 = vmul.f32 1.442695, %v2793_v47  ;;  %v2911_v51 = vmul.f32 1.442695, %v2794_v55  ;;  %v2799_v56 = vsub.f32 %v7121_v33, %v2734_v34  ;;  %v2800_v20 = vsub.f32 %v7132_v11, %v2734_v34  ;;  %v9353_v33 = vld [vmem:[#allocation49_spill] sm:$0xff] }
 0x50e   : >> { %9351 = vst [vmem:[#allocation129_spill] sm:$0xff] %v7640_v53  ;;  %v7644_v49 = vpop.xlane.xlu0 %2134  ;;  %v3023_v54 = vadd.f32 %v7640_v53, %v7636_v57  ;;  %v5325_v29 = vpop.eup %5324  ;;  %v2257_v47 = vmul.f32 %v5319_v1, %v9353_v33  ;;  %v3508_v55 = vmax.f32 %v7311_v7, %v7323_v63  ;;  %v9358_v33 = vld [vmem:[#allocation26_spill] sm:$0xff]  ;;  %v9384_v63 = vld [vmem:[#allocation88_spill] sm:$0xff] }
 0x50f   : >> { %5338 = vpow2.f32 %v2909_v25  ;;  %v2921_v50 = vmul.f32 1.442695, %v2799_v56  ;;  %v2923_v46 = vmul.f32 1.442695, %v2800_v20  ;;  %v2260_v41 = vmul.f32 %v5325_v29, %v7293_v45  ;;  %v5327_v20 = vpop.eup %5326  ;;  %v7660_v45 = vpop.f32.mrf.mxu0 }
 0x510   : >> { %5340 = vpow2.f32 %v2911_v51  ;;  %3024 = vadd.xlane.f32.xlu0 %v3023_v54  ;;  %v2259_v11 = vmul.f32 %v5325_v29, %v7289_v58 }
 0x511   : >> { %5342 = vpow2.f32 %v2921_v50  ;;  %v2300_v34 = vpack.c.bf16 %v2260_v41, %v2258_v8 }
 0x512   : >> { %5344 = vpow2.f32 %v2923_v46  ;;  %v2719_v25 = vpop.xlane.xlu0 %2718  ;;  %v2299_v56 = vpack.c.bf16 %v2259_v11, %v2257_v47  ;;  %v3502_v47 = vmax.f32 %v9358_v33, %v7277_v32  ;;  %v9359_v11 = vld [vmem:[#allocation27_spill] sm:$0xff]  ;;  %v9383_v33 = vld [vmem:[#allocation96_spill] sm:$0xff] }
 0x513   : >> { %v2789_v38 = vsub.f32 %v7027_v30, %v2719_v25  ;;  %v2790_v51 = vsub.f32 %v7041_v60, %v2719_v25  ;;  %2337 = vmatprep.subr.bf16.mxu1 %v2300_v34  ;;  %v7670_v30 = vpop.f32.mrf.mxu0  ;;  %v9360_v34 = vld [vmem:[#allocation30_spill] sm:$0xff] }
 0x514   : >> { %v7658_v54 = vpop.eup %5328  ;;  %3509 = vmax.xlane.f32.xlu0 %v3508_v55  ;;  %2338 = vmatpush2.bf16.xpose.msra.mxu1 %v2299_v56  ;;  %v2254_v55 = vmul.f32 %v5327_v20, %v9359_v11  ;;  %v9361_v56 = vld [vmem:[#allocation15_spill] sm:$0xff] }
 0x515   : >> { %9354 = vst [vmem:[#allocation131_spill] sm:$0xff] %v7658_v54  ;;  %v7662_v58 = vpop.eup %5330  ;;  %v2901_v1 = vmul.f32 1.442695, %v2789_v38  ;;  %v2903_v29 = vmul.f32 1.442695, %v2790_v51  ;;  %v2253_v38 = vmul.f32 %v5327_v20, %v9361_v56  ;;  %v9362_v51 = vld [vmem:[#allocation36_spill] sm:$0xff]  ;;  %v7685_v57 = vpop.f32.mrf.mxu0 }
 0x516   : >> { %9355 = vst [vmem:[#allocation76_spill] sm:$0xff] %v7662_v58  ;;  %v7664_v50 = vpop.eup %5332  ;;  %v3017_v46 = vadd.f32 %v7662_v58, %v7658_v54  ;;  %v9364_v54 = vld [vmem:[#allocation54_spill] sm:$0xff]  ;;  %v9365_v58 = vld [vmem:[#allocation33_spill] sm:$0xff]  ;;  %v9369_v56 = vld [vmem:[#allocation59_spill] sm:$0xff] }
 0x517   : >> { %9356 = vst [vmem:[#allocation103_spill] sm:$0xff] %v7664_v50  ;;  %v7668_v8 = vpop.eup %5334  ;;  %5346 = vpow2.f32 %v2901_v1 }
 0x518   : >> { %9357 = vst [vmem:[#allocation68_spill] sm:$0xff] %v7668_v8  ;;  %5348 = vpow2.f32 %v2903_v29  ;;  %3018 = vadd.xlane.f32.xlu0 %v3017_v46  ;;  %v3026_v60 = vadd.f32 %v7668_v8, %v7664_v50  ;;  %v5337_v41 = vpop.eup %5336  ;;  %v3511_v50 = vmax.f32 %v9365_v58, %v9364_v54 }
 0x519   : >> { %5350 = vrcp.f32 %v7630_v59  ;;  %v2256_v25 = vmul.f32 %v5337_v41, %v9360_v34  ;;  %v2255_v1 = vmul.f32 %v5337_v41, %v9362_v51 }
 0x51a   : >> { %3027 = vadd.xlane.f32.xlu1 %v3026_v60  ;;  %v2144_v29 = vpop.xlane.xlu1 %2143 }
 0x51b   : >> { %5352 = vrcp.f32 %v2144_v29  ;;  %v2298_v8 = vpack.c.bf16 %v2256_v25, %v2254_v55  ;;  %v2297_v59 = vpack.c.bf16 %v2255_v1, %v2253_v38  ;;  %v9370_v29 = vld [vmem:[#allocation95_spill] sm:$0xff]  ;;  %v7697_v55 = vpop.f32.mrf.mxu0  ;;  %v9372_v38 = vld [vmem:[#allocation38_spill] sm:$0xff] }
 0x51c   : >> { %v7681_v46 = vpop.eup %5338  ;;  %3503 = vmax.xlane.f32.xlu0 %v3502_v47  ;;  %5354 = vrcp.f32 %v7644_v49 }
 0x51d   : >> { %9363 = vst [vmem:[#allocation17_spill] sm:$0xff] %v7681_v46  ;;  %v7687_v60 = vpop.eup %5340  ;;  %2339 = vmatprep.subr.bf16.mxu1 %v2298_v8 }
 0x51e   : >> { %9366 = vst [vmem:[#allocation24_spill] sm:$0xff] %v7687_v60  ;;  %v7689_v11 = vpop.eup %5342  ;;  %3512 = vmax.xlane.f32.xlu1 %v3511_v50  ;;  %v2728_v20 = vpop.xlane.xlu1 %2727  ;;  %v3011_v41 = vadd.f32 %v7687_v60, %v7681_v46  ;;  %2340 = vmatpush2.bf16.xpose.msra.mxu1 %v2297_v59  ;;  %v9371_v50 = vld [vmem:[#allocation34_spill] sm:$0xff] }
 0x51f   : >> { %9367 = vst [vmem:[#allocation124_spill] sm:$0xff] %v7689_v11  ;;  %v7693_v34 = vpop.eup %5344  ;;  %v2795_v51 = vsub.f32 %v9369_v56, %v2728_v20  ;;  %v2796_v53 = vsub.f32 %v9370_v29, %v2728_v20  ;;  %v3496_v1 = vmax.f32 %v9372_v38, %v9371_v50  ;;  %v9374_v56 = vld [vmem:[#allocation99_spill] sm:$0xff]  ;;  %v9375_v20 = vld [vmem:[#allocation37_spill] sm:$0xff]  ;;  %v7708_v60 = vpop.f32.mrf.mxu0 }
 0x520   : >> { %9368 = vst [vmem:[#allocation125_spill] sm:$0xff] %v7693_v34  ;;  %3012 = vadd.xlane.f32.xlu0 %v3011_v41  ;;  %v3020_v47 = vadd.f32 %v7693_v34, %v7689_v11  ;;  %v3505_v29 = vmax.f32 %v9375_v20, %v9374_v56  ;;  %v9377_v34 = vld [vmem:[#allocation16_spill] sm:$0xff]  ;;  %v9378_v56 = vld [vmem:[#allocation101_spill] sm:$0xff] }
 0x521   : >> { %v2913_v25 = vmul.f32 1.442695, %v2795_v51  ;;  %v2915_v8 = vmul.f32 1.442695, %v2796_v53  ;;  %v7714_v11 = vpop.f32.mrf.mxu0  ;;  %v9380_v38 = vld [vmem:[#allocation21_spill] sm:$0xff] }
 0x522   : >> { %3021 = vadd.xlane.f32.xlu1 %v3020_v47  ;;  %v2138_v46 = vpop.xlane.xlu1 %2137 }
 0x523   : >> { %5356 = vpow2.f32 %v2913_v25  ;;  %v7726_v28 = vpop.f32.mrf.mxu0 }
 0x524   : >> { %v7704_v59 = vpop.eup %5346  ;;  %5358 = vpow2.f32 %v2915_v8  ;;  %3497 = vmax.xlane.f32.xlu0 %v3496_v1  ;;  %v9379_v8 = vld [vmem:[#allocation69_spill] sm:$0xff] }
 0x525   : >> { %9373 = vst [vmem:[#allocation126_spill] sm:$0xff] %v7704_v59  ;;  %v7710_v41 = vpop.eup %5348  ;;  %5360 = vrcp.f32 %v2138_v46  ;;  %v9381_v46 = vld [vmem:[#allocation18_spill] sm:$0xff] }
 0x526   : >> { %9376 = vst [vmem:[#allocation73_spill] sm:$0xff] %v7710_v41  ;;  %v5351_v53 = vpop.eup %5350  ;;  %3506 = vmax.xlane.f32.xlu1 %v3505_v29  ;;  %v2977_v51 = vpop.xlane.xlu0 %2976  ;;  %v3005_v49 = vadd.f32 %v7710_v41, %v7704_v59  ;;  %v9382_v29 = vld [vmem:[#allocation123_spill] sm:$0xff]  ;;  %v3490_v59 = vmax.f32 %v9384_v63, %v9383_v33 }
 0x527   : >> { %v2722_v47 = vpop.xlane.xlu1 %2721  ;;  %v2250_v1 = vmul.f32 %v5351_v53, %v9379_v8  ;;  %v2249_v58 = vmul.f32 %v5351_v53, %v9381_v46  ;;  %5362 = vrcp.f32 %v2977_v51  ;;  %v9406_v33 = vld [vmem:[#allocation51_spill] sm:$0xff] }
 0x528   : >> { %v5353_v25 = vpop.eup %5352  ;;  %v2791_v50 = vsub.f32 %v9377_v34, %v2722_v47  ;;  %v2792_v20 = vsub.f32 %v9378_v56, %v2722_v47  ;;  %3006 = vadd.xlane.f32.xlu0 %v3005_v49 }
 0x529   : >> { %v2252_v54 = vmul.f32 %v5353_v25, %v9380_v38  ;;  %v2251_v32 = vmul.f32 %v5353_v25, %v9382_v29  ;;  %v9392_v29 = vld [vmem:[#allocation47_spill] sm:$0xff] }
 0x52a   : >> { %v2905_v41 = vmul.f32 1.442695, %v2791_v50  ;;  %v2907_v7 = vmul.f32 1.442695, %v2792_v20  ;;  %v2713_v36 = vpop.xlane.xlu0 %2712  ;;  %v5355_v50 = vpop.eup %5354 }
 0x52b   : >> { %v2785_v34 = vsub.f32 %v9385_v44, %v2713_v36  ;;  %v2786_v56 = vsub.f32 %v9386_v62, %v2713_v36  ;;  %v2980_v49 = vpop.xlane.xlu1 %2979  ;;  %v2296_v47 = vpack.c.bf16 %v2252_v54, %v2250_v1  ;;  %v2295_v8 = vpack.c.bf16 %v2251_v32, %v2249_v58  ;;  %v7730_v44 = vpop.f32.mrf.mxu0  ;;  %v9388_v36 = vld [vmem:[#allocation107_spill] sm:$0xff]  ;;  %v9389_v62 = vld [vmem:[#allocation77_spill] sm:$0xff] }
 0x52c   : >> { %5364 = vpow2.f32 %v2905_v41  ;;  %3491 = vmax.xlane.f32.xlu0 %v3490_v59  ;;  %v9391_v1 = vld [vmem:[#allocation23_spill] sm:$0xff] }
 0x52d   : >> { %5366 = vpow2.f32 %v2907_v7  ;;  %v2893_v38 = vmul.f32 1.442695, %v2785_v34  ;;  %v2895_v53 = vmul.f32 1.442695, %v2786_v56  ;;  %2341 = vmatprep.subr.bf16.mxu1 %v2296_v47  ;;  %v2246_v46 = vmul.f32 %v5355_v50, %v9391_v1  ;;  %v9393_v56 = vld [vmem:[#allocation48_spill] sm:$0xff]  ;;  %v9394_v47 = vld [vmem:[#allocation122_spill] sm:$0xff] }
 0x52e   : >> { %5368 = vrcp.f32 %v2980_v49  ;;  %2342 = vmatpush2.bf16.xpose.msra.mxu1 %v2295_v8  ;;  %v2245_v49 = vmul.f32 %v5355_v50, %v9393_v56 }
 0x52f   : >> { %5370 = vpow2.f32 %v2893_v38  ;;  %v2716_v20 = vpop.xlane.xlu1 %2715  ;;  %v7742_v38 = vpop.f32.mrf.mxu0 }
 0x530   : >> { %v7728_v51 = vpop.eup %5356  ;;  %5372 = vpow2.f32 %v2895_v53  ;;  %v2787_v32 = vsub.f32 %v9388_v36, %v2716_v20  ;;  %v2788_v54 = vsub.f32 %v9389_v62, %v2716_v20  ;;  %v9395_v36 = vld [vmem:[#allocation32_spill] sm:$0xff] }
 0x531   : >> { %9387 = vst [vmem:[#allocation58_spill] sm:$0xff] %v7728_v51  ;;  %v7734_v58 = vpop.eup %5358  ;;  %v7746_v1 = vpop.f32.mrf.mxu0 }
 0x532   : >> { %9390 = vst [vmem:[#allocation72_spill] sm:$0xff] %v7734_v58  ;;  %v5361_v7 = vpop.eup %5360  ;;  %v2897_v59 = vmul.f32 1.442695, %v2787_v32  ;;  %v2899_v41 = vmul.f32 1.442695, %v2788_v54  ;;  %v3014_v25 = vadd.f32 %v7734_v58, %v7728_v51  ;;  %v9396_v32 = vld [vmem:[#allocation46_spill] sm:$0xff] }
 0x533   : >> { %v2248_v34 = vmul.f32 %v5361_v7, %v9392_v29  ;;  %v2247_v8 = vmul.f32 %v5361_v7, %v9394_v47  ;;  %v3499_v62 = vmax.f32 %v9396_v32, %v9395_v36  ;;  %v9404_v58 = vld [vmem:[#allocation127_spill] sm:$0xff] }
 0x534   : >> { %5374 = vpow2.f32 %v2897_v59  ;;  %3015 = vadd.xlane.f32.xlu1 %v3014_v25  ;;  %v5363_v51 = vpop.eup %5362  ;;  %v9399_v59 = vld [vmem:[#allocation115_spill] sm:$0xff] }
 0x535   : >> { %5376 = vpow2.f32 %v2899_v41  ;;  %v2294_v53 = vpack.c.bf16 %v2248_v34, %v2246_v46  ;;  %v2293_v20 = vpack.c.bf16 %v2247_v8, %v2245_v49  ;;  %v2309_v25 = vrot.slane %v9399_v59, 2  ;;  %v9400_v34 = vld [vmem:[#allocation112_spill] sm:$0xff]  ;;  %v9401_v49 = vld [vmem:[#allocation114_spill] sm:$0xff] }
 0x536   : >> { %v2971_v54 = vpop.xlane.xlu0 %2970  ;;  %v9405_v59 = vld [vmem:[#allocation50_spill] sm:$0xff] }
 0x537   : >> { %2343 = vmatprep.subr.bf16.mxu1 %v2294_v53  ;;  %5378 = vrcp.f32 %v2971_v54  ;;  %v3089_v32 = vmul.f32 %v5363_v51, %v9405_v59  ;;  %v9411_v59 = vld [vmem:[#allocation60_spill] sm:$0xff] }
 0x538   : >> { %2344 = vmatpush2.bf16.xpose.msra.mxu1 %v2293_v20  ;;  %3500 = vmax.xlane.f32.xlu1 %v3499_v62  ;;  %v7759_v20 = vpop.f32.mrf.mxu0  ;;  %v9403_v62 = vld [vmem:[#allocation128_spill] sm:$0xff] }
 0x539   : >> { %v7748_v50 = vpop.eup %5364  ;;  %v3090_v54 = vmul.f32 %v5363_v51, %v9403_v62  ;;  %v3493_v62 = vmax.f32 %v9409_v21, %v9408_v5 }
 0x53a   : >> { %9397 = vst [vmem:[#allocation57_spill] sm:$0xff] %v7748_v50  ;;  %v7750_v7 = vpop.eup %5366  ;;  %v2707_v41 = vpop.xlane.xlu0 %2706 }
 0x53b   : >> { %9398 = vst [vmem:[#allocation22_spill] sm:$0xff] %v7750_v7  ;;  %v2974_v46 = vpop.xlane.xlu1 %2973  ;;  %v5369_v29 = vpop.eup %5368  ;;  %v2781_v56 = vsub.f32 %v9400_v34, %v2707_v41  ;;  %v2782_v47 = vsub.f32 %v9401_v49, %v2707_v41  ;;  %v3008_v8 = vadd.f32 %v7750_v7, %v7748_v50 }
 0x53c   : >> { %5380 = vrcp.f32 %v2974_v46  ;;  %v7757_v53 = vpop.eup %5370  ;;  %v3092_v36 = vmul.f32 %v5369_v29, %v9404_v58  ;;  %v3091_v63 = vmul.f32 %v5369_v29, %v9406_v33  ;;  %v9410_v58 = vld [vmem:[#allocation113_spill] sm:$0xff]  ;;  %v7773_v29 = vpop.f32.mrf.mxu0 }
 0x53d   : >> { %9402 = vst [vmem:[#allocation19_spill] sm:$0xff] %v7757_v53  ;;  %v7765_v17 = vpop.eup %5372  ;;  %v2885_v34 = vmul.f32 1.442695, %v2781_v56  ;;  %v2887_v41 = vmul.f32 1.442695, %v2782_v47  ;;  %3009 = vadd.xlane.f32.xlu1 %v3008_v8 }
 0x53e   : >> { %9407 = vst [vmem:[#allocation28_spill] sm:$0xff] %v7765_v17  ;;  %v3140_v46 = vpack.c.bf16 %v3092_v36, %v3090_v54  ;;  %v3139_v49 = vpack.c.bf16 %v3091_v63, %v3089_v32  ;;  %v2999_v7 = vadd.f32 %v7765_v17, %v7757_v53  ;;  %v7783_v47 = vpop.f32.mrf.mxu0 }
 0x53f   : >> { %v2710_v50 = vpop.xlane.xlu1 %2709  ;;  %5382 = vpow2.f32 %v2885_v34  ;;  %2346 = vmatmul.mubr.bf16.vlgmr.msra.gmra.mxu1 %v2309_v25  ;;  %v3580_v25 = vmax.f32 %v7746_v1, %v7759_v20  ;;  %9414 = vst [vmem:[#allocation94_spill] sm:$0xff] %v7783_v47  ;;  %v3583_v54 = vmax.f32 %v7773_v29, %v7783_v47 }
 0x540   : >> { %v2783_v51 = vsub.f32 %v9410_v58, %v2710_v50  ;;  %v2784_v33 = vsub.f32 %v9411_v59, %v2710_v50  ;;  %5384 = vpow2.f32 %v2887_v41  ;;  %3164 = vmatprep.subr.bf16.mxu1 %v3140_v46  ;;  %3000 = vadd.xlane.f32.xlu0 %v2999_v7  ;;  %v9415_v41 = vld [vmem:[#allocation119_spill] sm:$0xff]  ;;  %v9417_v58 = vld [vmem:[#allocation121_spill] sm:$0xff] }
 0x541   : >> { %v7775_v36 = vpop.eup %5374  ;;  %3165 = vmatpush1.bf16.xpose.msra.mxu1 %v3139_v49  ;;  %3494 = vmax.xlane.f32.xlu1 %v3493_v62  ;;  %v9416_v49 = vld [vmem:[#allocation25_spill] sm:$0xff] }
 0x542   : >> { %9412 = vst [vmem:[#allocation29_spill] sm:$0xff] %v7775_v36  ;;  %v2889_v63 = vmul.f32 1.442695, %v2783_v51  ;;  %v2891_v32 = vmul.f32 1.442695, %v2784_v33  ;;  %v7777_v56 = vpop.eup %5376 }
 0x543   : >> { %9413 = vst [vmem:[#allocation100_spill] sm:$0xff] %v7777_v56  ;;  %v3002_v50 = vadd.f32 %v7777_v56, %v7775_v36  ;;  %v9420_v36 = vld [vmem:[#allocation147_spill] sm:$0xff] }
 0x544   : >> { %5386 = vpow2.f32 %v2889_v63  ;;  %3581 = vmax.xlane.f32.xlu0 %v3580_v25  ;;  %v5379_v7 = vpop.eup %5378  ;;  %v9418_v63 = vld [vmem:[#allocation120_spill] sm:$0xff] }
 0x545   : >> { %5388 = vpow2.f32 %v2891_v32  ;;  %3003 = vadd.xlane.f32.xlu1 %v3002_v50  ;;  %v3086_v46 = vmul.f32 %v5379_v7, %v9415_v41  ;;  %v3085_v32 = vmul.f32 %v5379_v7, %v9418_v63  ;;  %v9419_v25 = vld [vmem:[#allocation144_spill] sm:$0xff]  ;;  %v9422_v7 = vld [vmem:[#allocation65_spill] sm:$0xff]  ;;  %v9423_v63 = vld [vmem:[#allocation110_spill] sm:$0xff] }
 0x546   : >> { %v2965_v8 = vpop.xlane.xlu0 %2964 }
 0x547   : >> { %5390 = vrcp.f32 %v2965_v8 }
 0x549   : >> { %v5381_v34 = vpop.eup %5380  ;;  %3584 = vmax.xlane.f32.xlu1 %v3583_v54 }
 0x54a   : >> { %v3088_v62 = vmul.f32 %v5381_v34, %v9416_v49  ;;  %v3087_v51 = vmul.f32 %v5381_v34, %v9417_v58  ;;  %v2701_v59 = vpop.xlane.xlu0 %2700  ;;  %v2968_v33 = vpop.xlane.xlu1 %2967 }
 0x54b   : >> { %v2777_v50 = vsub.f32 %v9419_v25, %v2701_v59  ;;  %v2778_v53 = vsub.f32 %v9420_v36, %v2701_v59  ;;  %5392 = vrcp.f32 %v2968_v33 }
 0x54c   : >> { %v3138_v56 = vpack.c.bf16 %v3088_v62, %v3086_v46  ;;  %v7793_v17 = vpop.eup %5382  ;;  %v3137_v8 = vpack.c.bf16 %v3087_v51, %v3085_v32  ;;  %v3577_v32 = vmax.f32 %v7730_v44, %v7742_v38 }
 0x54d   : >> { %9421 = vst [vmem:[#allocation93_spill] sm:$0xff] %v7793_v17  ;;  %v7795_v54 = vpop.eup %5384  ;;  %v2877_v41 = vmul.f32 1.442695, %v2777_v50  ;;  %v2879_v47 = vmul.f32 1.442695, %v2778_v53  ;;  %v3574_v53 = vmax.f32 %v7714_v11, %v7726_v28  ;;  %v9425_v50 = vld [vmem:[#allocation118_spill] sm:$0xff] }
 0x54e   : >> { %3166 = vmatprep.subr.bf16.mxu1 %v3138_v56  ;;  %v2704_v34 = vpop.xlane.xlu1 %2703  ;;  %v2993_v49 = vadd.f32 %v7795_v54, %v7793_v17 }
 0x54f   : >> { %3167 = vmatpush1.bf16.xpose.msra.mxu1 %v3137_v8  ;;  %5394 = vpow2.f32 %v2877_v41  ;;  %v2779_v58 = vsub.f32 %v9422_v7, %v2704_v34  ;;  %v2780_v36 = vsub.f32 %v9423_v63, %v2704_v34  ;;  %v9426_v41 = vld [vmem:[#allocation67_spill] sm:$0xff] }
 0x550   : >> { %5396 = vpow2.f32 %v2879_v47  ;;  %2994 = vadd.xlane.f32.xlu0 %v2993_v49  ;;  %v9427_v49 = vld [vmem:[#allocation117_spill] sm:$0xff] }
 0x551   : >> { %v7801_v59 = vpop.eup %5386  ;;  %v2881_v62 = vmul.f32 1.442695, %v2779_v58  ;;  %v2883_v51 = vmul.f32 1.442695, %v2780_v36  ;;  %v9428_v36 = vld [vmem:[#allocation130_spill] sm:$0xff] }
 0x552   : >> { %9424 = vst [vmem:[#allocation102_spill] sm:$0xff] %v7801_v59  ;;  %v7803_v46 = vpop.eup %5388 }
 0x553   : >> { %v2996_v56 = vadd.f32 %v7803_v46, %v7801_v59  ;;  %5398 = vpow2.f32 %v2881_v62 }
 0x554   : >> { %5400 = vpow2.f32 %v2883_v51  ;;  %3575 = vmax.xlane.f32.xlu0 %v3574_v53  ;;  %v5391_v33 = vpop.eup %5390 }
 0x555   : >> { %2997 = vadd.xlane.f32.xlu1 %v2996_v56  ;;  %v3082_v8 = vmul.f32 %v5391_v33, %v9425_v50  ;;  %v3081_v62 = vmul.f32 %v5391_v33, %v9428_v36  ;;  %v9429_v36 = vld [vmem:[#allocation79_spill] sm:$0xff] }
 0x556   : >> { %v2959_v47 = vpop.xlane.xlu0 %2958 }
 0x557   : >> { %5402 = vrcp.f32 %v2959_v47 }
 0x558   : >> { %v5393_v25 = vpop.eup %5392 }
 0x559   : >> { %3578 = vmax.xlane.f32.xlu1 %v3577_v32  ;;  %v3084_v34 = vmul.f32 %v5393_v25, %v9426_v41  ;;  %v3083_v7 = vmul.f32 %v5393_v25, %v9427_v49 }
 0x55a   : >> { %v2695_v58 = vpop.xlane.xlu0 %2694  ;;  %v2962_v63 = vpop.xlane.xlu1 %2961 }
 0x55b   : >> { %v2773_v51 = vsub.f32 %v9306_v6, %v2695_v58  ;;  %v2774_v53 = vsub.f32 %v9305_v48, %v2695_v58  ;;  %5404 = vrcp.f32 %v2962_v63  ;;  %v3136_v56 = vpack.c.bf16 %v3084_v34, %v3082_v8 }
 0x55c   : >> { %v7817_v17 = vpop.eup %5394  ;;  %v3135_v32 = vpack.c.bf16 %v3083_v7, %v3081_v62  ;;  %v3568_v7 = vmax.f32 %v7670_v30, %v7685_v57 }
 0x55d   : >> { %v7819_v47 = vpop.eup %5396  ;;  %v2869_v50 = vmul.f32 1.442695, %v2773_v51  ;;  %v2871_v59 = vmul.f32 1.442695, %v2774_v53  ;;  %3168 = vmatprep.subr.bf16.mxu1 %v3136_v56  ;;  %v9430_v51 = vld [vmem:[#allocation74_spill] sm:$0xff]  ;;  %v9431_v56 = vld [vmem:[#allocation85_spill] sm:$0xff] }
 0x55e   : >> { %3169 = vmatpush1.bf16.xpose.msra.mxu1 %v3135_v32  ;;  %v2698_v25 = vpop.xlane.xlu1 %2697  ;;  %v2987_v41 = vadd.f32 %v7819_v47, %v7817_v17 }
 0x55f   : >> { %5406 = vpow2.f32 %v2869_v50  ;;  %v2775_v6 = vsub.f32 %v9309_v14, %v2698_v25  ;;  %v2776_v48 = vsub.f32 %v9308_v26, %v2698_v25  ;;  %v3571_v26 = vmax.f32 %v7697_v55, %v7708_v60 }
 0x560   : >> { %v7825_v33 = vpop.eup %5398  ;;  %5408 = vpow2.f32 %v2871_v59  ;;  %2988 = vadd.xlane.f32.xlu0 %v2987_v41  ;;  %v9432_v41 = vld [vmem:[#allocation78_spill] sm:$0xff] }
 0x561   : >> { %v7827_v8 = vpop.eup %5400  ;;  %v2873_v34 = vmul.f32 1.442695, %v2775_v6  ;;  %v2875_v49 = vmul.f32 1.442695, %v2776_v48 }
 0x562   : >> { %v2990_v58 = vadd.f32 %v7827_v8, %v7825_v33 }
 0x563   : >> { %5410 = vpow2.f32 %v2873_v34 }
 0x564   : >> { %5412 = vpow2.f32 %v2875_v49  ;;  %3569 = vmax.xlane.f32.xlu0 %v3568_v7  ;;  %2991 = vadd.xlane.f32.xlu1 %v2990_v58  ;;  %v5403_v14 = vpop.eup %5402 }
 0x565   : >> { %v3078_v62 = vmul.f32 %v5403_v14, %v9429_v36  ;;  %v3077_v6 = vmul.f32 %v5403_v14, %v9432_v41 }
 0x566   : >> { %v2953_v59 = vpop.xlane.xlu0 %2952 }
 0x567   : >> { %5414 = vrcp.f32 %v2953_v59 }
 0x568   : >> { %v5405_v63 = vpop.eup %5404  ;;  %3572 = vmax.xlane.f32.xlu1 %v3571_v26 }
 0x569   : >> { %v3080_v53 = vmul.f32 %v5405_v63, %v9430_v51  ;;  %v3079_v32 = vmul.f32 %v5405_v63, %v9431_v56 }
 0x56a   : >> { %v3534_v50 = vpop.xlane.xlu0 %3533  ;;  %v2956_v25 = vpop.xlane.xlu1 %2955 }
 0x56b   : >> { %v3614_v48 = vsub.f32 %v7454_v10, %v3534_v50  ;;  %v3615_v34 = vsub.f32 %v7464_v27, %v3534_v50  ;;  %5416 = vrcp.f32 %v2956_v25  ;;  %v3134_v49 = vpack.c.bf16 %v3080_v53, %v3078_v62 }
 0x56c   : >> { %v7841_v7 = vpop.eup %5406  ;;  %v3133_v58 = vpack.c.bf16 %v3079_v32, %v3077_v6  ;;  %v3562_v32 = vmax.f32 %v7632_v22, %v7638_v3 }
 0x56d   : >> { %v7843_v26 = vpop.eup %5408  ;;  %v3706_v59 = vmul.f32 1.442695, %v3614_v48  ;;  %v3708_v36 = vmul.f32 1.442695, %v3615_v34  ;;  %3170 = vmatprep.subr.bf16.mxu1 %v3134_v49  ;;  %v9433_v49 = vld [vmem:[#allocation137_spill] sm:$0xff] }
 0x56e   : >> { %3171 = vmatpush1.bf16.xpose.msra.mxu1 %v3133_v58  ;;  %v3537_v63 = vpop.xlane.xlu1 %3536  ;;  %v2981_v51 = vadd.f32 %v7843_v26, %v7841_v7 }
 0x56f   : >> { %5418 = vpow2.f32 %v3706_v59  ;;  %v3616_v10 = vsub.f32 %v7470_v31, %v3537_v63  ;;  %v3617_v27 = vsub.f32 %v7474_v35, %v3537_v63  ;;  %v3565_v35 = vmax.f32 %v7649_v9, %v7660_v45 }
 0x570   : >> { %v7849_v14 = vpop.eup %5410  ;;  %5420 = vpow2.f32 %v3708_v36  ;;  %2982 = vadd.xlane.f32.xlu0 %v2981_v51 }
 0x571   : >> { %v7851_v62 = vpop.eup %5412  ;;  %v3710_v53 = vmul.f32 1.442695, %v3616_v10  ;;  %v3712_v56 = vmul.f32 1.442695, %v3617_v27 }
 0x572   : >> { %v2984_v50 = vadd.f32 %v7851_v62, %v7849_v14 }
 0x573   : >> { %5422 = vpow2.f32 %v3710_v53 }
 0x574   : >> { %5424 = vpow2.f32 %v3712_v56  ;;  %3563 = vmax.xlane.f32.xlu0 %v3562_v32  ;;  %2985 = vadd.xlane.f32.xlu1 %v2984_v50  ;;  %v5415_v31 = vpop.eup %5414 }
 0x575   : >> { %v3074_v6 = vmul.f32 %v5415_v31, %v7518_v16  ;;  %v3073_v34 = vmul.f32 %v5415_v31, %v7516_v43 }
 0x576   : >> { %v2947_v25 = vpop.xlane.xlu0 %2946 }
 0x577   : >> { %5426 = vrcp.f32 %v2947_v25  ;;  %v3556_v25 = vmax.f32 %v7592_v15, %v7606_v13 }
 0x578   : >> { %v5417_v41 = vpop.eup %5416  ;;  %3566 = vmax.xlane.f32.xlu1 %v3565_v35 }
 0x579   : >> { %v3076_v48 = vmul.f32 %v5417_v41, %v7528_v0  ;;  %v3075_v58 = vmul.f32 %v5417_v41, %v9433_v49 }
 0x57a   : >> { %v3528_v59 = vpop.xlane.xlu0 %3527 }
 0x57b   : >> { %v3610_v36 = vsub.f32 %v7422_v24, %v3528_v59  ;;  %v3611_v63 = vsub.f32 %v7432_v42, %v3528_v59  ;;  %v2950_v51 = vpop.xlane.xlu1 %2949  ;;  %v3132_v10 = vpack.c.bf16 %v3076_v48, %v3074_v6  ;;  %v3131_v27 = vpack.c.bf16 %v3075_v58, %v3073_v34 }
 0x57c   : >> { %v7865_v53 = vpop.eup %5418  ;;  %5428 = vrcp.f32 %v2950_v51 }
 0x57d   : >> { %v7867_v56 = vpop.eup %5420  ;;  %v3698_v16 = vmul.f32 1.442695, %v3610_v36  ;;  %v3700_v0 = vmul.f32 1.442695, %v3611_v63  ;;  %3172 = vmatprep.subr.bf16.mxu1 %v3132_v10  ;;  %v3559_v36 = vmax.f32 %v7618_v37, %v7626_v2 }
 0x57e   : >> { %v2941_v43 = vpop.xlane.xlu0 %2940  ;;  %3173 = vmatpush1.bf16.xpose.msra.mxu1 %v3131_v27  ;;  %v3820_v32 = vadd.f32 %v7867_v56, %v7865_v53 }
 0x57f   : >> { %5430 = vpow2.f32 %v3698_v16  ;;  %v3531_v24 = vpop.xlane.xlu1 %3530 }
 0x580   : >> { %v7871_v50 = vpop.eup %5422  ;;  %5432 = vpow2.f32 %v3700_v0  ;;  %v3612_v42 = vsub.f32 %v7438_v40, %v3531_v24  ;;  %v3613_v31 = vsub.f32 %v7442_v52, %v3531_v24  ;;  %3821 = vadd.xlane.f32.xlu0 %v3820_v32  ;;  %v9435_v24 = vld [vmem:[#allocation142_spill] sm:$0xff] }
 0x581   : >> { %v7875_v35 = vpop.eup %5424  ;;  %5434 = vrcp.f32 %v2941_v43  ;;  %v9434_v43 = vld [vmem:[#allocation71_spill] sm:$0xff] }
 0x582   : >> { %v3702_v41 = vmul.f32 1.442695, %v3612_v42  ;;  %v3704_v6 = vmul.f32 1.442695, %v3613_v31  ;;  %v3522_v48 = vpop.xlane.xlu0 %3521  ;;  %v3823_v34 = vadd.f32 %v7875_v35, %v7871_v50 }
 0x583   : >> { %v3606_v49 = vsub.f32 %v7388_v23, %v3522_v48  ;;  %v3607_v58 = vsub.f32 %v7400_v12, %v3522_v48  ;;  %v2944_v40 = vpop.xlane.xlu1 %2943 }
 0x584   : >> { %5436 = vpow2.f32 %v3702_v41  ;;  %3557 = vmax.xlane.f32.xlu0 %v3556_v25  ;;  %3824 = vadd.xlane.f32.xlu1 %v3823_v34  ;;  %v5427_v63 = vpop.eup %5426  ;;  %v9437_v34 = vld [vmem:[#allocation87_spill] sm:$0xff] }
 0x585   : >> { %5438 = vpow2.f32 %v3704_v6  ;;  %v3690_v52 = vmul.f32 1.442695, %v3606_v49  ;;  %v3692_v59 = vmul.f32 1.442695, %v3607_v58  ;;  %v3070_v16 = vmul.f32 %v5427_v63, %v7554_v4 }
 0x586   : >> { %5440 = vrcp.f32 %v2944_v40  ;;  %v3069_v32 = vmul.f32 %v5427_v63, %v9434_v43  ;;  %v9440_v63 = vld [vmem:[#allocation20_spill] sm:$0xff] }
 0x587   : >> { %5442 = vpow2.f32 %v3690_v52  ;;  %v2935_v51 = vpop.xlane.xlu0 %2934 }
 0x588   : >> { %5444 = vpow2.f32 %v3692_v59  ;;  %v3525_v10 = vpop.xlane.xlu1 %3524  ;;  %3560 = vmax.xlane.f32.xlu1 %v3559_v36 }
 0x589   : >> { %v5429_v23 = vpop.eup %5428  ;;  %v3608_v12 = vsub.f32 %v7406_v18, %v3525_v10  ;;  %v3609_v27 = vsub.f32 %v7410_v19, %v3525_v10  ;;  %5446 = vrcp.f32 %v2935_v51  ;;  %v9441_v10 = vld [vmem:[#allocation12_spill] sm:$0xff] }
 0x58a   : >> { %v3072_v0 = vmul.f32 %v5429_v23, %v7564_v39  ;;  %v3071_v42 = vmul.f32 %v5429_v23, %v9435_v24 }
 0x58b   : >> { %v3694_v31 = vmul.f32 1.442695, %v3608_v12  ;;  %v3696_v25 = vmul.f32 1.442695, %v3609_v27  ;;  %v3516_v41 = vpop.xlane.xlu0 %3515  ;;  %v9443_v27 = vld [vmem:[#allocation83_spill] sm:$0xff] }
 0x58c   : >> { %v7891_v6 = vpop.eup %5430  ;;  %v3602_v48 = vsub.f32 %v7350_v61, %v3516_v41  ;;  %v3603_v18 = vsub.f32 %v9437_v34, %v3516_v41  ;;  %v2938_v49 = vpop.xlane.xlu1 %2937  ;;  %v3130_v19 = vpack.c.bf16 %v3072_v0, %v3070_v16  ;;  %v3129_v58 = vpack.c.bf16 %v3071_v42, %v3069_v32  ;;  %v9444_v16 = vld [vmem:[#allocation70_spill] sm:$0xff] }
 0x58d   : >> { %9436 = vst [vmem:[#allocation136_spill] sm:$0xff] %v7891_v6  ;;  %v7895_v4 = vpop.eup %5432  ;;  %5448 = vpow2.f32 %v3694_v31  ;;  %v3550_v0 = vmax.f32 %v9444_v16, %v9443_v27 }
 0x58e   : >> { %9438 = vst [vmem:[#allocation134_spill] sm:$0xff] %v7895_v4  ;;  %5450 = vpow2.f32 %v3696_v25  ;;  %v3682_v39 = vmul.f32 1.442695, %v3602_v48  ;;  %v3684_v40 = vmul.f32 1.442695, %v3603_v18  ;;  %3174 = vmatprep.subr.bf16.mxu1 %v3130_v19  ;;  %v3814_v52 = vadd.f32 %v7895_v4, %v7891_v6  ;;  %v5435_v59 = vpop.eup %5434  ;;  %v9446_v25 = vld [vmem:[#allocation140_spill] sm:$0xff] }
 0x58f   : >> { %5452 = vrcp.f32 %v2938_v49  ;;  %3175 = vmatpush1.bf16.xpose.msra.mxu1 %v3129_v58  ;;  %v3066_v41 = vmul.f32 %v5435_v59, %v9446_v25  ;;  %v9447_v48 = vld [vmem:[#allocation145_spill] sm:$0xff]  ;;  %v9449_v19 = vld [vmem:[#allocation146_spill] sm:$0xff] }
 0x590   : >> { %5454 = vpow2.f32 %v3682_v39  ;;  %v3519_v61 = vpop.xlane.xlu1 %3518  ;;  %3815 = vadd.xlane.f32.xlu0 %v3814_v52  ;;  %v9448_v18 = vld [vmem:[#allocation141_spill] sm:$0xff] }
 0x591   : >> { %v7899_v36 = vpop.eup %5436  ;;  %5456 = vpow2.f32 %v3684_v40  ;;  %v3604_v51 = vsub.f32 %v9440_v63, %v3519_v61  ;;  %v3605_v23 = vsub.f32 %v9441_v10, %v3519_v61  ;;  %v3065_v49 = vmul.f32 %v5435_v59, %v9448_v18  ;;  %v9451_v63 = vld [vmem:[#allocation138_spill] sm:$0xff]  ;;  %v9458_v18 = vld [vmem:[#allocation61_spill] sm:$0xff] }
 0x592   : >> { %9439 = vst [vmem:[#allocation143_spill] sm:$0xff] %v7899_v36  ;;  %v7903_v12 = vpop.eup %5438  ;;  %v7942_v4 = vld [vmem:[%s6939_s20 + $0x8] sm:$0xff] }
 0x593   : >> { %9442 = vst [vmem:[#allocation139_spill] sm:$0xff] %v7903_v12  ;;  %v5441_v43 = vpop.eup %5440  ;;  %v3686_v32 = vmul.f32 1.442695, %v3604_v51  ;;  %v3688_v24 = vmul.f32 1.442695, %v3605_v23  ;;  %v3817_v42 = vadd.f32 %v7903_v12, %v7899_v36  ;;  %v9452_v51 = vld [vmem:[#allocation135_spill] sm:$0xff] }
 0x594   : >> { %v7909_v31 = vpop.eup %5442  ;;  %3551 = vmax.xlane.f32.xlu0 %v3550_v0  ;;  %v3068_v34 = vmul.f32 %v5441_v43, %v9447_v48  ;;  %v3067_v58 = vmul.f32 %v5441_v43, %v9449_v19  ;;  %v3553_v10 = vmax.f32 %v9452_v51, %v9451_v63  ;;  %v9454_v43 = vld [vmem:[#allocation133_spill] sm:$0xff]  ;;  %v9487_v63 = vld [vmem:[#allocation103_spill] sm:$0xff] }
 0x595   : >> { %9445 = vst [vmem:[#allocation92_spill] sm:$0xff] %v7909_v31  ;;  %v7915_v39 = vpop.eup %5444  ;;  %5458 = vpow2.f32 %v3686_v32  ;;  %3818 = vadd.xlane.f32.xlu1 %v3817_v42  ;;  %v9455_v32 = vld [vmem:[#allocation81_spill] sm:$0xff] }
 0x596   : >> { %9450 = vst [vmem:[#allocation53_spill] sm:$0xff] %v7915_v39  ;;  %5460 = vpow2.f32 %v3688_v24  ;;  %v3128_v40 = vpack.c.bf16 %v3068_v34, %v3066_v41  ;;  %v3127_v52 = vpack.c.bf16 %v3067_v58, %v3065_v49  ;;  %v3808_v61 = vadd.f32 %v7915_v39, %v7909_v31  ;;  %v5447_v23 = vpop.eup %5446  ;;  %v9459_v19 = vld [vmem:[#allocation13_spill] sm:$0xff]  ;;  %v9463_v39 = vld [vmem:[#allocation106_spill] sm:$0xff] }
 0x597   : >> { %v3544_v42 = vmax.f32 %v9455_v32, %v9454_v43  ;;  %v3062_v49 = vmul.f32 %v5447_v23, %v9458_v18  ;;  %v9465_v18 = vld [vmem:[#allocation82_spill] sm:$0xff] }
 0x598   : >> { %3176 = vmatprep.subr.bf16.mxu1 %v3128_v40  ;;  %3809 = vadd.xlane.f32.xlu0 %v3808_v61  ;;  %v9460_v40 = vld [vmem:[#allocation111_spill] sm:$0xff]  ;;  %v9461_v61 = vld [vmem:[#allocation109_spill] sm:$0xff] }
 0x599   : >> { %3177 = vmatpush1.bf16.xpose.msra.mxu1 %v3127_v52  ;;  %3554 = vmax.xlane.f32.xlu1 %v3553_v10  ;;  %v3025_v59 = vpop.xlane.xlu0 %3024  ;;  %v3061_v52 = vmul.f32 %v5447_v23, %v9460_v40 }
 0x59a   : >> { %v7921_v0 = vpop.eup %5448  ;;  %5462 = vrcp.f32 %v3025_v59 }
 0x59b   : >> { %9453 = vst [vmem:[#allocation52_spill] sm:$0xff] %v7921_v0  ;;  %v7925_v24 = vpop.eup %5450 }
 0x59c   : >> { %9456 = vst [vmem:[#allocation91_spill] sm:$0xff] %v7925_v24  ;;  %v5453_v25 = vpop.eup %5452  ;;  %3545 = vmax.xlane.f32.xlu0 %v3544_v42  ;;  %v3811_v41 = vadd.f32 %v7925_v24, %v7921_v0  ;;  %v9464_v42 = vld [vmem:[#allocation86_spill] sm:$0xff] }
 0x59d   : >> { %v7929_v48 = vpop.eup %5454  ;;  %v3510_v34 = vpop.xlane.xlu0 %3509  ;;  %v3064_v58 = vmul.f32 %v5453_v25, %v9459_v19  ;;  %v3063_v10 = vmul.f32 %v5453_v25, %v9461_v61  ;;  %v9466_v19 = vld [vmem:[#allocation132_spill] sm:$0xff] }
 0x59e   : >> { %9457 = vst [vmem:[#allocation64_spill] sm:$0xff] %v7929_v48  ;;  %v7935_v31 = vpop.eup %5456  ;;  %3812 = vadd.xlane.f32.xlu1 %v3811_v41  ;;  %v3598_v36 = vsub.f32 %v9463_v39, %v3510_v34  ;;  %v3599_v6 = vsub.f32 %v9464_v42, %v3510_v34  ;;  %v3547_v43 = vmax.f32 %v9466_v19, %v9465_v18  ;;  %v9469_v34 = vld [vmem:[#allocation84_spill] sm:$0xff]  ;;  %v7952_v61 = vpop.f32.mrf.mxu1 }
 0x59f   : >> { %9462 = vst [vmem:[#allocation40_spill] sm:$0xff] %v7935_v31  ;;  %v3126_v12 = vpack.c.bf16 %v3064_v58, %v3062_v49  ;;  %v3125_v0 = vpack.c.bf16 %v3063_v10, %v3061_v52  ;;  %v3802_v24 = vadd.f32 %v7935_v31, %v7929_v48  ;;  %v9470_v49 = vld [vmem:[#allocation42_spill] sm:$0xff]  ;;  %v9474_v42 = vld [vmem:[#allocation80_spill] sm:$0xff] }
 0x5a0   : >> { %v3674_v23 = vmul.f32 1.442695, %v3598_v36  ;;  %v3676_v40 = vmul.f32 1.442695, %v3599_v6  ;;  %v3538_v58 = vmax.f32 %v9470_v49, %v9469_v34  ;;  %v7956_v6 = vcombine.high %v7942_v4, %v7942_v4  ;;  %v7961_v59 = vpop.f32.mrf.mxu1 }
 0x5a1   : >> { %3178 = vmatprep.subr.bf16.mxu1 %v3126_v12  ;;  %3803 = vadd.xlane.f32.xlu0 %v3802_v24  ;;  %v3019_v25 = vpop.xlane.xlu0 %3018  ;;  %v9473_v24 = vld [vmem:[#allocation104_spill] sm:$0xff] }
 0x5a2   : >> { %v7946_v41 = vpop.eup %5458  ;;  %5464 = vpow2.f32 %v3674_v23  ;;  %3179 = vmatpush1.bf16.xpose.msra.mxu1 %v3125_v0  ;;  %3548 = vmax.xlane.f32.xlu1 %v3547_v43  ;;  %9471 = vst [vmem:[#allocation89_spill] sm:$0xff] %v7956_v6  ;;  %v9472_v0 = vld [vmem:[#allocation26_spill] sm:$0xff]  ;;  %v9475_v23 = vld [vmem:[#allocation75_spill] sm:$0xff]  ;;  %v1509_v31 = vpop.f32.mrf.mxu1 }
 0x5a3   : >> { %9467 = vst [vmem:[#allocation55_spill] sm:$0xff] %v7946_v41  ;;  %v7948_v39 = vpop.eup %5460  ;;  %5466 = vpow2.f32 %v3676_v40  ;;  %v3028_v52 = vpop.xlane.xlu1 %3027  ;;  %3196 = vmatprep.mubr.bf16.mxu1 %v7956_v6  ;;  %v3541_v40 = vmax.f32 %v9475_v23, %v9474_v42  ;;  %v9478_v31 = vld [vmem:[#allocation38_spill] sm:$0xff] }
 0x5a4   : >> { %9468 = vst [vmem:[#allocation97_spill] sm:$0xff] %v7948_v39  ;;  %v3805_v36 = vadd.f32 %v7948_v39, %v7946_v41  ;;  %5468 = vrcp.f32 %v3028_v52  ;;  %v9476_v41 = vld [vmem:[#allocation33_spill] sm:$0xff]  ;;  %v1510_v18 = vpop.f32.mrf.mxu1 }
 0x5a5   : >> { %3539 = vmax.xlane.f32.xlu0 %v3538_v58  ;;  %v3504_v12 = vpop.xlane.xlu0 %3503  ;;  %v9477_v58 = vld [vmem:[#allocation54_spill] sm:$0xff]  ;;  %5470 = vrcp.f32 %v3019_v25 }
 0x5a6   : >> { %3806 = vadd.xlane.f32.xlu1 %v3805_v36  ;;  %v3594_v43 = vsub.f32 %v9472_v0, %v3504_v12  ;;  %v3595_v10 = vsub.f32 %v9473_v24, %v3504_v12 }
 0x5a7   : >> { %v3513_v48 = vpop.xlane.xlu1 %3512  ;;  %v5463_v24 = vpop.eup %5462 }
 0x5a8   : >> { %v3666_v34 = vmul.f32 1.442695, %v3594_v43  ;;  %v3668_v49 = vmul.f32 1.442695, %v3595_v10  ;;  %v3600_v52 = vsub.f32 %v9476_v41, %v3513_v48  ;;  %v3601_v39 = vsub.f32 %v9477_v58, %v3513_v48  ;;  %v9479_v10 = vld [vmem:[#allocation34_spill] sm:$0xff] }
 0x5a9   : >> { %v3013_v6 = vpop.xlane.xlu0 %3012 }
 0x5aa   : >> { %5472 = vpow2.f32 %v3666_v34  ;;  %v3678_v36 = vmul.f32 1.442695, %v3600_v52  ;;  %v3680_v19 = vmul.f32 1.442695, %v3601_v39  ;;  %3542 = vmax.xlane.f32.xlu1 %v3541_v40  ;;  %v9482_v39 = vld [vmem:[#allocation37_spill] sm:$0xff] }
 0x5ab   : >> { %5474 = vpow2.f32 %v3668_v49  ;;  %v3022_v12 = vpop.xlane.xlu1 %3021  ;;  %v9483_v49 = vld [vmem:[#allocation99_spill] sm:$0xff] }
 0x5ac   : >> { %5476 = vpow2.f32 %v3678_v36 }
 0x5ad   : >> { %5478 = vpow2.f32 %v3680_v19  ;;  %v3498_v0 = vpop.xlane.xlu0 %3497 }
 0x5ae   : >> { %v3590_v43 = vsub.f32 %v9478_v31, %v3498_v0  ;;  %v3591_v42 = vsub.f32 %v9479_v10, %v3498_v0  ;;  %5480 = vrcp.f32 %v3022_v12  ;;  %v9484_v10 = vld [vmem:[#allocation129_spill] sm:$0xff]  ;;  %v9485_v12 = vld [vmem:[#allocation68_spill] sm:$0xff] }
 0x5af   : >> { %v7971_v41 = vpop.eup %5464  ;;  %v3507_v48 = vpop.xlane.xlu1 %3506  ;;  %v3122_v23 = vmul.f32 %v5463_v24, %v9484_v10 }
 0x5b0   : >> { %9480 = vst [vmem:[#allocation44_spill] sm:$0xff] %v7971_v41  ;;  %v7973_v25 = vpop.eup %5466  ;;  %v3658_v18 = vmul.f32 1.442695, %v3590_v43  ;;  %v3660_v34 = vmul.f32 1.442695, %v3591_v42  ;;  %v3596_v40 = vsub.f32 %v9482_v39, %v3507_v48  ;;  %v3597_v52 = vsub.f32 %v9483_v49, %v3507_v48  ;;  %v9486_v43 = vld [vmem:[#allocation62_spill] sm:$0xff] }
 0x5b1   : >> { %9481 = vst [vmem:[#allocation66_spill] sm:$0xff] %v7973_v25  ;;  %v3007_v58 = vpop.xlane.xlu0 %3006  ;;  %v3796_v19 = vadd.f32 %v7973_v25, %v7971_v41  ;;  %v5469_v36 = vpop.eup %5468  ;;  %v3121_v42 = vmul.f32 %v5463_v24, %v9486_v43  ;;  %v9488_v25 = vld [vmem:[#allocation88_spill] sm:$0xff] }
 0x5b2   : >> { %5482 = vpow2.f32 %v3658_v18  ;;  %v3670_v31 = vmul.f32 1.442695, %v3596_v40  ;;  %v3672_v0 = vmul.f32 1.442695, %v3597_v52  ;;  %v3124_v32 = vmul.f32 %v5469_v36, %v9485_v12  ;;  %v5471_v41 = vpop.eup %5470  ;;  %v9489_v40 = vld [vmem:[#allocation96_spill] sm:$0xff]  ;;  %v9493_v12 = vld [vmem:[#allocation131_spill] sm:$0xff] }
 0x5b3   : >> { %5484 = vpow2.f32 %v3660_v34  ;;  %3797 = vadd.xlane.f32.xlu0 %v3796_v19  ;;  %v3123_v39 = vmul.f32 %v5469_v36, %v9487_v63  ;;  %v9491_v36 = vld [vmem:[#allocation76_spill] sm:$0xff]  ;;  %v3117_v43 = vmul.f32 %v5471_v41, %v9493_v12 }
 0x5b4   : >> { %5486 = vpow2.f32 %v3670_v31  ;;  %v3156_v48 = vpack.c.bf16 %v3124_v32, %v3122_v23  ;;  %v3118_v31 = vmul.f32 %v5471_v41, %v9491_v36  ;;  %v9498_v41 = vld [vmem:[#allocation46_spill] sm:$0xff] }
 0x5b5   : >> { %5488 = vpow2.f32 %v3672_v0  ;;  %v3492_v49 = vpop.xlane.xlu0 %3491  ;;  %v3155_v51 = vpack.c.bf16 %v3123_v39, %v3121_v42  ;;  %v9492_v0 = vld [vmem:[#allocation125_spill] sm:$0xff]  ;;  %v9494_v42 = vld [vmem:[#allocation124_spill] sm:$0xff] }
 0x5b6   : >> { %v3586_v18 = vsub.f32 %v9488_v25, %v3492_v49  ;;  %v3587_v52 = vsub.f32 %v9489_v40, %v3492_v49  ;;  %3180 = vmatprep.subr.bf16.mxu1 %v3156_v48 }
 0x5b7   : >> { %v7985_v27 = vpop.eup %5472  ;;  %3181 = vmatpush2.bf16.xpose.msra.mxu1 %v3155_v51 }
 0x5b8   : >> { %9490 = vst [vmem:[#allocation45_spill] sm:$0xff] %v7985_v27  ;;  %v7987_v34 = vpop.eup %5474  ;;  %v3650_v19 = vmul.f32 1.442695, %v3586_v18  ;;  %v3652_v10 = vmul.f32 1.442695, %v3587_v52 }
 0x5b9   : >> { %v7989_v24 = vpop.eup %5476  ;;  %v3790_v63 = vadd.f32 %v7987_v34, %v7985_v27 }
 0x5ba   : >> { %v7993_v32 = vpop.eup %5478  ;;  %5490 = vpow2.f32 %v3650_v19 }
 0x5bb   : >> { %5492 = vpow2.f32 %v3652_v10  ;;  %3791 = vadd.xlane.f32.xlu0 %v3790_v63  ;;  %v3799_v23 = vadd.f32 %v7993_v32, %v7989_v24  ;;  %v5481_v25 = vpop.eup %5480 }
 0x5bc   : >> { %5494 = vrcp.f32 %v3013_v6  ;;  %v3120_v51 = vmul.f32 %v5481_v25, %v9492_v0  ;;  %v3119_v39 = vmul.f32 %v5481_v25, %v9494_v42  ;;  %v9499_v25 = vld [vmem:[#allocation32_spill] sm:$0xff] }
 0x5bd   : >> { %3800 = vadd.xlane.f32.xlu1 %v3799_v23  ;;  %v3016_v48 = vpop.xlane.xlu1 %3015 }
 0x5be   : >> { %5496 = vrcp.f32 %v3016_v48  ;;  %v3154_v18 = vpack.c.bf16 %v3120_v51, %v3118_v31  ;;  %v3153_v40 = vpack.c.bf16 %v3119_v39, %v3117_v43 }
 0x5bf   : >> { %v8001_v49 = vpop.eup %5482  ;;  %5498 = vrcp.f32 %v3007_v58 }
 0x5c0   : >> { %9495 = vst [vmem:[#allocation43_spill] sm:$0xff] %v8001_v49  ;;  %v8003_v52 = vpop.eup %5484  ;;  %3182 = vmatprep.subr.bf16.mxu1 %v3154_v18 }
 0x5c1   : >> { %9496 = vst [vmem:[#allocation116_spill] sm:$0xff] %v8003_v52  ;;  %v8005_v19 = vpop.eup %5486  ;;  %v3501_v6 = vpop.xlane.xlu1 %3500  ;;  %v3784_v10 = vadd.f32 %v8003_v52, %v8001_v49  ;;  %3183 = vmatpush2.bf16.xpose.msra.mxu1 %v3153_v40 }
 0x5c2   : >> { %9497 = vst [vmem:[#allocation90_spill] sm:$0xff] %v8005_v19  ;;  %v8009_v63 = vpop.eup %5488  ;;  %v3592_v23 = vsub.f32 %v9498_v41, %v3501_v6  ;;  %v3593_v36 = vsub.f32 %v9499_v25, %v3501_v6  ;;  %v9502_v41 = vld [vmem:[#allocation24_spill] sm:$0xff] }
 0x5c3   : >> { %3785 = vadd.xlane.f32.xlu0 %v3784_v10  ;;  %v3793_v31 = vadd.f32 %v8009_v63, %v8005_v19  ;;  %v9503_v25 = vld [vmem:[#allocation72_spill] sm:$0xff] }
 0x5c4   : >> { %v3662_v0 = vmul.f32 1.442695, %v3592_v23  ;;  %v3664_v51 = vmul.f32 1.442695, %v3593_v36 }
 0x5c5   : >> { %3794 = vadd.xlane.f32.xlu1 %v3793_v31  ;;  %v9504_v31 = vld [vmem:[#allocation17_spill] sm:$0xff] }
 0x5c6   : >> { %5500 = vpow2.f32 %v3662_v0  ;;  %v3010_v12 = vpop.xlane.xlu1 %3009 }
 0x5c7   : >> { %v8015_v43 = vpop.eup %5490  ;;  %5502 = vpow2.f32 %v3664_v51  ;;  %v9505_v51 = vld [vmem:[#allocation58_spill] sm:$0xff] }
 0x5c8   : >> { %9500 = vst [vmem:[#allocation14_spill] sm:$0xff] %v8015_v43  ;;  %v8017_v42 = vpop.eup %5492  ;;  %5504 = vrcp.f32 %v3010_v12 }
 0x5c9   : >> { %9501 = vst [vmem:[#allocation39_spill] sm:$0xff] %v8017_v42  ;;  %v5495_v39 = vpop.eup %5494  ;;  %v3001_v48 = vpop.xlane.xlu0 %3000  ;;  %v3778_v18 = vadd.f32 %v8017_v42, %v8015_v43 }
 0x5ca   : >> { %v3495_v40 = vpop.xlane.xlu1 %3494  ;;  %v3114_v23 = vmul.f32 %v5495_v39, %v9502_v41  ;;  %v3113_v0 = vmul.f32 %v5495_v39, %v9504_v31  ;;  %5506 = vrcp.f32 %v3001_v48  ;;  %v9508_v41 = vld [vmem:[#allocation22_spill] sm:$0xff]  ;;  %v9510_v31 = vld [vmem:[#allocation57_spill] sm:$0xff] }
 0x5cb   : >> { %v5497_v6 = vpop.eup %5496  ;;  %v3588_v10 = vsub.f32 %v9409_v21, %v3495_v40  ;;  %v3589_v58 = vsub.f32 %v9408_v5, %v3495_v40  ;;  %3779 = vadd.xlane.f32.xlu0 %v3778_v18 }
 0x5cc   : >> { %v3116_v36 = vmul.f32 %v5497_v6, %v9503_v25  ;;  %v3115_v12 = vmul.f32 %v5497_v6, %v9505_v51  ;;  %v5499_v39 = vpop.eup %5498  ;;  %v9509_v25 = vld [vmem:[#allocation126_spill] sm:$0xff] }
 0x5cd   : >> { %v3654_v49 = vmul.f32 1.442695, %v3588_v10  ;;  %v3656_v52 = vmul.f32 1.442695, %v3589_v58  ;;  %v3582_v19 = vpop.xlane.xlu0 %3581  ;;  %v9506_v10 = vld [vmem:[#allocation94_spill] sm:$0xff] }
 0x5ce   : >> { %v3646_v43 = vsub.f32 %v7746_v1, %v3582_v19  ;;  %v3647_v42 = vsub.f32 %v7759_v20, %v3582_v19  ;;  %v3004_v21 = vpop.xlane.xlu1 %3003  ;;  %v3152_v27 = vpack.c.bf16 %v3116_v36, %v3114_v23  ;;  %v3151_v5 = vpack.c.bf16 %v3115_v12, %v3113_v0 }
 0x5cf   : >> { %5508 = vpow2.f32 %v3654_v49  ;;  %v3109_v36 = vmul.f32 %v5499_v39, %v9509_v25 }
 0x5d0   : >> { %5510 = vpow2.f32 %v3656_v52  ;;  %v3770_v18 = vmul.f32 1.442695, %v3646_v43  ;;  %v3772_v40 = vmul.f32 1.442695, %v3647_v42  ;;  %3184 = vmatprep.subr.bf16.mxu1 %v3152_v27  ;;  %v9507_v43 = vld [vmem:[#allocation73_spill] sm:$0xff] }
 0x5d1   : >> { %5512 = vrcp.f32 %v3004_v21  ;;  %3185 = vmatpush2.bf16.xpose.msra.mxu1 %v3151_v5  ;;  %v3110_v42 = vmul.f32 %v5499_v39, %v9507_v43 }
 0x5d2   : >> { %5514 = vpow2.f32 %v3770_v18  ;;  %v3585_v48 = vpop.xlane.xlu1 %3584 }
 0x5d3   : >> { %v8029_v6 = vpop.eup %5500  ;;  %5516 = vpow2.f32 %v3772_v40  ;;  %v3648_v1 = vsub.f32 %v7773_v29, %v3585_v48  ;;  %v3649_v20 = vsub.f32 %v9506_v10, %v3585_v48 }
 0x5d4   : >> { %v8033_v19 = vpop.eup %5502 }
 0x5d5   : >> { %v5505_v58 = vpop.eup %5504  ;;  %v3774_v49 = vmul.f32 1.442695, %v3648_v1  ;;  %v3776_v52 = vmul.f32 1.442695, %v3649_v20  ;;  %v3787_v27 = vadd.f32 %v8033_v19, %v8029_v6 }
 0x5d6   : >> { %v3112_v23 = vmul.f32 %v5505_v58, %v9508_v41  ;;  %v3111_v0 = vmul.f32 %v5505_v58, %v9510_v31 }
 0x5d7   : >> { %5518 = vpow2.f32 %v3774_v49  ;;  %3788 = vadd.xlane.f32.xlu1 %v3787_v27  ;;  %v5507_v21 = vpop.eup %5506  ;;  %v9511_v49 = vld [vmem:[#allocation28_spill] sm:$0xff] }
 0x5d8   : >> { %5520 = vpow2.f32 %v3776_v52  ;;  %v3150_v29 = vpack.c.bf16 %v3112_v23, %v3110_v42  ;;  %v3149_v51 = vpack.c.bf16 %v3111_v0, %v3109_v36  ;;  %v3106_v52 = vmul.f32 %v5507_v21, %v9511_v49  ;;  %v9512_v27 = vld [vmem:[#allocation100_spill] sm:$0xff]  ;;  %v9513_v42 = vld [vmem:[#allocation19_spill] sm:$0xff]  ;;  %v9514_v23 = vld [vmem:[#allocation29_spill] sm:$0xff] }
 0x5d9   : >> { %v2995_v12 = vpop.xlane.xlu0 %2994  ;;  %v3105_v41 = vmul.f32 %v5507_v21, %v9513_v42 }
 0x5da   : >> { %3186 = vmatprep.subr.bf16.mxu1 %v3150_v29  ;;  %5522 = vrcp.f32 %v2995_v12 }
 0x5db   : >> { %3187 = vmatpush2.bf16.xpose.msra.mxu1 %v3149_v51 }
 0x5dc   : >> { %v8041_v5 = vpop.eup %5508 }
 0x5dd   : >> { %v8043_v18 = vpop.eup %5510  ;;  %v3576_v40 = vpop.xlane.xlu0 %3575 }
 0x5de   : >> { %v2998_v48 = vpop.xlane.xlu1 %2997  ;;  %v5513_v1 = vpop.eup %5512  ;;  %v3642_v39 = vsub.f32 %v7714_v11, %v3576_v40  ;;  %v3643_v10 = vsub.f32 %v7726_v28, %v3576_v40  ;;  %v3781_v20 = vadd.f32 %v8043_v18, %v8041_v5 }
 0x5df   : >> { %5524 = vrcp.f32 %v2998_v48  ;;  %v8049_v58 = vpop.eup %5514  ;;  %v3108_v43 = vmul.f32 %v5513_v1, %v9512_v27  ;;  %v3107_v25 = vmul.f32 %v5513_v1, %v9514_v23  ;;  %v9515_v27 = vld [vmem:[#allocation102_spill] sm:$0xff]  ;;  %v9516_v23 = vld [vmem:[#allocation93_spill] sm:$0xff] }
 0x5e0   : >> { %v8055_v36 = vpop.eup %5516  ;;  %v3762_v31 = vmul.f32 1.442695, %v3642_v39  ;;  %v3764_v11 = vmul.f32 1.442695, %v3643_v10  ;;  %3782 = vadd.xlane.f32.xlu1 %v3781_v20 }
 0x5e1   : >> { %v3148_v28 = vpack.c.bf16 %v3108_v43, %v3106_v52  ;;  %v3147_v0 = vpack.c.bf16 %v3107_v25, %v3105_v41  ;;  %v3868_v51 = vadd.f32 %v8055_v36, %v8049_v58 }
 0x5e2   : >> { %v3579_v29 = vpop.xlane.xlu1 %3578  ;;  %5526 = vpow2.f32 %v3762_v31 }
 0x5e3   : >> { %v3644_v12 = vsub.f32 %v7730_v44, %v3579_v29  ;;  %v3645_v40 = vsub.f32 %v7742_v38, %v3579_v29  ;;  %5528 = vpow2.f32 %v3764_v11  ;;  %3188 = vmatprep.subr.bf16.mxu1 %v3148_v28  ;;  %3869 = vadd.xlane.f32.xlu0 %v3868_v51 }
 0x5e4   : >> { %v8061_v21 = vpop.eup %5518  ;;  %3189 = vmatpush2.bf16.xpose.msra.mxu1 %v3147_v0 }
 0x5e5   : >> { %v3766_v48 = vmul.f32 1.442695, %v3644_v12  ;;  %v3768_v1 = vmul.f32 1.442695, %v3645_v40  ;;  %v8063_v39 = vpop.eup %5520 }
 0x5e6   : >> { %v3871_v10 = vadd.f32 %v8063_v39, %v8061_v21 }
 0x5e7   : >> { %5530 = vpow2.f32 %v3766_v48  ;;  %v5523_v20 = vpop.eup %5522 }
 0x5e8   : >> { %5532 = vpow2.f32 %v3768_v1  ;;  %3872 = vadd.xlane.f32.xlu1 %v3871_v10  ;;  %v3102_v38 = vmul.f32 %v5523_v20, %v7795_v54  ;;  %v3101_v25 = vmul.f32 %v5523_v20, %v9516_v23 }
 0x5e9   : >> { %v2989_v44 = vpop.xlane.xlu0 %2988 }
 0x5ea   : >> { %5534 = vrcp.f32 %v2989_v44 }
 0x5ec   : >> { %v5525_v49 = vpop.eup %5524 }
 0x5ed   : >> { %v3104_v52 = vmul.f32 %v5525_v49, %v7803_v46  ;;  %v3103_v43 = vmul.f32 %v5525_v49, %v9515_v27  ;;  %v3570_v42 = vpop.xlane.xlu0 %3569  ;;  %v2992_v41 = vpop.xlane.xlu1 %2991 }
 0x5ee   : >> { %v3638_v31 = vsub.f32 %v7670_v30, %v3570_v42  ;;  %v3639_v11 = vsub.f32 %v7685_v57, %v3570_v42  ;;  %5536 = vrcp.f32 %v2992_v41 }
 0x5ef   : >> { %v3146_v28 = vpack.c.bf16 %v3104_v52, %v3102_v38  ;;  %v8073_v0 = vpop.eup %5526  ;;  %v3145_v29 = vpack.c.bf16 %v3103_v43, %v3101_v25 }
 0x5f0   : >> { %v8075_v51 = vpop.eup %5528  ;;  %v3754_v54 = vmul.f32 1.442695, %v3638_v31  ;;  %v3756_v12 = vmul.f32 1.442695, %v3639_v11 }
 0x5f1   : >> { %3190 = vmatprep.subr.bf16.mxu1 %v3146_v28  ;;  %v3573_v46 = vpop.xlane.xlu1 %3572  ;;  %v3862_v40 = vadd.f32 %v8075_v51, %v8073_v0 }
 0x5f2   : >> { %3191 = vmatpush2.bf16.xpose.msra.mxu1 %v3145_v29  ;;  %5538 = vpow2.f32 %v3754_v54  ;;  %v3640_v30 = vsub.f32 %v7697_v55, %v3573_v46  ;;  %v3641_v57 = vsub.f32 %v7708_v60, %v3573_v46 }
 0x5f3   : >> { %5540 = vpow2.f32 %v3756_v12  ;;  %3863 = vadd.xlane.f32.xlu0 %v3862_v40 }
 0x5f4   : >> { %v8081_v48 = vpop.eup %5530  ;;  %v3758_v10 = vmul.f32 1.442695, %v3640_v30  ;;  %v3760_v20 = vmul.f32 1.442695, %v3641_v57 }
 0x5f5   : >> { %v8083_v1 = vpop.eup %5532 }
 0x5f6   : >> { %v3865_v44 = vadd.f32 %v8083_v1, %v8081_v48  ;;  %5542 = vpow2.f32 %v3758_v10 }
 0x5f7   : >> { %5544 = vpow2.f32 %v3760_v20  ;;  %v5535_v49 = vpop.eup %5534 }
 0x5f8   : >> { %3866 = vadd.xlane.f32.xlu1 %v3865_v44  ;;  %v3098_v60 = vmul.f32 %v5535_v49, %v7819_v47  ;;  %v3097_v41 = vmul.f32 %v5535_v49, %v7817_v17 }
 0x5f9   : >> { %v2983_v38 = vpop.xlane.xlu0 %2982 }
 0x5fa   : >> { %5546 = vrcp.f32 %v2983_v38 }
 0x5fb   : >> { %v5537_v52 = vpop.eup %5536 }
 0x5fc   : >> { %v3100_v55 = vmul.f32 %v5537_v52, %v7827_v8  ;;  %v3099_v27 = vmul.f32 %v5537_v52, %v7825_v33 }
 0x5fd   : >> { %v3564_v43 = vpop.xlane.xlu0 %3563  ;;  %v2986_v42 = vpop.xlane.xlu1 %2985 }
 0x5fe   : >> { %v3634_v23 = vsub.f32 %v7632_v22, %v3564_v43  ;;  %v3635_v25 = vsub.f32 %v7638_v3, %v3564_v43  ;;  %5548 = vrcp.f32 %v2986_v42  ;;  %v3144_v31 = vpack.c.bf16 %v3100_v55, %v3098_v60 }
 0x5ff   : >> { %v8093_v11 = vpop.eup %5538  ;;  %v3143_v28 = vpack.c.bf16 %v3099_v27, %v3097_v41  ;;  %v2347_v29 = vpop.f32.mrf.mxu1 }
 0x600   : >> { %v8095_v54 = vpop.eup %5540  ;;  %v3746_v47 = vmul.f32 1.442695, %v3634_v23  ;;  %v3748_v8 = vmul.f32 1.442695, %v3635_v25  ;;  %3192 = vmatprep.subr.bf16.mxu1 %v3144_v31  ;;  %v4049_v33 = vrot.slane %v2347_v29, 4 }
 0x601   : >> { %3193 = vmatpush2.bf16.xpose.msra.mxu1 %v3143_v28  ;;  %v3567_v12 = vpop.xlane.xlu1 %3566  ;;  %v3856_v17 = vadd.f32 %v8095_v54, %v8093_v11  ;;  %v2349_v22 = vpop.f32.mrf.mxu1 }
 0x602   : >> { %5550 = vpow2.f32 %v3746_v47  ;;  %v3636_v3 = vsub.f32 %v7649_v9, %v3567_v12  ;;  %v3637_v46 = vsub.f32 %v7660_v45, %v3567_v12  ;;  %v4060_v30 = vsel %vm4059_vm3, %v7952_v61, %v4049_v33 }
 0x603   : >> { %v8101_v40 = vpop.eup %5542  ;;  %5552 = vpow2.f32 %v3748_v8  ;;  %3857 = vadd.xlane.f32.xlu0 %v3856_v17  ;;  %v4050_v57 = vrot.slane %v2349_v22, 4  ;;  %v2351_v10 = vpop.f32.mrf.mxu1  ;;  %v8134_v17 = vcombine.low %v7942_v4, %v7942_v4 }
 0x604   : >> { %v8105_v20 = vpop.eup %5544  ;;  %v3750_v44 = vmul.f32 1.442695, %v3636_v3  ;;  %v3752_v49 = vmul.f32 1.442695, %v3637_v46 }
 0x605   : >> { %v3859_v9 = vadd.f32 %v8105_v20, %v8101_v40  ;;  %v4061_v45 = vsel %vm4059_vm3, %v7961_v59, %v4050_v57  ;;  %v2352_v38 = vpop.f32.mrf.mxu1 }
 0x606   : >> { %5554 = vpow2.f32 %v3750_v44  ;;  %v4797_v52 = vpack.c.bf16 %v4061_v45, %v4060_v30  ;;  %v9517_v45 = vld [vmem:[#allocation83_spill] sm:$0xff] }
 0x607   : >> { %5556 = vpow2.f32 %v3752_v49  ;;  %3860 = vadd.xlane.f32.xlu1 %v3859_v9  ;;  %v5547_v61 = vpop.eup %5546 }
 0x608   : >> { %4078 = vst [vmem:[%s4077_s21] sm:$0xff] %v4797_v52  ;;  %v3094_v27 = vmul.f32 %v5547_v61, %v7843_v26  ;;  %v3093_v23 = vmul.f32 %v5547_v61, %v7841_v7 }
 0x609   : >> { %v3822_v60 = vpop.xlane.xlu0 %3821 }
 0x60a   : >> { %5558 = vrcp.f32 %v3822_v60 }
 0x60b   : >> { %v5549_v55 = vpop.eup %5548 }
 0x60c   : >> { %v3096_v43 = vmul.f32 %v5549_v55, %v7851_v62  ;;  %v3095_v42 = vmul.f32 %v5549_v55, %v7849_v14 }
 0x60d   : >> { %v3558_v41 = vpop.xlane.xlu0 %3557  ;;  %v3825_v59 = vpop.xlane.xlu1 %3824 }
 0x60e   : >> { %v3630_v25 = vsub.f32 %v7592_v15, %v3558_v41  ;;  %v3631_v31 = vsub.f32 %v7606_v13, %v3558_v41  ;;  %5560 = vrcp.f32 %v3825_v59  ;;  %v3142_v28 = vpack.c.bf16 %v3096_v43, %v3094_v27  ;;  %v9519_v59 = vld [vmem:[#allocation138_spill] sm:$0xff] }
 0x60f   : >> { %v8120_v29 = vpop.eup %5550  ;;  %v3141_v47 = vpack.c.bf16 %v3095_v42, %v3093_v23  ;;  %v9518_v42 = vld [vmem:[#allocation135_spill] sm:$0xff] }
 0x610   : >> { %v8122_v8 = vpop.eup %5552  ;;  %v3738_v26 = vmul.f32 1.442695, %v3630_v25  ;;  %v3740_v33 = vmul.f32 1.442695, %v3631_v31  ;;  %3194 = vmatprep.subr.bf16.mxu1 %v3142_v28 }
 0x611   : >> { %3195 = vmatpush2.bf16.xpose.msra.mxu1 %v3141_v47  ;;  %v3561_v14 = vpop.xlane.xlu1 %3560  ;;  %v3850_v62 = vadd.f32 %v8122_v8, %v8120_v29 }
 0x612   : >> { %5562 = vpow2.f32 %v3738_v26  ;;  %v3632_v15 = vsub.f32 %v7618_v37, %v3561_v14  ;;  %v3633_v13 = vsub.f32 %v7626_v2, %v3561_v14 }
 0x613   : >> { %v8128_v7 = vpop.eup %5554  ;;  %5564 = vpow2.f32 %v3740_v33  ;;  %3851 = vadd.xlane.f32.xlu0 %v3850_v62  ;;  %v9520_v33 = vld [vmem:[#allocation81_spill] sm:$0xff] }
 0x614   : >> { %v8130_v12 = vpop.eup %5556  ;;  %v3742_v22 = vmul.f32 1.442695, %v3632_v15  ;;  %v3744_v3 = vmul.f32 1.442695, %v3633_v13  ;;  %v9521_v62 = vld [vmem:[#allocation133_spill] sm:$0xff] }
 0x615   : >> { %v3853_v46 = vadd.f32 %v8130_v12, %v8128_v7 }
 0x616   : >> { %5566 = vpow2.f32 %v3742_v22 }
 0x617   : >> { %5568 = vpow2.f32 %v3744_v3  ;;  %3854 = vadd.xlane.f32.xlu1 %v3853_v46  ;;  %v5559_v37 = vpop.eup %5558 }
 0x618   : >> { %3197 = vmatmul.mubr.bf16.vlgmr.msra.gmra.mxu1 %v8134_v17  ;;  %v3935_v57 = vmul.f32 %v5559_v37, %v7867_v56  ;;  %v3934_v4 = vmul.f32 %v5559_v37, %v7865_v53 }
 0x619   : >> { %v3816_v2 = vpop.xlane.xlu0 %3815 }
 0x61a   : >> { %5570 = vrcp.f32 %v3816_v2 }
 0x61b   : >> { %v5561_v30 = vpop.eup %5560 }
 0x61c   : >> { %v3937_v10 = vmul.f32 %v5561_v30, %v7875_v35  ;;  %v3936_v44 = vmul.f32 %v5561_v30, %v7871_v50 }
 0x61d   : >> { %v3552_v49 = vpop.xlane.xlu0 %3551 }
 0x61e   : >> { %v3626_v9 = vsub.f32 %v9444_v16, %v3552_v49  ;;  %v3627_v38 = vsub.f32 %v9517_v45, %v3552_v49  ;;  %v3819_v52 = vpop.xlane.xlu1 %3818  ;;  %v3985_v61 = vpack.c.bf16 %v3937_v10, %v3935_v57  ;;  %v3984_v60 = vpack.c.bf16 %v3936_v44, %v3934_v4  ;;  %v9522_v57 = vld [vmem:[#allocation132_spill] sm:$0xff]  ;;  %v9523_v4 = vld [vmem:[#allocation82_spill] sm:$0xff]  ;;  %v9525_v45 = vld [vmem:[#allocation139_spill] sm:$0xff] }
 0x61f   : >> { %v8145_v55 = vpop.eup %5562  ;;  %5572 = vrcp.f32 %v3819_v52  ;;  %v9524_v49 = vld [vmem:[#allocation134_spill] sm:$0xff]  ;;  %v9526_v52 = vld [vmem:[#allocation136_spill] sm:$0xff] }
 0x620   : >> { %v8147_v27 = vpop.eup %5564  ;;  %v3730_v56 = vmul.f32 1.442695, %v3626_v9  ;;  %v3732_v35 = vmul.f32 1.442695, %v3627_v38  ;;  %4006 = vmatprep.subr.bf16.mxu1 %v3985_v61 }
 0x621   : >> { %v3810_v53 = vpop.xlane.xlu0 %3809  ;;  %4007 = vmatpush1.bf16.xpose.msra.mxu1 %v3984_v60  ;;  %v3844_v50 = vadd.f32 %v8147_v27, %v8145_v55  ;;  %v9527_v60 = vld [vmem:[#allocation143_spill] sm:$0xff] }
 0x622   : >> { %5574 = vpow2.f32 %v3730_v56  ;;  %v3555_v16 = vpop.xlane.xlu1 %3554 }
 0x623   : >> { %v8151_v43 = vpop.eup %5566  ;;  %5576 = vpow2.f32 %v3732_v35  ;;  %v3628_v41 = vsub.f32 %v9518_v42, %v3555_v16  ;;  %v3629_v23 = vsub.f32 %v9519_v59, %v3555_v16  ;;  %3845 = vadd.xlane.f32.xlu0 %v3844_v50  ;;  %v9528_v42 = vld [vmem:[#allocation42_spill] sm:$0xff]  ;;  %v9529_v59 = vld [vmem:[#allocation84_spill] sm:$0xff] }
 0x624   : >> { %v8155_v25 = vpop.eup %5568  ;;  %5578 = vrcp.f32 %v3810_v53 }
 0x625   : >> { %v3734_v31 = vmul.f32 1.442695, %v3628_v41  ;;  %v3736_v28 = vmul.f32 1.442695, %v3629_v23  ;;  %v3546_v47 = vpop.xlane.xlu0 %3545  ;;  %v3847_v26 = vadd.f32 %v8155_v25, %v8151_v43 }
 0x626   : >> { %v3622_v14 = vsub.f32 %v9520_v33, %v3546_v47  ;;  %v3623_v15 = vsub.f32 %v9521_v62, %v3546_v47 }
 0x627   : >> { %5580 = vpow2.f32 %v3734_v31  ;;  %v3813_v13 = vpop.xlane.xlu1 %3812  ;;  %3848 = vadd.xlane.f32.xlu1 %v3847_v26  ;;  %v5571_v46 = vpop.eup %5570 }
 0x628   : >> { %5582 = vpow2.f32 %v3736_v28  ;;  %v3722_v22 = vmul.f32 1.442695, %v3622_v14  ;;  %v3724_v3 = vmul.f32 1.442695, %v3623_v15  ;;  %v3931_v9 = vmul.f32 %v5571_v46, %v9524_v49 }
 0x629   : >> { %5584 = vrcp.f32 %v3813_v13  ;;  %v3930_v61 = vmul.f32 %v5571_v46, %v9526_v52 }
 0x62a   : >> { %5586 = vpow2.f32 %v3722_v22  ;;  %v3804_v37 = vpop.xlane.xlu0 %3803 }
 0x62b   : >> { %5588 = vpow2.f32 %v3724_v3  ;;  %v3549_v2 = vpop.xlane.xlu1 %3548  ;;  %v9530_v3 = vld [vmem:[#allocation75_spill] sm:$0xff] }
 0x62c   : >> { %v5573_v30 = vpop.eup %5572  ;;  %v3624_v10 = vsub.f32 %v9522_v57, %v3549_v2  ;;  %v3625_v44 = vsub.f32 %v9523_v4, %v3549_v2  ;;  %5590 = vrcp.f32 %v3804_v37  ;;  %v9531_v37 = vld [vmem:[#allocation80_spill] sm:$0xff] }
 0x62d   : >> { %v3933_v38 = vmul.f32 %v5573_v30, %v9525_v45  ;;  %v3932_v56 = vmul.f32 %v5573_v30, %v9527_v60 }
 0x62e   : >> { %v3726_v35 = vmul.f32 1.442695, %v3624_v10  ;;  %v3728_v53 = vmul.f32 1.442695, %v3625_v44  ;;  %v3540_v50 = vpop.xlane.xlu0 %3539 }
 0x62f   : >> { %v8167_v16 = vpop.eup %5574  ;;  %v3618_v41 = vsub.f32 %v9528_v42, %v3540_v50  ;;  %v3619_v23 = vsub.f32 %v9529_v59, %v3540_v50  ;;  %v3807_v31 = vpop.xlane.xlu1 %3806  ;;  %v3983_v28 = vpack.c.bf16 %v3933_v38, %v3931_v9  ;;  %v3982_v47 = vpack.c.bf16 %v3932_v56, %v3930_v61  ;;  %v9532_v9 = vld [vmem:[#allocation53_spill] sm:$0xff]  ;;  %v9533_v38 = vld [vmem:[#allocation91_spill] sm:$0xff]  ;;  %v9534_v61 = vld [vmem:[#allocation92_spill] sm:$0xff] }
 0x630   : >> { %v8171_v26 = vpop.eup %5576  ;;  %5592 = vpow2.f32 %v3726_v35  ;;  %v9535_v56 = vld [vmem:[#allocation52_spill] sm:$0xff] }
 0x631   : >> { %5594 = vpow2.f32 %v3728_v53  ;;  %v3714_v33 = vmul.f32 1.442695, %v3618_v41  ;;  %v3716_v14 = vmul.f32 1.442695, %v3619_v23  ;;  %4008 = vmatprep.subr.bf16.mxu1 %v3983_v28  ;;  %v3838_v62 = vadd.f32 %v8171_v26, %v8167_v16  ;;  %v5579_v15 = vpop.eup %5578 }
 0x632   : >> { %5596 = vrcp.f32 %v3807_v31  ;;  %4009 = vmatpush1.bf16.xpose.msra.mxu1 %v3982_v47  ;;  %v3927_v45 = vmul.f32 %v5579_v15, %v9532_v9  ;;  %v3926_v60 = vmul.f32 %v5579_v15, %v9534_v61  ;;  %v9537_v15 = vld [vmem:[#allocation97_spill] sm:$0xff] }
 0x633   : >> { %5598 = vpow2.f32 %v3714_v33  ;;  %v3543_v13 = vpop.xlane.xlu1 %3542  ;;  %3839 = vadd.xlane.f32.xlu0 %v3838_v62 }
 0x634   : >> { %v8175_v22 = vpop.eup %5580  ;;  %5600 = vpow2.f32 %v3716_v14  ;;  %v3620_v46 = vsub.f32 %v9530_v3, %v3543_v13  ;;  %v3621_v2 = vsub.f32 %v9531_v37, %v3543_v13  ;;  %v9536_v14 = vld [vmem:[#allocation40_spill] sm:$0xff]  ;;  %v9539_v37 = vld [vmem:[#allocation55_spill] sm:$0xff] }
 0x635   : >> { %v8179_v30 = vpop.eup %5582  ;;  %v9538_v3 = vld [vmem:[#allocation64_spill] sm:$0xff] }
 0x636   : >> { %v5585_v57 = vpop.eup %5584  ;;  %v3718_v10 = vmul.f32 1.442695, %v3620_v46  ;;  %v3720_v4 = vmul.f32 1.442695, %v3621_v2  ;;  %v3841_v44 = vadd.f32 %v8179_v30, %v8175_v22 }
 0x637   : >> { %v8183_v49 = vpop.eup %5586  ;;  %v3929_v52 = vmul.f32 %v5585_v57, %v9533_v38  ;;  %v3928_v35 = vmul.f32 %v5585_v57, %v9535_v56 }
 0x638   : >> { %v8189_v53 = vpop.eup %5588  ;;  %5602 = vpow2.f32 %v3718_v10  ;;  %3842 = vadd.xlane.f32.xlu1 %v3841_v44 }
 0x639   : >> { %5604 = vpow2.f32 %v3720_v4  ;;  %v3981_v50 = vpack.c.bf16 %v3929_v52, %v3927_v45  ;;  %v3980_v42 = vpack.c.bf16 %v3928_v35, %v3926_v60  ;;  %v3832_v41 = vadd.f32 %v8189_v53, %v8183_v49  ;;  %v5591_v59 = vpop.eup %5590 }
 0x63a   : >> { %v3923_v62 = vmul.f32 %v5591_v59, %v9536_v14  ;;  %v3922_v46 = vmul.f32 %v5591_v59, %v9538_v3 }
 0x63b   : >> { %4010 = vmatprep.subr.bf16.mxu1 %v3981_v50  ;;  %3833 = vadd.xlane.f32.xlu0 %v3832_v41 }
 0x63c   : >> { %4011 = vmatpush1.bf16.xpose.msra.mxu1 %v3980_v42  ;;  %v3798_v10 = vpop.xlane.xlu0 %3797  ;;  %v9540_v42 = vld [vmem:[#allocation66_spill] sm:$0xff] }
 0x63d   : >> { %v8193_v23 = vpop.eup %5592  ;;  %5606 = vrcp.f32 %v3798_v10  ;;  %v9542_v10 = vld [vmem:[#allocation45_spill] sm:$0xff] }
 0x63e   : >> { %v8195_v31 = vpop.eup %5594 }
 0x63f   : >> { %v5597_v28 = vpop.eup %5596  ;;  %v3835_v47 = vadd.f32 %v8195_v31, %v8193_v23 }
 0x640   : >> { %v8199_v33 = vpop.eup %5598  ;;  %v3925_v13 = vmul.f32 %v5597_v28, %v9537_v15  ;;  %v3924_v2 = vmul.f32 %v5597_v28, %v9539_v37  ;;  %v9541_v28 = vld [vmem:[#allocation44_spill] sm:$0xff] }
 0x641   : >> { %v8205_v57 = vpop.eup %5600  ;;  %3836 = vadd.xlane.f32.xlu1 %v3835_v47 }
 0x642   : >> { %v3979_v4 = vpack.c.bf16 %v3925_v13, %v3923_v62  ;;  %v3978_v44 = vpack.c.bf16 %v3924_v2, %v3922_v46  ;;  %v3826_v9 = vadd.f32 %v8205_v57, %v8199_v33 }
 0x644   : >> { %4012 = vmatprep.subr.bf16.mxu1 %v3979_v4  ;;  %3827 = vadd.xlane.f32.xlu0 %v3826_v9  ;;  %v3792_v60 = vpop.xlane.xlu0 %3791 }
 0x645   : >> { %v8209_v45 = vpop.eup %5602  ;;  %4013 = vmatpush1.bf16.xpose.msra.mxu1 %v3978_v44  ;;  %v9543_v44 = vld [vmem:[#allocation90_spill] sm:$0xff] }
 0x646   : >> { %v8211_v38 = vpop.eup %5604  ;;  %v3801_v52 = vpop.xlane.xlu1 %3800 }
 0x647   : >> { %5608 = vrcp.f32 %v3801_v52  ;;  %v3829_v61 = vadd.f32 %v8211_v38, %v8209_v45 }
 0x648   : >> { %5610 = vrcp.f32 %v3792_v60  ;;  %v9544_v60 = vld [vmem:[#allocation89_spill] sm:$0xff] }
 0x649   : >> { %3830 = vadd.xlane.f32.xlu1 %v3829_v61 }
 0x64a   : >> { %v5607_v35 = vpop.eup %5606 }
 0x64b   : >> { %v3919_v41 = vmul.f32 %v5607_v35, %v9540_v42  ;;  %v3918_v47 = vmul.f32 %v5607_v35, %v9541_v28  ;;  %v9545_v42 = vld [vmem:[#allocation116_spill] sm:$0xff]  ;;  %v9546_v28 = vld [vmem:[#allocation43_spill] sm:$0xff] }
 0x64c   : >> { %v3786_v46 = vpop.xlane.xlu0 %3785 }
 0x64e   : >> { %v3795_v56 = vpop.xlane.xlu1 %3794 }
 0x64f   : >> { %5612 = vrcp.f32 %v3795_v56  ;;  %v4003_v56 = vrot.slane %v9544_v60, 2 }
 0x650   : >> { %5614 = vrcp.f32 %v3786_v46 }
 0x651   : >> { %4038 = vmatprep.mubr.bf16.mxu1 %v4003_v56 }
 0x654   : >> { %v5609_v50 = vpop.eup %5608 }
 0x655   : >> { %v3921_v59 = vmul.f32 %v5609_v50, %v7993_v32  ;;  %v3920_v14 = vmul.f32 %v5609_v50, %v7989_v24  ;;  %v5611_v13 = vpop.eup %5610  ;;  %v3780_v24 = vpop.xlane.xlu0 %3779 }
 0x656   : >> { %v3915_v37 = vmul.f32 %v5611_v13, %v7987_v34  ;;  %v3914_v4 = vmul.f32 %v5611_v13, %v9542_v10 }
 0x657   : >> { %v3977_v62 = vpack.c.bf16 %v3921_v59, %v3919_v41  ;;  %v3976_v15 = vpack.c.bf16 %v3920_v14, %v3918_v47 }
 0x659   : >> { %4014 = vmatprep.subr.bf16.mxu1 %v3977_v62 }
 0x65a   : >> { %4015 = vmatpush1.bf16.xpose.msra.mxu1 %v3976_v15 }
 0x65c   : >> { %v5613_v3 = vpop.eup %5612 }
 0x65d   : >> { %v3917_v2 = vmul.f32 %v5613_v3, %v8009_v63  ;;  %v3916_v9 = vmul.f32 %v5613_v3, %v9543_v44  ;;  %v5615_v34 = vpop.eup %5614 }
 0x65e   : >> { %v3911_v41 = vmul.f32 %v5615_v34, %v9545_v42  ;;  %v3910_v47 = vmul.f32 %v5615_v34, %v9546_v28 }
 0x65f   : >> { %v3975_v32 = vpack.c.bf16 %v3917_v2, %v3915_v37  ;;  %v3974_v52 = vpack.c.bf16 %v3916_v9, %v3914_v4  ;;  %v9547_v37 = vld [vmem:[#allocation39_spill] sm:$0xff]  ;;  %v9548_v4 = vld [vmem:[#allocation14_spill] sm:$0xff] }
 0x660   : >> { %v3789_v61 = vpop.xlane.xlu1 %3788 }
 0x661   : >> { %4016 = vmatprep.subr.bf16.mxu1 %v3975_v32  ;;  %5616 = vrcp.f32 %v3789_v61 }
 0x662   : >> { %4017 = vmatpush1.bf16.xpose.msra.mxu1 %v3974_v52  ;;  %5618 = vrcp.f32 %v3780_v24 }
 0x669   : >> { %v3783_v35 = vpop.xlane.xlu1 %3782 }
 0x66a   : >> { %5620 = vrcp.f32 %v3783_v35 }
 0x66c   : >> { %v3870_v63 = vpop.xlane.xlu0 %3869 }
 0x66d   : >> { %5622 = vrcp.f32 %v3870_v63 }
 0x66e   : >> { %v5617_v50 = vpop.eup %5616 }
 0x66f   : >> { %v3913_v59 = vmul.f32 %v5617_v50, %v8033_v19  ;;  %v3912_v14 = vmul.f32 %v5617_v50, %v8029_v6  ;;  %v5619_v3 = vpop.eup %5618 }
 0x670   : >> { %v3907_v2 = vmul.f32 %v5619_v3, %v9547_v37  ;;  %v3906_v44 = vmul.f32 %v5619_v3, %v9548_v4 }
 0x671   : >> { %v3873_v62 = vpop.xlane.xlu1 %3872  ;;  %v3973_v15 = vpack.c.bf16 %v3913_v59, %v3911_v41  ;;  %v3972_v13 = vpack.c.bf16 %v3912_v14, %v3910_v47 }
 0x672   : >> { %5624 = vrcp.f32 %v3873_v62 }
 0x673   : >> { %4018 = vmatprep.subr.bf16.mxu1 %v3973_v15 }
 0x674   : >> { %4019 = vmatpush1.bf16.xpose.msra.mxu1 %v3972_v13 }
 0x677   : >> { %v5621_v46 = vpop.eup %5620 }
 0x678   : >> { %v3909_v10 = vmul.f32 %v5621_v46, %v8043_v18  ;;  %v3908_v19 = vmul.f32 %v5621_v46, %v8041_v5 }
 0x67a   : >> { %v3971_v9 = vpack.c.bf16 %v3909_v10, %v3907_v2  ;;  %v3970_v32 = vpack.c.bf16 %v3908_v19, %v3906_v44  ;;  %v5623_v52 = vpop.eup %5622 }
 0x67b   : >> { %v3967_v60 = vmul.f32 %v5623_v52, %v8055_v36  ;;  %v3966_v35 = vmul.f32 %v5623_v52, %v8049_v58 }
 0x67c   : >> { %4020 = vmatprep.subr.bf16.mxu1 %v3971_v9  ;;  %v3864_v6 = vpop.xlane.xlu0 %3863 }
 0x67d   : >> { %4021 = vmatpush1.bf16.xpose.msra.mxu1 %v3970_v32  ;;  %5626 = vrcp.f32 %v3864_v6 }
 0x67f   : >> { %v5625_v61 = vpop.eup %5624 }
 0x680   : >> { %v3969_v56 = vmul.f32 %v5625_v61, %v8063_v39  ;;  %v3968_v18 = vmul.f32 %v5625_v61, %v8061_v21 }
 0x681   : >> { %v3867_v24 = vpop.xlane.xlu1 %3866 }
 0x682   : >> { %5628 = vrcp.f32 %v3867_v24  ;;  %v4001_v34 = vpack.c.bf16 %v3969_v56, %v3967_v60  ;;  %v4000_v5 = vpack.c.bf16 %v3968_v18, %v3966_v35 }
 0x684   : >> { %4022 = vmatprep.subr.bf16.mxu1 %v4001_v34 }
 0x685   : >> { %4023 = vmatpush2.bf16.xpose.msra.mxu1 %v4000_v5 }
 0x68a   : >> { %v5627_v63 = vpop.eup %5626 }
 0x68b   : >> { %v3963_v41 = vmul.f32 %v5627_v63, %v8075_v51  ;;  %v3962_v36 = vmul.f32 %v5627_v63, %v8073_v0 }
 0x68c   : >> { %v3858_v50 = vpop.xlane.xlu0 %3857 }
 0x68d   : >> { %5630 = vrcp.f32 %v3858_v50 }
 0x68f   : >> { %v5629_v42 = vpop.eup %5628 }
 0x690   : >> { %v3965_v59 = vmul.f32 %v5629_v42, %v8083_v1  ;;  %v3964_v39 = vmul.f32 %v5629_v42, %v8081_v48  ;;  %v3861_v58 = vpop.xlane.xlu1 %3860 }
 0x691   : >> { %5632 = vrcp.f32 %v3861_v58 }
 0x692   : >> { %v3999_v21 = vpack.c.bf16 %v3965_v59, %v3963_v41  ;;  %v3998_v28 = vpack.c.bf16 %v3964_v39, %v3962_v36 }
 0x694   : >> { %4024 = vmatprep.subr.bf16.mxu1 %v3999_v21 }
 0x695   : >> { %4025 = vmatpush2.bf16.xpose.msra.mxu1 %v3998_v28 }
 0x69a   : >> { %v5631_v47 = vpop.eup %5630 }
 0x69b   : >> { %v3959_v15 = vmul.f32 %v5631_v47, %v8095_v54  ;;  %v3958_v1 = vmul.f32 %v5631_v47, %v8093_v11 }
 0x69c   : >> { %v3852_v14 = vpop.xlane.xlu0 %3851 }
 0x69d   : >> { %5634 = vrcp.f32 %v3852_v14 }
 0x69e   : >> { %v5633_v62 = vpop.eup %5632 }
 0x69f   : >> { %v3961_v51 = vmul.f32 %v5633_v62, %v8105_v20  ;;  %v3960_v0 = vmul.f32 %v5633_v62, %v8101_v40 }
 0x6a0   : >> { %v3855_v13 = vpop.xlane.xlu1 %3854 }
 0x6a1   : >> { %5636 = vrcp.f32 %v3855_v13  ;;  %v3997_v48 = vpack.c.bf16 %v3961_v51, %v3959_v15  ;;  %v3996_v3 = vpack.c.bf16 %v3960_v0, %v3958_v1  ;;  %v4002_v15 = vrot.slane %v8134_v17, 2 }
 0x6a3   : >> { %4026 = vmatprep.subr.bf16.mxu1 %v3997_v48 }
 0x6a4   : >> { %4027 = vmatpush2.bf16.xpose.msra.mxu1 %v3996_v3 }
 0x6aa   : >> { %v5635_v46 = vpop.eup %5634 }
 0x6ab   : >> { %v3955_v10 = vmul.f32 %v5635_v46, %v8122_v8  ;;  %v3954_v20 = vmul.f32 %v5635_v46, %v8120_v29 }
 0x6ac   : >> { %v3846_v37 = vpop.xlane.xlu0 %3845 }
 0x6ad   : >> { %5638 = vrcp.f32 %v3846_v37 }
 0x6ae   : >> { %v5637_v2 = vpop.eup %5636 }
 0x6af   : >> { %v3957_v54 = vmul.f32 %v5637_v2, %v8130_v12  ;;  %v3956_v11 = vmul.f32 %v5637_v2, %v8128_v7 }
 0x6b0   : >> { %v3849_v4 = vpop.xlane.xlu1 %3848 }
 0x6b1   : >> { %5640 = vrcp.f32 %v3849_v4  ;;  %v3995_v40 = vpack.c.bf16 %v3957_v54, %v3955_v10  ;;  %v3994_v44 = vpack.c.bf16 %v3956_v11, %v3954_v20  ;;  %v4089_v10 = vld [vmem:[%s8411_s4 + $0x8] sm:$0xff] (%p631_p4)  ;;  %v4091_v54 = vld [vmem:[%s8411_s4 + $0x18] sm:$0xff] (%p631_p4)  ;;  %v5662_v20 = vld [vmem:[%s8410_s3] sm:$0xff] (%p631_p4)  }
 0x6b2   : > { %v4088_v11 = vld [vmem:[%s8411_s4] sm:$0xff] (%p631_p4)  ;;  %v4090_v4 = vld [vmem:[%s8411_s4 + $0x10] sm:$0xff] (%p631_p4) }
 0x6b3   : >> { %4028 = vmatprep.subr.bf16.mxu1 %v3995_v40  ;;  %v5663_v40 = vld [vmem:[%s8410_s3 + $0x8] sm:$0xff] (%p631_p4)  }
 0x6b4   : >> { %4029 = vmatpush2.bf16.xpose.msra.mxu1 %v3994_v44 }
 0x6ba   : >> { %v5639_v19 = vpop.eup %5638 }
 0x6bb   : >> { %v3951_v6 = vmul.f32 %v5639_v19, %v8147_v27  ;;  %v3950_v52 = vmul.f32 %v5639_v19, %v8145_v55 }
 0x6bc   : >> { %v3840_v9 = vpop.xlane.xlu0 %3839 }
 0x6bd   : >> { %5642 = vrcp.f32 %v3840_v9 }
 0x6be   : >> { %v5641_v32 = vpop.eup %5640 }
 0x6bf   : >> { %v3953_v8 = vmul.f32 %v5641_v32, %v8155_v25  ;;  %v3952_v12 = vmul.f32 %v5641_v32, %v8151_v43 }
 0x6c1   : >> { %v3843_v29 = vpop.xlane.xlu1 %3842  ;;  %v3993_v7 = vpack.c.bf16 %v3953_v8, %v3951_v6  ;;  %v3992_v61 = vpack.c.bf16 %v3952_v12, %v3950_v52 }
 0x6c2   : >> { %5644 = vrcp.f32 %v3843_v29 }
 0x6c3   : >> { %4030 = vmatprep.subr.bf16.mxu1 %v3993_v7 }
 0x6c4   : >> { %4031 = vmatpush2.bf16.xpose.msra.mxu1 %v3992_v61  ;;  %v3834_v24 = vpop.xlane.xlu0 %3833 }
 0x6c5   : >> { %5646 = vrcp.f32 %v3834_v24 }
 0x6ca   : >> { %v3837_v60 = vpop.xlane.xlu1 %3836  ;;  %v5643_v56 = vpop.eup %5642 }
 0x6cb   : >> { %5648 = vrcp.f32 %v3837_v60  ;;  %v3947_v25 = vmul.f32 %v5643_v56, %v8171_v26  ;;  %v3946_v43 = vmul.f32 %v5643_v56, %v8167_v16 }
 0x6cd   : >> { %v3828_v35 = vpop.xlane.xlu0 %3827 }
 0x6ce   : >> { %5650 = vrcp.f32 %v3828_v35 }
 0x6cf   : >> { %v5645_v27 = vpop.eup %5644 }
 0x6d0   : >> { %v3949_v55 = vmul.f32 %v5645_v27, %v8179_v30  ;;  %v3948_v18 = vmul.f32 %v5645_v27, %v8175_v22 }
 0x6d2   : >> { %v3831_v34 = vpop.xlane.xlu1 %3830  ;;  %v3991_v5 = vpack.c.bf16 %v3949_v55, %v3947_v25  ;;  %v3990_v63 = vpack.c.bf16 %v3948_v18, %v3946_v43  ;;  %v5647_v50 = vpop.eup %5646 }
 0x6d3   : >> { %5652 = vrcp.f32 %v3831_v34  ;;  %v3943_v59 = vmul.f32 %v5647_v50, %v8189_v53  ;;  %v3942_v30 = vmul.f32 %v5647_v50, %v8183_v49 }
 0x6d4   : >> { %4032 = vmatprep.subr.bf16.mxu1 %v3991_v5 }
 0x6d5   : >> { %4033 = vmatpush2.bf16.xpose.msra.mxu1 %v3990_v63 }
 0x6d8   : >> { %v5649_v42 = vpop.eup %5648  ;;  %v3198_v41 = vpop.f32.mrf.mxu1 }
 0x6d9   : >> { %v3945_v26 = vmul.f32 %v5649_v42, %v8195_v31  ;;  %v3944_v16 = vmul.f32 %v5649_v42, %v8193_v23 }
 0x6da   : >> { %v3200_v36 = vpop.f32.mrf.mxu1 }
 0x6db   : >> { %v3989_v22 = vpack.c.bf16 %v3945_v26, %v3943_v59  ;;  %v3988_v39 = vpack.c.bf16 %v3944_v16, %v3942_v30  ;;  %v5651_v21 = vpop.eup %5650 }
 0x6dc   : >> { %v3202_v58 = vpop.f32.mrf.mxu1  ;;  %v3939_v14 = vmul.f32 %v5651_v21, %v8205_v57  ;;  %v3938_v53 = vmul.f32 %v5651_v21, %v8199_v33 }
 0x6dd   : >> { %4034 = vmatprep.subr.bf16.mxu1 %v3989_v22 }
 0x6de   : >> { %4035 = vmatpush2.bf16.xpose.msra.mxu1 %v3988_v39  ;;  %v3203_v28 = vpop.f32.mrf.mxu1 }
 0x6e0   : >> { %v5653_v47 = vpop.eup %5652 }
 0x6e1   : >> { %v3941_v62 = vmul.f32 %v5653_v47, %v8211_v38  ;;  %v3940_v31 = vmul.f32 %v5653_v47, %v8209_v45  ;;  %v9549_v45 = vmov (%p631_p4), 0   ;;  %v4233_v47 = vld [vmem:[%s8414_s7] sm:$0xff] (%p631_p4) }
 0x6e2   : > { %4180 = vmatprep.mubr.bf16.mxu0 (%p631_p4), %v9549_v45  ;;  %5655 = vset.pattern.permute.xlu1 (%p631_p4), %v9549_v45 }
 0x6e3   : >> { %v3987_v49 = vpack.c.bf16 %v3941_v62, %v3939_v14  ;;  %v3986_v23 = vpack.c.bf16 %v3940_v31, %v3938_v53  ;;  %5654 = vset.pattern.permute.xlu0 (%p631_p4), %v9549_v45  ;;  %4099 = vperm.xlu1 (%p631_p4), %5655, %v4089_v10   ;;  %v4492_v14 = vld [vmem:[%s8412_s5 + $0x8] sm:$0xff] (%p631_p4)  ;;  %v4494_v62 = vld [vmem:[%s8412_s5 + $0x18] sm:$0xff] (%p631_p4)  ;;  %v4491_v31 = vld [vmem:[%s8412_s5] sm:$0xff] (%p631_p4) }
 0x6e4   : > { %4109 = vperm.xlu0 (%p631_p4), %5654, %v4091_v54   ;;  %v4524_v53 = vld [vmem:[%s8413_s6 + $0x8] sm:$0xff] (%p631_p4) }
 0x6e5   : >> { %4036 = vmatprep.subr.bf16.mxu1 %v3987_v49  ;;  %v4493_v49 = vld [vmem:[%s8412_s5 + $0x10] sm:$0xff] (%p631_p4) }
 0x6e6   : >> { %4037 = vmatpush2.bf16.xpose.msra.mxu1 %v3986_v23  ;;  %v4523_v23 = vld [vmem:[%s8413_s6] sm:$0xff] (%p631_p4) }
 0x6e7   : > { %4094 = vperm.xlu1 (%p631_p4), %5655, %v4088_v11  }
 0x6e8   : > { %4104 = vperm.xlu0 (%p631_p4), %5654, %v4090_v4  }
 0x6ed   : >> { %4039 = vmatmul.mubr.bf16.vlgmr.msra.gmra.mxu1 %v4002_v15 }
 0x6ee   : > { %4824 = vmatprep.mubr.msk.f32.mxu1 (%p631_p4), %vm433_vm0, %v4233_v47 }
 0x75e   : > { %v4100_v56 = vpop.permute.xlu1 (%p631_p4), %4099 }
 0x75f   : > { %v4110_v9 = vpop.permute.xlu0 (%p631_p4), %4109 }
 0x762   : > { %v4095_v50 = vpop.permute.xlu1 (%p631_p4), %4094 }
 0x763   : > { %v4105_v8 = vpop.permute.xlu0 (%p631_p4), %4104 }
 0x7ad   : >> { %v4040_v51 = vpop.f32.mrf.mxu1 }
 0x7ae   : >> { %v4055_v1 = vrot.slane %v4040_v51, 4 }
 0x7af   : >> { %v4042_v0 = vpop.f32.mrf.mxu1 }
 0x7b0   : >> { %v4056_v13 = vrot.slane %v4042_v0, 4  ;;  %v4062_v57 = vsel %vm4059_vm3, %v3198_v41, %v4055_v1 }
 0x7b1   : >> { %v4044_v48 = vpop.f32.mrf.mxu1  ;;  %633 = sbr.rel (!%p631_p4) target bundleno = 247 (0xf7), region = 93 }
 0x7b2   : >> { %v4063_v38 = vsel %vm4059_vm3, %v3200_v36, %v4056_v13  ;;  %v4234_v48 = vld [vmem:[%s8414_s7 + $0x8] sm:$0xff] (%p631_p4) }
 0x7b3   : >> { %v4798_v33 = vpack.c.bf16 %v4063_v38, %v4062_v57  ;;  %v4045_v3 = vpop.f32.mrf.mxu1  ;;  %v4235_v57 = vld [vmem:[%s8414_s7 + $0x10] sm:$0xff] (%p631_p4) }
 0x7b5   : >> { %4079 = vst [vmem:[%s4077_s21 + $0x8] sm:$0xff] %v4798_v33  ;;  %v4236_v33 = vld [vmem:[%s8414_s7 + $0x18] sm:$0xff] (%p631_p4) }
 0x7bc   : > { %v5656_v17 = vld [vmem:[#allocation3 + $0x14] ss:$8 sps:$4 sm:$0xff]   ;;  %v5658_v46 = vld [vmem:[#allocation3 + $0x10] ss:$8 sps:$4 sm:$0xff]   ;;  %v5659_v37 = vld [vmem:[#allocation3 + $0x4] ss:$8 sps:$4 sm:$0xff]  }
 0x7bd   : > { %4160 = vmatprep.subr.bf16.mxu0 %v5656_v17  ;;  %v5661_v2 = vld [vmem:[#allocation3] ss:$8 sps:$4 sm:$0xff]  }
 0x7be   : > { %4161 = vmatpush1.bf16.msra.mxu0 %v5658_v46 }
 0x7bf   : > { %4162 = vmatprep.subr.bf16.mxu0 %v5659_v37 }
 0x7c2   : > { %4163 = vmatpush1.bf16.msra.mxu0 %v5661_v2 }
 0x7c5   : > { %4768 = vmatmul.mubr.msk.bf16.vlgmr.msra.gmra.mxu0 %vm433_vm0, %v5662_v20 }
 0x7c6   : > { %4190 = vmatprep.mubr.bf16.mxu0 %v9549_v45 }
 0x7cd   : > { %4769 = vmatmul.mubr.msk.bf16.gmra.mxu0 %vm433_vm0, %v5663_v40 }
 0x885   : > { %v4182_v44 = vpop.f32.mrf.mxu0 }
 0x886   : > { %v8324_v26 = vadd.f32 %v4182_v44, %v4095_v50 }
 0x887   : > { %v4184_v19 = vpop.f32.mrf.mxu0 }
 0x888   : > { %v8318_v42 = vadd.f32 %v4184_v19, %v4095_v50  ;;  %v4213_v21 = vmul.f32 %v8324_v26, %v8324_v26 }
 0x889   : > { %v4186_v32 = vpop.f32.mrf.mxu0 }
 0x88a   : > { %v8308_v55 = vadd.f32 %v4186_v32, %v4100_v56  ;;  %v4201_v16 = vadd.f32 %v8318_v42, %v8324_v26  ;;  %v4214_v58 = vmul.f32 %v8318_v42, %v8318_v42 }
 0x88b   : > { %v4188_v6 = vpop.f32.mrf.mxu0 }
 0x88c   : > { %v8304_v27 = vadd.f32 %v4188_v6, %v4100_v56  ;;  %v4215_v59 = vmul.f32 %v8308_v55, %v8308_v55  ;;  %v4221_v28 = vadd.f32 %v4214_v58, %v4213_v21 }
 0x88d   : > { %v4192_v52 = vpop.f32.mrf.mxu0 }
 0x88e   : > { %v8296_v29 = vadd.f32 %v4192_v52, %v4105_v8  ;;  %v4216_v63 = vmul.f32 %v8304_v27, %v8304_v27  ;;  %v4204_v41 = vadd.f32 %v8304_v27, %v8308_v55 }
 0x88f   : > { %v4194_v12 = vpop.f32.mrf.mxu0 }
 0x890   : > { %v8298_v7 = vadd.f32 %v4194_v12, %v4105_v8  ;;  %v4224_v30 = vadd.f32 %v4216_v63, %v4215_v59  ;;  %v4217_v22 = vmul.f32 %v8296_v29, %v8296_v29 }
 0x891   : > { %v4196_v61 = vpop.f32.mrf.mxu0 }
 0x892   : > { %v8300_v24 = vadd.f32 %v4196_v61, %v4110_v9  ;;  %v4207_v60 = vadd.f32 %v8298_v7, %v8296_v29  ;;  %v4218_v36 = vmul.f32 %v8298_v7, %v8298_v7 }
 0x893   : > { %v4198_v35 = vpop.f32.mrf.mxu0 }
 0x894   : > { %v8306_v25 = vadd.f32 %v4198_v35, %v4110_v9  ;;  %4208 = vadd.xlane.f32.xlu1 %v4207_v60  ;;  %v4219_v18 = vmul.f32 %v8300_v24, %v8300_v24  ;;  %v4227_v39 = vadd.f32 %v4218_v36, %v4217_v22 }
 0x896   : > { %v4210_v43 = vadd.f32 %v8306_v25, %v8300_v24  ;;  %v4220_v34 = vmul.f32 %v8306_v25, %v8306_v25 }
 0x898   : > { %4211 = vadd.xlane.f32.xlu0 %v4210_v43  ;;  %v4230_v5 = vadd.f32 %v4220_v34, %v4219_v18  ;;  %v4526_v34 = vld [vmem:[%s8413_s6 + $0x18] sm:$0xff] }
 0x89a   : > { %4231 = vadd.xlane.f32.xlu1 %v4230_v5  ;;  %v4525_v5 = vld [vmem:[%s8413_s6 + $0x10] sm:$0xff] }
 0x89c   : > { %4205 = vadd.xlane.f32.xlu0 %v4204_v41 }
 0x89e   : > { %4225 = vadd.xlane.f32.xlu1 %v4224_v30 }
 0x8a0   : > { %4202 = vadd.xlane.f32.xlu0 %v4201_v16 }
 0x8a4   : > { %4228 = vadd.xlane.f32.xlu0 %v4227_v39 }
 0x8a8   : > { %4222 = vadd.xlane.f32.xlu0 %v4221_v28 }
 0x8af   : > { %4502 = vperm.xlu1 %5655, %v4492_v14  }
 0x8b3   : > { %4512 = vperm.xlu1 %5655, %v4494_v62  }
 0x8b7   : > { %4534 = vperm.xlu1 %5655, %v4524_v53  }
 0x8be   : > { %4497 = vperm.xlu0 %5654, %v4491_v31  }
 0x8c2   : > { %4507 = vperm.xlu0 %5654, %v4493_v49  }
 0x8c6   : > { %4529 = vperm.xlu0 %5654, %v4523_v23  }
 0x91d   : > { %v4209_v51 = vpop.xlane.xlu1 %4208 }
 0x921   : > { %v4212_v15 = vpop.xlane.xlu0 %4211 }
 0x922   : > { %4816 = vmatprep.subr.mxu1 %v4212_v15 }
 0x923   : > { %4817 = vmatpush3.msra.mxu1 %v4212_v15  ;;  %v4232_v0 = vpop.xlane.xlu1 %4231 }
 0x924   : > { %4818 = vmatprep.subr.mxu1 %v4209_v51 }
 0x925   : > { %4819 = vmatpush3.msra.mxu1 %v4209_v51  ;;  %v4206_v1 = vpop.xlane.xlu0 %4205 }
 0x926   : > { %4820 = vmatprep.subr.mxu1 %v4206_v1 }
 0x927   : > { %4821 = vmatpush3.msra.mxu1 %v4206_v1  ;;  %v4226_v3 = vpop.xlane.xlu1 %4225 }
 0x929   : > { %v4203_v13 = vpop.xlane.xlu0 %4202 }
 0x92a   : > { %4822 = vmatprep.subr.mxu1 %v4203_v13 }
 0x92b   : > { %4823 = vmatpush3.msra.mxu1 %v4203_v13  ;;  %v4503_v63 = vpop.permute.xlu1 %4502 }
 0x92c   : > { %4825 = vmatmul.mubr.msk.f32.vlgmr.msra.gmra.mxu1 %vm433_vm0, %v4234_v48  ;;  %4830 = vmatprep.subr.mxu1 %v4232_v0 }
 0x92d   : > { %4831 = vmatpush3.msra.mxu1 %v4232_v0  ;;  %v4229_v38 = vpop.xlane.xlu0 %4228  ;;  %4827 = vmatprep.mubr.msk.f32.mxu1 %vm433_vm0, %v4235_v57 }
 0x92e   : > { %4832 = vmatprep.subr.mxu1 %v4229_v38 }
 0x92f   : > { %4833 = vmatpush3.msra.mxu1 %v4229_v38  ;;  %v4513_v50 = vpop.permute.xlu1 %4512 }
 0x930   : > { %4828 = vmatmul.mubr.msk.f32.gmra.mxu1 %vm433_vm0, %v4236_v33  ;;  %4834 = vmatprep.subr.mxu1 %v4226_v3 }
 0x931   : > { %4835 = vmatpush3.msra.mxu1 %v4226_v3  ;;  %v4223_v17 = vpop.xlane.xlu0 %4222  ;;  %4838 = vmatprep.mubr.msk.f32.mxu1 %vm433_vm0, %v4233_v47 }
 0x932   : > { %4836 = vmatprep.subr.mxu1 %v4223_v17 }
 0x933   : > { %4837 = vmatpush3.msra.mxu1 %v4223_v17  ;;  %v4535_v41 = vpop.permute.xlu1 %4534 }
 0x934   : > { %4839 = vmatmul.mubr.msk.f32.vlgmr.msra.gmra.mxu1 %vm433_vm0, %v4234_v48 }
 0x935   : > { %4841 = vmatprep.mubr.msk.f32.mxu1 %vm433_vm0, %v4235_v57 }
 0x938   : > { %4842 = vmatmul.mubr.msk.f32.gmra.mxu1 %vm433_vm0, %v4236_v33 }
 0x939   : > { %v4498_v59 = vpop.permute.xlu0 %4497 }
 0x93d   : > { %v4508_v16 = vpop.permute.xlu0 %4507 }
 0x941   : > { %v4530_v22 = vpop.permute.xlu0 %4529 }
 0x9ec   : > { %v4826_v45 = vpop.f32.mrf.mxu1 }
 0x9ed   : > { %4442 = vperm.xlu0 %5654, %v4826_v45   ;;  %v4420_v10 = vmul.f32 %v4826_v45, %v4826_v45  ;;  %v9550_v45 = vld [vmem:[#allocation11_spill] sm:$0xff] }
 0x9ee   : > { %v4315_v46 = vpop.f32.mrf.mxu1 }
 0x9ef   : > { %4437 = vperm.xlu1 %5655, %v4315_v46   ;;  %v4419_v20 = vmul.f32 %v4315_v46, %v4315_v46 }
 0x9f0   : > { %v4829_v37 = vpop.f32.mrf.mxu1 }
 0x9f1   : > { %v4422_v40 = vmul.f32 %v4829_v37, %v4829_v37 }
 0x9f2   : > { %v4325_v2 = vpop.f32.mrf.mxu1 }
 0x9f3   : > { %4452 = vperm.xlu1 %5655, %v4829_v37   ;;  %v4421_v32 = vmul.f32 %v4325_v2, %v4325_v2  ;;  %v9551_v37 = vld [vmem:[#allocation9_spill] sm:$0xff] }
 0x9f4   : > { %v4840_v54 = vpop.f32.mrf.mxu1 }
 0x9f5   : > { %v4424_v11 = vsub.f32 %v4840_v54, %v4420_v10 }
 0x9f6   : > { %v4400_v4 = vpop.f32.mrf.mxu1 }
 0x9f7   : > { %v4428_v44 = vadd.f32 1e-05, %v4424_v11  ;;  %v4423_v19 = vsub.f32 %v4400_v4, %v4419_v20  ;;  %4447 = vperm.xlu1 %5655, %v4325_v2  }
 0x9f8   : > { %v4843_v9 = vpop.f32.mrf.mxu1 }
 0x9f9   : > { %5664 = vrsqrt.f32 %v4428_v44  ;;  %v4427_v6 = vadd.f32 1e-05, %v4423_v19  ;;  %v4426_v8 = vsub.f32 %v4843_v9, %v4422_v40  ;;  %v9553_v40 = vld [vmem:[#allocation8_spill] sm:$0xff] }
 0x9fa   : > { %v4410_v52 = vpop.f32.mrf.mxu1 }
 0x9fb   : > { %5666 = vrsqrt.f32 %v4427_v6  ;;  %v4430_v12 = vadd.f32 1e-05, %v4426_v8  ;;  %v4425_v61 = vsub.f32 %v4410_v52, %v4421_v32  ;;  %v9554_v52 = vld [vmem:[#allocation7_spill] sm:$0xff] }
 0x9fd   : > { %5668 = vrsqrt.f32 %v4430_v12  ;;  %v4429_v60 = vadd.f32 1e-05, %v4425_v61  ;;  %v9555_v61 = vld [vmem:[#allocation5_spill] sm:$0xff] }
 0x9ff   : > { %5670 = vrsqrt.f32 %v4429_v60 }
 0xa06   : > { %v5665_v56 = vpop.eup %5664 }
 0xa07   : > { %4470 = vperm.xlu1 %5655, %v5665_v56  }
 0xa08   : > { %v5667_v35 = vpop.eup %5666 }
 0xa09   : > { %4465 = vperm.xlu0 %5654, %v5667_v35  }
 0xa0a   : > { %v5669_v43 = vpop.eup %5668 }
 0xa0b   : > { %4480 = vperm.xlu1 %5655, %v5669_v43   ;;  %v9556_v43 = vld [vmem:[#allocation6_spill] sm:$0xff] }
 0xa0c   : > { %v5671_v18 = vpop.eup %5670 }
 0xa0d   : > { %4475 = vperm.xlu0 %5654, %v5671_v18  }
 0xa0f   : > { %4544 = vperm.xlu1 %5655, %v4526_v34   ;;  %v9557_v34 = vld [vmem:[#allocation4_spill] sm:$0xff] }
 0xa11   : > { %4539 = vperm.xlu0 %5654, %v4525_v5  }
 0xa68   : > { %v4443_v39 = vpop.permute.xlu0 %4442 }
 0xa69   : > { %v4457_v21 = vsub.f32 %v8308_v55, %v4443_v39  ;;  %v4458_v28 = vsub.f32 %v8304_v27, %v4443_v39 }
 0xa6a   : > { %v4438_v30 = vpop.permute.xlu1 %4437 }
 0xa6b   : > { %v4455_v14 = vsub.f32 %v8324_v26, %v4438_v30  ;;  %v4456_v62 = vsub.f32 %v8318_v42, %v4438_v30 }
 0xa6e   : > { %v4453_v36 = vpop.permute.xlu1 %4452 }
 0xa6f   : > { %v4461_v0 = vsub.f32 %v8300_v24, %v4453_v36  ;;  %v4462_v13 = vsub.f32 %v8306_v25, %v4453_v36 }
 0xa72   : > { %v4448_v58 = vpop.permute.xlu1 %4447 }
 0xa73   : > { %v4459_v42 = vsub.f32 %v8296_v29, %v4448_v58  ;;  %v4460_v26 = vsub.f32 %v8298_v7, %v4448_v58  ;;  %v9552_v29 = vld [vmem:[#allocation10_spill] sm:$0xff] }
 0xa82   : > { %v4471_v47 = vpop.permute.xlu1 %4470 }
 0xa83   : > { %v4485_v53 = vmul.f32 %v4471_v47, %v4457_v21  ;;  %v4486_v31 = vmul.f32 %v4471_v47, %v4458_v28 }
 0xa84   : > { %v4466_v49 = vpop.permute.xlu0 %4465 }
 0xa85   : > { %v4517_v23 = vmul.f32 %v4503_v63, %v4485_v53  ;;  %v4518_v15 = vmul.f32 %v4503_v63, %v4486_v31  ;;  %v4483_v51 = vmul.f32 %v4466_v49, %v4455_v14  ;;  %v4484_v1 = vmul.f32 %v4466_v49, %v4456_v62 }
 0xa86   : > { %v4481_v48 = vpop.permute.xlu1 %4480 }
 0xa87   : > { %v4549_v55 = vadd.f32 %v4535_v41, %v4517_v23  ;;  %v4550_v57 = vadd.f32 %v4535_v41, %v4518_v15  ;;  %v4515_v27 = vmul.f32 %v4498_v59, %v4483_v51  ;;  %v4516_v38 = vmul.f32 %v4498_v59, %v4484_v1 }
 0xa88   : > { %v4489_v33 = vmul.f32 %v4481_v48, %v4461_v0  ;;  %v4490_v3 = vmul.f32 %v4481_v48, %v4462_v13  ;;  %v4476_v17 = vpop.permute.xlu0 %4475 }
 0xa89   : > { %v4557_v46 = vadd.f32 %v4549_v55, %v9550_v45  ;;  %v4558_v24 = vadd.f32 %v4550_v57, %v9551_v37  ;;  %v4547_v2 = vadd.f32 %v4530_v22, %v4515_v27  ;;  %v4548_v25 = vadd.f32 %v4530_v22, %v4516_v38 }
 0xa8a   : > { %v4487_v10 = vmul.f32 %v4476_v17, %v4459_v42  ;;  %v4488_v54 = vmul.f32 %v4476_v17, %v4460_v26  ;;  %v4521_v20 = vmul.f32 %v4513_v50, %v4489_v33  ;;  %v4522_v11 = vmul.f32 %v4513_v50, %v4490_v3  ;;  %v4545_v4 = vpop.permute.xlu1 %4544 }
 0xa8b   : > { %4565 = vst [vmem:[%s5753_s13 + $0x10] sm:$0xff] %v4557_v46  ;;  %4566 = vst [vmem:[%s5753_s13 + $0x18] sm:$0xff] %v4558_v24  ;;  %v4555_v7 = vadd.f32 %v4547_v2, %v9552_v29  ;;  %v4556_v44 = vadd.f32 %v4548_v25, %v9553_v40 }
 0xa8c   : > { %v4553_v19 = vadd.f32 %v4545_v4, %v4521_v20  ;;  %v4554_v9 = vadd.f32 %v4545_v4, %v4522_v11  ;;  %v4519_v32 = vmul.f32 %v4508_v16, %v4487_v10  ;;  %v4520_v6 = vmul.f32 %v4508_v16, %v4488_v54  ;;  %v4540_v8 = vpop.permute.xlu0 %4539 }
 0xa8d   : > { %4563 = vst [vmem:[%s5753_s13] sm:$0xff] %v4555_v7  ;;  %4564 = vst [vmem:[%s5753_s13 + $0x8] sm:$0xff] %v4556_v44 }
 0xa8e   : > { %v4561_v12 = vadd.f32 %v4553_v19, %v9554_v52  ;;  %v4562_v60 = vadd.f32 %v4554_v9, %v9555_v61  ;;  %v4551_v56 = vadd.f32 %v4540_v8, %v4519_v32  ;;  %v4552_v35 = vadd.f32 %v4540_v8, %v4520_v6 }
 0xa90   : > { %4569 = vst [vmem:[%s5753_s13 + $0x30] sm:$0xff] %v4561_v12  ;;  %4570 = vst [vmem:[%s5753_s13 + $0x38] sm:$0xff] %v4562_v60  ;;  %v4559_v18 = vadd.f32 %v4551_v56, %v9556_v43  ;;  %v4560_v5 = vadd.f32 %v4552_v35, %v9557_v34 }
 0xa92   : > { %4567 = vst [vmem:[%s5753_s13 + $0x20] sm:$0xff] %v4559_v18  ;;  %4568 = vst [vmem:[%s5753_s13 + $0x28] sm:$0xff] %v4560_v5 }
 0xa93 PF: > { %s18_s27 = sadd.s32 1, %s5682_s27  }
 0xa94   : > { %p15_p5 = scmp.ge.s32.totalorder %s18_s27, 4  }
 0xa96   :  { %17 = sbr.rel (!%p15_p5) target bundleno = 1 (0x1), region = 104 }

</bundles_post_ra>
